<compile_context>
chip_gen: v6e
topology: v6e:2x2x1
jax: 0.10.0
libtpu: 0.0.40
codegen_flags: <defaults>
</compile_context>

<pallas_src>
import functools

import jax
import jax.numpy as jnp
from jax import lax
from jax.experimental import pallas as pl
from jax.experimental.pallas import tpu as pltpu

KSIZE = 7
PAD = 3


def _make_banded(w, width):
    """(7,7,Cin,Cout) HWIO kernel -> 7 banded (W*Cin, W*Cout) matrices.

    B[kh, wi*Cin+ci, wo*Cout+co] = w[kh, wi-wo+3, ci, co] if 0<=wi-wo+3<7 else 0
    so that  out[h, wo, co] = sum_kh  xrow_pad_h[h+kh, :] @ B[kh]
    implements the stride-1, pad-3 convolution (W-padding folded into B).
    """
    k, _, cin, cout = w.shape
    wi = jnp.arange(width)
    wo = jnp.arange(width)
    kw = wi[:, None] - wo[None, :] + PAD                 # (W, W)
    valid = (kw >= 0) & (kw < k)
    kw_c = jnp.clip(kw, 0, k - 1)
    b = w[:, kw_c]                                       # (7, W, W, Cin, Cout)
    b = jnp.where(valid[None, :, :, None, None], b, 0.0)
    b = b.transpose(0, 1, 3, 2, 4)                       # (7, W, Cin, W, Cout)
    return b.reshape(k, width * cin, width * cout)


def _im2col_fill(read_rows, dst_ref, *, n_blk, h, wc):
    """Scatter row-shifted activation copies into a kh-major im2col buffer.

    For output row hh of image b, column block kh of dst holds input row
    hh+kh-PAD (zero outside the image).  All slices are static.
    """
    for b in range(n_blk):
        base = b * h
        for kh in range(KSIZE):
            h0 = max(0, PAD - kh)          # first valid output row
            h1 = min(h, h + PAD - kh)      # one past last valid output row
            in0 = h0 + kh - PAD            # corresponding first input row
            dst_ref[pl.ds(base + h0, h1 - h0), pl.ds(kh * wc, wc)] = (
                read_rows(base + in0, h1 - h0))
            if h0 > 0:                     # top halo rows -> zero
                dst_ref[pl.ds(base, h0), pl.ds(kh * wc, wc)] = (
                    jnp.zeros((h0, wc), jnp.float32))
            if h1 < h:                     # bottom halo rows -> zero
                dst_ref[pl.ds(base + h1, h - h1), pl.ds(kh * wc, wc)] = (
                    jnp.zeros((h - h1, wc), jnp.float32))


def fused_kernel(x1_ref, x2_ref, w1_ref, w2_ref, bias_ref, out_ref,
                 v3_ref, a1_ref, colA_ref, colB_ref, colC_ref, *, n_blk, h):
    """N_BLK batch images: the full 4-conv graph, all intermediates in VMEM."""
    wc = out_ref.shape[2]                                # W * C (lane-dense)

    bias = bias_ref[...]                                 # (2, WC) f32
    bias1 = bias[0:1, :]
    bias2 = bias[1:2, :]
    w1 = w1_ref[...]                                     # (7*WC, WC) bf16
    w2 = w2_ref[...]

    # ---- Stage A: v1 = conv1(x1), a1 = conv2(x1) (shared im2col LHS) -----
    _im2col_fill(lambda r0, ln: x1_ref[0, pl.ds(r0, ln), :], colA_ref,
                 n_blk=n_blk, h=h, wc=wc)
    colA = colA_ref[...].astype(jnp.bfloat16)
    v1 = jnp.dot(colA, w1, preferred_element_type=jnp.float32) + bias1
    a1 = jnp.dot(colA, w2, preferred_element_type=jnp.float32) + bias2

    # v3 = relu(v1 + x2); stash v3 / a1 in VMEM as im2col sources.
    v3_ref[...] = jnp.maximum(v1 + x2_ref[0], 0.0)
    a1_ref[...] = a1

    # ---- Stage B+C: out = relu(conv1(v3) + conv2(a1)) ---------------------
    _im2col_fill(lambda r0, ln: v3_ref[pl.ds(r0, ln), :], colB_ref,
                 n_blk=n_blk, h=h, wc=wc)
    _im2col_fill(lambda r0, ln: a1_ref[pl.ds(r0, ln), :], colC_ref,
                 n_blk=n_blk, h=h, wc=wc)
    acc = jnp.dot(colB_ref[...].astype(jnp.bfloat16), w1,
                  preferred_element_type=jnp.float32)
    acc = acc + jnp.dot(colC_ref[...].astype(jnp.bfloat16), w2,
                        preferred_element_type=jnp.float32)
    out_ref[0] = jnp.maximum(acc + bias1 + bias2, 0.0).astype(out_ref.dtype)


def _pick_batch_block(n, h, target_m=256):
    """Largest divisor of n with n_blk*h <= target_m (MXU M utilization)."""
    nb = 1
    for cand in range(1, n + 1):
        if n % cand == 0 and cand * h <= target_m:
            nb = cand
    return nb


def model_forward(x1, x2, params):
    """Pallas implementation of Model.forward (NHWC activations, HWIO weights)."""
    w1, b1, w2, b2 = params
    N, H, W, C = x1.shape
    WC = W * C
    assert WC % 128 == 0 and H % 8 == 0, "test shapes must be TPU-tile friendly"

    n_blk = _pick_batch_block(N, H)
    n_steps = N // n_blk
    M = n_blk * H

    # Banded weight matrices: kw taps + W zero-padding folded into K; kh is
    # the major part of K (matches the im2col layout).  bf16 halves the
    # dominant weight DMA and is the MXU's native input format.
    B1 = _make_banded(w1, W).reshape(KSIZE * WC, WC).astype(jnp.bfloat16)
    B2 = _make_banded(w2, W).reshape(KSIZE * WC, WC).astype(jnp.bfloat16)
    bias = jnp.stack([jnp.tile(b1, W), jnp.tile(b2, W)]).astype(jnp.float32)

    # Lane-dense (rows = n_blk*H) presentation of the activations.
    x1_r = x1.reshape(n_steps, M, WC)
    x2_r = x2.reshape(n_steps, M, WC)

    kernel = functools.partial(fused_kernel, n_blk=n_blk, h=H)

    flops = 8 * N * H * (KSIZE * WC) * WC            # 4 MXU matmuls, 2 flops/MAC
    bytes_accessed = 2 * (KSIZE * WC * WC * 2) + 3 * (N * H * WC * 4)

    out2d = pl.pallas_call(
        kernel,
        out_shape=jax.ShapeDtypeStruct((n_steps, M, WC), x1.dtype),
        grid_spec=pltpu.PrefetchScalarGridSpec(
            num_scalar_prefetch=0,
            grid=(n_steps,),
            in_specs=[
                pl.BlockSpec((1, M, WC), lambda n: (n, 0, 0)),       # x1
                pl.BlockSpec((1, M, WC), lambda n: (n, 0, 0)),       # x2
                pl.BlockSpec((KSIZE * WC, WC), lambda n: (0, 0)),    # B1 (once)
                pl.BlockSpec((KSIZE * WC, WC), lambda n: (0, 0)),    # B2 (once)
                pl.BlockSpec((2, WC), lambda n: (0, 0)),             # biases
            ],
            out_specs=pl.BlockSpec((1, M, WC), lambda n: (n, 0, 0)),
            scratch_shapes=[
                pltpu.VMEM((M, WC), jnp.float32),           # v3
                pltpu.VMEM((M, WC), jnp.float32),           # a1
                pltpu.VMEM((M, KSIZE * WC), jnp.float32),   # im2col(x1)
                pltpu.VMEM((M, KSIZE * WC), jnp.float32),   # im2col(v3)
                pltpu.VMEM((M, KSIZE * WC), jnp.float32),   # im2col(a1)
            ],
        ),
        compiler_params=pltpu.CompilerParams(
            dimension_semantics=("parallel",),
            vmem_limit_bytes=32 * 1024 * 1024),
        cost_estimate=pl.CostEstimate(
            flops=flops, transcendentals=0, bytes_accessed=bytes_accessed),
    )(x1_r, x2_r, B1, B2, bias)

    return out2d.reshape(N, H, W, C)


def _reference_forward(x1, x2, params):
    """Pure-JAX reference (lax conv, f32) for correctness checking."""
    w1, b1, w2, b2 = params
    dn = ("NHWC", "HWIO", "NHWC")

    def conv(x, w, b):
        y = lax.conv_general_dilated(x, w, (1, 1), ((PAD, PAD), (PAD, PAD)),
                                     dimension_numbers=dn)
        return y + b[None, None, None, :]

    v3 = jax.nn.relu(conv(x1, w1, b1) + x2)
    v4 = conv(v3, w1, b1)
    a2 = conv(conv(x1, w2, b2), w2, b2)
    return jax.nn.relu(v4 + a2)


if __name__ == "__main__":
    # Small shapes consistent with the module: 16 channels required by the
    # convs; use batch=2 and 16x16 spatial instead of 64x64.
    N, H, W, C = 2, 16, 16, 16

    key = jax.random.PRNGKey(0)
    k1, k2, k3, k4, k5, k6 = jax.random.split(key, 6)

    x1 = jax.random.normal(k1, (N, H, W, C), jnp.float32)
    x2 = jax.random.normal(k2, (N, H, W, C), jnp.float32)

    # Deterministic parameter init (HWIO weights, per-Cout bias).
    w1 = jax.random.normal(k3, (KSIZE, KSIZE, C, C), jnp.float32) * 0.05
    b1 = jax.random.normal(k4, (C,), jnp.float32) * 0.05
    w2 = jax.random.normal(k5, (KSIZE, KSIZE, C, C), jnp.float32) * 0.05
    b2 = jax.random.normal(k6, (C,), jnp.float32) * 0.05
    params = (w1, b1, w2, b2)

    out = jax.jit(model_forward)(x1, x2, params)
    out = jax.block_until_ready(out)

    ref = _reference_forward(x1, x2, params)
    assert out.shape == (N, H, W, C)
    err = jnp.max(jnp.abs(out - ref))
    # bf16 weights / bf16 MXU inputs (f32 accumulation) inside the kernel, so
    # compare against the pure-f32 lax reference with a bf16-level tolerance.
    assert jnp.allclose(out, ref, atol=1e-1, rtol=5e-2), f"max abs err {err}"

    print("KERNEL_OK")
</pallas_src>

<mosaic_0001>
module attributes {stable_mosaic.version = 11 : i64} {
  func.func @fused_kernel(%arg0: i32, %arg1: memref<1x32x256xf32, #tpu.memory_space<vmem>>, %arg2: memref<1x32x256xf32, #tpu.memory_space<vmem>>, %arg3: memref<1792x256xbf16, #tpu.memory_space<vmem>>, %arg4: memref<1792x256xbf16, #tpu.memory_space<vmem>>, %arg5: memref<2x256xf32, #tpu.memory_space<vmem>>, %arg6: memref<1x32x256xf32, #tpu.memory_space<vmem>>, %arg7: memref<32x256xf32, #tpu.memory_space<vmem>>, %arg8: memref<32x256xf32, #tpu.memory_space<vmem>>, %arg9: memref<32x1792xf32, #tpu.memory_space<vmem>>, %arg10: memref<32x1792xf32, #tpu.memory_space<vmem>>, %arg11: memref<32x1792xf32, #tpu.memory_space<vmem>>) attributes {dimension_semantics = [#tpu.dimension_semantics<parallel>], iteration_bounds = array<i64: 1>, scalar_prefetch = 0 : i64, scratch_operands = 5 : i64, tpu.core_type = #tpu.core_type<tc>, window_params = [{transform_indices = @transform_0, window_bounds = array<i64: 1, 32, 256>}, {transform_indices = @transform_1, window_bounds = array<i64: 1, 32, 256>}, {pipeline_mode = #tpu.pipeline_mode<synchronous>, transform_indices = @transform_2, window_bounds = array<i64: 1792, 256>}, {pipeline_mode = #tpu.pipeline_mode<synchronous>, transform_indices = @transform_3, window_bounds = array<i64: 1792, 256>}, {pipeline_mode = #tpu.pipeline_mode<synchronous>, transform_indices = @transform_4, window_bounds = array<i64: 2, 256>}, {transform_indices = @transform_5, window_bounds = array<i64: 1, 32, 256>}]} {
    %c0 = arith.constant 0 : index
    %c0_0 = arith.constant 0 : index
    %0 = vector.load %arg5[%c0, %c0_0] : memref<2x256xf32, #tpu.memory_space<vmem>>, vector<2x256xf32>
    %1 = vector.extract_strided_slice %0 {offsets = [0, 0], sizes = [1, 256], strides = [1, 1]} : vector<2x256xf32> to vector<1x256xf32>
    %2 = vector.extract_strided_slice %0 {offsets = [1, 0], sizes = [1, 256], strides = [1, 1]} : vector<2x256xf32> to vector<1x256xf32>
    %c0_1 = arith.constant 0 : index
    %c0_2 = arith.constant 0 : index
    %3 = vector.load %arg3[%c0_1, %c0_2] : memref<1792x256xbf16, #tpu.memory_space<vmem>>, vector<1792x256xbf16>
    %c0_3 = arith.constant 0 : index
    %c0_4 = arith.constant 0 : index
    %4 = vector.load %arg4[%c0_3, %c0_4] : memref<1792x256xbf16, #tpu.memory_space<vmem>>, vector<1792x256xbf16>
    %c0_5 = arith.constant 0 : index
    %c0_6 = arith.constant 0 : index
    %c0_7 = arith.constant 0 : index
    %5 = vector.load %arg1[%c0_5, %c0_6, %c0_7] : memref<1x32x256xf32, #tpu.memory_space<vmem>>, vector<1x13x256xf32>
    %6 = vector.shape_cast %5 : vector<1x13x256xf32> to vector<13x256xf32>
    %c3 = arith.constant 3 : index
    %c0_8 = arith.constant 0 : index
    %7 = vector.load %arg9[%c3, %c0_8] : memref<32x1792xf32, #tpu.memory_space<vmem>>, vector<13x256xf32>
    tpu.vector_store %arg9[%c3, %c0_8], %6 {strides = array<i32>} : memref<32x1792xf32, #tpu.memory_space<vmem>>, vector<13x256xf32>,
    %cst = arith.constant 0.000000e+00 : f32
    %8 = vector.broadcast %cst : f32 to vector<3x256xf32>
    %c0_9 = arith.constant 0 : index
    %c0_10 = arith.constant 0 : index
    %9 = vector.load %arg9[%c0_9, %c0_10] : memref<32x1792xf32, #tpu.memory_space<vmem>>, vector<3x256xf32>
    tpu.vector_store %arg9[%c0_9, %c0_10], %8 {strides = array<i32>} : memref<32x1792xf32, #tpu.memory_space<vmem>>, vector<3x256xf32>,
    %c0_11 = arith.constant 0 : index
    %c0_12 = arith.constant 0 : index
    %c0_13 = arith.constant 0 : index
    %10 = vector.load %arg1[%c0_11, %c0_12, %c0_13] : memref<1x32x256xf32, #tpu.memory_space<vmem>>, vector<1x14x256xf32>
    %11 = vector.shape_cast %10 : vector<1x14x256xf32> to vector<14x256xf32>
    %c2 = arith.constant 2 : index
    %c256 = arith.constant 256 : index
    %12 = vector.load %arg9[%c2, %c256] : memref<32x1792xf32, #tpu.memory_space<vmem>>, vector<14x256xf32>
    tpu.vector_store %arg9[%c2, %c256], %11 {strides = array<i32>} : memref<32x1792xf32, #tpu.memory_space<vmem>>, vector<14x256xf32>,
    %cst_14 = arith.constant 0.000000e+00 : f32
    %13 = vector.broadcast %cst_14 : f32 to vector<2x256xf32>
    %c0_15 = arith.constant 0 : index
    %c256_16 = arith.constant 256 : index
    %14 = vector.load %arg9[%c0_15, %c256_16] : memref<32x1792xf32, #tpu.memory_space<vmem>>, vector<2x256xf32>
    tpu.vector_store %arg9[%c0_15, %c256_16], %13 {strides = array<i32>} : memref<32x1792xf32, #tpu.memory_space<vmem>>, vector<2x256xf32>,
    %c0_17 = arith.constant 0 : index
    %c0_18 = arith.constant 0 : index
    %c0_19 = arith.constant 0 : index
    %15 = vector.load %arg1[%c0_17, %c0_18, %c0_19] : memref<1x32x256xf32, #tpu.memory_space<vmem>>, vector<1x15x256xf32>
    %16 = vector.shape_cast %15 : vector<1x15x256xf32> to vector<15x256xf32>
    %c1 = arith.constant 1 : index
    %c512 = arith.constant 512 : index
    %17 = vector.load %arg9[%c1, %c512] : memref<32x1792xf32, #tpu.memory_space<vmem>>, vector<15x256xf32>
    tpu.vector_store %arg9[%c1, %c512], %16 {strides = array<i32>} : memref<32x1792xf32, #tpu.memory_space<vmem>>, vector<15x256xf32>,
    %cst_20 = arith.constant 0.000000e+00 : f32
    %18 = vector.broadcast %cst_20 : f32 to vector<1x256xf32>
    %c0_21 = arith.constant 0 : index
    %c512_22 = arith.constant 512 : index
    %19 = vector.load %arg9[%c0_21, %c512_22] : memref<32x1792xf32, #tpu.memory_space<vmem>>, vector<1x256xf32>
    tpu.vector_store %arg9[%c0_21, %c512_22], %18 {strides = array<i32>} : memref<32x1792xf32, #tpu.memory_space<vmem>>, vector<1x256xf32>,
    %c0_23 = arith.constant 0 : index
    %c0_24 = arith.constant 0 : index
    %c0_25 = arith.constant 0 : index
    %20 = vector.load %arg1[%c0_23, %c0_24, %c0_25] : memref<1x32x256xf32, #tpu.memory_space<vmem>>, vector<1x16x256xf32>
    %21 = vector.shape_cast %20 : vector<1x16x256xf32> to vector<16x256xf32>
    %c0_26 = arith.constant 0 : index
    %c768 = arith.constant 768 : index
    %22 = vector.load %arg9[%c0_26, %c768] : memref<32x1792xf32, #tpu.memory_space<vmem>>, vector<16x256xf32>
    tpu.vector_store %arg9[%c0_26, %c768], %21 {strides = array<i32>} : memref<32x1792xf32, #tpu.memory_space<vmem>>, vector<16x256xf32>,
    %c0_27 = arith.constant 0 : index
    %c1_28 = arith.constant 1 : index
    %c0_29 = arith.constant 0 : index
    %23 = vector.load %arg1[%c0_27, %c1_28, %c0_29] : memref<1x32x256xf32, #tpu.memory_space<vmem>>, vector<1x15x256xf32>
    %24 = vector.shape_cast %23 : vector<1x15x256xf32> to vector<15x256xf32>
    %c0_30 = arith.constant 0 : index
    %c1024 = arith.constant 1024 : index
    %25 = vector.load %arg9[%c0_30, %c1024] : memref<32x1792xf32, #tpu.memory_space<vmem>>, vector<15x256xf32>
    tpu.vector_store %arg9[%c0_30, %c1024], %24 {strides = array<i32>} : memref<32x1792xf32, #tpu.memory_space<vmem>>, vector<15x256xf32>,
    %cst_31 = arith.constant 0.000000e+00 : f32
    %26 = vector.broadcast %cst_31 : f32 to vector<1x256xf32>
    %c15 = arith.constant 15 : index
    %c1024_32 = arith.constant 1024 : index
    %27 = vector.load %arg9[%c15, %c1024_32] : memref<32x1792xf32, #tpu.memory_space<vmem>>, vector<1x256xf32>
    tpu.vector_store %arg9[%c15, %c1024_32], %26 {strides = array<i32>} : memref<32x1792xf32, #tpu.memory_space<vmem>>, vector<1x256xf32>,
    %c0_33 = arith.constant 0 : index
    %c2_34 = arith.constant 2 : index
    %c0_35 = arith.constant 0 : index
    %28 = vector.load %arg1[%c0_33, %c2_34, %c0_35] : memref<1x32x256xf32, #tpu.memory_space<vmem>>, vector<1x14x256xf32>
    %29 = vector.shape_cast %28 : vector<1x14x256xf32> to vector<14x256xf32>
    %c0_36 = arith.constant 0 : index
    %c1280 = arith.constant 1280 : index
    %30 = vector.load %arg9[%c0_36, %c1280] : memref<32x1792xf32, #tpu.memory_space<vmem>>, vector<14x256xf32>
    tpu.vector_store %arg9[%c0_36, %c1280], %29 {strides = array<i32>} : memref<32x1792xf32, #tpu.memory_space<vmem>>, vector<14x256xf32>,
    %cst_37 = arith.constant 0.000000e+00 : f32
    %31 = vector.broadcast %cst_37 : f32 to vector<2x256xf32>
    %c14 = arith.constant 14 : index
    %c1280_38 = arith.constant 1280 : index
    %32 = vector.load %arg9[%c14, %c1280_38] : memref<32x1792xf32, #tpu.memory_space<vmem>>, vector<2x256xf32>
    tpu.vector_store %arg9[%c14, %c1280_38], %31 {strides = array<i32>} : memref<32x1792xf32, #tpu.memory_space<vmem>>, vector<2x256xf32>,
    %c0_39 = arith.constant 0 : index
    %c3_40 = arith.constant 3 : index
    %c0_41 = arith.constant 0 : index
    %33 = vector.load %arg1[%c0_39, %c3_40, %c0_41] : memref<1x32x256xf32, #tpu.memory_space<vmem>>, vector<1x13x256xf32>
    %34 = vector.shape_cast %33 : vector<1x13x256xf32> to vector<13x256xf32>
    %c0_42 = arith.constant 0 : index
    %c1536 = arith.constant 1536 : index
    %35 = vector.load %arg9[%c0_42, %c1536] : memref<32x1792xf32, #tpu.memory_space<vmem>>, vector<13x256xf32>
    tpu.vector_store %arg9[%c0_42, %c1536], %34 {strides = array<i32>} : memref<32x1792xf32, #tpu.memory_space<vmem>>, vector<13x256xf32>,
    %cst_43 = arith.constant 0.000000e+00 : f32
    %36 = vector.broadcast %cst_43 : f32 to vector<3x256xf32>
    %c13 = arith.constant 13 : index
    %c1536_44 = arith.constant 1536 : index
    %37 = vector.load %arg9[%c13, %c1536_44] : memref<32x1792xf32, #tpu.memory_space<vmem>>, vector<3x256xf32>
    tpu.vector_store %arg9[%c13, %c1536_44], %36 {strides = array<i32>} : memref<32x1792xf32, #tpu.memory_space<vmem>>, vector<3x256xf32>,
    %c0_45 = arith.constant 0 : index
    %c16 = arith.constant 16 : index
    %c0_46 = arith.constant 0 : index
    %38 = vector.load %arg1[%c0_45, %c16, %c0_46] : memref<1x32x256xf32, #tpu.memory_space<vmem>>, vector<1x13x256xf32>
    %39 = vector.shape_cast %38 : vector<1x13x256xf32> to vector<13x256xf32>
    %c19 = arith.constant 19 : index
    %c0_47 = arith.constant 0 : index
    %40 = vector.load %arg9[%c19, %c0_47] : memref<32x1792xf32, #tpu.memory_space<vmem>>, vector<13x256xf32>
    tpu.vector_store %arg9[%c19, %c0_47], %39 {strides = array<i32>} : memref<32x1792xf32, #tpu.memory_space<vmem>>, vector<13x256xf32>,
    %cst_48 = arith.constant 0.000000e+00 : f32
    %41 = vector.broadcast %cst_48 : f32 to vector<3x256xf32>
    %c16_49 = arith.constant 16 : index
    %c0_50 = arith.constant 0 : index
    %42 = vector.load %arg9[%c16_49, %c0_50] : memref<32x1792xf32, #tpu.memory_space<vmem>>, vector<3x256xf32>
    tpu.vector_store %arg9[%c16_49, %c0_50], %41 {strides = array<i32>} : memref<32x1792xf32, #tpu.memory_space<vmem>>, vector<3x256xf32>,
    %c0_51 = arith.constant 0 : index
    %c16_52 = arith.constant 16 : index
    %c0_53 = arith.constant 0 : index
    %43 = vector.load %arg1[%c0_51, %c16_52, %c0_53] : memref<1x32x256xf32, #tpu.memory_space<vmem>>, vector<1x14x256xf32>
    %44 = vector.shape_cast %43 : vector<1x14x256xf32> to vector<14x256xf32>
    %c18 = arith.constant 18 : index
    %c256_54 = arith.constant 256 : index
    %45 = vector.load %arg9[%c18, %c256_54] : memref<32x1792xf32, #tpu.memory_space<vmem>>, vector<14x256xf32>
    tpu.vector_store %arg9[%c18, %c256_54], %44 {strides = array<i32>} : memref<32x1792xf32, #tpu.memory_space<vmem>>, vector<14x256xf32>,
    %cst_55 = arith.constant 0.000000e+00 : f32
    %46 = vector.broadcast %cst_55 : f32 to vector<2x256xf32>
    %c16_56 = arith.constant 16 : index
    %c256_57 = arith.constant 256 : index
    %47 = vector.load %arg9[%c16_56, %c256_57] : memref<32x1792xf32, #tpu.memory_space<vmem>>, vector<2x256xf32>
    tpu.vector_store %arg9[%c16_56, %c256_57], %46 {strides = array<i32>} : memref<32x1792xf32, #tpu.memory_space<vmem>>, vector<2x256xf32>,
    %c0_58 = arith.constant 0 : index
    %c16_59 = arith.constant 16 : index
    %c0_60 = arith.constant 0 : index
    %48 = vector.load %arg1[%c0_58, %c16_59, %c0_60] : memref<1x32x256xf32, #tpu.memory_space<vmem>>, vector<1x15x256xf32>
    %49 = vector.shape_cast %48 : vector<1x15x256xf32> to vector<15x256xf32>
    %c17 = arith.constant 17 : index
    %c512_61 = arith.constant 512 : index
    %50 = vector.load %arg9[%c17, %c512_61] : memref<32x1792xf32, #tpu.memory_space<vmem>>, vector<15x256xf32>
    tpu.vector_store %arg9[%c17, %c512_61], %49 {strides = array<i32>} : memref<32x1792xf32, #tpu.memory_space<vmem>>, vector<15x256xf32>,
    %cst_62 = arith.constant 0.000000e+00 : f32
    %51 = vector.broadcast %cst_62 : f32 to vector<1x256xf32>
    %c16_63 = arith.constant 16 : index
    %c512_64 = arith.constant 512 : index
    %52 = vector.load %arg9[%c16_63, %c512_64] : memref<32x1792xf32, #tpu.memory_space<vmem>>, vector<1x256xf32>
    tpu.vector_store %arg9[%c16_63, %c512_64], %51 {strides = array<i32>} : memref<32x1792xf32, #tpu.memory_space<vmem>>, vector<1x256xf32>,
    %c0_65 = arith.constant 0 : index
    %c16_66 = arith.constant 16 : index
    %c0_67 = arith.constant 0 : index
    %53 = vector.load %arg1[%c0_65, %c16_66, %c0_67] : memref<1x32x256xf32, #tpu.memory_space<vmem>>, vector<1x16x256xf32>
    %54 = vector.shape_cast %53 : vector<1x16x256xf32> to vector<16x256xf32>
    %c16_68 = arith.constant 16 : index
    %c768_69 = arith.constant 768 : index
    %55 = vector.load %arg9[%c16_68, %c768_69] : memref<32x1792xf32, #tpu.memory_space<vmem>>, vector<16x256xf32>
    tpu.vector_store %arg9[%c16_68, %c768_69], %54 {strides = array<i32>} : memref<32x1792xf32, #tpu.memory_space<vmem>>, vector<16x256xf32>,
    %c0_70 = arith.constant 0 : index
    %c17_71 = arith.constant 17 : index
    %c0_72 = arith.constant 0 : index
    %56 = vector.load %arg1[%c0_70, %c17_71, %c0_72] : memref<1x32x256xf32, #tpu.memory_space<vmem>>, vector<1x15x256xf32>
    %57 = vector.shape_cast %56 : vector<1x15x256xf32> to vector<15x256xf32>
    %c16_73 = arith.constant 16 : index
    %c1024_74 = arith.constant 1024 : index
    %58 = vector.load %arg9[%c16_73, %c1024_74] : memref<32x1792xf32, #tpu.memory_space<vmem>>, vector<15x256xf32>
    tpu.vector_store %arg9[%c16_73, %c1024_74], %57 {strides = array<i32>} : memref<32x1792xf32, #tpu.memory_space<vmem>>, vector<15x256xf32>,
    %cst_75 = arith.constant 0.000000e+00 : f32
    %59 = vector.broadcast %cst_75 : f32 to vector<1x256xf32>
    %c31 = arith.constant 31 : index
    %c1024_76 = arith.constant 1024 : index
    %60 = vector.load %arg9[%c31, %c1024_76] : memref<32x1792xf32, #tpu.memory_space<vmem>>, vector<1x256xf32>
    tpu.vector_store %arg9[%c31, %c1024_76], %59 {strides = array<i32>} : memref<32x1792xf32, #tpu.memory_space<vmem>>, vector<1x256xf32>,
    %c0_77 = arith.constant 0 : index
    %c18_78 = arith.constant 18 : index
    %c0_79 = arith.constant 0 : index
    %61 = vector.load %arg1[%c0_77, %c18_78, %c0_79] : memref<1x32x256xf32, #tpu.memory_space<vmem>>, vector<1x14x256xf32>
    %62 = vector.shape_cast %61 : vector<1x14x256xf32> to vector<14x256xf32>
    %c16_80 = arith.constant 16 : index
    %c1280_81 = arith.constant 1280 : index
    %63 = vector.load %arg9[%c16_80, %c1280_81] : memref<32x1792xf32, #tpu.memory_space<vmem>>, vector<14x256xf32>
    tpu.vector_store %arg9[%c16_80, %c1280_81], %62 {strides = array<i32>} : memref<32x1792xf32, #tpu.memory_space<vmem>>, vector<14x256xf32>,
    %cst_82 = arith.constant 0.000000e+00 : f32
    %64 = vector.broadcast %cst_82 : f32 to vector<2x256xf32>
    %c30 = arith.constant 30 : index
    %c1280_83 = arith.constant 1280 : index
    %65 = vector.load %arg9[%c30, %c1280_83] : memref<32x1792xf32, #tpu.memory_space<vmem>>, vector<2x256xf32>
    tpu.vector_store %arg9[%c30, %c1280_83], %64 {strides = array<i32>} : memref<32x1792xf32, #tpu.memory_space<vmem>>, vector<2x256xf32>,
    %c0_84 = arith.constant 0 : index
    %c19_85 = arith.constant 19 : index
    %c0_86 = arith.constant 0 : index
    %66 = vector.load %arg1[%c0_84, %c19_85, %c0_86] : memref<1x32x256xf32, #tpu.memory_space<vmem>>, vector<1x13x256xf32>
    %67 = vector.shape_cast %66 : vector<1x13x256xf32> to vector<13x256xf32>
    %c16_87 = arith.constant 16 : index
    %c1536_88 = arith.constant 1536 : index
    %68 = vector.load %arg9[%c16_87, %c1536_88] : memref<32x1792xf32, #tpu.memory_space<vmem>>, vector<13x256xf32>
    tpu.vector_store %arg9[%c16_87, %c1536_88], %67 {strides = array<i32>} : memref<32x1792xf32, #tpu.memory_space<vmem>>, vector<13x256xf32>,
    %cst_89 = arith.constant 0.000000e+00 : f32
    %69 = vector.broadcast %cst_89 : f32 to vector<3x256xf32>
    %c29 = arith.constant 29 : index
    %c1536_90 = arith.constant 1536 : index
    %70 = vector.load %arg9[%c29, %c1536_90] : memref<32x1792xf32, #tpu.memory_space<vmem>>, vector<3x256xf32>
    tpu.vector_store %arg9[%c29, %c1536_90], %69 {strides = array<i32>} : memref<32x1792xf32, #tpu.memory_space<vmem>>, vector<3x256xf32>,
    %c0_91 = arith.constant 0 : index
    %c0_92 = arith.constant 0 : index
    %71 = vector.load %arg9[%c0_91, %c0_92] : memref<32x1792xf32, #tpu.memory_space<vmem>>, vector<32x1792xf32>
    %72 = arith.truncf %71 : vector<32x1792xf32> to vector<32x1792xbf16>
    %cst_93 = arith.constant dense<0.000000e+00> : vector<32x256xf32>
    %73 = tpu.matmul %72, %3, %cst_93 {dimension_numbers = #tpu.dot_dimension_numbers<[1], [0], [0], [1], [0, 0, 1, 1], [], []>} : vector<32x1792xbf16>, vector<1792x256xbf16>, vector<32x256xf32> -> vector<32x256xf32>
    %74 = vector.broadcast %1 : vector<1x256xf32> to vector<32x256xf32>
    %75 = arith.addf %73, %74 : vector<32x256xf32>
    %cst_94 = arith.constant dense<0.000000e+00> : vector<32x256xf32>
    %76 = tpu.matmul %72, %4, %cst_94 {dimension_numbers = #tpu.dot_dimension_numbers<[1], [0], [0], [1], [0, 0, 1, 1], [], []>} : vector<32x1792xbf16>, vector<1792x256xbf16>, vector<32x256xf32> -> vector<32x256xf32>
    %77 = vector.broadcast %2 : vector<1x256xf32> to vector<32x256xf32>
    %78 = arith.addf %76, %77 : vector<32x256xf32>
    %c0_95 = arith.constant 0 : index
    %c0_96 = arith.constant 0 : index
    %c0_97 = arith.constant 0 : index
    %79 = vector.load %arg2[%c0_95, %c0_96, %c0_97] : memref<1x32x256xf32, #tpu.memory_space<vmem>>, vector<1x32x256xf32>
    %80 = vector.shape_cast %79 : vector<1x32x256xf32> to vector<32x256xf32>
    %81 = arith.addf %75, %80 : vector<32x256xf32>
    %cst_98 = arith.constant 0.000000e+00 : f32
    %82 = vector.broadcast %cst_98 : f32 to vector<32x256xf32>
    %83 = arith.maximumf %81, %82 : vector<32x256xf32>
    %c0_99 = arith.constant 0 : index
    %c0_100 = arith.constant 0 : index
    %84 = vector.load %arg7[%c0_99, %c0_100] : memref<32x256xf32, #tpu.memory_space<vmem>>, vector<32x256xf32>
    tpu.vector_store %arg7[%c0_99, %c0_100], %83 {strides = array<i32>} : memref<32x256xf32, #tpu.memory_space<vmem>>, vector<32x256xf32>,
    %c0_101 = arith.constant 0 : index
    %c0_102 = arith.constant 0 : index
    %85 = vector.load %arg8[%c0_101, %c0_102] : memref<32x256xf32, #tpu.memory_space<vmem>>, vector<32x256xf32>
    tpu.vector_store %arg8[%c0_101, %c0_102], %78 {strides = array<i32>} : memref<32x256xf32, #tpu.memory_space<vmem>>, vector<32x256xf32>,
    %c0_103 = arith.constant 0 : index
    %c0_104 = arith.constant 0 : index
    %86 = vector.load %arg7[%c0_103, %c0_104] : memref<32x256xf32, #tpu.memory_space<vmem>>, vector<13x256xf32>
    %c3_105 = arith.constant 3 : index
    %c0_106 = arith.constant 0 : index
    %87 = vector.load %arg10[%c3_105, %c0_106] : memref<32x1792xf32, #tpu.memory_space<vmem>>, vector<13x256xf32>
    tpu.vector_store %arg10[%c3_105, %c0_106], %86 {strides = array<i32>} : memref<32x1792xf32, #tpu.memory_space<vmem>>, vector<13x256xf32>,
    %cst_107 = arith.constant 0.000000e+00 : f32
    %88 = vector.broadcast %cst_107 : f32 to vector<3x256xf32>
    %c0_108 = arith.constant 0 : index
    %c0_109 = arith.constant 0 : index
    %89 = vector.load %arg10[%c0_108, %c0_109] : memref<32x1792xf32, #tpu.memory_space<vmem>>, vector<3x256xf32>
    tpu.vector_store %arg10[%c0_108, %c0_109], %88 {strides = array<i32>} : memref<32x1792xf32, #tpu.memory_space<vmem>>, vector<3x256xf32>,
    %c0_110 = arith.constant 0 : index
    %c0_111 = arith.constant 0 : index
    %90 = vector.load %arg7[%c0_110, %c0_111] : memref<32x256xf32, #tpu.memory_space<vmem>>, vector<14x256xf32>
    %c2_112 = arith.constant 2 : index
    %c256_113 = arith.constant 256 : index
    %91 = vector.load %arg10[%c2_112, %c256_113] : memref<32x1792xf32, #tpu.memory_space<vmem>>, vector<14x256xf32>
    tpu.vector_store %arg10[%c2_112, %c256_113], %90 {strides = array<i32>} : memref<32x1792xf32, #tpu.memory_space<vmem>>, vector<14x256xf32>,
    %cst_114 = arith.constant 0.000000e+00 : f32
    %92 = vector.broadcast %cst_114 : f32 to vector<2x256xf32>
    %c0_115 = arith.constant 0 : index
    %c256_116 = arith.constant 256 : index
    %93 = vector.load %arg10[%c0_115, %c256_116] : memref<32x1792xf32, #tpu.memory_space<vmem>>, vector<2x256xf32>
    tpu.vector_store %arg10[%c0_115, %c256_116], %92 {strides = array<i32>} : memref<32x1792xf32, #tpu.memory_space<vmem>>, vector<2x256xf32>,
    %c0_117 = arith.constant 0 : index
    %c0_118 = arith.constant 0 : index
    %94 = vector.load %arg7[%c0_117, %c0_118] : memref<32x256xf32, #tpu.memory_space<vmem>>, vector<15x256xf32>
    %c1_119 = arith.constant 1 : index
    %c512_120 = arith.constant 512 : index
    %95 = vector.load %arg10[%c1_119, %c512_120] : memref<32x1792xf32, #tpu.memory_space<vmem>>, vector<15x256xf32>
    tpu.vector_store %arg10[%c1_119, %c512_120], %94 {strides = array<i32>} : memref<32x1792xf32, #tpu.memory_space<vmem>>, vector<15x256xf32>,
    %cst_121 = arith.constant 0.000000e+00 : f32
    %96 = vector.broadcast %cst_121 : f32 to vector<1x256xf32>
    %c0_122 = arith.constant 0 : index
    %c512_123 = arith.constant 512 : index
    %97 = vector.load %arg10[%c0_122, %c512_123] : memref<32x1792xf32, #tpu.memory_space<vmem>>, vector<1x256xf32>
    tpu.vector_store %arg10[%c0_122, %c512_123], %96 {strides = array<i32>} : memref<32x1792xf32, #tpu.memory_space<vmem>>, vector<1x256xf32>,
    %c0_124 = arith.constant 0 : index
    %c0_125 = arith.constant 0 : index
    %98 = vector.load %arg7[%c0_124, %c0_125] : memref<32x256xf32, #tpu.memory_space<vmem>>, vector<16x256xf32>
    %c0_126 = arith.constant 0 : index
    %c768_127 = arith.constant 768 : index
    %99 = vector.load %arg10[%c0_126, %c768_127] : memref<32x1792xf32, #tpu.memory_space<vmem>>, vector<16x256xf32>
    tpu.vector_store %arg10[%c0_126, %c768_127], %98 {strides = array<i32>} : memref<32x1792xf32, #tpu.memory_space<vmem>>, vector<16x256xf32>,
    %c1_128 = arith.constant 1 : index
    %c0_129 = arith.constant 0 : index
    %100 = vector.load %arg7[%c1_128, %c0_129] : memref<32x256xf32, #tpu.memory_space<vmem>>, vector<15x256xf32>
    %c0_130 = arith.constant 0 : index
    %c1024_131 = arith.constant 1024 : index
    %101 = vector.load %arg10[%c0_130, %c1024_131] : memref<32x1792xf32, #tpu.memory_space<vmem>>, vector<15x256xf32>
    tpu.vector_store %arg10[%c0_130, %c1024_131], %100 {strides = array<i32>} : memref<32x1792xf32, #tpu.memory_space<vmem>>, vector<15x256xf32>,
    %cst_132 = arith.constant 0.000000e+00 : f32
    %102 = vector.broadcast %cst_132 : f32 to vector<1x256xf32>
    %c15_133 = arith.constant 15 : index
    %c1024_134 = arith.constant 1024 : index
    %103 = vector.load %arg10[%c15_133, %c1024_134] : memref<32x1792xf32, #tpu.memory_space<vmem>>, vector<1x256xf32>
    tpu.vector_store %arg10[%c15_133, %c1024_134], %102 {strides = array<i32>} : memref<32x1792xf32, #tpu.memory_space<vmem>>, vector<1x256xf32>,
    %c2_135 = arith.constant 2 : index
    %c0_136 = arith.constant 0 : index
    %104 = vector.load %arg7[%c2_135, %c0_136] : memref<32x256xf32, #tpu.memory_space<vmem>>, vector<14x256xf32>
    %c0_137 = arith.constant 0 : index
    %c1280_138 = arith.constant 1280 : index
    %105 = vector.load %arg10[%c0_137, %c1280_138] : memref<32x1792xf32, #tpu.memory_space<vmem>>, vector<14x256xf32>
    tpu.vector_store %arg10[%c0_137, %c1280_138], %104 {strides = array<i32>} : memref<32x1792xf32, #tpu.memory_space<vmem>>, vector<14x256xf32>,
    %cst_139 = arith.constant 0.000000e+00 : f32
    %106 = vector.broadcast %cst_139 : f32 to vector<2x256xf32>
    %c14_140 = arith.constant 14 : index
    %c1280_141 = arith.constant 1280 : index
    %107 = vector.load %arg10[%c14_140, %c1280_141] : memref<32x1792xf32, #tpu.memory_space<vmem>>, vector<2x256xf32>
    tpu.vector_store %arg10[%c14_140, %c1280_141], %106 {strides = array<i32>} : memref<32x1792xf32, #tpu.memory_space<vmem>>, vector<2x256xf32>,
    %c3_142 = arith.constant 3 : index
    %c0_143 = arith.constant 0 : index
    %108 = vector.load %arg7[%c3_142, %c0_143] : memref<32x256xf32, #tpu.memory_space<vmem>>, vector<13x256xf32>
    %c0_144 = arith.constant 0 : index
    %c1536_145 = arith.constant 1536 : index
    %109 = vector.load %arg10[%c0_144, %c1536_145] : memref<32x1792xf32, #tpu.memory_space<vmem>>, vector<13x256xf32>
    tpu.vector_store %arg10[%c0_144, %c1536_145], %108 {strides = array<i32>} : memref<32x1792xf32, #tpu.memory_space<vmem>>, vector<13x256xf32>,
    %cst_146 = arith.constant 0.000000e+00 : f32
    %110 = vector.broadcast %cst_146 : f32 to vector<3x256xf32>
    %c13_147 = arith.constant 13 : index
    %c1536_148 = arith.constant 1536 : index
    %111 = vector.load %arg10[%c13_147, %c1536_148] : memref<32x1792xf32, #tpu.memory_space<vmem>>, vector<3x256xf32>
    tpu.vector_store %arg10[%c13_147, %c1536_148], %110 {strides = array<i32>} : memref<32x1792xf32, #tpu.memory_space<vmem>>, vector<3x256xf32>,
    %c16_149 = arith.constant 16 : index
    %c0_150 = arith.constant 0 : index
    %112 = vector.load %arg7[%c16_149, %c0_150] : memref<32x256xf32, #tpu.memory_space<vmem>>, vector<13x256xf32>
    %c19_151 = arith.constant 19 : index
    %c0_152 = arith.constant 0 : index
    %113 = vector.load %arg10[%c19_151, %c0_152] : memref<32x1792xf32, #tpu.memory_space<vmem>>, vector<13x256xf32>
    tpu.vector_store %arg10[%c19_151, %c0_152], %112 {strides = array<i32>} : memref<32x1792xf32, #tpu.memory_space<vmem>>, vector<13x256xf32>,
    %cst_153 = arith.constant 0.000000e+00 : f32
    %114 = vector.broadcast %cst_153 : f32 to vector<3x256xf32>
    %c16_154 = arith.constant 16 : index
    %c0_155 = arith.constant 0 : index
    %115 = vector.load %arg10[%c16_154, %c0_155] : memref<32x1792xf32, #tpu.memory_space<vmem>>, vector<3x256xf32>
    tpu.vector_store %arg10[%c16_154, %c0_155], %114 {strides = array<i32>} : memref<32x1792xf32, #tpu.memory_space<vmem>>, vector<3x256xf32>,
    %c16_156 = arith.constant 16 : index
    %c0_157 = arith.constant 0 : index
    %116 = vector.load %arg7[%c16_156, %c0_157] : memref<32x256xf32, #tpu.memory_space<vmem>>, vector<14x256xf32>
    %c18_158 = arith.constant 18 : index
    %c256_159 = arith.constant 256 : index
    %117 = vector.load %arg10[%c18_158, %c256_159] : memref<32x1792xf32, #tpu.memory_space<vmem>>, vector<14x256xf32>
    tpu.vector_store %arg10[%c18_158, %c256_159], %116 {strides = array<i32>} : memref<32x1792xf32, #tpu.memory_space<vmem>>, vector<14x256xf32>,
    %cst_160 = arith.constant 0.000000e+00 : f32
    %118 = vector.broadcast %cst_160 : f32 to vector<2x256xf32>
    %c16_161 = arith.constant 16 : index
    %c256_162 = arith.constant 256 : index
    %119 = vector.load %arg10[%c16_161, %c256_162] : memref<32x1792xf32, #tpu.memory_space<vmem>>, vector<2x256xf32>
    tpu.vector_store %arg10[%c16_161, %c256_162], %118 {strides = array<i32>} : memref<32x1792xf32, #tpu.memory_space<vmem>>, vector<2x256xf32>,
    %c16_163 = arith.constant 16 : index
    %c0_164 = arith.constant 0 : index
    %120 = vector.load %arg7[%c16_163, %c0_164] : memref<32x256xf32, #tpu.memory_space<vmem>>, vector<15x256xf32>
    %c17_165 = arith.constant 17 : index
    %c512_166 = arith.constant 512 : index
    %121 = vector.load %arg10[%c17_165, %c512_166] : memref<32x1792xf32, #tpu.memory_space<vmem>>, vector<15x256xf32>
    tpu.vector_store %arg10[%c17_165, %c512_166], %120 {strides = array<i32>} : memref<32x1792xf32, #tpu.memory_space<vmem>>, vector<15x256xf32>,
    %cst_167 = arith.constant 0.000000e+00 : f32
    %122 = vector.broadcast %cst_167 : f32 to vector<1x256xf32>
    %c16_168 = arith.constant 16 : index
    %c512_169 = arith.constant 512 : index
    %123 = vector.load %arg10[%c16_168, %c512_169] : memref<32x1792xf32, #tpu.memory_space<vmem>>, vector<1x256xf32>
    tpu.vector_store %arg10[%c16_168, %c512_169], %122 {strides = array<i32>} : memref<32x1792xf32, #tpu.memory_space<vmem>>, vector<1x256xf32>,
    %c16_170 = arith.constant 16 : index
    %c0_171 = arith.constant 0 : index
    %124 = vector.load %arg7[%c16_170, %c0_171] : memref<32x256xf32, #tpu.memory_space<vmem>>, vector<16x256xf32>
    %c16_172 = arith.constant 16 : index
    %c768_173 = arith.constant 768 : index
    %125 = vector.load %arg10[%c16_172, %c768_173] : memref<32x1792xf32, #tpu.memory_space<vmem>>, vector<16x256xf32>
    tpu.vector_store %arg10[%c16_172, %c768_173], %124 {strides = array<i32>} : memref<32x1792xf32, #tpu.memory_space<vmem>>, vector<16x256xf32>,
    %c17_174 = arith.constant 17 : index
    %c0_175 = arith.constant 0 : index
    %126 = vector.load %arg7[%c17_174, %c0_175] : memref<32x256xf32, #tpu.memory_space<vmem>>, vector<15x256xf32>
    %c16_176 = arith.constant 16 : index
    %c1024_177 = arith.constant 1024 : index
    %127 = vector.load %arg10[%c16_176, %c1024_177] : memref<32x1792xf32, #tpu.memory_space<vmem>>, vector<15x256xf32>
    tpu.vector_store %arg10[%c16_176, %c1024_177], %126 {strides = array<i32>} : memref<32x1792xf32, #tpu.memory_space<vmem>>, vector<15x256xf32>,
    %cst_178 = arith.constant 0.000000e+00 : f32
    %128 = vector.broadcast %cst_178 : f32 to vector<1x256xf32>
    %c31_179 = arith.constant 31 : index
    %c1024_180 = arith.constant 1024 : index
    %129 = vector.load %arg10[%c31_179, %c1024_180] : memref<32x1792xf32, #tpu.memory_space<vmem>>, vector<1x256xf32>
    tpu.vector_store %arg10[%c31_179, %c1024_180], %128 {strides = array<i32>} : memref<32x1792xf32, #tpu.memory_space<vmem>>, vector<1x256xf32>,
    %c18_181 = arith.constant 18 : index
    %c0_182 = arith.constant 0 : index
    %130 = vector.load %arg7[%c18_181, %c0_182] : memref<32x256xf32, #tpu.memory_space<vmem>>, vector<14x256xf32>
    %c16_183 = arith.constant 16 : index
    %c1280_184 = arith.constant 1280 : index
    %131 = vector.load %arg10[%c16_183, %c1280_184] : memref<32x1792xf32, #tpu.memory_space<vmem>>, vector<14x256xf32>
    tpu.vector_store %arg10[%c16_183, %c1280_184], %130 {strides = array<i32>} : memref<32x1792xf32, #tpu.memory_space<vmem>>, vector<14x256xf32>,
    %cst_185 = arith.constant 0.000000e+00 : f32
    %132 = vector.broadcast %cst_185 : f32 to vector<2x256xf32>
    %c30_186 = arith.constant 30 : index
    %c1280_187 = arith.constant 1280 : index
    %133 = vector.load %arg10[%c30_186, %c1280_187] : memref<32x1792xf32, #tpu.memory_space<vmem>>, vector<2x256xf32>
    tpu.vector_store %arg10[%c30_186, %c1280_187], %132 {strides = array<i32>} : memref<32x1792xf32, #tpu.memory_space<vmem>>, vector<2x256xf32>,
    %c19_188 = arith.constant 19 : index
    %c0_189 = arith.constant 0 : index
    %134 = vector.load %arg7[%c19_188, %c0_189] : memref<32x256xf32, #tpu.memory_space<vmem>>, vector<13x256xf32>
    %c16_190 = arith.constant 16 : index
    %c1536_191 = arith.constant 1536 : index
    %135 = vector.load %arg10[%c16_190, %c1536_191] : memref<32x1792xf32, #tpu.memory_space<vmem>>, vector<13x256xf32>
    tpu.vector_store %arg10[%c16_190, %c1536_191], %134 {strides = array<i32>} : memref<32x1792xf32, #tpu.memory_space<vmem>>, vector<13x256xf32>,
    %cst_192 = arith.constant 0.000000e+00 : f32
    %136 = vector.broadcast %cst_192 : f32 to vector<3x256xf32>
    %c29_193 = arith.constant 29 : index
    %c1536_194 = arith.constant 1536 : index
    %137 = vector.load %arg10[%c29_193, %c1536_194] : memref<32x1792xf32, #tpu.memory_space<vmem>>, vector<3x256xf32>
    tpu.vector_store %arg10[%c29_193, %c1536_194], %136 {strides = array<i32>} : memref<32x1792xf32, #tpu.memory_space<vmem>>, vector<3x256xf32>,
    %c0_195 = arith.constant 0 : index
    %c0_196 = arith.constant 0 : index
    %138 = vector.load %arg8[%c0_195, %c0_196] : memref<32x256xf32, #tpu.memory_space<vmem>>, vector<13x256xf32>
    %c3_197 = arith.constant 3 : index
    %c0_198 = arith.constant 0 : index
    %139 = vector.load %arg11[%c3_197, %c0_198] : memref<32x1792xf32, #tpu.memory_space<vmem>>, vector<13x256xf32>
    tpu.vector_store %arg11[%c3_197, %c0_198], %138 {strides = array<i32>} : memref<32x1792xf32, #tpu.memory_space<vmem>>, vector<13x256xf32>,
    %cst_199 = arith.constant 0.000000e+00 : f32
    %140 = vector.broadcast %cst_199 : f32 to vector<3x256xf32>
    %c0_200 = arith.constant 0 : index
    %c0_201 = arith.constant 0 : index
    %141 = vector.load %arg11[%c0_200, %c0_201] : memref<32x1792xf32, #tpu.memory_space<vmem>>, vector<3x256xf32>
    tpu.vector_store %arg11[%c0_200, %c0_201], %140 {strides = array<i32>} : memref<32x1792xf32, #tpu.memory_space<vmem>>, vector<3x256xf32>,
    %c0_202 = arith.constant 0 : index
    %c0_203 = arith.constant 0 : index
    %142 = vector.load %arg8[%c0_202, %c0_203] : memref<32x256xf32, #tpu.memory_space<vmem>>, vector<14x256xf32>
    %c2_204 = arith.constant 2 : index
    %c256_205 = arith.constant 256 : index
    %143 = vector.load %arg11[%c2_204, %c256_205] : memref<32x1792xf32, #tpu.memory_space<vmem>>, vector<14x256xf32>
    tpu.vector_store %arg11[%c2_204, %c256_205], %142 {strides = array<i32>} : memref<32x1792xf32, #tpu.memory_space<vmem>>, vector<14x256xf32>,
    %cst_206 = arith.constant 0.000000e+00 : f32
    %144 = vector.broadcast %cst_206 : f32 to vector<2x256xf32>
    %c0_207 = arith.constant 0 : index
    %c256_208 = arith.constant 256 : index
    %145 = vector.load %arg11[%c0_207, %c256_208] : memref<32x1792xf32, #tpu.memory_space<vmem>>, vector<2x256xf32>
    tpu.vector_store %arg11[%c0_207, %c256_208], %144 {strides = array<i32>} : memref<32x1792xf32, #tpu.memory_space<vmem>>, vector<2x256xf32>,
    %c0_209 = arith.constant 0 : index
    %c0_210 = arith.constant 0 : index
    %146 = vector.load %arg8[%c0_209, %c0_210] : memref<32x256xf32, #tpu.memory_space<vmem>>, vector<15x256xf32>
    %c1_211 = arith.constant 1 : index
    %c512_212 = arith.constant 512 : index
    %147 = vector.load %arg11[%c1_211, %c512_212] : memref<32x1792xf32, #tpu.memory_space<vmem>>, vector<15x256xf32>
    tpu.vector_store %arg11[%c1_211, %c512_212], %146 {strides = array<i32>} : memref<32x1792xf32, #tpu.memory_space<vmem>>, vector<15x256xf32>,
    %cst_213 = arith.constant 0.000000e+00 : f32
    %148 = vector.broadcast %cst_213 : f32 to vector<1x256xf32>
    %c0_214 = arith.constant 0 : index
    %c512_215 = arith.constant 512 : index
    %149 = vector.load %arg11[%c0_214, %c512_215] : memref<32x1792xf32, #tpu.memory_space<vmem>>, vector<1x256xf32>
    tpu.vector_store %arg11[%c0_214, %c512_215], %148 {strides = array<i32>} : memref<32x1792xf32, #tpu.memory_space<vmem>>, vector<1x256xf32>,
    %c0_216 = arith.constant 0 : index
    %c0_217 = arith.constant 0 : index
    %150 = vector.load %arg8[%c0_216, %c0_217] : memref<32x256xf32, #tpu.memory_space<vmem>>, vector<16x256xf32>
    %c0_218 = arith.constant 0 : index
    %c768_219 = arith.constant 768 : index
    %151 = vector.load %arg11[%c0_218, %c768_219] : memref<32x1792xf32, #tpu.memory_space<vmem>>, vector<16x256xf32>
    tpu.vector_store %arg11[%c0_218, %c768_219], %150 {strides = array<i32>} : memref<32x1792xf32, #tpu.memory_space<vmem>>, vector<16x256xf32>,
    %c1_220 = arith.constant 1 : index
    %c0_221 = arith.constant 0 : index
    %152 = vector.load %arg8[%c1_220, %c0_221] : memref<32x256xf32, #tpu.memory_space<vmem>>, vector<15x256xf32>
    %c0_222 = arith.constant 0 : index
    %c1024_223 = arith.constant 1024 : index
    %153 = vector.load %arg11[%c0_222, %c1024_223] : memref<32x1792xf32, #tpu.memory_space<vmem>>, vector<15x256xf32>
    tpu.vector_store %arg11[%c0_222, %c1024_223], %152 {strides = array<i32>} : memref<32x1792xf32, #tpu.memory_space<vmem>>, vector<15x256xf32>,
    %cst_224 = arith.constant 0.000000e+00 : f32
    %154 = vector.broadcast %cst_224 : f32 to vector<1x256xf32>
    %c15_225 = arith.constant 15 : index
    %c1024_226 = arith.constant 1024 : index
    %155 = vector.load %arg11[%c15_225, %c1024_226] : memref<32x1792xf32, #tpu.memory_space<vmem>>, vector<1x256xf32>
    tpu.vector_store %arg11[%c15_225, %c1024_226], %154 {strides = array<i32>} : memref<32x1792xf32, #tpu.memory_space<vmem>>, vector<1x256xf32>,
    %c2_227 = arith.constant 2 : index
    %c0_228 = arith.constant 0 : index
    %156 = vector.load %arg8[%c2_227, %c0_228] : memref<32x256xf32, #tpu.memory_space<vmem>>, vector<14x256xf32>
    %c0_229 = arith.constant 0 : index
    %c1280_230 = arith.constant 1280 : index
    %157 = vector.load %arg11[%c0_229, %c1280_230] : memref<32x1792xf32, #tpu.memory_space<vmem>>, vector<14x256xf32>
    tpu.vector_store %arg11[%c0_229, %c1280_230], %156 {strides = array<i32>} : memref<32x1792xf32, #tpu.memory_space<vmem>>, vector<14x256xf32>,
    %cst_231 = arith.constant 0.000000e+00 : f32
    %158 = vector.broadcast %cst_231 : f32 to vector<2x256xf32>
    %c14_232 = arith.constant 14 : index
    %c1280_233 = arith.constant 1280 : index
    %159 = vector.load %arg11[%c14_232, %c1280_233] : memref<32x1792xf32, #tpu.memory_space<vmem>>, vector<2x256xf32>
    tpu.vector_store %arg11[%c14_232, %c1280_233], %158 {strides = array<i32>} : memref<32x1792xf32, #tpu.memory_space<vmem>>, vector<2x256xf32>,
    %c3_234 = arith.constant 3 : index
    %c0_235 = arith.constant 0 : index
    %160 = vector.load %arg8[%c3_234, %c0_235] : memref<32x256xf32, #tpu.memory_space<vmem>>, vector<13x256xf32>
    %c0_236 = arith.constant 0 : index
    %c1536_237 = arith.constant 1536 : index
    %161 = vector.load %arg11[%c0_236, %c1536_237] : memref<32x1792xf32, #tpu.memory_space<vmem>>, vector<13x256xf32>
    tpu.vector_store %arg11[%c0_236, %c1536_237], %160 {strides = array<i32>} : memref<32x1792xf32, #tpu.memory_space<vmem>>, vector<13x256xf32>,
    %cst_238 = arith.constant 0.000000e+00 : f32
    %162 = vector.broadcast %cst_238 : f32 to vector<3x256xf32>
    %c13_239 = arith.constant 13 : index
    %c1536_240 = arith.constant 1536 : index
    %163 = vector.load %arg11[%c13_239, %c1536_240] : memref<32x1792xf32, #tpu.memory_space<vmem>>, vector<3x256xf32>
    tpu.vector_store %arg11[%c13_239, %c1536_240], %162 {strides = array<i32>} : memref<32x1792xf32, #tpu.memory_space<vmem>>, vector<3x256xf32>,
    %c16_241 = arith.constant 16 : index
    %c0_242 = arith.constant 0 : index
    %164 = vector.load %arg8[%c16_241, %c0_242] : memref<32x256xf32, #tpu.memory_space<vmem>>, vector<13x256xf32>
    %c19_243 = arith.constant 19 : index
    %c0_244 = arith.constant 0 : index
    %165 = vector.load %arg11[%c19_243, %c0_244] : memref<32x1792xf32, #tpu.memory_space<vmem>>, vector<13x256xf32>
    tpu.vector_store %arg11[%c19_243, %c0_244], %164 {strides = array<i32>} : memref<32x1792xf32, #tpu.memory_space<vmem>>, vector<13x256xf32>,
    %cst_245 = arith.constant 0.000000e+00 : f32
    %166 = vector.broadcast %cst_245 : f32 to vector<3x256xf32>
    %c16_246 = arith.constant 16 : index
    %c0_247 = arith.constant 0 : index
    %167 = vector.load %arg11[%c16_246, %c0_247] : memref<32x1792xf32, #tpu.memory_space<vmem>>, vector<3x256xf32>
    tpu.vector_store %arg11[%c16_246, %c0_247], %166 {strides = array<i32>} : memref<32x1792xf32, #tpu.memory_space<vmem>>, vector<3x256xf32>,
    %c16_248 = arith.constant 16 : index
    %c0_249 = arith.constant 0 : index
    %168 = vector.load %arg8[%c16_248, %c0_249] : memref<32x256xf32, #tpu.memory_space<vmem>>, vector<14x256xf32>
    %c18_250 = arith.constant 18 : index
    %c256_251 = arith.constant 256 : index
    %169 = vector.load %arg11[%c18_250, %c256_251] : memref<32x1792xf32, #tpu.memory_space<vmem>>, vector<14x256xf32>
    tpu.vector_store %arg11[%c18_250, %c256_251], %168 {strides = array<i32>} : memref<32x1792xf32, #tpu.memory_space<vmem>>, vector<14x256xf32>,
    %cst_252 = arith.constant 0.000000e+00 : f32
    %170 = vector.broadcast %cst_252 : f32 to vector<2x256xf32>
    %c16_253 = arith.constant 16 : index
    %c256_254 = arith.constant 256 : index
    %171 = vector.load %arg11[%c16_253, %c256_254] : memref<32x1792xf32, #tpu.memory_space<vmem>>, vector<2x256xf32>
    tpu.vector_store %arg11[%c16_253, %c256_254], %170 {strides = array<i32>} : memref<32x1792xf32, #tpu.memory_space<vmem>>, vector<2x256xf32>,
    %c16_255 = arith.constant 16 : index
    %c0_256 = arith.constant 0 : index
    %172 = vector.load %arg8[%c16_255, %c0_256] : memref<32x256xf32, #tpu.memory_space<vmem>>, vector<15x256xf32>
    %c17_257 = arith.constant 17 : index
    %c512_258 = arith.constant 512 : index
    %173 = vector.load %arg11[%c17_257, %c512_258] : memref<32x1792xf32, #tpu.memory_space<vmem>>, vector<15x256xf32>
    tpu.vector_store %arg11[%c17_257, %c512_258], %172 {strides = array<i32>} : memref<32x1792xf32, #tpu.memory_space<vmem>>, vector<15x256xf32>,
    %cst_259 = arith.constant 0.000000e+00 : f32
    %174 = vector.broadcast %cst_259 : f32 to vector<1x256xf32>
    %c16_260 = arith.constant 16 : index
    %c512_261 = arith.constant 512 : index
    %175 = vector.load %arg11[%c16_260, %c512_261] : memref<32x1792xf32, #tpu.memory_space<vmem>>, vector<1x256xf32>
    tpu.vector_store %arg11[%c16_260, %c512_261], %174 {strides = array<i32>} : memref<32x1792xf32, #tpu.memory_space<vmem>>, vector<1x256xf32>,
    %c16_262 = arith.constant 16 : index
    %c0_263 = arith.constant 0 : index
    %176 = vector.load %arg8[%c16_262, %c0_263] : memref<32x256xf32, #tpu.memory_space<vmem>>, vector<16x256xf32>
    %c16_264 = arith.constant 16 : index
    %c768_265 = arith.constant 768 : index
    %177 = vector.load %arg11[%c16_264, %c768_265] : memref<32x1792xf32, #tpu.memory_space<vmem>>, vector<16x256xf32>
    tpu.vector_store %arg11[%c16_264, %c768_265], %176 {strides = array<i32>} : memref<32x1792xf32, #tpu.memory_space<vmem>>, vector<16x256xf32>,
    %c17_266 = arith.constant 17 : index
    %c0_267 = arith.constant 0 : index
    %178 = vector.load %arg8[%c17_266, %c0_267] : memref<32x256xf32, #tpu.memory_space<vmem>>, vector<15x256xf32>
    %c16_268 = arith.constant 16 : index
    %c1024_269 = arith.constant 1024 : index
    %179 = vector.load %arg11[%c16_268, %c1024_269] : memref<32x1792xf32, #tpu.memory_space<vmem>>, vector<15x256xf32>
    tpu.vector_store %arg11[%c16_268, %c1024_269], %178 {strides = array<i32>} : memref<32x1792xf32, #tpu.memory_space<vmem>>, vector<15x256xf32>,
    %cst_270 = arith.constant 0.000000e+00 : f32
    %180 = vector.broadcast %cst_270 : f32 to vector<1x256xf32>
    %c31_271 = arith.constant 31 : index
    %c1024_272 = arith.constant 1024 : index
    %181 = vector.load %arg11[%c31_271, %c1024_272] : memref<32x1792xf32, #tpu.memory_space<vmem>>, vector<1x256xf32>
    tpu.vector_store %arg11[%c31_271, %c1024_272], %180 {strides = array<i32>} : memref<32x1792xf32, #tpu.memory_space<vmem>>, vector<1x256xf32>,
    %c18_273 = arith.constant 18 : index
    %c0_274 = arith.constant 0 : index
    %182 = vector.load %arg8[%c18_273, %c0_274] : memref<32x256xf32, #tpu.memory_space<vmem>>, vector<14x256xf32>
    %c16_275 = arith.constant 16 : index
    %c1280_276 = arith.constant 1280 : index
    %183 = vector.load %arg11[%c16_275, %c1280_276] : memref<32x1792xf32, #tpu.memory_space<vmem>>, vector<14x256xf32>
    tpu.vector_store %arg11[%c16_275, %c1280_276], %182 {strides = array<i32>} : memref<32x1792xf32, #tpu.memory_space<vmem>>, vector<14x256xf32>,
    %cst_277 = arith.constant 0.000000e+00 : f32
    %184 = vector.broadcast %cst_277 : f32 to vector<2x256xf32>
    %c30_278 = arith.constant 30 : index
    %c1280_279 = arith.constant 1280 : index
    %185 = vector.load %arg11[%c30_278, %c1280_279] : memref<32x1792xf32, #tpu.memory_space<vmem>>, vector<2x256xf32>
    tpu.vector_store %arg11[%c30_278, %c1280_279], %184 {strides = array<i32>} : memref<32x1792xf32, #tpu.memory_space<vmem>>, vector<2x256xf32>,
    %c19_280 = arith.constant 19 : index
    %c0_281 = arith.constant 0 : index
    %186 = vector.load %arg8[%c19_280, %c0_281] : memref<32x256xf32, #tpu.memory_space<vmem>>, vector<13x256xf32>
    %c16_282 = arith.constant 16 : index
    %c1536_283 = arith.constant 1536 : index
    %187 = vector.load %arg11[%c16_282, %c1536_283] : memref<32x1792xf32, #tpu.memory_space<vmem>>, vector<13x256xf32>
    tpu.vector_store %arg11[%c16_282, %c1536_283], %186 {strides = array<i32>} : memref<32x1792xf32, #tpu.memory_space<vmem>>, vector<13x256xf32>,
    %cst_284 = arith.constant 0.000000e+00 : f32
    %188 = vector.broadcast %cst_284 : f32 to vector<3x256xf32>
    %c29_285 = arith.constant 29 : index
    %c1536_286 = arith.constant 1536 : index
    %189 = vector.load %arg11[%c29_285, %c1536_286] : memref<32x1792xf32, #tpu.memory_space<vmem>>, vector<3x256xf32>
    tpu.vector_store %arg11[%c29_285, %c1536_286], %188 {strides = array<i32>} : memref<32x1792xf32, #tpu.memory_space<vmem>>, vector<3x256xf32>,
    %c0_287 = arith.constant 0 : index
    %c0_288 = arith.constant 0 : index
    %190 = vector.load %arg10[%c0_287, %c0_288] : memref<32x1792xf32, #tpu.memory_space<vmem>>, vector<32x1792xf32>
    %191 = arith.truncf %190 : vector<32x1792xf32> to vector<32x1792xbf16>
    %cst_289 = arith.constant dense<0.000000e+00> : vector<32x256xf32>
    %192 = tpu.matmul %191, %3, %cst_289 {dimension_numbers = #tpu.dot_dimension_numbers<[1], [0], [0], [1], [0, 0, 1, 1], [], []>} : vector<32x1792xbf16>, vector<1792x256xbf16>, vector<32x256xf32> -> vector<32x256xf32>
    %c0_290 = arith.constant 0 : index
    %c0_291 = arith.constant 0 : index
    %193 = vector.load %arg11[%c0_290, %c0_291] : memref<32x1792xf32, #tpu.memory_space<vmem>>, vector<32x1792xf32>
    %194 = arith.truncf %193 : vector<32x1792xf32> to vector<32x1792xbf16>
    %cst_292 = arith.constant dense<0.000000e+00> : vector<32x256xf32>
    %195 = tpu.matmul %194, %4, %cst_292 {dimension_numbers = #tpu.dot_dimension_numbers<[1], [0], [0], [1], [0, 0, 1, 1], [], []>} : vector<32x1792xbf16>, vector<1792x256xbf16>, vector<32x256xf32> -> vector<32x256xf32>
    %196 = arith.addf %192, %195 : vector<32x256xf32>
    %197 = vector.broadcast %1 : vector<1x256xf32> to vector<32x256xf32>
    %198 = arith.addf %196, %197 : vector<32x256xf32>
    %199 = vector.broadcast %2 : vector<1x256xf32> to vector<32x256xf32>
    %200 = arith.addf %198, %199 : vector<32x256xf32>
    %cst_293 = arith.constant 0.000000e+00 : f32
    %201 = vector.broadcast %cst_293 : f32 to vector<32x256xf32>
    %202 = arith.maximumf %200, %201 : vector<32x256xf32>
    %c0_294 = arith.constant 0 : index
    %c0_295 = arith.constant 0 : index
    %c0_296 = arith.constant 0 : index
    %203 = vector.load %arg6[%c0_294, %c0_295, %c0_296] : memref<1x32x256xf32, #tpu.memory_space<vmem>>, vector<1x32x256xf32>
    %204 = vector.shape_cast %203 : vector<1x32x256xf32> to vector<32x256xf32>
    %205 = vector.shape_cast %202 : vector<32x256xf32> to vector<1x32x256xf32>
    tpu.vector_store %arg6[%c0_294, %c0_295, %c0_296], %205 {strides = array<i32>} : memref<1x32x256xf32, #tpu.memory_space<vmem>>, vector<1x32x256xf32>,
    return
  }
  func.func @transform_0(%arg0: i32) -> (i32, i32, i32) {
    %c0_i32 = arith.constant 0 : i32
    %c0_i32_0 = arith.constant 0 : i32
    %c0_i32_1 = arith.constant 0 : i32
    return %arg0, %c0_i32, %c0_i32_0 : i32, i32, i32
  }
  func.func @transform_1(%arg0: i32) -> (i32, i32, i32) {
    %c0_i32 = arith.constant 0 : i32
    %c0_i32_0 = arith.constant 0 : i32
    %c0_i32_1 = arith.constant 0 : i32
    return %arg0, %c0_i32, %c0_i32_0 : i32, i32, i32
  }
  func.func @transform_2(%arg0: i32) -> (i32, i32) {
    %c0_i32 = arith.constant 0 : i32
    %c0_i32_0 = arith.constant 0 : i32
    %c0_i32_1 = arith.constant 0 : i32
    return %c0_i32, %c0_i32_0 : i32, i32
  }
  func.func @transform_3(%arg0: i32) -> (i32, i32) {
    %c0_i32 = arith.constant 0 : i32
    %c0_i32_0 = arith.constant 0 : i32
    %c0_i32_1 = arith.constant 0 : i32
    return %c0_i32, %c0_i32_0 : i32, i32
  }
  func.func @transform_4(%arg0: i32) -> (i32, i32) {
    %c0_i32 = arith.constant 0 : i32
    %c0_i32_0 = arith.constant 0 : i32
    %c0_i32_1 = arith.constant 0 : i32
    return %c0_i32, %c0_i32_0 : i32, i32
  }
  func.func @transform_5(%arg0: i32) -> (i32, i32, i32) {
    %c0_i32 = arith.constant 0 : i32
    %c0_i32_0 = arith.constant 0 : i32
    %c0_i32_1 = arith.constant 0 : i32
    return %arg0, %c0_i32, %c0_i32_0 : i32, i32, i32
  }
}

</mosaic_0001>

<bundles_post_ra>
// kernel: tile.13
= control target key start
LH: loop header
LB: loop body
LE: loop exit
PB: predicated region body
PF: predicated region fallthrough
CT: control target
= control target key end

     0   :  { %s28_s0 = inlined_call_operand.vmem [shape: f32[16], index: 0, kind: input, shape index: {}]   ;;  %s29_s1 = inlined_call_operand.vmem [shape: f32[16,16], index: 1, kind: output, shape index: {}]  }
   0x1   :  { %v4_v0 = vld [vmem:[%s28_s0] ss:$0 sm:$0xff] }
   0x2   :  { %5 = vst [vmem:[%s29_s1] sm:$0xff] %v4_v0  ;;  %8 = vst [vmem:[%s29_s1 + $0x8] sm:$0xff] %v4_v0 }

// kernel: tile.18
= control target key start
LH: loop header
LB: loop body
LE: loop exit
PB: predicated region body
PF: predicated region fallthrough
CT: control target
= control target key end

     0   :  { %s7_s6 = smov 3  ;;  %s21_s9 = smov 3  ;;  %vm4_vm0 = vcmask 130048   ;;  %vm11_vm1 = vcmask 1048448   ;;  %vm18_vm2 = vcmask 917248   ;;  %vm25_vm3 = vcmask 786048   ;;  %s131_s0 = inlined_call_operand.vmem [shape: f32[16,16], index: 0, kind: input, shape index: {}]   ;;  %s132_s1 = inlined_call_operand.vmem [shape: f32[1,256], index: 1, kind: output, shape index: {}]  }
   0x1   :  { %v69_v0 = vld [vmem:[%s131_s0 + $0x7] ss:$8 sm:%s7_s6]   ;;  %s84_s10 = smov 112   ;;  %v71_v1 = vld [vmem:[%s131_s0 + $0x5] ss:$8 sm:%s21_s9]   ;;  %s14_s13 = smov 3 }
   0x2   :  { %9 = vrot.lane.b32.xlu0 %v69_v0, %s84_s10  ;;  %s85_s14 = smov 80   ;;  %v70_v2 = vld [vmem:[%s131_s0 + $0x6] ss:$8 sm:%s14_s13]   ;;  %s28_s17 = smov 3  ;;  %vm32_vm4 = vcmask 654848   ;;  %vm39_vm5 = vcmask 523648  }
   0x3   :  { %23 = vrot.lane.b32.xlu1 %v71_v1, %s85_s14  ;;  %v72_v3 = vld [vmem:[%s131_s0 + $0x4] ss:$8 sm:%s28_s17]   ;;  %s35_s20 = smov 3  ;;  %s42_s21 = smov 3  ;;  %vm46_vm6 = vcmask 392448   ;;  %vm53_vm7 = vcmask 261248  }
   0x4   :  { %s86_s22 = smov 96   ;;  %s87_s23 = smov 64   ;;  %v73_v4 = vld [vmem:[%s131_s0 + $0x3] ss:$8 sm:%s35_s20]   ;;  %v74_v5 = vld [vmem:[%s131_s0 + $0x2] ss:$8 sm:%s42_s21]  }
   0x5   :  { %s2_s26 = smov 3  ;;  %s49_s29 = smov 3 }
   0x6   :  { %16 = vrot.lane.b32.xlu0 %v70_v2, %s86_s22  ;;  %v3_v6 = vld [vmem:[%s131_s0] ss:$8 sm:%s2_s26]   ;;  %s88_s3 = smov 48   ;;  %s89_s4 = smov 32  }
   0x7   :  { %30 = vrot.lane.b32.xlu1 %v72_v3, %s87_s23  ;;  %5 = vst.msk [vmem:[#allocation0] ss:$8 sm:$0x3] %vm4_vm0, %v3_v6   ;;  %v75_v7 = vld [vmem:[%s131_s0 + $0x1] ss:$8 sm:%s49_s29]   ;;  %s90_s0 = smov 16  }
   0xa   :  { %37 = vrot.lane.b32.xlu0 %v73_v4, %s88_s3 }
   0xb   :  { %44 = vrot.lane.b32.xlu1 %v74_v5, %s89_s4 }
   0xe   :  { %51 = vrot.lane.b32.xlu0 %v75_v7, %s90_s0 }
  0x74   :  { %v10_v8 = vpop.permute.xlu0 %9  }
  0x75   :  { %12 = vst.msk [vmem:[#allocation0] ss:$8 sm:$0x3] %vm11_vm1, %v10_v8   ;;  %v24_v9 = vpop.permute.xlu1 %23  }
  0x78   :  { %v17_v10 = vpop.permute.xlu0 %16  }
  0x79   :  { %19 = vst.msk [vmem:[#allocation0] ss:$8 sm:$0x3] %vm18_vm2, %v17_v10   ;;  %v31_v11 = vpop.permute.xlu1 %30  }
  0x7a   :  { %26 = vst.msk [vmem:[#allocation0] ss:$8 sm:$0x3] %vm25_vm3, %v24_v9  }
  0x7b   :  { %33 = vst.msk [vmem:[#allocation0] ss:$8 sm:$0x3] %vm32_vm4, %v31_v11  }
  0x7c   :  { %v38_v12 = vpop.permute.xlu0 %37  }
  0x7d   :  { %40 = vst.msk [vmem:[#allocation0] ss:$8 sm:$0x3] %vm39_vm5, %v38_v12   ;;  %v45_v13 = vpop.permute.xlu1 %44  }
  0x7e   :  { %47 = vst.msk [vmem:[#allocation0] ss:$8 sm:$0x3] %vm46_vm6, %v45_v13  }
  0x80   :  { %v52_v14 = vpop.permute.xlu0 %51  }
  0x81   :  { %54 = vst.msk [vmem:[#allocation0] ss:$8 sm:$0x3] %vm53_vm7, %v52_v14  }
  0x88   :  { %v59_v15 = vld [vmem:[#allocation0] sm:$0x1]  ;;  %v64_v16 = vld [vmem:[#allocation0 + $0x8] sm:$0x1] }
  0x89   :  { %62 = vst [vmem:[%s132_s1] sm:$0x1] %v59_v15  ;;  %76 = vst [vmem:[%s132_s1 + $0x1] sm:$0x1] %v64_v16 }

// kernel: model_forward.1
= control target key start
LH: loop header
LB: loop body
LE: loop exit
PB: predicated region body
PF: predicated region fallthrough
CT: control target
= control target key end

     0   :  { %v7079_v1 = vmov 0.0   ;;  %v542_v2 = vlaneseq  ;;  %vm477_vm1 = vcmask 1042432   ;;  %vm502_vm2 = vcmask 1041408   ;;  %s11049_s2 = inlined_call_operand.vmem [shape: bf16[1792,256], index: 2, kind: input, shape index: {}]   ;;  %s11050_s0 = inlined_call_operand.vmem [shape: f32[1,32,256], index: 0, kind: input, shape index: {}]   ;;  %s11051_s3 = inlined_call_operand.vmem [shape: bf16[1792,256], index: 3, kind: input, shape index: {}]   ;;  %s11052_s4 = inlined_call_operand.vmem [shape: f32[2,256], index: 4, kind: input, shape index: {}]   ;;  %s11053_s1 = inlined_call_operand.vmem [shape: f32[1,32,256], index: 1, kind: input, shape index: {}]   ;;  %s11054_s5 = inlined_call_operand.vmem [shape: f32[1,32,256], index: 5, kind: output, shape index: {}]  }
   0x1   :  { %v5941_v0 = vld [vmem:[%s11049_s2 + $0x74] ss:$8 sps:$4 sm:$0xff]   ;;  %493 = vst [vmem:[#allocation4 + $0x8] sm:$0x7] %v7079_v1  ;;  %492 = vst [vmem:[#allocation4] sm:$0x7] %v7079_v1 }
   0x2   :  { %517 = vst [vmem:[#allocation4 + $0x10] sm:$0x3] %v7079_v1  ;;  %518 = vst [vmem:[#allocation4 + $0x18] sm:$0x3] %v7079_v1  ;;  %v5943_v3 = vld [vmem:[%s11049_s2 + $0x174] ss:$8 sps:$4 sm:$0xff]   ;;  %2010 = vmatprep.subr.bf16.mxu0 %v5941_v0 }
   0x3   :  { %606 = vst [vmem:[#allocation4 + $0xc0] sm:$0xc0] %v7079_v1  ;;  %607 = vst [vmem:[#allocation4 + $0xc8] sm:$0xc0] %v7079_v1  ;;  %v5945_v4 = vld [vmem:[%s11049_s2 + $0x70] ss:$8 sps:$4 sm:$0xff]   ;;  %2063 = vmatprep.subr.bf16.mxu1 %v5943_v3 }
   0x4   :  { %631 = vst [vmem:[#allocation4 + $0xd0] sm:$0xe0] %v7079_v1  ;;  %632 = vst [vmem:[#allocation4 + $0xd8] sm:$0xe0] %v7079_v1  ;;  %v5946_v5 = vld [vmem:[%s11049_s2 + $0x170] ss:$8 sps:$4 sm:$0xff]   ;;  %2011 = vmatpush1.bf16.msra.mxu0 %v5945_v4 }
   0x5   :  { %655 = vst [vmem:[#allocation4 + $0xe0] sm:$0x7] %v7079_v1  ;;  %656 = vst [vmem:[#allocation4 + $0xe8] sm:$0x7] %v7079_v1  ;;  %vm544_vm0 = vcmp.lt.s32.totalorder %v542_v2, 256  ;;  %2064 = vmatpush1.bf16.msra.mxu1 %v5946_v5  ;;  %v7318_v50 = vld [vmem:[%s11050_s0 + $0x8] sm:$0xff] }
   0x6   :  { %679 = vst [vmem:[#allocation4 + $0xf0] sm:$0x3] %v7079_v1  ;;  %680 = vst [vmem:[#allocation4 + $0xf8] sm:$0x3] %v7079_v1  ;;  %v5947_v6 = vld [vmem:[%s11049_s2 + $0x64] ss:$8 sps:$4 sm:$0xff]  }
   0x7   :  { %761 = vst [vmem:[#allocation4 + $0x1a0] sm:$0xc0] %v7079_v1  ;;  %762 = vst [vmem:[#allocation4 + $0x1a8] sm:$0xc0] %v7079_v1  ;;  %v5949_v7 = vld [vmem:[%s11049_s2 + $0x164] ss:$8 sps:$4 sm:$0xff]   ;;  %2012 = vmatprep.subr.bf16.mxu0 %v5947_v6 }
   0x8   :  { %785 = vst [vmem:[#allocation4 + $0x1b0] sm:$0xe0] %v7079_v1  ;;  %786 = vst [vmem:[#allocation4 + $0x1b8] sm:$0xe0] %v7079_v1  ;;  %v5951_v8 = vld [vmem:[%s11049_s2 + $0x60] ss:$8 sps:$4 sm:$0xff]   ;;  %2065 = vmatprep.subr.bf16.mxu1 %v5949_v7 }
   0x9   :  { %3952 = vst [vmem:[#allocation5] sm:$0x7] %v7079_v1  ;;  %3953 = vst [vmem:[#allocation5 + $0x8] sm:$0x7] %v7079_v1  ;;  %v5952_v9 = vld [vmem:[%s11049_s2 + $0x160] ss:$8 sps:$4 sm:$0xff]   ;;  %2013 = vmatpush1.bf16.msra.mxu0 %v5951_v8 }
   0xa   :  { %3976 = vst [vmem:[#allocation5 + $0x10] sm:$0x3] %v7079_v1  ;;  %3977 = vst [vmem:[#allocation5 + $0x18] sm:$0x3] %v7079_v1  ;;  %v5953_v10 = vld [vmem:[%s11049_s2 + $0x54] ss:$8 sps:$4 sm:$0xff]   ;;  %2066 = vmatpush1.bf16.msra.mxu1 %v5952_v9 }
   0xb   :  { %4058 = vst [vmem:[#allocation5 + $0xc0] sm:$0xc0] %v7079_v1  ;;  %4059 = vst [vmem:[#allocation5 + $0xc8] sm:$0xc0] %v7079_v1  ;;  %v5955_v11 = vld [vmem:[%s11049_s2 + $0x154] ss:$8 sps:$4 sm:$0xff]   ;;  %2014 = vmatprep.subr.bf16.mxu0 %v5953_v10 }
   0xc   :  { %4082 = vst [vmem:[#allocation5 + $0xd0] sm:$0xe0] %v7079_v1  ;;  %4083 = vst [vmem:[#allocation5 + $0xd8] sm:$0xe0] %v7079_v1  ;;  %v5957_v12 = vld [vmem:[%s11049_s2 + $0x50] ss:$8 sps:$4 sm:$0xff]   ;;  %2067 = vmatprep.subr.bf16.mxu1 %v5955_v11 }
   0xd   :  { %4106 = vst [vmem:[#allocation5 + $0xe0] sm:$0x7] %v7079_v1  ;;  %4107 = vst [vmem:[#allocation5 + $0xe8] sm:$0x7] %v7079_v1  ;;  %v5958_v13 = vld [vmem:[%s11049_s2 + $0x150] ss:$8 sps:$4 sm:$0xff]   ;;  %2015 = vmatpush1.bf16.msra.mxu0 %v5957_v12 }
   0xe   :  { %4130 = vst [vmem:[#allocation5 + $0xf0] sm:$0x3] %v7079_v1  ;;  %4131 = vst [vmem:[#allocation5 + $0xf8] sm:$0x3] %v7079_v1  ;;  %v5959_v14 = vld [vmem:[%s11049_s2 + $0x44] ss:$8 sps:$4 sm:$0xff]   ;;  %2068 = vmatpush1.bf16.msra.mxu1 %v5958_v13 }
   0xf   :  { %4212 = vst [vmem:[#allocation5 + $0x1a0] sm:$0xc0] %v7079_v1  ;;  %4213 = vst [vmem:[#allocation5 + $0x1a8] sm:$0xc0] %v7079_v1  ;;  %v5961_v15 = vld [vmem:[%s11049_s2 + $0x144] ss:$8 sps:$4 sm:$0xff]   ;;  %2016 = vmatprep.subr.bf16.mxu0 %v5959_v14 }
  0x10   :  { %4236 = vst [vmem:[#allocation5 + $0x1b0] sm:$0xe0] %v7079_v1  ;;  %4237 = vst [vmem:[#allocation5 + $0x1b8] sm:$0xe0] %v7079_v1  ;;  %v5963_v16 = vld [vmem:[%s11049_s2 + $0x40] ss:$8 sps:$4 sm:$0xff]   ;;  %2069 = vmatprep.subr.bf16.mxu1 %v5961_v15 }
  0x11   :  { %4260 = vst [vmem:[#allocation6] sm:$0x7] %v7079_v1  ;;  %4261 = vst [vmem:[#allocation6 + $0x8] sm:$0x7] %v7079_v1  ;;  %v5964_v17 = vld [vmem:[%s11049_s2 + $0x140] ss:$8 sps:$4 sm:$0xff]   ;;  %2017 = vmatpush1.bf16.msra.mxu0 %v5963_v16 }
  0x12   :  { %4284 = vst [vmem:[#allocation6 + $0x10] sm:$0x3] %v7079_v1  ;;  %4285 = vst [vmem:[#allocation6 + $0x18] sm:$0x3] %v7079_v1  ;;  %v5965_v18 = vld [vmem:[%s11049_s2 + $0x34] ss:$8 sps:$4 sm:$0xff]   ;;  %2070 = vmatpush1.bf16.msra.mxu1 %v5964_v17 }
  0x13   :  { %4366 = vst [vmem:[#allocation6 + $0xc0] sm:$0xc0] %v7079_v1  ;;  %4367 = vst [vmem:[#allocation6 + $0xc8] sm:$0xc0] %v7079_v1  ;;  %v5967_v19 = vld [vmem:[%s11049_s2 + $0x134] ss:$8 sps:$4 sm:$0xff]   ;;  %2018 = vmatprep.subr.bf16.mxu0 %v5965_v18 }
  0x14   :  { %4390 = vst [vmem:[#allocation6 + $0xd0] sm:$0xe0] %v7079_v1  ;;  %4391 = vst [vmem:[#allocation6 + $0xd8] sm:$0xe0] %v7079_v1  ;;  %v5969_v20 = vld [vmem:[%s11049_s2 + $0x30] ss:$8 sps:$4 sm:$0xff]   ;;  %2071 = vmatprep.subr.bf16.mxu1 %v5967_v19 }
  0x15   :  { %4414 = vst [vmem:[#allocation6 + $0xe0] sm:$0x7] %v7079_v1  ;;  %4415 = vst [vmem:[#allocation6 + $0xe8] sm:$0x7] %v7079_v1  ;;  %v5970_v21 = vld [vmem:[%s11049_s2 + $0x130] ss:$8 sps:$4 sm:$0xff]   ;;  %2019 = vmatpush1.bf16.msra.mxu0 %v5969_v20 }
  0x16   :  { %4438 = vst [vmem:[#allocation6 + $0xf0] sm:$0x3] %v7079_v1  ;;  %4439 = vst [vmem:[#allocation6 + $0xf8] sm:$0x3] %v7079_v1  ;;  %v5971_v22 = vld [vmem:[%s11049_s2 + $0x24] ss:$8 sps:$4 sm:$0xff]   ;;  %2072 = vmatpush1.bf16.msra.mxu1 %v5970_v21 }
  0x17   :  { %4520 = vst [vmem:[#allocation6 + $0x1a0] sm:$0xc0] %v7079_v1  ;;  %4521 = vst [vmem:[#allocation6 + $0x1a8] sm:$0xc0] %v7079_v1  ;;  %v5973_v23 = vld [vmem:[%s11049_s2 + $0x124] ss:$8 sps:$4 sm:$0xff]   ;;  %2020 = vmatprep.subr.bf16.mxu0 %v5971_v22 }
  0x18   :  { %4544 = vst [vmem:[#allocation6 + $0x1b0] sm:$0xe0] %v7079_v1  ;;  %4545 = vst [vmem:[#allocation6 + $0x1b8] sm:$0xe0] %v7079_v1  ;;  %v5975_v24 = vld [vmem:[%s11049_s2 + $0x20] ss:$8 sps:$4 sm:$0xff]   ;;  %2073 = vmatprep.subr.bf16.mxu1 %v5973_v23 }
  0x19   :  { %547 = vst.msk [vmem:[#allocation4 + $0x20] ss:$8 sm:$0x3] %vm544_vm0, %v7079_v1  ;;  %581 = vst.msk [vmem:[#allocation4 + $0xb7] ss:$8 sm:$0x3] %vm544_vm0, %v7079_v1  ;;  %2021 = vmatpush1.bf16.msra.mxu0 %v5975_v24 }
  0x1a   :  { %704 = vst.msk [vmem:[#allocation4 + $0x100] ss:$8 sm:$0x3] %vm544_vm0, %v7079_v1  ;;  %737 = vst.msk [vmem:[#allocation4 + $0x197] ss:$8 sm:$0x3] %vm544_vm0, %v7079_v1 }
  0x1b   :  { %4001 = vst.msk [vmem:[#allocation5 + $0x20] ss:$8 sm:$0x3] %vm544_vm0, %v7079_v1  ;;  %4034 = vst.msk [vmem:[#allocation5 + $0xb7] ss:$8 sm:$0x3] %vm544_vm0, %v7079_v1 }
  0x1c   :  { %4155 = vst.msk [vmem:[#allocation5 + $0x100] ss:$8 sm:$0x3] %vm544_vm0, %v7079_v1  ;;  %4188 = vst.msk [vmem:[#allocation5 + $0x197] ss:$8 sm:$0x3] %vm544_vm0, %v7079_v1 }
  0x1d   :  { %4309 = vst.msk [vmem:[#allocation6 + $0x20] ss:$8 sm:$0x3] %vm544_vm0, %v7079_v1  ;;  %4342 = vst.msk [vmem:[#allocation6 + $0xb7] ss:$8 sm:$0x3] %vm544_vm0, %v7079_v1 }
  0x1e   :  { %4463 = vst.msk [vmem:[#allocation6 + $0x100] ss:$8 sm:$0x3] %vm544_vm0, %v7079_v1  ;;  %4496 = vst.msk [vmem:[#allocation6 + $0x197] ss:$8 sm:$0x3] %vm544_vm0, %v7079_v1 }
  0x1f   :  { %v5976_v25 = vld [vmem:[%s11049_s2 + $0x120] ss:$8 sps:$4 sm:$0xff]   ;;  %v5977_v26 = vld [vmem:[%s11049_s2 + $0x14] ss:$8 sps:$4 sm:$0xff]   ;;  %v5981_v28 = vld [vmem:[%s11049_s2 + $0x10] ss:$8 sps:$4 sm:$0xff]  }
  0x20   :  { %v5979_v27 = vld [vmem:[%s11049_s2 + $0x114] ss:$8 sps:$4 sm:$0xff]   ;;  %v5982_v29 = vld [vmem:[%s11049_s2 + $0x110] ss:$8 sps:$4 sm:$0xff]   ;;  %2074 = vmatpush1.bf16.msra.mxu1 %v5976_v25  ;;  %v5983_v30 = vld [vmem:[%s11049_s2 + $0x4] ss:$8 sps:$4 sm:$0xff]   ;;  %2022 = vmatprep.subr.bf16.mxu0 %v5977_v26 }
  0x21   :  { %2075 = vmatprep.subr.bf16.mxu1 %v5979_v27  ;;  %v5985_v31 = vld [vmem:[%s11049_s2 + $0x104] ss:$8 sps:$4 sm:$0xff]   ;;  %v5987_v32 = vld [vmem:[%s11049_s2] ss:$8 sps:$4 sm:$0xff]   ;;  %2023 = vmatpush1.bf16.msra.mxu0 %v5981_v28  ;;  %v5989_v34 = vld [vmem:[%s11049_s2 + $0xf4] ss:$8 sps:$4 sm:$0xff]  }
  0x22   :  { %v5988_v33 = vld [vmem:[%s11049_s2 + $0x100] ss:$8 sps:$4 sm:$0xff]   ;;  %2024 = vmatprep.subr.bf16.mxu0 %v5983_v30  ;;  %v5991_v35 = vld [vmem:[%s11049_s2 + $0x1f4] ss:$8 sps:$4 sm:$0xff]   ;;  %v5993_v36 = vld [vmem:[%s11049_s2 + $0xf0] ss:$8 sps:$4 sm:$0xff]  }
  0x23   :  { %v5994_v37 = vld [vmem:[%s11049_s2 + $0x1f0] ss:$8 sps:$4 sm:$0xff]   ;;  %v5995_v38 = vld [vmem:[%s11049_s2 + $0xe4] ss:$8 sps:$4 sm:$0xff]   ;;  %v5999_v40 = vld [vmem:[%s11049_s2 + $0xe0] ss:$8 sps:$4 sm:$0xff]  }
  0x24   :  { %2076 = vmatpush1.bf16.msra.mxu1 %v5982_v29  ;;  %v5997_v39 = vld [vmem:[%s11049_s2 + $0x1e4] ss:$8 sps:$4 sm:$0xff]   ;;  %v6000_v41 = vld [vmem:[%s11049_s2 + $0x1e0] ss:$8 sps:$4 sm:$0xff]   ;;  %v6001_v42 = vld [vmem:[%s11049_s2 + $0xd4] ss:$8 sps:$4 sm:$0xff]  }
  0x25   :  { %2077 = vmatprep.subr.bf16.mxu1 %v5985_v31  ;;  %2025 = vmatpush1.bf16.msra.mxu0 %v5987_v32  ;;  %v6003_v43 = vld [vmem:[%s11049_s2 + $0x1d4] ss:$8 sps:$4 sm:$0xff]   ;;  %v6005_v44 = vld [vmem:[%s11049_s2 + $0xd0] ss:$8 sps:$4 sm:$0xff]   ;;  %v6007_v46 = vld [vmem:[%s11049_s2 + $0xc4] ss:$8 sps:$4 sm:$0xff]  }
  0x26   :  { %2026 = vmatprep.subr.bf16.mxu0 %v5989_v34  ;;  %v6006_v45 = vld [vmem:[%s11049_s2 + $0x1d0] ss:$8 sps:$4 sm:$0xff]   ;;  %v6009_v47 = vld [vmem:[%s11049_s2 + $0x1c4] ss:$8 sps:$4 sm:$0xff]   ;;  %v6011_v48 = vld [vmem:[%s11049_s2 + $0xc0] ss:$8 sps:$4 sm:$0xff]  }
  0x27   :  { %v6012_v49 = vld [vmem:[%s11049_s2 + $0x1c0] ss:$8 sps:$4 sm:$0xff]   ;;  %v6013_v51 = vld [vmem:[%s11049_s2 + $0xb4] ss:$8 sps:$4 sm:$0xff]   ;;  %v479_v54 = vrot.slane %v7318_v50, 5  ;;  %v504_v56 = vrot.slane %v7318_v50, 6 }
  0x28   :  { %2078 = vmatpush1.bf16.msra.mxu1 %v5988_v33  ;;  %v6015_v52 = vld [vmem:[%s11049_s2 + $0x1b4] ss:$8 sps:$4 sm:$0xff]   ;;  %v7337_v59 = vld [vmem:[%s11050_s0] sm:$0xff]  ;;  %v6017_v5 = vld [vmem:[%s11049_s2 + $0xb0] ss:$8 sps:$4 sm:$0xff]   ;;  %v529_v8 = vrot.slane %v7318_v50, 7 }
  0x29   :  { %2079 = vmatprep.subr.bf16.mxu1 %v5991_v35  ;;  %2027 = vmatpush2.bf16.msra.mxu0 %v5993_v36  ;;  %v472_v53 = vld [vmem:[%s11050_s0 + $0x18] sm:$0x1f]  ;;  %v471_v60 = vld [vmem:[%s11050_s0 + $0x10] sm:$0x1f]  ;;  %489 = vst [vmem:[#allocation4 + $0x8] sm:$0xf8] %v479_v54 }
  0x2a   :  { %2028 = vmatprep.subr.bf16.mxu0 %v5995_v38  ;;  %v497_v55 = vld [vmem:[%s11050_s0 + $0x18] sm:$0x3f]  ;;  %v482_v57 = vrot.slane %v472_v53, 5  ;;  %514 = vst [vmem:[#allocation4 + $0x18] sm:$0xfc] %v504_v56  ;;  %v478_v61 = vrot.slane %v7337_v59, 5 }
  0x2b   :  { %v507_v58 = vrot.slane %v497_v55, 6  ;;  %v480_v62 = vrot.slane %v471_v60, 5  ;;  %v496_v63 = vld [vmem:[%s11050_s0 + $0x10] sm:$0x3f]  ;;  %v503_v0 = vrot.slane %v7337_v59, 6  ;;  %v528_v11 = vrot.slane %v7337_v59, 7 }
  0x2c   :  { %2080 = vmatpush2.bf16.msra.mxu1 %v5994_v37  ;;  %v483_v1 = vsel %vm477_vm1, %v479_v54, %v482_v57  ;;  %v505_v4 = vrot.slane %v496_v63, 6  ;;  %v6018_v6 = vld [vmem:[%s11049_s2 + $0x1b0] ss:$8 sps:$4 sm:$0xff]   ;;  %488 = vst [vmem:[#allocation4] sm:$0xf8] %v478_v61  ;;  %v7480_v54 = vld [vmem:[%s11050_s0 + $0x28] sm:$0xff] }
  0x2d   :  { %2081 = vmatprep.subr.bf16.mxu1 %v5997_v39  ;;  %2029 = vmatpush2.bf16.msra.mxu0 %v5999_v40  ;;  %v508_v3 = vsel %vm502_vm2, %v504_v56, %v507_v58  ;;  %v481_v7 = vsel %vm477_vm1, %v478_v61, %v480_v62  ;;  %513 = vst [vmem:[#allocation4 + $0x10] sm:$0xfc] %v503_v0  ;;  %v6019_v9 = vld [vmem:[%s11049_s2 + $0xa4] ss:$8 sps:$4 sm:$0xff]   ;;  %539 = vst [vmem:[#allocation4 + $0x28] sm:$0xfe] %v529_v8 }
  0x2e   :  { %2030 = vmatprep.subr.bf16.mxu0 %v6001_v42  ;;  %v506_v10 = vsel %vm502_vm2, %v503_v0, %v505_v4  ;;  %v6021_v12 = vld [vmem:[%s11049_s2 + $0x1a4] ss:$8 sps:$4 sm:$0xff]   ;;  %538 = vst [vmem:[#allocation4 + $0x20] sm:$0xfe] %v528_v11  ;;  %v6023_v13 = vld [vmem:[%s11049_s2 + $0xa0] ss:$8 sps:$4 sm:$0xff]  }
  0x2f   :  { %v6024_v14 = vld [vmem:[%s11049_s2 + $0x1a0] ss:$8 sps:$4 sm:$0xff]   ;;  %v6025_v17 = vld [vmem:[%s11049_s2 + $0x94] ss:$8 sps:$4 sm:$0xff]   ;;  %v6029_v21 = vld [vmem:[%s11049_s2 + $0x90] ss:$8 sps:$4 sm:$0xff]  }
  0x30   :  { %2082 = vmatpush2.bf16.msra.mxu1 %v6000_v41  ;;  %v788_v15 = vld [vmem:[#allocation4 + $0x8] sm:$0xff]  ;;  %v6027_v18 = vld [vmem:[%s11049_s2 + $0x194] ss:$8 sps:$4 sm:$0xff]   ;;  %v6030_v22 = vld [vmem:[%s11049_s2 + $0x190] ss:$8 sps:$4 sm:$0xff]   ;;  %v642_v56 = vrot.slane %v7480_v54, 5 }
  0x31   :  { %2083 = vmatprep.subr.bf16.mxu1 %v6003_v43  ;;  %2031 = vmatpush2.bf16.msra.mxu0 %v6005_v44  ;;  %v790_v16 = vld [vmem:[#allocation4 + $0x18] sm:$0xff]  ;;  %v7381_v19 = vpack.c.bf16 %v483_v1, %v788_v15  ;;  %v6031_v23 = vld [vmem:[%s11049_s2 + $0x84] ss:$8 sps:$4 sm:$0xff]   ;;  %v6035_v25 = vld [vmem:[%s11049_s2 + $0x80] ss:$8 sps:$4 sm:$0xff]   ;;  %v666_v61 = vrot.slane %v7480_v54, 6 }
  0x32   :  { %2032 = vmatprep.subr.bf16.mxu0 %v6007_v46  ;;  %v7383_v20 = vpack.c.bf16 %v508_v3, %v790_v16  ;;  %v6033_v24 = vld [vmem:[%s11049_s2 + $0x184] ss:$8 sps:$4 sm:$0xff]   ;;  %v6036_v26 = vld [vmem:[%s11049_s2 + $0x180] ss:$8 sps:$4 sm:$0xff]   ;;  %v6039_v28 = vld [vmem:[%s11049_s2 + $0x274] ss:$8 sps:$4 sm:$0xff]  }
  0x33   :  { %2042 = vmatprep.mubr.bf16.mxu0 %v7381_v19  ;;  %v787_v27 = vld [vmem:[#allocation4] sm:$0xff]  ;;  %v6042_v30 = vld [vmem:[%s11049_s2 + $0x374] ss:$8 sps:$4 sm:$0xff]   ;;  %v6037_v33 = vld [vmem:[%s11049_s2 + $0x270] ss:$8 sps:$4 sm:$0xff]   ;;  %vm527_vm3 = vcmask 1040384  }
  0x34   :  { %2084 = vmatpush2.bf16.msra.mxu1 %v6006_v45  ;;  %2095 = vmatprep.mubr.bf16.mxu1 %v7383_v20  ;;  %v789_v29 = vld [vmem:[#allocation4 + $0x10] sm:$0xff]  ;;  %v7411_v31 = vpack.c.bf16 %v481_v7, %v787_v27  ;;  %v6045_v35 = vld [vmem:[%s11049_s2 + $0x264] ss:$8 sps:$4 sm:$0xff]   ;;  %v6043_v37 = vld [vmem:[%s11049_s2 + $0x260] ss:$8 sps:$4 sm:$0xff]   ;;  %vm565_vm4 = vcmask 1046528  }
  0x35   :  { %2085 = vmatprep.subr.bf16.mxu1 %v6009_v47  ;;  %2033 = vmatpush2.bf16.msra.mxu0 %v6011_v48  ;;  %v7413_v32 = vpack.c.bf16 %v506_v10, %v789_v29  ;;  %v6040_v34 = vld [vmem:[%s11049_s2 + $0x370] ss:$8 sps:$4 sm:$0xff]   ;;  %v6048_v36 = vld [vmem:[%s11049_s2 + $0x364] ss:$8 sps:$4 sm:$0xff]   ;;  %v6046_v38 = vld [vmem:[%s11049_s2 + $0x360] ss:$8 sps:$4 sm:$0xff]  }
  0x36   :  { %2034 = vmatprep.subr.bf16.mxu0 %v6013_v51  ;;  %v6051_v39 = vld [vmem:[%s11049_s2 + $0x254] ss:$8 sps:$4 sm:$0xff]   ;;  %v6049_v41 = vld [vmem:[%s11049_s2 + $0x250] ss:$8 sps:$4 sm:$0xff]   ;;  %v6057_v43 = vld [vmem:[%s11049_s2 + $0x244] ss:$8 sps:$4 sm:$0xff]  }
  0x37   :  { %v6054_v40 = vld [vmem:[%s11049_s2 + $0x354] ss:$8 sps:$4 sm:$0xff]   ;;  %v6052_v42 = vld [vmem:[%s11049_s2 + $0x350] ss:$8 sps:$4 sm:$0xff]   ;;  %v6060_v44 = vld [vmem:[%s11049_s2 + $0x344] ss:$8 sps:$4 sm:$0xff]  }
  0x38   :  { %2086 = vmatpush2.bf16.msra.mxu1 %v6012_v49  ;;  %v6055_v45 = vld [vmem:[%s11049_s2 + $0x240] ss:$8 sps:$4 sm:$0xff]   ;;  %v6063_v47 = vld [vmem:[%s11049_s2 + $0x234] ss:$8 sps:$4 sm:$0xff]   ;;  %v6061_v49 = vld [vmem:[%s11049_s2 + $0x230] ss:$8 sps:$4 sm:$0xff]  }
  0x39   :  { %2087 = vmatprep.subr.bf16.mxu1 %v6015_v52  ;;  %2035 = vmatpush2.bf16.msra.mxu0 %v6017_v5  ;;  %v6058_v46 = vld [vmem:[%s11049_s2 + $0x340] ss:$8 sps:$4 sm:$0xff]   ;;  %v6066_v48 = vld [vmem:[%s11049_s2 + $0x334] ss:$8 sps:$4 sm:$0xff]   ;;  %v6064_v51 = vld [vmem:[%s11049_s2 + $0x330] ss:$8 sps:$4 sm:$0xff]  }
  0x3a   :  { %2036 = vmatprep.subr.bf16.mxu0 %v6019_v9  ;;  %v6069_v52 = vld [vmem:[%s11049_s2 + $0x224] ss:$8 sps:$4 sm:$0xff]   ;;  %v636_v55 = vld [vmem:[%s11050_s0 + $0x38] sm:$0x1f]  ;;  %v635_v60 = vld [vmem:[%s11050_s0 + $0x30] sm:$0x1f] }
  0x3b   :  { %v6072_v53 = vld [vmem:[%s11049_s2 + $0x324] ss:$8 sps:$4 sm:$0xff]   ;;  %v645_v57 = vrot.slane %v636_v55, 5  ;;  %v643_v63 = vrot.slane %v635_v60, 5  ;;  %v660_v0 = vld [vmem:[%s11050_s0 + $0x38] sm:$0x3f] }
  0x3c   :  { %2088 = vmatpush2.bf16.msra.mxu1 %v6018_v6  ;;  %v7489_v58 = vld [vmem:[%s11050_s0 + $0x20] sm:$0xff]  ;;  %652 = vst [vmem:[#allocation4 + $0xe8] sm:$0xf8] %v642_v56  ;;  %v669_v5 = vrot.slane %v660_v0, 6  ;;  %676 = vst [vmem:[#allocation4 + $0xf8] sm:$0xfc] %v666_v61 }
  0x3d   :  { %2089 = vmatprep.subr.bf16.mxu1 %v6021_v12  ;;  %2037 = vmatpush2.bf16.msra.mxu0 %v6023_v13  ;;  %v641_v62 = vrot.slane %v7489_v58, 5  ;;  %v6067_v1 = vld [vmem:[%s11049_s2 + $0x220] ss:$8 sps:$4 sm:$0xff]   ;;  %v646_v4 = vsel %vm477_vm1, %v642_v56, %v645_v57  ;;  %v6075_v6 = vld [vmem:[%s11049_s2 + $0x214] ss:$8 sps:$4 sm:$0xff]   ;;  %v665_v10 = vrot.slane %v7489_v58, 6 }
  0x3e   :  { %2038 = vmatprep.subr.bf16.mxu0 %v6025_v17  ;;  %v6070_v3 = vld [vmem:[%s11049_s2 + $0x320] ss:$8 sps:$4 sm:$0xff]   ;;  %v6078_v7 = vld [vmem:[%s11049_s2 + $0x314] ss:$8 sps:$4 sm:$0xff]   ;;  %v670_v12 = vsel %vm502_vm2, %v666_v61, %v669_v5  ;;  %v689_v15 = vrot.slane %v7489_v58, 7  ;;  %vm591_vm5 = vcmask 1045504  }
  0x3f   :  { %v644_v9 = vsel %vm477_vm1, %v641_v62, %v643_v63  ;;  %651 = vst [vmem:[#allocation4 + $0xe0] sm:$0xf8] %v641_v62  ;;  %v659_v13 = vld [vmem:[%s11050_s0 + $0x30] sm:$0x3f]  ;;  %675 = vst [vmem:[#allocation4 + $0xf0] sm:$0xfc] %v665_v10 }
  0x40   :  { %2090 = vmatpush2.bf16.msra.mxu1 %v6024_v14  ;;  %v690_v14 = vrot.slane %v7480_v54, 7  ;;  %v6073_v16 = vld [vmem:[%s11049_s2 + $0x210] ss:$8 sps:$4 sm:$0xff]   ;;  %v667_v17 = vrot.slane %v659_v13, 6  ;;  %699 = vst [vmem:[#allocation4 + $0x100] sm:$0xfe] %v689_v15 }
  0x41   :  { %2091 = vmatprep.subr.bf16.mxu1 %v6027_v18  ;;  %2039 = vmatpush2.bf16.msra.mxu0 %v6029_v21  ;;  %v6076_v18 = vld [vmem:[%s11049_s2 + $0x310] ss:$8 sps:$4 sm:$0xff]   ;;  %v6081_v21 = vld [vmem:[%s11049_s2 + $0x204] ss:$8 sps:$4 sm:$0xff]   ;;  %v6090_v29 = vld [vmem:[%s11049_s2 + $0x3f4] ss:$8 sps:$4 sm:$0xff]  }
  0x42   :  { %2040 = vmatprep.subr.bf16.mxu0 %v6031_v23  ;;  %700 = vst [vmem:[#allocation4 + $0x108] sm:$0xfe] %v690_v14  ;;  %v668_v23 = vsel %vm502_vm2, %v665_v10, %v667_v17  ;;  %v6096_v56 = vld [vmem:[%s11049_s2 + $0x3e4] ss:$8 sps:$4 sm:$0xff]   ;;  %v6094_v57 = vld [vmem:[%s11049_s2 + $0x3e0] ss:$8 sps:$4 sm:$0xff]  }
  0x43   :  { %v816_v27 = vld [vmem:[#allocation4 + $0xe8] sm:$0xff]  ;;  %v6099_v60 = vld [vmem:[%s11049_s2 + $0x2d4] ss:$8 sps:$4 sm:$0xff]   ;;  %vm616_vm6 = vcmask 1044480  }
  0x44   :  { %2092 = vmatpush2.bf16.msra.mxu1 %v6030_v22  ;;  %v6084_v22 = vld [vmem:[%s11049_s2 + $0x304] ss:$8 sps:$4 sm:$0xff]   ;;  %v684_v61 = vld [vmem:[%s11050_s0 + $0x38] sm:$0x7f]  ;;  %v683_v0 = vld [vmem:[%s11050_s0 + $0x30] sm:$0x7f] }
  0x45   :  { %2093 = vmatprep.subr.bf16.mxu1 %v6033_v24  ;;  %2041 = vmatpush2.bf16.msra.mxu0 %v6035_v25  ;;  %v6079_v24 = vld [vmem:[%s11049_s2 + $0x200] ss:$8 sps:$4 sm:$0xff]   ;;  %v6102_v62 = vld [vmem:[%s11049_s2 + $0x3d4] ss:$8 sps:$4 sm:$0xff]   ;;  %v693_v63 = vrot.slane %v684_v61, 7 }
  0x46   :  { %2116 = vmatprep.subr.bf16.mxu0 %v6039_v28  ;;  %v6082_v25 = vld [vmem:[%s11049_s2 + $0x300] ss:$8 sps:$4 sm:$0xff]   ;;  %v818_v28 = vld [vmem:[#allocation4 + $0xf8] sm:$0xff]  ;;  %v7662_v10 = vld [vmem:[%s11050_s0 + $0x30] sm:$0xff] }
  0x47   :  { %v7644_v5 = vsel %vm527_vm3, %v690_v14, %v693_v63  ;;  %v723_v14 = vrot.slane %v7662_v10, 1  ;;  %v748_v17 = vrot.slane %v7662_v10, 2  ;;  %v6139_v63 = vld [vmem:[%s11049_s2 + $0x460] ss:$8 sps:$4 sm:$0xff]  }
  0x48   :  { %2094 = vmatpush2.bf16.msra.mxu1 %v6036_v26  ;;  %2043 = vmatmul.mubr.bf16.vlgmr.msra.gmra.mxu0 %v7411_v31  ;;  %v6087_v26 = vld [vmem:[%s11049_s2 + $0x2f4] ss:$8 sps:$4 sm:$0xff]  }
  0x49   :  { %2169 = vmatprep.subr.bf16.mxu1 %v6042_v30  ;;  %2117 = vmatpush1.bf16.msra.mxu0 %v6037_v33  ;;  %v7549_v30 = vpack.c.bf16 %v646_v4, %v816_v27  ;;  %v815_v33 = vld [vmem:[#allocation4 + $0xe0] sm:$0xff]  ;;  %v6100_v4 = vld [vmem:[%s11049_s2 + $0x3d0] ss:$8 sps:$4 sm:$0xff]   ;;  %734 = vst [vmem:[#allocation4 + $0x190] sm:$0x7f] %v723_v14 }
  0x4a   :  { %2118 = vmatprep.subr.bf16.mxu0 %v6045_v35  ;;  %v522_v35 = vld [vmem:[%s11050_s0 + $0x18] sm:$0x7f]  ;;  %759 = vst [vmem:[#allocation4 + $0x1a0] sm:$0x3f] %v748_v17  ;;  %v6115_v27 = vld [vmem:[%s11049_s2 + $0x2a0] ss:$8 sps:$4 sm:$0xff]  }
  0x4b   :  { %2096 = vmatmul.mubr.bf16.vlgmr.msra.gmra.mxu1 %v7413_v32  ;;  %2052 = vmatprep.mubr.bf16.mxu0 %v7549_v30 }
  0x4c   :  { %2170 = vmatpush1.bf16.msra.mxu1 %v6040_v34  ;;  %v7551_v34 = vpack.c.bf16 %v670_v12, %v818_v28  ;;  %v6108_v12 = vld [vmem:[%s11049_s2 + $0x3c4] ss:$8 sps:$4 sm:$0xff]   ;;  %v6118_v28 = vld [vmem:[%s11049_s2 + $0x3a0] ss:$8 sps:$4 sm:$0xff]  }
  0x4d   :  { %2171 = vmatprep.subr.bf16.mxu1 %v6048_v36  ;;  %2119 = vmatpush1.bf16.msra.mxu0 %v6043_v37  ;;  %v7556_v36 = vpack.c.bf16 %v644_v9, %v815_v33  ;;  %v532_v37 = vrot.slane %v522_v35, 7  ;;  %v7657_v9 = vld [vmem:[%s11050_s0 + $0x38] sm:$0xff] }
  0x4e   :  { %2120 = vmatprep.subr.bf16.mxu0 %v6051_v39  ;;  %v7561_v39 = vld [vmem:[%s11050_s0 + $0x18] sm:$0xff]  ;;  %2105 = vmatprep.mubr.bf16.mxu1 %v7551_v34  ;;  %v726_v13 = vrot.slane %v7657_v9, 1 }
  0x4f   :  { %v6126_v33 = vld [vmem:[%s11049_s2 + $0x394] ss:$8 sps:$4 sm:$0xff]   ;;  %v6121_v35 = vld [vmem:[%s11049_s2 + $0x290] ss:$8 sps:$4 sm:$0xff]  }
  0x50   :  { %2172 = vmatpush1.bf16.msra.mxu1 %v6046_v38  ;;  %v792_v38 = vld [vmem:[#allocation4 + $0x28] sm:$0xff]  ;;  %2053 = vmatmul.mubr.bf16.gmra.mxu0 %v7556_v36  ;;  %735 = vst [vmem:[#allocation4 + $0x198] sm:$0x7f] %v726_v13 }
  0x51   :  { %2173 = vmatprep.subr.bf16.mxu1 %v6054_v40  ;;  %2121 = vmatpush1.bf16.msra.mxu0 %v6049_v41  ;;  %v521_v40 = vld [vmem:[%s11050_s0 + $0x10] sm:$0x7f] }
  0x52   :  { %2122 = vmatprep.subr.bf16.mxu0 %v6057_v43  ;;  %v817_v41 = vld [vmem:[#allocation4 + $0xf0] sm:$0xff] }
  0x53   :  { %v7571_v43 = vld [vmem:[%s11050_s0 + $0x10] sm:$0xff] }
  0x54   :  { %2174 = vmatpush1.bf16.msra.mxu1 %v6052_v42  ;;  %v530_v42 = vrot.slane %v521_v40, 7  ;;  %v6132_v40 = vld [vmem:[%s11049_s2 + $0x384] ss:$8 sps:$4 sm:$0xff]  }
  0x55   :  { %2175 = vmatprep.subr.bf16.mxu1 %v6060_v44  ;;  %2123 = vmatpush1.bf16.msra.mxu0 %v6055_v45  ;;  %v570_v44 = vrot.slane %v7561_v39, 1  ;;  %v596_v45 = vrot.slane %v7561_v39, 2 }
  0x56   :  { %2124 = vmatprep.subr.bf16.mxu0 %v6063_v47  ;;  %v7579_v47 = vpack.c.bf16 %v668_v23, %v817_v41  ;;  %v7597_v55 = vsel %vm527_vm3, %v528_v11, %v530_v42  ;;  %v6091_v11 = vld [vmem:[%s11049_s2 + $0x2e0] ss:$8 sps:$4 sm:$0xff]   ;;  %v6109_v23 = vld [vmem:[%s11049_s2 + $0x2b0] ss:$8 sps:$4 sm:$0xff]  }
  0x57   :  { %579 = vst [vmem:[#allocation4 + $0xb8] sm:$0x7f] %v570_v44  ;;  %605 = vst [vmem:[#allocation4 + $0xc8] sm:$0x3f] %v596_v45  ;;  %v6127_v41 = vld [vmem:[%s11049_s2 + $0x280] ss:$8 sps:$4 sm:$0xff]  }
  0x58   :  { %2176 = vmatpush1.bf16.msra.mxu1 %v6058_v46  ;;  %v6085_v46 = vld [vmem:[%s11049_s2 + $0x2f0] ss:$8 sps:$4 sm:$0xff]   ;;  %v6130_v42 = vld [vmem:[%s11049_s2 + $0x380] ss:$8 sps:$4 sm:$0xff]  }
  0x59   :  { %2177 = vmatprep.subr.bf16.mxu1 %v6066_v48  ;;  %2125 = vmatpush1.bf16.msra.mxu0 %v6061_v49  ;;  %v533_v48 = vsel %vm527_vm3, %v529_v8, %v532_v37  ;;  %v7586_v49 = vpack.c.bf16 %v7561_v39, %v7318_v50  ;;  %v593_v50 = vrot.slane %v7571_v43, 2  ;;  %v6093_v8 = vld [vmem:[%s11049_s2 + $0x2e4] ss:$8 sps:$4 sm:$0xff]   ;;  %v6124_v37 = vld [vmem:[%s11049_s2 + $0x390] ss:$8 sps:$4 sm:$0xff]  }
  0x5a   :  { %2126 = vmatprep.subr.bf16.mxu0 %v6069_v52  ;;  %v6088_v52 = vld [vmem:[%s11049_s2 + $0x3f0] ss:$8 sps:$4 sm:$0xff]   ;;  %2106 = vmatmul.mubr.bf16.gmra.mxu1 %v7579_v47 }
  0x5b   :  { %604 = vst [vmem:[#allocation4 + $0xc0] sm:$0x3f] %v593_v50  ;;  %2201 = vmatprep.mubr.bf16.mxu1 %v7586_v49 }
  0x5c   :  { %2178 = vmatpush1.bf16.msra.mxu1 %v6064_v51  ;;  %v567_v51 = vrot.slane %v7571_v43, 1 }
  0x5d   :  { %2179 = vmatprep.subr.bf16.mxu1 %v6072_v53  ;;  %2127 = vmatpush1.bf16.msra.mxu0 %v6067_v1  ;;  %v7592_v53 = vpack.c.bf16 %v533_v48, %v792_v38  ;;  %v6097_v1 = vld [vmem:[%s11049_s2 + $0x2d0] ss:$8 sps:$4 sm:$0xff]   ;;  %v6129_v38 = vld [vmem:[%s11049_s2 + $0x284] ss:$8 sps:$4 sm:$0xff]   ;;  %v6135_v48 = vld [vmem:[%s11049_s2 + $0x474] ss:$8 sps:$4 sm:$0xff]  }
  0x5e   :  { %2128 = vmatprep.subr.bf16.mxu0 %v6075_v6  ;;  %578 = vst [vmem:[#allocation4 + $0xb0] sm:$0x7f] %v567_v51  ;;  %v6105_v6 = vld [vmem:[%s11049_s2 + $0x2c4] ss:$8 sps:$4 sm:$0xff]  }
  0x5f   :  { %2148 = vmatprep.mubr.bf16.mxu0 %v7592_v53 }
  0x60   :  { %2180 = vmatpush1.bf16.msra.mxu1 %v6070_v3  ;;  %v691_v3 = vrot.slane %v683_v0, 7  ;;  %v6142_v0 = vld [vmem:[%s11049_s2 + $0x560] ss:$8 sps:$4 sm:$0xff]  }
  0x61   :  { %2181 = vmatprep.subr.bf16.mxu1 %v6078_v7  ;;  %2129 = vmatpush1.bf16.msra.mxu0 %v6073_v16  ;;  %v6103_v16 = vld [vmem:[%s11049_s2 + $0x2c0] ss:$8 sps:$4 sm:$0xff]  }
  0x62   :  { %2130 = vmatprep.subr.bf16.mxu0 %v6081_v21  ;;  %v7652_v7 = vsel %vm527_vm3, %v689_v15, %v691_v3  ;;  %v751_v15 = vrot.slane %v7657_v9, 2  ;;  %v6111_v21 = vld [vmem:[%s11049_s2 + $0x2b4] ss:$8 sps:$4 sm:$0xff]  }
  0x63   :  { %v6150_v3 = vld [vmem:[%s11049_s2 + $0x554] ss:$8 sps:$4 sm:$0xff]  }
  0x64   :  { %2182 = vmatpush1.bf16.msra.mxu1 %v6076_v18  ;;  %v6106_v18 = vld [vmem:[%s11049_s2 + $0x3c0] ss:$8 sps:$4 sm:$0xff]   ;;  %760 = vst [vmem:[#allocation4 + $0x1a8] sm:$0x3f] %v751_v15 }
  0x65   :  { %2183 = vmatprep.subr.bf16.mxu1 %v6084_v22  ;;  %2131 = vmatpush1.bf16.msra.mxu0 %v6079_v24  ;;  %v6114_v22 = vld [vmem:[%s11049_s2 + $0x3b4] ss:$8 sps:$4 sm:$0xff]   ;;  %v6112_v24 = vld [vmem:[%s11049_s2 + $0x3b0] ss:$8 sps:$4 sm:$0xff]  }
  0x66   :  { %2132 = vmatprep.subr.bf16.mxu0 %v6087_v26  ;;  %v6120_v26 = vld [vmem:[%s11049_s2 + $0x3a4] ss:$8 sps:$4 sm:$0xff]  }
  0x68   :  { %2184 = vmatpush1.bf16.msra.mxu1 %v6082_v25  ;;  %v6117_v25 = vld [vmem:[%s11049_s2 + $0x2a4] ss:$8 sps:$4 sm:$0xff]  }
  0x69   :  { %2185 = vmatprep.subr.bf16.mxu1 %v6090_v29  ;;  %2133 = vmatpush2.bf16.msra.mxu0 %v6085_v46  ;;  %v6123_v29 = vld [vmem:[%s11049_s2 + $0x294] ss:$8 sps:$4 sm:$0xff]   ;;  %v791_v46 = vld [vmem:[#allocation4 + $0x20] sm:$0xff] }
  0x6a   :  { %2134 = vmatprep.subr.bf16.mxu0 %v6093_v8  ;;  %v7740_v8 = vpack.c.bf16 %v7597_v55, %v791_v46  ;;  %v6141_v55 = vld [vmem:[%s11049_s2 + $0x464] ss:$8 sps:$4 sm:$0xff]   ;;  %v6160_v46 = vld [vmem:[%s11049_s2 + $0x530] ss:$8 sps:$4 sm:$0xff]  }
  0x6c   :  { %2186 = vmatpush2.bf16.msra.mxu1 %v6088_v52  ;;  %v6138_v52 = vld [vmem:[%s11049_s2 + $0x574] ss:$8 sps:$4 sm:$0xff]  }
  0x6d   :  { %2187 = vmatprep.subr.bf16.mxu1 %v6096_v56  ;;  %2135 = vmatpush2.bf16.msra.mxu0 %v6091_v11  ;;  %v7744_v56 = vpack.c.bf16 %v7571_v43, %v7337_v59  ;;  %v6133_v11 = vld [vmem:[%s11049_s2 + $0x470] ss:$8 sps:$4 sm:$0xff]   ;;  %v6144_v59 = vld [vmem:[%s11049_s2 + $0x564] ss:$8 sps:$4 sm:$0xff]   ;;  %v6166_v43 = vld [vmem:[%s11049_s2 + $0x520] ss:$8 sps:$4 sm:$0xff]  }
  0x6e   :  { %2136 = vmatprep.subr.bf16.mxu0 %v6099_v60  ;;  %v6136_v60 = vld [vmem:[%s11049_s2 + $0x570] ss:$8 sps:$4 sm:$0xff]  }
  0x70   :  { %2188 = vmatpush2.bf16.msra.mxu1 %v6094_v57  ;;  %v820_v57 = vld [vmem:[#allocation4 + $0x108] sm:$0xff] }
  0x71   :  { %2189 = vmatprep.subr.bf16.mxu1 %v6102_v62  ;;  %2137 = vmatpush2.bf16.msra.mxu0 %v6097_v1  ;;  %v7759_v61 = vpack.c.bf16 %v7644_v5, %v820_v57  ;;  %v7763_v62 = vpack.c.bf16 %v7657_v9, %v7480_v54  ;;  %v819_v1 = vld [vmem:[#allocation4 + $0x100] sm:$0xff]  ;;  %v6147_v54 = vld [vmem:[%s11049_s2 + $0x454] ss:$8 sps:$4 sm:$0xff]   ;;  %v6145_v5 = vld [vmem:[%s11049_s2 + $0x450] ss:$8 sps:$4 sm:$0xff]  }
  0x72   :  { %2138 = vmatprep.subr.bf16.mxu0 %v6105_v6  ;;  %v7789_v6 = vpack.c.bf16 %v7662_v10, %v7489_v58  ;;  %v6151_v58 = vld [vmem:[%s11049_s2 + $0x440] ss:$8 sps:$4 sm:$0xff]   ;;  %v6183_v9 = vld [vmem:[%s11049_s2 + $0x4f4] ss:$8 sps:$4 sm:$0xff]   ;;  %v6181_v10 = vld [vmem:[%s11049_s2 + $0x4f0] ss:$8 sps:$4 sm:$0xff]  }
  0x74   :  { %2190 = vmatpush2.bf16.msra.mxu1 %v6100_v4  ;;  %v7782_v4 = vpack.c.bf16 %v7652_v7, %v819_v1  ;;  %v6156_v7 = vld [vmem:[%s11049_s2 + $0x544] ss:$8 sps:$4 sm:$0xff]   ;;  %v6172_v1 = vld [vmem:[%s11049_s2 + $0x510] ss:$8 sps:$4 sm:$0xff]  }
  0x75   :  { %2191 = vmatprep.subr.bf16.mxu1 %v6108_v12  ;;  %2139 = vmatpush2.bf16.msra.mxu0 %v6103_v16  ;;  %v6148_v12 = vld [vmem:[%s11049_s2 + $0x550] ss:$8 sps:$4 sm:$0xff]   ;;  %v6153_v16 = vld [vmem:[%s11049_s2 + $0x444] ss:$8 sps:$4 sm:$0xff]  }
  0x76   :  { %2140 = vmatprep.subr.bf16.mxu0 %v6111_v21  ;;  %v6159_v21 = vld [vmem:[%s11049_s2 + $0x434] ss:$8 sps:$4 sm:$0xff]  }
  0x78   :  { %2192 = vmatpush2.bf16.msra.mxu1 %v6106_v18  ;;  %v6154_v18 = vld [vmem:[%s11049_s2 + $0x540] ss:$8 sps:$4 sm:$0xff]  }
  0x79   :  { %2193 = vmatprep.subr.bf16.mxu1 %v6114_v22  ;;  %2141 = vmatpush2.bf16.msra.mxu0 %v6109_v23  ;;  %v558_v22 = vld [vmem:[%s11050_s0 + $0x8] sm:$0xfe]  ;;  %v6162_v23 = vld [vmem:[%s11049_s2 + $0x534] ss:$8 sps:$4 sm:$0xff]  }
  0x7a   :  { %2142 = vmatprep.subr.bf16.mxu0 %v6117_v25  ;;  %v810_v25 = vld [vmem:[#allocation4 + $0xb8] sm:$0xff] }
  0x7c   :  { %2194 = vmatpush2.bf16.msra.mxu1 %v6112_v24  ;;  %v569_v24 = vrot.slane %v558_v22, 1  ;;  %v6189_v22 = vld [vmem:[%s11049_s2 + $0x4e4] ss:$8 sps:$4 sm:$0xff]  }
  0x7d   :  { %2195 = vmatprep.subr.bf16.mxu1 %v6120_v26  ;;  %2143 = vmatpush2.bf16.msra.mxu0 %v6115_v27  ;;  %v584_v26 = vld [vmem:[%s11050_s0 + $0x8] sm:$0xfc] }
  0x7e   :  { %2144 = vmatprep.subr.bf16.mxu0 %v6123_v29  ;;  %v595_v27 = vrot.slane %v584_v26, 2  ;;  %v557_v29 = vld [vmem:[%s11050_s0] sm:$0xfe]  ;;  %v6195_v26 = vld [vmem:[%s11049_s2 + $0x4d4] ss:$8 sps:$4 sm:$0xff]  }
  0x80   :  { %2196 = vmatpush2.bf16.msra.mxu1 %v6118_v28  ;;  %v812_v28 = vld [vmem:[#allocation4 + $0xc8] sm:$0xff] }
  0x81   :  { %2197 = vmatprep.subr.bf16.mxu1 %v6126_v33  ;;  %2145 = vmatpush2.bf16.msra.mxu0 %v6121_v35  ;;  %v583_v33 = vld [vmem:[%s11050_s0] sm:$0xfc]  ;;  %v571_v35 = vsel %vm565_vm4, %v569_v24, %v570_v44 }
  0x82   :  { %2146 = vmatprep.subr.bf16.mxu0 %v6129_v38  ;;  %v592_v38 = vrot.slane %v583_v33, 2  ;;  %v6165_v44 = vld [vmem:[%s11049_s2 + $0x424] ss:$8 sps:$4 sm:$0xff]   ;;  %v6187_v24 = vld [vmem:[%s11049_s2 + $0x4e0] ss:$8 sps:$4 sm:$0xff]  }
  0x83   :  { %v6201_v33 = vld [vmem:[%s11049_s2 + $0x4c4] ss:$8 sps:$4 sm:$0xff]  }
  0x84   :  { %2198 = vmatpush2.bf16.msra.mxu1 %v6124_v37  ;;  %v566_v37 = vrot.slane %v557_v29, 1  ;;  %v7853_v39 = vsel %vm591_vm5, %v592_v38, %v593_v50  ;;  %v715_v50 = vld [vmem:[%s11050_s0 + $0x28] sm:$0xfe]  ;;  %v6196_v29 = vld [vmem:[%s11049_s2 + $0x5d0] ss:$8 sps:$4 sm:$0xff]  }
  0x85   :  { %2199 = vmatprep.subr.bf16.mxu1 %v6132_v40  ;;  %2147 = vmatpush2.bf16.msra.mxu0 %v6127_v41  ;;  %v6157_v40 = vld [vmem:[%s11049_s2 + $0x430] ss:$8 sps:$4 sm:$0xff]   ;;  %v7832_v41 = vpack.c.bf16 %v810_v25, %v571_v35  ;;  %v725_v57 = vrot.slane %v715_v50, 1  ;;  %v6190_v25 = vld [vmem:[%s11049_s2 + $0x5e0] ss:$8 sps:$4 sm:$0xff]  }
  0x86   :  { %2222 = vmatprep.subr.bf16.mxu0 %v6135_v48  ;;  %v6204_v35 = vld [vmem:[%s11049_s2 + $0x5c4] ss:$8 sps:$4 sm:$0xff]   ;;  %v6202_v38 = vld [vmem:[%s11049_s2 + $0x5c0] ss:$8 sps:$4 sm:$0xff]  }
  0x87   :  { %v6214_v50 = vld [vmem:[%s11049_s2 + $0x5a0] ss:$8 sps:$4 sm:$0xff]  }
  0x88   :  { %2200 = vmatpush2.bf16.msra.mxu1 %v6130_v42  ;;  %2149 = vmatmul.mubr.bf16.vlgmr.msra.gmra.mxu0 %v7740_v8  ;;  %v597_v42 = vsel %vm591_vm5, %v595_v27, %v596_v45  ;;  %v6168_v45 = vld [vmem:[%s11049_s2 + $0x524] ss:$8 sps:$4 sm:$0xff]   ;;  %v6198_v27 = vld [vmem:[%s11049_s2 + $0x5d4] ss:$8 sps:$4 sm:$0xff]  }
  0x89   :  { %2275 = vmatprep.subr.bf16.mxu1 %v6138_v52  ;;  %2223 = vmatpush1.bf16.msra.mxu0 %v6133_v11  ;;  %v7843_v48 = vpack.c.bf16 %v812_v28, %v597_v42  ;;  %v7848_v52 = vsel %vm565_vm4, %v566_v37, %v567_v51  ;;  %v6163_v51 = vld [vmem:[%s11049_s2 + $0x420] ss:$8 sps:$4 sm:$0xff]   ;;  %v6171_v11 = vld [vmem:[%s11049_s2 + $0x414] ss:$8 sps:$4 sm:$0xff]   ;;  %v6193_v28 = vld [vmem:[%s11049_s2 + $0x4d0] ss:$8 sps:$4 sm:$0xff]  }
  0x8a   :  { %2224 = vmatprep.subr.bf16.mxu0 %v6141_v55  ;;  %2158 = vmatprep.mubr.bf16.mxu0 %v7759_v61  ;;  %v6174_v55 = vld [vmem:[%s11049_s2 + $0x514] ss:$8 sps:$4 sm:$0xff]   ;;  %v6199_v37 = vld [vmem:[%s11049_s2 + $0x4c0] ss:$8 sps:$4 sm:$0xff]  }
  0x8b   :  { %2202 = vmatmul.mubr.bf16.vlgmr.msra.gmra.mxu1 %v7744_v56  ;;  %v6210_v42 = vld [vmem:[%s11049_s2 + $0x5b4] ss:$8 sps:$4 sm:$0xff]  }
  0x8c   :  { %2276 = vmatpush1.bf16.msra.mxu1 %v6136_v60  ;;  %2211 = vmatprep.mubr.bf16.mxu1 %v7763_v62  ;;  %v714_v60 = vld [vmem:[%s11050_s0 + $0x20] sm:$0xfe] }
  0x8d   :  { %2277 = vmatprep.subr.bf16.mxu1 %v6144_v59  ;;  %2225 = vmatpush1.bf16.msra.mxu0 %v6139_v63  ;;  %v722_v59 = vrot.slane %v714_v60, 1  ;;  %v7881_v63 = vsel %vm565_vm4, %v725_v57, %v726_v13  ;;  %v6177_v13 = vld [vmem:[%s11049_s2 + $0x404] ss:$8 sps:$4 sm:$0xff]   ;;  %v6222_v57 = vld [vmem:[%s11049_s2 + $0x594] ss:$8 sps:$4 sm:$0xff]  }
  0x8e   :  { %2226 = vmatprep.subr.bf16.mxu0 %v6147_v54  ;;  %v6217_v60 = vld [vmem:[%s11049_s2 + $0x490] ss:$8 sps:$4 sm:$0xff]  }
  0x8f   :  { %v7892_v54 = vsel %vm565_vm4, %v722_v59, %v723_v14  ;;  %v6180_v14 = vld [vmem:[%s11049_s2 + $0x504] ss:$8 sps:$4 sm:$0xff]  }
  0x90   :  { %2278 = vmatpush1.bf16.msra.mxu1 %v6142_v0  ;;  %2159 = vmatmul.mubr.bf16.gmra.mxu0 %v7782_v4  ;;  %v6169_v0 = vld [vmem:[%s11049_s2 + $0x410] ss:$8 sps:$4 sm:$0xff]   ;;  %v6225_v59 = vld [vmem:[%s11049_s2 + $0x484] ss:$8 sps:$4 sm:$0xff]  }
  0x91   :  { %2279 = vmatprep.subr.bf16.mxu1 %v6150_v3  ;;  %2227 = vmatpush1.bf16.msra.mxu0 %v6145_v5  ;;  %v740_v3 = vld [vmem:[%s11050_s0 + $0x28] sm:$0xfc] }
  0x92   :  { %2228 = vmatprep.subr.bf16.mxu0 %v6153_v16  ;;  %2254 = vmatprep.mubr.bf16.mxu0 %v7832_v41  ;;  %v750_v5 = vrot.slane %v740_v3, 2  ;;  %v6226_v3 = vld [vmem:[%s11049_s2 + $0x580] ss:$8 sps:$4 sm:$0xff]  }
  0x93   :  { %2212 = vmatmul.mubr.bf16.gmra.mxu1 %v7789_v6 }
  0x94   :  { %2280 = vmatpush1.bf16.msra.mxu1 %v6148_v12  ;;  %2307 = vmatprep.mubr.bf16.mxu1 %v7843_v48  ;;  %v739_v12 = vld [vmem:[%s11050_s0 + $0x20] sm:$0xfc] }
  0x95   :  { %2281 = vmatprep.subr.bf16.mxu1 %v6156_v7  ;;  %2229 = vmatpush1.bf16.msra.mxu0 %v6151_v58  ;;  %v747_v16 = vrot.slane %v739_v12, 2  ;;  %v7909_v7 = vsel %vm591_vm5, %v750_v5, %v751_v15  ;;  %v6175_v58 = vld [vmem:[%s11049_s2 + $0x400] ss:$8 sps:$4 sm:$0xff]   ;;  %v6186_v15 = vld [vmem:[%s11049_s2 + $0x5f4] ss:$8 sps:$4 sm:$0xff]  }
  0x96   :  { %2230 = vmatprep.subr.bf16.mxu0 %v6159_v21  ;;  %v6178_v21 = vld [vmem:[%s11049_s2 + $0x500] ss:$8 sps:$4 sm:$0xff]   ;;  %v6231_v12 = vld [vmem:[%s11049_s2 + $0x674] ss:$8 sps:$4 sm:$0xff]  }
  0x97   :  { %v811_v5 = vld [vmem:[#allocation4 + $0xc0] sm:$0xff] }
  0x98   :  { %2282 = vmatpush1.bf16.msra.mxu1 %v6154_v18  ;;  %v7917_v18 = vsel %vm591_vm5, %v747_v16, %v748_v17  ;;  %v6184_v17 = vld [vmem:[%s11049_s2 + $0x5f0] ss:$8 sps:$4 sm:$0xff]   ;;  %v6234_v16 = vld [vmem:[%s11051_s3 + $0x74] ss:$8 sps:$4 sm:$0xff]  }
  0x99   :  { %2283 = vmatprep.subr.bf16.mxu1 %v6162_v23  ;;  %2231 = vmatpush1.bf16.msra.mxu0 %v6157_v40  ;;  %v6192_v23 = vld [vmem:[%s11049_s2 + $0x5e4] ss:$8 sps:$4 sm:$0xff]   ;;  %v6207_v40 = vld [vmem:[%s11049_s2 + $0x4b4] ss:$8 sps:$4 sm:$0xff]  }
  0x9a   :  { %2232 = vmatprep.subr.bf16.mxu0 %v6165_v44  ;;  %v6208_v44 = vld [vmem:[%s11049_s2 + $0x5b0] ss:$8 sps:$4 sm:$0xff]  }
  0x9c   :  { %2284 = vmatpush1.bf16.msra.mxu1 %v6160_v46  ;;  %v6205_v46 = vld [vmem:[%s11049_s2 + $0x4b0] ss:$8 sps:$4 sm:$0xff]  }
  0x9d   :  { %2285 = vmatprep.subr.bf16.mxu1 %v6168_v45  ;;  %2233 = vmatpush1.bf16.msra.mxu0 %v6163_v51  ;;  %v6213_v45 = vld [vmem:[%s11049_s2 + $0x4a4] ss:$8 sps:$4 sm:$0xff]  }
  0x9e   :  { %2234 = vmatprep.subr.bf16.mxu0 %v6171_v11  ;;  %v6216_v51 = vld [vmem:[%s11049_s2 + $0x5a4] ss:$8 sps:$4 sm:$0xff]   ;;  %v6219_v11 = vld [vmem:[%s11049_s2 + $0x494] ss:$8 sps:$4 sm:$0xff]  }
  0xa0   :  { %2286 = vmatpush1.bf16.msra.mxu1 %v6166_v43  ;;  %v6211_v43 = vld [vmem:[%s11049_s2 + $0x4a0] ss:$8 sps:$4 sm:$0xff]  }
  0xa1   :  { %2287 = vmatprep.subr.bf16.mxu1 %v6174_v55  ;;  %2235 = vmatpush1.bf16.msra.mxu0 %v6169_v0  ;;  %v6220_v55 = vld [vmem:[%s11049_s2 + $0x590] ss:$8 sps:$4 sm:$0xff]   ;;  %v6228_v0 = vld [vmem:[%s11049_s2 + $0x584] ss:$8 sps:$4 sm:$0xff]  }
  0xa2   :  { %2236 = vmatprep.subr.bf16.mxu0 %v6177_v13  ;;  %v809_v13 = vld [vmem:[#allocation4 + $0xb0] sm:$0xff] }
  0xa4   :  { %2288 = vmatpush1.bf16.msra.mxu1 %v6172_v1  ;;  %v6223_v1 = vld [vmem:[%s11049_s2 + $0x480] ss:$8 sps:$4 sm:$0xff]  }
  0xa5   :  { %2289 = vmatprep.subr.bf16.mxu1 %v6180_v14  ;;  %2237 = vmatpush1.bf16.msra.mxu0 %v6175_v58  ;;  %v609_v14 = vld [vmem:[%s11050_s0 + $0x8] sm:$0xf8]  ;;  %v611_v58 = vld [vmem:[%s11050_s0 + $0x18] sm:$0xff] }
  0xa6   :  { %2238 = vmatprep.subr.bf16.mxu0 %v6183_v9  ;;  %v608_v9 = vld [vmem:[%s11050_s0] sm:$0xf8] }
  0xa8   :  { %2290 = vmatpush1.bf16.msra.mxu1 %v6178_v21  ;;  %v620_v21 = vrot.slane %v609_v14, 3  ;;  %v6247_v14 = vld [vmem:[%s11049_s2 + $0x640] ss:$8 sps:$4 sm:$0xff]  }
  0xa9   :  { %2291 = vmatprep.subr.bf16.mxu1 %v6186_v15  ;;  %2239 = vmatpush2.bf16.msra.mxu0 %v6181_v10  ;;  %v621_v15 = vrot.slane %v611_v58, 3  ;;  %v610_v10 = vld [vmem:[%s11050_s0 + $0x10] sm:$0xff] }
  0xaa   :  { %2240 = vmatprep.subr.bf16.mxu0 %v6189_v22  ;;  %v6229_v22 = vld [vmem:[%s11049_s2 + $0x670] ss:$8 sps:$4 sm:$0xff]   ;;  %v6255_v58 = vld [vmem:[%s11049_s2 + $0x634] ss:$8 sps:$4 sm:$0xff]  }
  0xab   :  { %630 = vst [vmem:[#allocation4 + $0xd8] sm:$0x1f] %v621_v15 }
  0xac   :  { %2292 = vmatpush2.bf16.msra.mxu1 %v6184_v17  ;;  %v617_v17 = vrot.slane %v608_v9, 3  ;;  %v6253_v9 = vld [vmem:[%s11049_s2 + $0x630] ss:$8 sps:$4 sm:$0xff]  }
  0xad   :  { %2293 = vmatprep.subr.bf16.mxu1 %v6192_v23  ;;  %2241 = vmatpush2.bf16.msra.mxu0 %v6187_v24  ;;  %v6232_v23 = vld [vmem:[%s11051_s3 + $0x70] ss:$8 sps:$4 sm:$0xff]   ;;  %v618_v24 = vrot.slane %v610_v10, 3  ;;  %v6261_v10 = vld [vmem:[%s11049_s2 + $0x624] ss:$8 sps:$4 sm:$0xff]  }
  0xae   :  { %2242 = vmatprep.subr.bf16.mxu0 %v6195_v26  ;;  %v8046_v26 = vpack.c.bf16 %v811_v5, %v7853_v39  ;;  %v6235_v39 = vld [vmem:[%s11049_s2 + $0x660] ss:$8 sps:$4 sm:$0xff]   ;;  %v6244_v5 = vld [vmem:[%s11051_s3 + $0x50] ss:$8 sps:$4 sm:$0xff]  }
  0xaf   :  { %629 = vst [vmem:[#allocation4 + $0xd0] sm:$0x1f] %v618_v24 }
  0xb0   :  { %2294 = vmatpush2.bf16.msra.mxu1 %v6190_v25  ;;  %v8043_v25 = vpack.c.bf16 %v809_v13, %v7848_v52  ;;  %v6240_v52 = vld [vmem:[%s11051_s3 + $0x64] ss:$8 sps:$4 sm:$0xff]   ;;  %v6241_v13 = vld [vmem:[%s11049_s2 + $0x650] ss:$8 sps:$4 sm:$0xff]  }
  0xb1   :  { %2295 = vmatprep.subr.bf16.mxu1 %v6198_v27  ;;  %2243 = vmatpush2.bf16.msra.mxu0 %v6193_v28  ;;  %v838_v27 = vld [vmem:[#allocation4 + $0x198] sm:$0xff]  ;;  %v840_v28 = vld [vmem:[#allocation4 + $0x1a8] sm:$0xff] }
  0xb2   :  { %2244 = vmatprep.subr.bf16.mxu0 %v6201_v33  ;;  %v6237_v33 = vld [vmem:[%s11049_s2 + $0x664] ss:$8 sps:$4 sm:$0xff]  }
  0xb4   :  { %2296 = vmatpush2.bf16.msra.mxu1 %v6196_v29  ;;  %v622_v29 = vsel %vm616_vm6, %v620_v21, %v621_v15  ;;  %v6258_v21 = vld [vmem:[%s11051_s3 + $0x34] ss:$8 sps:$4 sm:$0xff]   ;;  %v6256_v15 = vld [vmem:[%s11051_s3 + $0x30] ss:$8 sps:$4 sm:$0xff]  }
  0xb5   :  { %2297 = vmatprep.subr.bf16.mxu1 %v6204_v35  ;;  %2245 = vmatpush2.bf16.msra.mxu0 %v6199_v37  ;;  %v8053_v35 = vsel %vm616_vm6, %v617_v17, %v618_v24  ;;  %v6238_v37 = vld [vmem:[%s11051_s3 + $0x60] ss:$8 sps:$4 sm:$0xff]   ;;  %v6270_v24 = vld [vmem:[%s11051_s3 + $0x14] ss:$8 sps:$4 sm:$0xff]  }
  0xb6   :  { %2246 = vmatprep.subr.bf16.mxu0 %v6207_v40  ;;  %v837_v40 = vld [vmem:[#allocation4 + $0x190] sm:$0xff]  ;;  %v6259_v17 = vld [vmem:[%s11049_s2 + $0x620] ss:$8 sps:$4 sm:$0xff]  }
  0xb8   :  { %2298 = vmatpush2.bf16.msra.mxu1 %v6202_v38  ;;  %v8065_v38 = vpack.c.bf16 %v838_v27, %v7881_v63  ;;  %v763_v63 = vld [vmem:[%s11050_s0 + $0x20] sm:$0xf8]  ;;  %v6265_v27 = vld [vmem:[%s11049_s2 + $0x610] ss:$8 sps:$4 sm:$0xff]  }
  0xb9   :  { %2299 = vmatprep.subr.bf16.mxu1 %v6210_v42  ;;  %2247 = vmatpush2.bf16.msra.mxu0 %v6205_v46  ;;  %v8068_v42 = vpack.c.bf16 %v840_v28, %v7909_v7  ;;  %v839_v46 = vld [vmem:[#allocation4 + $0x1a0] sm:$0xff]  ;;  %v765_v7 = vld [vmem:[%s11050_s0 + $0x30] sm:$0xff] }
  0xba   :  { %2248 = vmatprep.subr.bf16.mxu0 %v6213_v45  ;;  %v766_v45 = vld [vmem:[%s11050_s0 + $0x38] sm:$0xff] }
  0xbb   :  { %v6268_v28 = vld [vmem:[%s11051_s3 + $0x10] ss:$8 sps:$4 sm:$0xff]  }
  0xbc   :  { %2300 = vmatpush2.bf16.msra.mxu1 %v6208_v44  ;;  %v764_v44 = vld [vmem:[%s11050_s0 + $0x28] sm:$0xf8] }
  0xbd   :  { %2301 = vmatprep.subr.bf16.mxu1 %v6216_v51  ;;  %2249 = vmatpush2.bf16.msra.mxu0 %v6211_v43  ;;  %v774_v51 = vrot.slane %v764_v44, 3  ;;  %v775_v43 = vrot.slane %v766_v45, 3  ;;  %v6280_v44 = vld [vmem:[%s11051_s3 + $0xf0] ss:$8 sps:$4 sm:$0xff]   ;;  %v6285_v45 = vld [vmem:[%s11049_s2 + $0x6e4] ss:$8 sps:$4 sm:$0xff]  }
  0xbe   :  { %2250 = vmatprep.subr.bf16.mxu0 %v6219_v11  ;;  %v772_v11 = vrot.slane %v765_v7, 3  ;;  %v6286_v7 = vld [vmem:[%s11051_s3 + $0xe0] ss:$8 sps:$4 sm:$0xff]  }
  0xbf   :  { %784 = vst [vmem:[#allocation4 + $0x1b8] sm:$0x1f] %v775_v43 }
  0xc0   :  { %2302 = vmatpush2.bf16.msra.mxu1 %v6214_v50  ;;  %v771_v50 = vrot.slane %v763_v63, 3  ;;  %783 = vst [vmem:[#allocation4 + $0x1b0] sm:$0x1f] %v772_v11  ;;  %v6283_v63 = vld [vmem:[%s11049_s2 + $0x6e0] ss:$8 sps:$4 sm:$0xff]  }
  0xc1   :  { %2303 = vmatprep.subr.bf16.mxu1 %v6222_v57  ;;  %2251 = vmatpush2.bf16.msra.mxu0 %v6217_v60  ;;  %v6243_v57 = vld [vmem:[%s11049_s2 + $0x654] ss:$8 sps:$4 sm:$0xff]  }
  0xc2   :  { %2252 = vmatprep.subr.bf16.mxu0 %v6225_v59  ;;  %v6246_v60 = vld [vmem:[%s11051_s3 + $0x54] ss:$8 sps:$4 sm:$0xff]   ;;  %v8096_v59 = vsel %vm616_vm6, %v771_v50, %v772_v11  ;;  %v6289_v11 = vld [vmem:[%s11049_s2 + $0x6d0] ss:$8 sps:$4 sm:$0xff]  }
  0xc3   :  { %v6294_v50 = vld [vmem:[%s11051_s3 + $0xd4] ss:$8 sps:$4 sm:$0xff]  }
  0xc4   :  { %2304 = vmatpush2.bf16.msra.mxu1 %v6220_v55  ;;  %v8093_v55 = vsel %vm616_vm6, %v774_v51, %v775_v43  ;;  %v6288_v51 = vld [vmem:[%s11051_s3 + $0xe4] ss:$8 sps:$4 sm:$0xff]   ;;  %v6291_v43 = vld [vmem:[%s11049_s2 + $0x6d4] ss:$8 sps:$4 sm:$0xff]  }
  0xc5   :  { %2305 = vmatprep.subr.bf16.mxu1 %v6228_v0  ;;  %2253 = vmatpush2.bf16.msra.mxu0 %v6223_v1  ;;  %v8099_v0 = vpack.c.bf16 %v837_v40, %v7892_v54  ;;  %v8102_v1 = vpack.c.bf16 %v839_v46, %v7917_v18  ;;  %v6249_v54 = vld [vmem:[%s11049_s2 + $0x644] ss:$8 sps:$4 sm:$0xff]   ;;  %v6282_v40 = vld [vmem:[%s11051_s3 + $0xf4] ss:$8 sps:$4 sm:$0xff]   ;;  %v6277_v46 = vld [vmem:[%s11049_s2 + $0x6f0] ss:$8 sps:$4 sm:$0xff]  }
  0xc6   :  { %2328 = vmatprep.subr.bf16.mxu0 %v6231_v12  ;;  %v6252_v18 = vld [vmem:[%s11051_s3 + $0x44] ss:$8 sps:$4 sm:$0xff]  }
  0xc8   :  { %2306 = vmatpush2.bf16.msra.mxu1 %v6226_v3  ;;  %2255 = vmatmul.mubr.bf16.vlgmr.msra.gmra.mxu0 %v8043_v25  ;;  %v814_v3 = vld [vmem:[#allocation4 + $0xd8] sm:$0xff] }
  0xc9   :  { %3519 = vmatprep.subr.bf16.mxu1 %v6234_v16  ;;  %2329 = vmatpush1.bf16.msra.mxu0 %v6229_v22  ;;  %v8116_v12 = vpack.c.bf16 %v814_v3, %v622_v29  ;;  %v6250_v16 = vld [vmem:[%s11051_s3 + $0x40] ss:$8 sps:$4 sm:$0xff]   ;;  %v6273_v29 = vld [vmem:[%s11049_s2 + $0x604] ss:$8 sps:$4 sm:$0xff]  }
  0xca   :  { %2330 = vmatprep.subr.bf16.mxu0 %v6237_v33  ;;  %2264 = vmatprep.mubr.bf16.mxu0 %v8065_v38  ;;  %v6262_v22 = vld [vmem:[%s11051_s3 + $0x20] ss:$8 sps:$4 sm:$0xff]   ;;  %v6276_v33 = vld [vmem:[%s11051_s3 + $0x4] ss:$8 sps:$4 sm:$0xff]  }
  0xcb   :  { %2308 = vmatmul.mubr.bf16.vlgmr.msra.gmra.mxu1 %v8046_v26  ;;  %v6300_v3 = vld [vmem:[%s11051_s3 + $0xc4] ss:$8 sps:$4 sm:$0xff]  }
  0xcc   :  { %3520 = vmatpush1.bf16.msra.mxu1 %v6232_v23  ;;  %2317 = vmatprep.mubr.bf16.mxu1 %v8068_v42  ;;  %v6267_v23 = vld [vmem:[%s11049_s2 + $0x614] ss:$8 sps:$4 sm:$0xff]  }
  0xcd   :  { %3521 = vmatprep.subr.bf16.mxu1 %v6240_v52  ;;  %2331 = vmatpush1.bf16.msra.mxu0 %v6235_v39  ;;  %v6271_v52 = vld [vmem:[%s11049_s2 + $0x600] ss:$8 sps:$4 sm:$0xff]  }
  0xce   :  { %2332 = vmatprep.subr.bf16.mxu0 %v6243_v57  ;;  %v6274_v39 = vld [vmem:[%s11051_s3] ss:$8 sps:$4 sm:$0xff]   ;;  %v6292_v57 = vld [vmem:[%s11051_s3 + $0xd0] ss:$8 sps:$4 sm:$0xff]  }
  0xd0   :  { %3522 = vmatpush1.bf16.msra.mxu1 %v6238_v37  ;;  %2265 = vmatmul.mubr.bf16.gmra.mxu0 %v8099_v0  ;;  %v6279_v37 = vld [vmem:[%s11049_s2 + $0x6f4] ss:$8 sps:$4 sm:$0xff]  }
  0xd1   :  { %3523 = vmatprep.subr.bf16.mxu1 %v6246_v60  ;;  %2333 = vmatpush1.bf16.msra.mxu0 %v6241_v13  ;;  %v6297_v60 = vld [vmem:[%s11049_s2 + $0x6c4] ss:$8 sps:$4 sm:$0xff]   ;;  %v6295_v13 = vld [vmem:[%s11049_s2 + $0x6c0] ss:$8 sps:$4 sm:$0xff]  }
  0xd2   :  { %2334 = vmatprep.subr.bf16.mxu0 %v6249_v54  ;;  %2360 = vmatprep.mubr.bf16.mxu0 %v8116_v12  ;;  %v6303_v54 = vld [vmem:[%s11049_s2 + $0x6b4] ss:$8 sps:$4 sm:$0xff]  }
  0xd3   :  { %2318 = vmatmul.mubr.bf16.gmra.mxu1 %v8102_v1 }
  0xd4   :  { %3524 = vmatpush1.bf16.msra.mxu1 %v6244_v5  ;;  %3551 = vmatprep.mubr.bf16.mxu1 %v7381_v19  ;;  %v6264_v19 = vld [vmem:[%s11051_s3 + $0x24] ss:$8 sps:$4 sm:$0xff]   ;;  %v6298_v5 = vld [vmem:[%s11051_s3 + $0xc0] ss:$8 sps:$4 sm:$0xff]  }
  0xd5   :  { %3525 = vmatprep.subr.bf16.mxu1 %v6252_v18  ;;  %2335 = vmatpush1.bf16.msra.mxu0 %v6247_v14  ;;  %v6306_v18 = vld [vmem:[%s11051_s3 + $0xb4] ss:$8 sps:$4 sm:$0xff]   ;;  %v6301_v14 = vld [vmem:[%s11049_s2 + $0x6b0] ss:$8 sps:$4 sm:$0xff]  }
  0xd6   :  { %2336 = vmatprep.subr.bf16.mxu0 %v6255_v58  ;;  %v6309_v58 = vld [vmem:[%s11049_s2 + $0x6a4] ss:$8 sps:$4 sm:$0xff]  }
  0xd8   :  { %3526 = vmatpush1.bf16.msra.mxu1 %v6250_v16  ;;  %v6304_v16 = vld [vmem:[%s11051_s3 + $0xb0] ss:$8 sps:$4 sm:$0xff]  }
  0xd9   :  { %3527 = vmatprep.subr.bf16.mxu1 %v6258_v21  ;;  %2337 = vmatpush1.bf16.msra.mxu0 %v6253_v9  ;;  %v6312_v21 = vld [vmem:[%s11051_s3 + $0xa4] ss:$8 sps:$4 sm:$0xff]   ;;  %v6307_v9 = vld [vmem:[%s11049_s2 + $0x6a0] ss:$8 sps:$4 sm:$0xff]  }
  0xda   :  { %2338 = vmatprep.subr.bf16.mxu0 %v6261_v10  ;;  %v6315_v10 = vld [vmem:[%s11049_s2 + $0x694] ss:$8 sps:$4 sm:$0xff]  }
  0xdc   :  { %3528 = vmatpush1.bf16.msra.mxu1 %v6256_v15  ;;  %v6310_v15 = vld [vmem:[%s11051_s3 + $0xa0] ss:$8 sps:$4 sm:$0xff]  }
  0xdd   :  { %3529 = vmatprep.subr.bf16.mxu1 %v6264_v19  ;;  %2339 = vmatpush1.bf16.msra.mxu0 %v6259_v17  ;;  %v6318_v19 = vld [vmem:[%s11051_s3 + $0x94] ss:$8 sps:$4 sm:$0xff]   ;;  %v6313_v17 = vld [vmem:[%s11049_s2 + $0x690] ss:$8 sps:$4 sm:$0xff]  }
  0xde   :  { %2340 = vmatprep.subr.bf16.mxu0 %v6267_v23  ;;  %v6321_v23 = vld [vmem:[%s11049_s2 + $0x684] ss:$8 sps:$4 sm:$0xff]  }
  0xe0   :  { %3530 = vmatpush1.bf16.msra.mxu1 %v6262_v22  ;;  %v6316_v22 = vld [vmem:[%s11051_s3 + $0x90] ss:$8 sps:$4 sm:$0xff]  }
  0xe1   :  { %3531 = vmatprep.subr.bf16.mxu1 %v6270_v24  ;;  %2341 = vmatpush1.bf16.msra.mxu0 %v6265_v27  ;;  %v6324_v24 = vld [vmem:[%s11051_s3 + $0x84] ss:$8 sps:$4 sm:$0xff]   ;;  %v6319_v27 = vld [vmem:[%s11049_s2 + $0x680] ss:$8 sps:$4 sm:$0xff]  }
  0xe2   :  { %2342 = vmatprep.subr.bf16.mxu0 %v6273_v29  ;;  %v6327_v29 = vld [vmem:[%s11051_s3 + $0x174] ss:$8 sps:$4 sm:$0xff]  }
  0xe4   :  { %3532 = vmatpush1.bf16.msra.mxu1 %v6268_v28  ;;  %v6322_v28 = vld [vmem:[%s11051_s3 + $0x80] ss:$8 sps:$4 sm:$0xff]  }
  0xe5   :  { %3533 = vmatprep.subr.bf16.mxu1 %v6276_v33  ;;  %2343 = vmatpush1.bf16.msra.mxu0 %v6271_v52  ;;  %v813_v33 = vld [vmem:[#allocation4 + $0xd0] sm:$0xff] }
  0xe6   :  { %2344 = vmatprep.subr.bf16.mxu0 %v6279_v37  ;;  %v6330_v52 = vld [vmem:[%s11051_s3 + $0x274] ss:$8 sps:$4 sm:$0xff]   ;;  %v8282_v37 = vpack.c.bf16 %v813_v33, %v8053_v35  ;;  %v6331_v35 = vld [vmem:[%s11051_s3 + $0x160] ss:$8 sps:$4 sm:$0xff]  }
  0xe7   :  { %v6382_v33 = vld [vmem:[%s11051_s3 + $0x2e0] ss:$8 sps:$4 sm:$0xff]  }
  0xe8   :  { %3534 = vmatpush1.bf16.msra.mxu1 %v6274_v39  ;;  %v6325_v39 = vld [vmem:[%s11051_s3 + $0x170] ss:$8 sps:$4 sm:$0xff]  }
  0xe9   :  { %3535 = vmatprep.subr.bf16.mxu1 %v6282_v40  ;;  %2345 = vmatpush2.bf16.msra.mxu0 %v6277_v46  ;;  %v6328_v40 = vld [vmem:[%s11051_s3 + $0x270] ss:$8 sps:$4 sm:$0xff]  }
  0xea   :  { %2346 = vmatprep.subr.bf16.mxu0 %v6285_v45  ;;  %v842_v46 = vld [vmem:[#allocation4 + $0x1b8] sm:$0xff]  ;;  %v6336_v45 = vld [vmem:[%s11051_s3 + $0x264] ss:$8 sps:$4 sm:$0xff]  }
  0xec   :  { %3536 = vmatpush2.bf16.msra.mxu1 %v6280_v44  ;;  %v6333_v44 = vld [vmem:[%s11051_s3 + $0x164] ss:$8 sps:$4 sm:$0xff]  }
  0xed   :  { %3537 = vmatprep.subr.bf16.mxu1 %v6288_v51  ;;  %2347 = vmatpush2.bf16.msra.mxu0 %v6283_v63  ;;  %v8297_v51 = vpack.c.bf16 %v842_v46, %v8093_v55  ;;  %v6334_v63 = vld [vmem:[%s11051_s3 + $0x260] ss:$8 sps:$4 sm:$0xff]   ;;  %v6342_v55 = vld [vmem:[%s11051_s3 + $0x254] ss:$8 sps:$4 sm:$0xff]   ;;  %v6388_v46 = vld [vmem:[%s11051_s3 + $0x2d0] ss:$8 sps:$4 sm:$0xff]  }
  0xee   :  { %2348 = vmatprep.subr.bf16.mxu0 %v6291_v43  ;;  %v841_v43 = vld [vmem:[#allocation4 + $0x1b0] sm:$0xff] }
  0xf0   :  { %3538 = vmatpush2.bf16.msra.mxu1 %v6286_v7  ;;  %v6339_v7 = vld [vmem:[%s11051_s3 + $0x154] ss:$8 sps:$4 sm:$0xff]  }
  0xf1   :  { %3539 = vmatprep.subr.bf16.mxu1 %v6294_v50  ;;  %2349 = vmatpush2.bf16.msra.mxu0 %v6289_v11  ;;  %v6337_v50 = vld [vmem:[%s11051_s3 + $0x150] ss:$8 sps:$4 sm:$0xff]  }
  0xf2   :  { %2350 = vmatprep.subr.bf16.mxu0 %v6297_v60  ;;  %v6340_v11 = vld [vmem:[%s11051_s3 + $0x250] ss:$8 sps:$4 sm:$0xff]   ;;  %v6346_v60 = vld [vmem:[%s11051_s3 + $0x240] ss:$8 sps:$4 sm:$0xff]  }
  0xf4   :  { %3540 = vmatpush2.bf16.msra.mxu1 %v6292_v57  ;;  %v6345_v57 = vld [vmem:[%s11051_s3 + $0x144] ss:$8 sps:$4 sm:$0xff]  }
  0xf5   :  { %3541 = vmatprep.subr.bf16.mxu1 %v6300_v3  ;;  %2351 = vmatpush2.bf16.msra.mxu0 %v6295_v13  ;;  %v6351_v3 = vld [vmem:[%s11051_s3 + $0x134] ss:$8 sps:$4 sm:$0xff]  }
  0xf6   :  { %2352 = vmatprep.subr.bf16.mxu0 %v6303_v54  ;;  %v6354_v13 = vld [vmem:[%s11051_s3 + $0x234] ss:$8 sps:$4 sm:$0xff]   ;;  %v6357_v54 = vld [vmem:[%s11051_s3 + $0x124] ss:$8 sps:$4 sm:$0xff]  }
  0xf8   :  { %3542 = vmatpush2.bf16.msra.mxu1 %v6298_v5  ;;  %v6352_v5 = vld [vmem:[%s11051_s3 + $0x230] ss:$8 sps:$4 sm:$0xff]  }
  0xf9   :  { %3543 = vmatprep.subr.bf16.mxu1 %v6306_v18  ;;  %2353 = vmatpush2.bf16.msra.mxu0 %v6301_v14  ;;  %v6358_v18 = vld [vmem:[%s11051_s3 + $0x220] ss:$8 sps:$4 sm:$0xff]   ;;  %v6363_v14 = vld [vmem:[%s11051_s3 + $0x114] ss:$8 sps:$4 sm:$0xff]  }
  0xfa   :  { %2354 = vmatprep.subr.bf16.mxu0 %v6309_v58  ;;  %v6361_v58 = vld [vmem:[%s11051_s3 + $0x110] ss:$8 sps:$4 sm:$0xff]  }
  0xfc   :  { %3544 = vmatpush2.bf16.msra.mxu1 %v6304_v16  ;;  %v6366_v16 = vld [vmem:[%s11051_s3 + $0x214] ss:$8 sps:$4 sm:$0xff]  }
  0xfd   :  { %3545 = vmatprep.subr.bf16.mxu1 %v6312_v21  ;;  %2355 = vmatpush2.bf16.msra.mxu0 %v6307_v9  ;;  %v6364_v21 = vld [vmem:[%s11051_s3 + $0x210] ss:$8 sps:$4 sm:$0xff]   ;;  %v6369_v9 = vld [vmem:[%s11051_s3 + $0x104] ss:$8 sps:$4 sm:$0xff]  }
  0xfe   :  { %2356 = vmatprep.subr.bf16.mxu0 %v6315_v10  ;;  %v6367_v10 = vld [vmem:[%s11051_s3 + $0x100] ss:$8 sps:$4 sm:$0xff]  }
 0x100   :  { %3546 = vmatpush2.bf16.msra.mxu1 %v6310_v15  ;;  %v6372_v15 = vld [vmem:[%s11051_s3 + $0x204] ss:$8 sps:$4 sm:$0xff]  }
 0x101   :  { %3547 = vmatprep.subr.bf16.mxu1 %v6318_v19  ;;  %2357 = vmatpush2.bf16.msra.mxu0 %v6313_v17  ;;  %v6370_v19 = vld [vmem:[%s11051_s3 + $0x200] ss:$8 sps:$4 sm:$0xff]   ;;  %v6375_v17 = vld [vmem:[%s11051_s3 + $0x1f4] ss:$8 sps:$4 sm:$0xff]  }
 0x102   :  { %2358 = vmatprep.subr.bf16.mxu0 %v6321_v23  ;;  %v6373_v23 = vld [vmem:[%s11051_s3 + $0x1f0] ss:$8 sps:$4 sm:$0xff]  }
 0x104   :  { %3548 = vmatpush2.bf16.msra.mxu1 %v6316_v22  ;;  %v6378_v22 = vld [vmem:[%s11051_s3 + $0x2f4] ss:$8 sps:$4 sm:$0xff]  }
 0x105   :  { %3549 = vmatprep.subr.bf16.mxu1 %v6324_v24  ;;  %2359 = vmatpush2.bf16.msra.mxu0 %v6319_v27  ;;  %v6376_v24 = vld [vmem:[%s11051_s3 + $0x2f0] ss:$8 sps:$4 sm:$0xff]   ;;  %v6381_v27 = vld [vmem:[%s11051_s3 + $0x1e4] ss:$8 sps:$4 sm:$0xff]  }
 0x106   :  { %3572 = vmatprep.subr.bf16.mxu0 %v6327_v29  ;;  %v6379_v29 = vld [vmem:[%s11051_s3 + $0x1e0] ss:$8 sps:$4 sm:$0xff]  }
 0x108   :  { %3550 = vmatpush2.bf16.msra.mxu1 %v6322_v28  ;;  %2361 = vmatmul.mubr.bf16.vlgmr.msra.gmra.mxu0 %v8282_v37  ;;  %v6384_v28 = vld [vmem:[%s11051_s3 + $0x2e4] ss:$8 sps:$4 sm:$0xff]  }
 0x109   :  { %3625 = vmatprep.subr.bf16.mxu1 %v6330_v52  ;;  %3573 = vmatpush1.bf16.msra.mxu0 %v6325_v39  ;;  %v6387_v52 = vld [vmem:[%s11051_s3 + $0x1d4] ss:$8 sps:$4 sm:$0xff]  }
 0x10a   :  { %3574 = vmatprep.subr.bf16.mxu0 %v6333_v44  ;;  %2370 = vmatprep.mubr.bf16.mxu0 %v8297_v51  ;;  %v6390_v39 = vld [vmem:[%s11051_s3 + $0x2d4] ss:$8 sps:$4 sm:$0xff]   ;;  %v6393_v44 = vld [vmem:[%s11051_s3 + $0x1c4] ss:$8 sps:$4 sm:$0xff]  }
 0x10b   :  { %3552 = vmatmul.mubr.bf16.vlgmr.msra.gmra.mxu1 %v7411_v31  ;;  %v8313_v31 = vpack.c.bf16 %v841_v43, %v8096_v59  ;;  %v6343_v59 = vld [vmem:[%s11051_s3 + $0x140] ss:$8 sps:$4 sm:$0xff]   ;;  %v6402_v43 = vld [vmem:[%s11051_s3 + $0x2b4] ss:$8 sps:$4 sm:$0xff]  }
 0x10c   :  { %3626 = vmatpush1.bf16.msra.mxu1 %v6328_v40  ;;  %3561 = vmatprep.mubr.bf16.mxu1 %v7549_v30  ;;  %v6348_v30 = vld [vmem:[%s11051_s3 + $0x244] ss:$8 sps:$4 sm:$0xff]   ;;  %v6385_v40 = vld [vmem:[%s11051_s3 + $0x1d0] ss:$8 sps:$4 sm:$0xff]  }
 0x10d   :  { %3627 = vmatprep.subr.bf16.mxu1 %v6336_v45  ;;  %3575 = vmatpush1.bf16.msra.mxu0 %v6331_v35  ;;  %v6396_v45 = vld [vmem:[%s11051_s3 + $0x2c4] ss:$8 sps:$4 sm:$0xff]   ;;  %v6391_v35 = vld [vmem:[%s11051_s3 + $0x1c0] ss:$8 sps:$4 sm:$0xff]  }
 0x10e   :  { %3576 = vmatprep.subr.bf16.mxu0 %v6339_v7  ;;  %v6399_v7 = vld [vmem:[%s11051_s3 + $0x1b4] ss:$8 sps:$4 sm:$0xff]  }
 0x110   :  { %3628 = vmatpush1.bf16.msra.mxu1 %v6334_v63  ;;  %2371 = vmatmul.mubr.bf16.gmra.mxu0 %v8313_v31  ;;  %v6394_v63 = vld [vmem:[%s11051_s3 + $0x2c0] ss:$8 sps:$4 sm:$0xff]  }
 0x111   :  { %3629 = vmatprep.subr.bf16.mxu1 %v6342_v55  ;;  %3577 = vmatpush1.bf16.msra.mxu0 %v6337_v50  ;;  %v6397_v55 = vld [vmem:[%s11051_s3 + $0x1b0] ss:$8 sps:$4 sm:$0xff]  }
 0x112   :  { %3578 = vmatprep.subr.bf16.mxu0 %v6345_v57  ;;  %3604 = vmatprep.mubr.bf16.mxu0 %v7383_v20  ;;  %v6360_v20 = vld [vmem:[%s11051_s3 + $0x224] ss:$8 sps:$4 sm:$0xff]   ;;  %v6400_v50 = vld [vmem:[%s11051_s3 + $0x2b0] ss:$8 sps:$4 sm:$0xff]  }
 0x113   :  { %3562 = vmatmul.mubr.bf16.gmra.mxu1 %v7556_v36  ;;  %v6349_v36 = vld [vmem:[%s11051_s3 + $0x130] ss:$8 sps:$4 sm:$0xff]   ;;  %v6408_v57 = vld [vmem:[%s11051_s3 + $0x2a4] ss:$8 sps:$4 sm:$0xff]  }
 0x114   :  { %3630 = vmatpush1.bf16.msra.mxu1 %v6340_v11  ;;  %3657 = vmatprep.mubr.bf16.mxu1 %v7592_v53  ;;  %v6355_v53 = vld [vmem:[%s11051_s3 + $0x120] ss:$8 sps:$4 sm:$0xff]   ;;  %v6405_v11 = vld [vmem:[%s11051_s3 + $0x1a4] ss:$8 sps:$4 sm:$0xff]  }
 0x115   :  { %3631 = vmatprep.subr.bf16.mxu1 %v6348_v30  ;;  %3579 = vmatpush1.bf16.msra.mxu0 %v6343_v59  ;;  %v6403_v30 = vld [vmem:[%s11051_s3 + $0x1a0] ss:$8 sps:$4 sm:$0xff]  }
 0x116   :  { %3580 = vmatprep.subr.bf16.mxu0 %v6351_v3  ;;  %v6406_v59 = vld [vmem:[%s11051_s3 + $0x2a0] ss:$8 sps:$4 sm:$0xff]   ;;  %v6414_v3 = vld [vmem:[%s11051_s3 + $0x294] ss:$8 sps:$4 sm:$0xff]  }
 0x118   :  { %3632 = vmatpush1.bf16.msra.mxu1 %v6346_v60  ;;  %v6411_v60 = vld [vmem:[%s11051_s3 + $0x194] ss:$8 sps:$4 sm:$0xff]  }
 0x119   :  { %3633 = vmatprep.subr.bf16.mxu1 %v6354_v13  ;;  %3581 = vmatpush1.bf16.msra.mxu0 %v6349_v36  ;;  %v6409_v13 = vld [vmem:[%s11051_s3 + $0x190] ss:$8 sps:$4 sm:$0xff]  }
 0x11a   :  { %3582 = vmatprep.subr.bf16.mxu0 %v6357_v54  ;;  %v6412_v36 = vld [vmem:[%s11051_s3 + $0x290] ss:$8 sps:$4 sm:$0xff]   ;;  %v6420_v54 = vld [vmem:[%s11051_s3 + $0x284] ss:$8 sps:$4 sm:$0xff]  }
 0x11c   :  { %3634 = vmatpush1.bf16.msra.mxu1 %v6352_v5  ;;  %v6417_v5 = vld [vmem:[%s11051_s3 + $0x184] ss:$8 sps:$4 sm:$0xff]  }
 0x11d   :  { %3635 = vmatprep.subr.bf16.mxu1 %v6360_v20  ;;  %3583 = vmatpush1.bf16.msra.mxu0 %v6355_v53  ;;  %v6415_v20 = vld [vmem:[%s11051_s3 + $0x180] ss:$8 sps:$4 sm:$0xff]  }
 0x11e   :  { %3584 = vmatprep.subr.bf16.mxu0 %v6363_v14  ;;  %v6418_v53 = vld [vmem:[%s11051_s3 + $0x280] ss:$8 sps:$4 sm:$0xff]   ;;  %v6426_v14 = vld [vmem:[%s11051_s3 + $0x474] ss:$8 sps:$4 sm:$0xff]  }
 0x120   :  { %3636 = vmatpush1.bf16.msra.mxu1 %v6358_v18  ;;  %v6423_v18 = vld [vmem:[%s11051_s3 + $0x374] ss:$8 sps:$4 sm:$0xff]  }
 0x121   :  { %3637 = vmatprep.subr.bf16.mxu1 %v6366_v16  ;;  %3585 = vmatpush1.bf16.msra.mxu0 %v6361_v58  ;;  %v6421_v16 = vld [vmem:[%s11051_s3 + $0x370] ss:$8 sps:$4 sm:$0xff]  }
 0x122   :  { %3586 = vmatprep.subr.bf16.mxu0 %v6369_v9  ;;  %v6424_v58 = vld [vmem:[%s11051_s3 + $0x470] ss:$8 sps:$4 sm:$0xff]   ;;  %v6432_v9 = vld [vmem:[%s11051_s3 + $0x464] ss:$8 sps:$4 sm:$0xff]  }
 0x124   :  { %3638 = vmatpush1.bf16.msra.mxu1 %v6364_v21  ;;  %v6429_v21 = vld [vmem:[%s11051_s3 + $0x364] ss:$8 sps:$4 sm:$0xff]  }
 0x125   :  { %3639 = vmatprep.subr.bf16.mxu1 %v6372_v15  ;;  %3587 = vmatpush1.bf16.msra.mxu0 %v6367_v10  ;;  %v6427_v15 = vld [vmem:[%s11051_s3 + $0x360] ss:$8 sps:$4 sm:$0xff]  }
 0x126   :  { %3588 = vmatprep.subr.bf16.mxu0 %v6375_v17  ;;  %v6430_v10 = vld [vmem:[%s11051_s3 + $0x460] ss:$8 sps:$4 sm:$0xff]   ;;  %v6436_v17 = vld [vmem:[%s11051_s3 + $0x450] ss:$8 sps:$4 sm:$0xff]  }
 0x128   :  { %3640 = vmatpush1.bf16.msra.mxu1 %v6370_v19  ;;  %v6435_v19 = vld [vmem:[%s11051_s3 + $0x354] ss:$8 sps:$4 sm:$0xff]  }
 0x129   :  { %3641 = vmatprep.subr.bf16.mxu1 %v6378_v22  ;;  %3589 = vmatpush2.bf16.msra.mxu0 %v6373_v23  ;;  %v6441_v22 = vld [vmem:[%s11051_s3 + $0x344] ss:$8 sps:$4 sm:$0xff]   ;;  %v6442_v23 = vld [vmem:[%s11051_s3 + $0x440] ss:$8 sps:$4 sm:$0xff]  }
 0x12a   :  { %3590 = vmatprep.subr.bf16.mxu0 %v6381_v27  ;;  %v6448_v27 = vld [vmem:[%s11051_s3 + $0x430] ss:$8 sps:$4 sm:$0xff]  }
 0x12c   :  { %3642 = vmatpush2.bf16.msra.mxu1 %v6376_v24  ;;  %v6447_v24 = vld [vmem:[%s11051_s3 + $0x334] ss:$8 sps:$4 sm:$0xff]  }
 0x12d   :  { %3643 = vmatprep.subr.bf16.mxu1 %v6384_v28  ;;  %3591 = vmatpush2.bf16.msra.mxu0 %v6379_v29  ;;  %v6453_v28 = vld [vmem:[%s11051_s3 + $0x324] ss:$8 sps:$4 sm:$0xff]   ;;  %v6454_v29 = vld [vmem:[%s11051_s3 + $0x420] ss:$8 sps:$4 sm:$0xff]  }
 0x12e   :  { %3592 = vmatprep.subr.bf16.mxu0 %v6387_v52  ;;  %v6462_v52 = vld [vmem:[%s11051_s3 + $0x414] ss:$8 sps:$4 sm:$0xff]  }
 0x130   :  { %3644 = vmatpush2.bf16.msra.mxu1 %v6382_v33  ;;  %v6459_v33 = vld [vmem:[%s11051_s3 + $0x314] ss:$8 sps:$4 sm:$0xff]  }
 0x131   :  { %3645 = vmatprep.subr.bf16.mxu1 %v6390_v39  ;;  %3593 = vmatpush2.bf16.msra.mxu0 %v6385_v40  ;;  %v6457_v39 = vld [vmem:[%s11051_s3 + $0x310] ss:$8 sps:$4 sm:$0xff]  }
 0x132   :  { %3594 = vmatprep.subr.bf16.mxu0 %v6393_v44  ;;  %v6460_v40 = vld [vmem:[%s11051_s3 + $0x410] ss:$8 sps:$4 sm:$0xff]   ;;  %v6468_v44 = vld [vmem:[%s11051_s3 + $0x404] ss:$8 sps:$4 sm:$0xff]  }
 0x134   :  { %3646 = vmatpush2.bf16.msra.mxu1 %v6388_v46  ;;  %v6465_v46 = vld [vmem:[%s11051_s3 + $0x304] ss:$8 sps:$4 sm:$0xff]  }
 0x135   :  { %3647 = vmatprep.subr.bf16.mxu1 %v6396_v45  ;;  %3595 = vmatpush2.bf16.msra.mxu0 %v6391_v35  ;;  %v6463_v45 = vld [vmem:[%s11051_s3 + $0x300] ss:$8 sps:$4 sm:$0xff]  }
 0x136   :  { %3596 = vmatprep.subr.bf16.mxu0 %v6399_v7  ;;  %v6466_v35 = vld [vmem:[%s11051_s3 + $0x400] ss:$8 sps:$4 sm:$0xff]   ;;  %v6474_v7 = vld [vmem:[%s11051_s3 + $0x4f4] ss:$8 sps:$4 sm:$0xff]  }
 0x138   :  { %3648 = vmatpush2.bf16.msra.mxu1 %v6394_v63  ;;  %v6471_v63 = vld [vmem:[%s11051_s3 + $0x3f4] ss:$8 sps:$4 sm:$0xff]  }
 0x139   :  { %3649 = vmatprep.subr.bf16.mxu1 %v6402_v43  ;;  %3597 = vmatpush2.bf16.msra.mxu0 %v6397_v55  ;;  %v6469_v43 = vld [vmem:[%s11051_s3 + $0x3f0] ss:$8 sps:$4 sm:$0xff]  }
 0x13a   :  { %3598 = vmatprep.subr.bf16.mxu0 %v6405_v11  ;;  %v6472_v55 = vld [vmem:[%s11051_s3 + $0x4f0] ss:$8 sps:$4 sm:$0xff]   ;;  %v6480_v11 = vld [vmem:[%s11051_s3 + $0x4e4] ss:$8 sps:$4 sm:$0xff]  }
 0x13c   :  { %3650 = vmatpush2.bf16.msra.mxu1 %v6400_v50  ;;  %v6477_v50 = vld [vmem:[%s11051_s3 + $0x3e4] ss:$8 sps:$4 sm:$0xff]  }
 0x13d   :  { %3651 = vmatprep.subr.bf16.mxu1 %v6408_v57  ;;  %3599 = vmatpush2.bf16.msra.mxu0 %v6403_v30  ;;  %v6475_v57 = vld [vmem:[%s11051_s3 + $0x3e0] ss:$8 sps:$4 sm:$0xff]  }
 0x13e   :  { %3600 = vmatprep.subr.bf16.mxu0 %v6411_v60  ;;  %v6478_v30 = vld [vmem:[%s11051_s3 + $0x4e0] ss:$8 sps:$4 sm:$0xff]   ;;  %v6486_v60 = vld [vmem:[%s11051_s3 + $0x4d4] ss:$8 sps:$4 sm:$0xff]  }
 0x140   :  { %3652 = vmatpush2.bf16.msra.mxu1 %v6406_v59  ;;  %v6483_v59 = vld [vmem:[%s11051_s3 + $0x3d4] ss:$8 sps:$4 sm:$0xff]  }
 0x141   :  { %3653 = vmatprep.subr.bf16.mxu1 %v6414_v3  ;;  %3601 = vmatpush2.bf16.msra.mxu0 %v6409_v13  ;;  %v6481_v3 = vld [vmem:[%s11051_s3 + $0x3d0] ss:$8 sps:$4 sm:$0xff]  }
 0x142   :  { %3602 = vmatprep.subr.bf16.mxu0 %v6417_v5  ;;  %v6484_v13 = vld [vmem:[%s11051_s3 + $0x4d0] ss:$8 sps:$4 sm:$0xff]   ;;  %v6492_v5 = vld [vmem:[%s11051_s3 + $0x4c4] ss:$8 sps:$4 sm:$0xff]  }
 0x144   :  { %3654 = vmatpush2.bf16.msra.mxu1 %v6412_v36  ;;  %v6489_v36 = vld [vmem:[%s11051_s3 + $0x3c4] ss:$8 sps:$4 sm:$0xff]  }
 0x145   :  { %3655 = vmatprep.subr.bf16.mxu1 %v6420_v54  ;;  %3603 = vmatpush2.bf16.msra.mxu0 %v6415_v20  ;;  %v8627_v54 = vpop.f32.mrf.mxu0  ;;  %v6487_v20 = vld [vmem:[%s11051_s3 + $0x3c0] ss:$8 sps:$4 sm:$0xff]  }
 0x146   :  { %3678 = vmatprep.subr.bf16.mxu0 %v6423_v18  ;;  %v6495_v18 = vld [vmem:[%s11051_s3 + $0x3b4] ss:$8 sps:$4 sm:$0xff]  }
 0x148   :  { %3656 = vmatpush2.bf16.msra.mxu1 %v6418_v53  ;;  %3605 = vmatmul.mubr.bf16.vlgmr.msra.gmra.mxu0 %v7413_v32  ;;  %v6438_v32 = vld [vmem:[%s11051_s3 + $0x454] ss:$8 sps:$4 sm:$0xff]   ;;  %v6490_v53 = vld [vmem:[%s11051_s3 + $0x4c0] ss:$8 sps:$4 sm:$0xff]  }
 0x149   :  { %3731 = vmatprep.subr.bf16.mxu1 %v6426_v14  ;;  %3679 = vmatpush1.bf16.msra.mxu0 %v6421_v16  ;;  %v6498_v14 = vld [vmem:[%s11051_s3 + $0x4b4] ss:$8 sps:$4 sm:$0xff]   ;;  %v8641_v16 = vpop.f32.mrf.mxu0 }
 0x14a   :  { %3680 = vmatprep.subr.bf16.mxu0 %v6429_v21  ;;  %3614 = vmatprep.mubr.bf16.mxu0 %v7551_v34  ;;  %v6444_v34 = vld [vmem:[%s11051_s3 + $0x444] ss:$8 sps:$4 sm:$0xff]   ;;  %v6496_v21 = vld [vmem:[%s11051_s3 + $0x4b0] ss:$8 sps:$4 sm:$0xff]  }
 0x14b   :  { %3658 = vmatmul.mubr.bf16.vlgmr.msra.gmra.mxu1 %v7740_v8  ;;  %v6433_v8 = vld [vmem:[%s11051_s3 + $0x350] ss:$8 sps:$4 sm:$0xff]  }
 0x14c   :  { %3732 = vmatpush1.bf16.msra.mxu1 %v6424_v58  ;;  %3667 = vmatprep.mubr.bf16.mxu1 %v7759_v61  ;;  %v6439_v61 = vld [vmem:[%s11051_s3 + $0x340] ss:$8 sps:$4 sm:$0xff]   ;;  %v6493_v58 = vld [vmem:[%s11051_s3 + $0x3b0] ss:$8 sps:$4 sm:$0xff]  }
 0x14d   :  { %3733 = vmatprep.subr.bf16.mxu1 %v6432_v9  ;;  %3681 = vmatpush1.bf16.msra.mxu0 %v6427_v15  ;;  %v6501_v9 = vld [vmem:[%s11051_s3 + $0x3a4] ss:$8 sps:$4 sm:$0xff]  }
 0x14e   :  { %3682 = vmatprep.subr.bf16.mxu0 %v6435_v19  ;;  %v6504_v15 = vld [vmem:[%s11051_s3 + $0x4a4] ss:$8 sps:$4 sm:$0xff]   ;;  %v6499_v19 = vld [vmem:[%s11051_s3 + $0x3a0] ss:$8 sps:$4 sm:$0xff]  }
 0x150   :  { %3734 = vmatpush1.bf16.msra.mxu1 %v6430_v10  ;;  %3615 = vmatmul.mubr.bf16.gmra.mxu0 %v7579_v47  ;;  %v6450_v47 = vld [vmem:[%s11051_s3 + $0x434] ss:$8 sps:$4 sm:$0xff]   ;;  %v8655_v10 = vpop.f32.mrf.mxu0 }
 0x151   :  { %3735 = vmatprep.subr.bf16.mxu1 %v6438_v32  ;;  %3683 = vmatpush1.bf16.msra.mxu0 %v6433_v8  ;;  %v6502_v32 = vld [vmem:[%s11051_s3 + $0x4a0] ss:$8 sps:$4 sm:$0xff]   ;;  %v6507_v8 = vld [vmem:[%s11051_s3 + $0x394] ss:$8 sps:$4 sm:$0xff]  }
 0x152   :  { %3684 = vmatprep.subr.bf16.mxu0 %v6441_v22  ;;  %3710 = vmatprep.mubr.bf16.mxu0 %v7586_v49  ;;  %v6456_v49 = vld [vmem:[%s11051_s3 + $0x424] ss:$8 sps:$4 sm:$0xff]   ;;  %v8669_v22 = vpop.f32.mrf.mxu0 }
 0x153   :  { %3668 = vmatmul.mubr.bf16.gmra.mxu1 %v7782_v4  ;;  %v6445_v4 = vld [vmem:[%s11051_s3 + $0x330] ss:$8 sps:$4 sm:$0xff]  }
 0x154   :  { %3736 = vmatpush1.bf16.msra.mxu1 %v6436_v17  ;;  %3763 = vmatprep.mubr.bf16.mxu1 %v7832_v41  ;;  %v6451_v41 = vld [vmem:[%s11051_s3 + $0x320] ss:$8 sps:$4 sm:$0xff]   ;;  %v6510_v17 = vld [vmem:[%s11051_s3 + $0x494] ss:$8 sps:$4 sm:$0xff]  }
 0x155   :  { %3737 = vmatprep.subr.bf16.mxu1 %v6444_v34  ;;  %3685 = vmatpush1.bf16.msra.mxu0 %v6439_v61  ;;  %v6505_v34 = vld [vmem:[%s11051_s3 + $0x390] ss:$8 sps:$4 sm:$0xff]  }
 0x156   :  { %3686 = vmatprep.subr.bf16.mxu0 %v6447_v24  ;;  %v6508_v61 = vld [vmem:[%s11051_s3 + $0x490] ss:$8 sps:$4 sm:$0xff]   ;;  %v6513_v24 = vld [vmem:[%s11051_s3 + $0x384] ss:$8 sps:$4 sm:$0xff]  }
 0x158   :  { %3738 = vmatpush1.bf16.msra.mxu1 %v6442_v23  ;;  %v8677_v23 = vpop.f32.mrf.mxu0 }
 0x159   :  { %3739 = vmatprep.subr.bf16.mxu1 %v6450_v47  ;;  %3687 = vmatpush1.bf16.msra.mxu0 %v6445_v4  ;;  %v6516_v47 = vld [vmem:[%s11051_s3 + $0x484] ss:$8 sps:$4 sm:$0xff]   ;;  %v8685_v4 = vpop.f32.mrf.mxu1 }
 0x15a   :  { %3688 = vmatprep.subr.bf16.mxu0 %v6453_v28  ;;  %v6514_v28 = vld [vmem:[%s11051_s3 + $0x480] ss:$8 sps:$4 sm:$0xff]  }
 0x15c   :  { %3740 = vmatpush1.bf16.msra.mxu1 %v6448_v27  ;;  %v6511_v27 = vld [vmem:[%s11051_s3 + $0x380] ss:$8 sps:$4 sm:$0xff]  }
 0x15d   :  { %3741 = vmatprep.subr.bf16.mxu1 %v6456_v49  ;;  %3689 = vmatpush1.bf16.msra.mxu0 %v6451_v41  ;;  %v8693_v49 = vpop.f32.mrf.mxu0  ;;  %v6519_v41 = vld [vmem:[%s11051_s3 + $0x574] ss:$8 sps:$4 sm:$0xff]  }
 0x15e   :  { %3690 = vmatprep.subr.bf16.mxu0 %v6459_v33  ;;  %v8701_v33 = vpop.f32.mrf.mxu1 }
 0x160   :  { %3742 = vmatpush1.bf16.msra.mxu1 %v6454_v29  ;;  %v6522_v29 = vld [vmem:[%s11051_s3 + $0x674] ss:$8 sps:$4 sm:$0xff]  }
 0x161   :  { %3743 = vmatprep.subr.bf16.mxu1 %v6462_v52  ;;  %3691 = vmatpush1.bf16.msra.mxu0 %v6457_v39  ;;  %v6517_v52 = vld [vmem:[%s11051_s3 + $0x570] ss:$8 sps:$4 sm:$0xff]  }
 0x162   :  { %3692 = vmatprep.subr.bf16.mxu0 %v6465_v46  ;;  %v6520_v39 = vld [vmem:[%s11051_s3 + $0x670] ss:$8 sps:$4 sm:$0xff]   ;;  %v6525_v46 = vld [vmem:[%s11051_s3 + $0x564] ss:$8 sps:$4 sm:$0xff]  }
 0x164   :  { %3744 = vmatpush1.bf16.msra.mxu1 %v6460_v40  ;;  %v8709_v40 = vpop.f32.mrf.mxu0 }
 0x165   :  { %3745 = vmatprep.subr.bf16.mxu1 %v6468_v44  ;;  %3693 = vmatpush1.bf16.msra.mxu0 %v6463_v45  ;;  %v6528_v44 = vld [vmem:[%s11051_s3 + $0x664] ss:$8 sps:$4 sm:$0xff]   ;;  %v8719_v45 = vpop.f32.mrf.mxu1 }
 0x166   :  { %3694 = vmatprep.subr.bf16.mxu0 %v6471_v63  ;;  %v6526_v63 = vld [vmem:[%s11051_s3 + $0x660] ss:$8 sps:$4 sm:$0xff]  }
 0x168   :  { %3746 = vmatpush1.bf16.msra.mxu1 %v6466_v35  ;;  %v6523_v35 = vld [vmem:[%s11051_s3 + $0x560] ss:$8 sps:$4 sm:$0xff]  }
 0x169   :  { %3747 = vmatprep.subr.bf16.mxu1 %v6474_v7  ;;  %3695 = vmatpush2.bf16.msra.mxu0 %v6469_v43  ;;  %v8727_v7 = vpop.f32.mrf.mxu0 }
 0x16a   :  { %3696 = vmatprep.subr.bf16.mxu0 %v6477_v50  ;;  %v6529_v50 = vld [vmem:[%s11051_s3 + $0x550] ss:$8 sps:$4 sm:$0xff]  }
 0x16b   :  { %v8737_v43 = vpop.f32.mrf.mxu0 }
 0x16c   :  { %3748 = vmatpush2.bf16.msra.mxu1 %v6472_v55  ;;  %v8739_v55 = vpop.f32.mrf.mxu1 }
 0x16d   :  { %3749 = vmatprep.subr.bf16.mxu1 %v6480_v11  ;;  %3697 = vmatpush2.bf16.msra.mxu0 %v6475_v57  ;;  %v6532_v11 = vld [vmem:[%s11051_s3 + $0x650] ss:$8 sps:$4 sm:$0xff]  }
 0x16e   :  { %3698 = vmatprep.subr.bf16.mxu0 %v6483_v59  ;;  %v8753_v57 = vpop.f32.mrf.mxu1  ;;  %v6535_v59 = vld [vmem:[%s11051_s3 + $0x540] ss:$8 sps:$4 sm:$0xff]  }
 0x170   :  { %3750 = vmatpush2.bf16.msra.mxu1 %v6478_v30  ;;  %v8755_v30 = vpop.f32.mrf.mxu0 }
 0x171   :  { %3751 = vmatprep.subr.bf16.mxu1 %v6486_v60  ;;  %3699 = vmatpush2.bf16.msra.mxu0 %v6481_v3  ;;  %v6538_v60 = vld [vmem:[%s11051_s3 + $0x640] ss:$8 sps:$4 sm:$0xff]   ;;  %v6543_v3 = vld [vmem:[%s11051_s3 + $0x534] ss:$8 sps:$4 sm:$0xff]  }
 0x172   :  { %3700 = vmatprep.subr.bf16.mxu0 %v6489_v36  ;;  %v6541_v36 = vld [vmem:[%s11051_s3 + $0x530] ss:$8 sps:$4 sm:$0xff]  }
 0x174   :  { %3752 = vmatpush2.bf16.msra.mxu1 %v6484_v13  ;;  %v8775_v13 = vpop.f32.mrf.mxu0 }
 0x175   :  { %3753 = vmatprep.subr.bf16.mxu1 %v6492_v5  ;;  %3701 = vmatpush2.bf16.msra.mxu0 %v6487_v20  ;;  %v6544_v5 = vld [vmem:[%s11051_s3 + $0x630] ss:$8 sps:$4 sm:$0xff]  }
 0x176   :  { %3702 = vmatprep.subr.bf16.mxu0 %v6495_v18  ;;  %v6547_v18 = vld [vmem:[%s11051_s3 + $0x520] ss:$8 sps:$4 sm:$0xff]  }
 0x178   :  { %3754 = vmatpush2.bf16.msra.mxu1 %v6490_v53  ;;  %v8791_v53 = vpop.f32.mrf.mxu0 }
 0x179   :  { %3755 = vmatprep.subr.bf16.mxu1 %v6498_v14  ;;  %3703 = vmatpush2.bf16.msra.mxu0 %v6493_v58  ;;  %v6550_v14 = vld [vmem:[%s11051_s3 + $0x620] ss:$8 sps:$4 sm:$0xff]   ;;  %v6555_v58 = vld [vmem:[%s11051_s3 + $0x514] ss:$8 sps:$4 sm:$0xff]  }
 0x17a   :  { %3704 = vmatprep.subr.bf16.mxu0 %v6501_v9 }
 0x17c   :  { %3756 = vmatpush2.bf16.msra.mxu1 %v6496_v21  ;;  %v6558_v21 = vld [vmem:[%s11051_s3 + $0x614] ss:$8 sps:$4 sm:$0xff]  }
 0x17d   :  { %3757 = vmatprep.subr.bf16.mxu1 %v6504_v15  ;;  %3705 = vmatpush2.bf16.msra.mxu0 %v6499_v19  ;;  %v8807_v15 = vpop.f32.mrf.mxu0 }
 0x17e   :  { %3706 = vmatprep.subr.bf16.mxu0 %v6507_v8  ;;  %v6556_v8 = vld [vmem:[%s11051_s3 + $0x610] ss:$8 sps:$4 sm:$0xff]  }
 0x180   :  { %3758 = vmatpush2.bf16.msra.mxu1 %v6502_v32  ;;  %v6553_v32 = vld [vmem:[%s11051_s3 + $0x510] ss:$8 sps:$4 sm:$0xff]  }
 0x181   :  { %3759 = vmatprep.subr.bf16.mxu1 %v6510_v17  ;;  %3707 = vmatpush2.bf16.msra.mxu0 %v6505_v34  ;;  %v6561_v17 = vld [vmem:[%s11051_s3 + $0x504] ss:$8 sps:$4 sm:$0xff]  }
 0x182   :  { %3708 = vmatprep.subr.bf16.mxu0 %v6513_v24  ;;  %v6564_v34 = vld [vmem:[%s11051_s3 + $0x604] ss:$8 sps:$4 sm:$0xff]  }
 0x184   :  { %3760 = vmatpush2.bf16.msra.mxu1 %v6508_v61  ;;  %v8823_v61 = vpop.f32.mrf.mxu0 }
 0x185   :  { %3761 = vmatprep.subr.bf16.mxu1 %v6516_v47  ;;  %3709 = vmatpush2.bf16.msra.mxu0 %v6511_v27  ;;  %v6559_v47 = vld [vmem:[%s11051_s3 + $0x500] ss:$8 sps:$4 sm:$0xff]  }
 0x186   :  { %3784 = vmatprep.subr.bf16.mxu0 %v6519_v41  ;;  %v6562_v27 = vld [vmem:[%s11051_s3 + $0x600] ss:$8 sps:$4 sm:$0xff]   ;;  %v6570_v41 = vld [vmem:[%s11051_s3 + $0x6f4] ss:$8 sps:$4 sm:$0xff]  }
 0x188   :  { %3762 = vmatpush2.bf16.msra.mxu1 %v6514_v28  ;;  %3711 = vmatmul.mubr.bf16.vlgmr.msra.gmra.mxu0 %v7744_v56  ;;  %v6531_v56 = vld [vmem:[%s11051_s3 + $0x554] ss:$8 sps:$4 sm:$0xff]  }
 0x189   :  { %3837 = vmatprep.subr.bf16.mxu1 %v6522_v29  ;;  %3785 = vmatpush1.bf16.msra.mxu0 %v6517_v52  ;;  %v6567_v28 = vld [vmem:[%s11051_s3 + $0x5f4] ss:$8 sps:$4 sm:$0xff]   ;;  %v8839_v29 = vpop.f32.mrf.mxu0 }
 0x18a   :  { %3786 = vmatprep.subr.bf16.mxu0 %v6525_v46  ;;  %3720 = vmatprep.mubr.bf16.mxu0 %v7763_v62  ;;  %v6537_v62 = vld [vmem:[%s11051_s3 + $0x544] ss:$8 sps:$4 sm:$0xff]   ;;  %v6568_v46 = vld [vmem:[%s11051_s3 + $0x6f0] ss:$8 sps:$4 sm:$0xff]  }
 0x18b   :  { %3764 = vmatmul.mubr.bf16.vlgmr.msra.gmra.mxu1 %v8043_v25  ;;  %v6534_v25 = vld [vmem:[%s11051_s3 + $0x654] ss:$8 sps:$4 sm:$0xff]  }
 0x18c   :  { %3838 = vmatpush1.bf16.msra.mxu1 %v6520_v39  ;;  %3773 = vmatprep.mubr.bf16.mxu1 %v8065_v38  ;;  %v6540_v38 = vld [vmem:[%s11051_s3 + $0x644] ss:$8 sps:$4 sm:$0xff]   ;;  %v6565_v39 = vld [vmem:[%s11051_s3 + $0x5f0] ss:$8 sps:$4 sm:$0xff]  }
 0x18d   :  { %3839 = vmatprep.subr.bf16.mxu1 %v6528_v44  ;;  %3787 = vmatpush1.bf16.msra.mxu0 %v6523_v35  ;;  %v6573_v44 = vld [vmem:[%s11051_s3 + $0x5e4] ss:$8 sps:$4 sm:$0xff]  }
 0x18e   :  { %3788 = vmatprep.subr.bf16.mxu0 %v6531_v56  ;;  %v6576_v35 = vld [vmem:[%s11051_s3 + $0x6e4] ss:$8 sps:$4 sm:$0xff]   ;;  %v8858_v56 = vpop.f32.mrf.mxu0 }
 0x190   :  { %3840 = vmatpush1.bf16.msra.mxu1 %v6526_v63  ;;  %3721 = vmatmul.mubr.bf16.gmra.mxu0 %v7789_v6  ;;  %v6546_v6 = vld [vmem:[%s11051_s3 + $0x634] ss:$8 sps:$4 sm:$0xff]   ;;  %v8856_v63 = vshrl.u32 %v542_v2, 7 }
 0x191   :  { %3841 = vmatprep.subr.bf16.mxu1 %v6534_v25  ;;  %3789 = vmatpush1.bf16.msra.mxu0 %v6529_v50  ;;  %v6571_v50 = vld [vmem:[%s11051_s3 + $0x5e0] ss:$8 sps:$4 sm:$0xff]   ;;  %v6579_v2 = vld [vmem:[%s11051_s3 + $0x5d4] ss:$8 sps:$4 sm:$0xff]  }
 0x192   :  { %3790 = vmatprep.subr.bf16.mxu0 %v6537_v62  ;;  %3816 = vmatprep.mubr.bf16.mxu0 %v7843_v48  ;;  %v6549_v48 = vld [vmem:[%s11051_s3 + $0x524] ss:$8 sps:$4 sm:$0xff]   ;;  %v8868_v62 = vpop.f32.mrf.mxu0 }
 0x193   :  { %3774 = vmatmul.mubr.bf16.gmra.mxu1 %v8099_v0  ;;  %v8771_v0 = vpop.f32.mrf.mxu1 }
 0x194   :  { %3842 = vmatpush1.bf16.msra.mxu1 %v6532_v11  ;;  %3869 = vmatprep.mubr.bf16.mxu1 %v8116_v12  ;;  %v6552_v12 = vld [vmem:[%s11051_s3 + $0x624] ss:$8 sps:$4 sm:$0xff]   ;;  %v6574_v11 = vld [vmem:[%s11051_s3 + $0x6e0] ss:$8 sps:$4 sm:$0xff]  }
 0x195   :  { %3843 = vmatprep.subr.bf16.mxu1 %v6540_v38  ;;  %3791 = vmatpush1.bf16.msra.mxu0 %v6535_v59  ;;  %v8789_v20 = vpop.f32.mrf.mxu1  ;;  %v6582_v38 = vld [vmem:[%s11051_s3 + $0x6d4] ss:$8 sps:$4 sm:$0xff]   ;;  %v874_v59 = vsub.s32 0, %v8856_v63 }
 0x196   :  { %3792 = vmatprep.subr.bf16.mxu0 %v6543_v3  ;;  %v8882_v3 = vld [vmem:[%s11052_s4] sm:$0xf] }
 0x197   :  { %v8805_v9 = vpop.f32.mrf.mxu1 }
 0x198   :  { %3844 = vmatpush1.bf16.msra.mxu1 %v6538_v60 }
 0x199   :  { %3845 = vmatprep.subr.bf16.mxu1 %v6546_v6  ;;  %3793 = vmatpush1.bf16.msra.mxu0 %v6541_v36  ;;  %v8809_v19 = vpop.f32.mrf.mxu1  ;;  %v878_v6 = vsub.s32 2, %v8856_v63  ;;  %v6577_v36 = vld [vmem:[%s11051_s3 + $0x5d0] ss:$8 sps:$4 sm:$0xff]  }
 0x19a   :  { %3794 = vmatprep.subr.bf16.mxu0 %v6549_v48  ;;  %v8891_v48 = vpop.f32.mrf.mxu0 }
 0x19b   :  { %v8825_v24 = vpop.f32.mrf.mxu1 }
 0x19c   :  { %3846 = vmatpush1.bf16.msra.mxu1 %v6544_v5  ;;  %v6580_v5 = vld [vmem:[%s11051_s3 + $0x6d0] ss:$8 sps:$4 sm:$0xff]  }
 0x19d   :  { %3847 = vmatprep.subr.bf16.mxu1 %v6552_v12  ;;  %3795 = vmatpush1.bf16.msra.mxu0 %v6547_v18  ;;  %v8841_v52 = vpop.f32.mrf.mxu1  ;;  %v6585_v12 = vld [vmem:[%s11051_s3 + $0x5c4] ss:$8 sps:$4 sm:$0xff]  }
 0x19e   :  { %3796 = vmatprep.subr.bf16.mxu0 %v6555_v58  ;;  %v6588_v18 = vld [vmem:[%s11051_s3 + $0x6c4] ss:$8 sps:$4 sm:$0xff]  }
 0x19f   :  { %v8860_v25 = vpop.f32.mrf.mxu1 }
 0x1a0   :  { %3848 = vmatpush1.bf16.msra.mxu1 %v6550_v14  ;;  %v875_v14 = vrot.slane %v8882_v3, %v874_v59 }
 0x1a1   :  { %3849 = vmatprep.subr.bf16.mxu1 %v6558_v21  ;;  %3797 = vmatpush1.bf16.msra.mxu0 %v6553_v32  ;;  %v8877_v60 = vpop.f32.mrf.mxu1  ;;  %v879_v21 = vrot.slane %v8882_v3, %v878_v6  ;;  %v6583_v32 = vld [vmem:[%s11051_s3 + $0x5c0] ss:$8 sps:$4 sm:$0xff]  }
 0x1a2   :  { %3798 = vmatprep.subr.bf16.mxu0 %v6561_v17  ;;  %v8909_v17 = vpop.f32.mrf.mxu0  ;;  %v6595_v6 = vld [vmem:[%s11051_s3 + $0x5a0] ss:$8 sps:$4 sm:$0xff]  }
 0x1a3   :  { %v8900_v58 = vpop.f32.mrf.mxu1 }
 0x1a4   :  { %3850 = vmatpush1.bf16.msra.mxu1 %v6556_v8  ;;  %v6586_v8 = vld [vmem:[%s11051_s3 + $0x6c0] ss:$8 sps:$4 sm:$0xff]  }
 0x1a5   :  { %3851 = vmatprep.subr.bf16.mxu1 %v6564_v34  ;;  %3799 = vmatpush1.bf16.msra.mxu0 %v6559_v47  ;;  %v6591_v34 = vld [vmem:[%s11051_s3 + $0x5b4] ss:$8 sps:$4 sm:$0xff]  }
 0x1a6   :  { %3800 = vmatprep.subr.bf16.mxu0 %v6567_v28  ;;  %v6594_v47 = vld [vmem:[%s11051_s3 + $0x6b4] ss:$8 sps:$4 sm:$0xff]   ;;  %v8919_v28 = vpop.f32.mrf.mxu1 }
 0x1a8   :  { %3852 = vmatpush1.bf16.msra.mxu1 %v6562_v27  ;;  %v8917_v27 = vrot.slane %v875_v14, %v874_v59 }
 0x1a9   :  { %3853 = vmatprep.subr.bf16.mxu1 %v6570_v41  ;;  %3801 = vmatpush2.bf16.msra.mxu0 %v6565_v39  ;;  %v8921_v41 = vrot.slane %v879_v21, %v874_v59  ;;  %v6589_v39 = vld [vmem:[%s11051_s3 + $0x5b0] ss:$8 sps:$4 sm:$0xff]  }
 0x1aa   :  { %3802 = vmatprep.subr.bf16.mxu0 %v6573_v44  ;;  %11063 = vst [vmem:[#allocation7_spill] sm:$0xff] %v8917_v27  ;;  %v8929_v44 = vpop.f32.mrf.mxu0 }
 0x1ab   :  { %11064 = vst [vmem:[#allocation8_spill] sm:$0xff] %v8921_v41 }
 0x1ac   :  { %3854 = vmatpush2.bf16.msra.mxu1 %v6568_v46  ;;  %v6592_v46 = vld [vmem:[%s11051_s3 + $0x6b0] ss:$8 sps:$4 sm:$0xff]  }
 0x1ad   :  { %3855 = vmatprep.subr.bf16.mxu1 %v6576_v35  ;;  %3803 = vmatpush2.bf16.msra.mxu0 %v6571_v50  ;;  %v6597_v35 = vld [vmem:[%s11051_s3 + $0x5a4] ss:$8 sps:$4 sm:$0xff]  }
 0x1ae   :  { %3804 = vmatprep.subr.bf16.mxu0 %v6579_v2  ;;  %v6600_v50 = vld [vmem:[%s11051_s3 + $0x6a4] ss:$8 sps:$4 sm:$0xff]   ;;  %v8939_v2 = vpop.f32.mrf.mxu1 }
 0x1b0   :  { %3856 = vmatpush2.bf16.msra.mxu1 %v6574_v11  ;;  %v2045_v11 = vadd.f32 %v8627_v54, %v8917_v27  ;;  %v2309_v59 = vpop.f32.mrf.mxu1  ;;  %v6603_v54 = vld [vmem:[%s11051_s3 + $0x594] ss:$8 sps:$4 sm:$0xff]  }
 0x1b1   :  { %3857 = vmatprep.subr.bf16.mxu1 %v6582_v38  ;;  %3805 = vmatpush2.bf16.msra.mxu0 %v6577_v36  ;;  %v2047_v38 = vadd.f32 %v8641_v16, %v8921_v41  ;;  %v6598_v36 = vld [vmem:[%s11051_s3 + $0x6a0] ss:$8 sps:$4 sm:$0xff]   ;;  %v6606_v16 = vld [vmem:[%s11051_s3 + $0x694] ss:$8 sps:$4 sm:$0xff]  }
 0x1b2   :  { %3806 = vmatprep.subr.bf16.mxu0 %v6585_v12  ;;  %v2098_v12 = vadd.f32 %v8685_v4, %v2045_v11  ;;  %v2051_v4 = vadd.f32 %v8669_v22, %v8921_v41  ;;  %v6610_v11 = vld [vmem:[%s11051_s3 + $0x680] ss:$8 sps:$4 sm:$0xff]  }
 0x1b3   :  { %v2100_v14 = vadd.f32 %v8701_v33, %v2047_v38 }
 0x1b4   :  { %3858 = vmatpush2.bf16.msra.mxu1 %v6580_v5  ;;  %v8949_v5 = vpop.f32.mrf.mxu0  ;;  %v2151_v21 = vadd.f32 %v8737_v43, %v2098_v12  ;;  %v6609_v43 = vld [vmem:[%s11051_s3 + $0x584] ss:$8 sps:$4 sm:$0xff]   ;;  %v2104_v38 = vadd.f32 %v8739_v55, %v2051_v4 }
 0x1b5   :  { %3859 = vmatprep.subr.bf16.mxu1 %v6588_v18  ;;  %3807 = vmatpush2.bf16.msra.mxu0 %v6583_v32  ;;  %v2049_v18 = vadd.f32 %v8655_v10, %v8917_v27  ;;  %v2311_v32 = vpop.f32.mrf.mxu1  ;;  %v2055_v10 = vadd.f32 %v8677_v23, %v8917_v27 }
 0x1b6   :  { %3808 = vmatprep.subr.bf16.mxu0 %v6591_v34  ;;  %v6604_v34 = vld [vmem:[%s11051_s3 + $0x690] ss:$8 sps:$4 sm:$0xff]   ;;  %v8972_v33 = vpop.f32.mrf.mxu0  ;;  %v2204_v22 = vadd.f32 %v8809_v19, %v2151_v21 }
 0x1b8   :  { %3860 = vmatpush2.bf16.msra.mxu1 %v6586_v8  ;;  %v6601_v8 = vld [vmem:[%s11051_s3 + $0x590] ss:$8 sps:$4 sm:$0xff]   ;;  %v8994_v19 = vpop.f32.mrf.mxu0 }
 0x1b9   :  { %3861 = vmatprep.subr.bf16.mxu1 %v6594_v47  ;;  %3809 = vmatpush2.bf16.msra.mxu0 %v6589_v39  ;;  %v6612_v47 = vld [vmem:[%s11051_s3 + $0x684] ss:$8 sps:$4 sm:$0xff]   ;;  %v2102_v39 = vadd.f32 %v8719_v45, %v2049_v18  ;;  %v2057_v45 = vadd.f32 %v8693_v49, %v8921_v41 }
 0x1ba   :  { %3810 = vmatprep.subr.bf16.mxu0 %v6597_v35  ;;  %v2313_v35 = vpop.f32.mrf.mxu1  ;;  %v9007_v18 = vpop.f32.mrf.mxu0 }
 0x1bb   :  { %v2155_v23 = vadd.f32 %v8775_v13, %v2102_v39  ;;  %v2059_v13 = vadd.f32 %v8709_v40, %v8917_v27  ;;  %v2110_v12 = vadd.f32 %v8771_v0, %v2057_v45  ;;  %v2061_v40 = vadd.f32 %v8727_v7, %v8921_v41 }
 0x1bc   :  { %3862 = vmatpush2.bf16.msra.mxu1 %v6592_v46  ;;  %v2153_v46 = vadd.f32 %v8755_v30, %v2100_v14  ;;  %v2108_v30 = vadd.f32 %v8753_v57, %v2055_v10  ;;  %v2315_v57 = vpop.f32.mrf.mxu1 }
 0x1bd   :  { %3863 = vmatprep.subr.bf16.mxu1 %v6600_v50  ;;  %3811 = vmatpush2.bf16.msra.mxu0 %v6595_v6  ;;  %v6607_v50 = vld [vmem:[%s11051_s3 + $0x580] ss:$8 sps:$4 sm:$0xff]  }
 0x1be   :  { %3812 = vmatprep.subr.bf16.mxu0 %v6603_v54  ;;  %v2206_v6 = vadd.f32 %v8825_v24, %v2153_v46  ;;  %v2157_v54 = vadd.f32 %v8791_v53, %v2104_v38  ;;  %v2161_v55 = vadd.f32 %v8807_v15, %v2108_v30  ;;  %v6613_v53 = vld [vmem:[%s11051_s3 + $0x74] ss:$8 sps:$4 sm:$0xff]   ;;  %v2112_v24 = vadd.f32 %v8789_v20, %v2059_v13 }
 0x1bf   :  { %v6614_v15 = vld [vmem:[%s11051_s3 + $0x174] ss:$8 sps:$4 sm:$0xff]  }
 0x1c0   :  { %3864 = vmatpush2.bf16.msra.mxu1 %v6598_v36  ;;  %v2257_v36 = vadd.f32 %v8868_v62, %v2204_v22  ;;  %v2259_v49 = vadd.f32 %v8891_v48, %v2206_v6  ;;  %v2319_v62 = vpop.f32.mrf.mxu1  ;;  %v2210_v7 = vadd.f32 %v8860_v25, %v2157_v54  ;;  %v2163_v48 = vadd.f32 %v8823_v61, %v2110_v12  ;;  %v3893_v6 = vld [vmem:[%s11053_s1 + $0x18] sm:$0xff]  ;;  %v3894_v12 = vld [vmem:[%s11053_s1 + $0x20] sm:$0xff] }
 0x1c1   :  { %3865 = vmatprep.subr.bf16.mxu1 %v6606_v16  ;;  %3813 = vmatpush2.bf16.msra.mxu0 %v6601_v8  ;;  %v2208_v16 = vadd.f32 %v8841_v52, %v2155_v23  ;;  %v2214_v14 = vadd.f32 %v8877_v60, %v2161_v55  ;;  %v3890_v8 = vld [vmem:[%s11053_s1] sm:$0xff]  ;;  %v2165_v20 = vadd.f32 %v8839_v29, %v2112_v24  ;;  %v3892_v23 = vld [vmem:[%s11053_s1 + $0x10] sm:$0xff] }
 0x1c2   :  { %3814 = vmatprep.subr.bf16.mxu0 %v6609_v43  ;;  %v2310_v52 = vadd.f32 %v2309_v59, %v2257_v36  ;;  %v2312_v59 = vadd.f32 %v2311_v32, %v2259_v49  ;;  %v2114_v61 = vadd.f32 %v8805_v9, %v2061_v40  ;;  %v2263_v25 = vadd.f32 %v8929_v44, %v2210_v7  ;;  %v2321_v9 = vpop.f32.mrf.mxu1  ;;  %v6618_v32 = vld [vmem:[%s11051_s3 + $0x164] ss:$8 sps:$4 sm:$0xff]   ;;  %v6621_v36 = vld [vmem:[%s11051_s3 + $0x54] ss:$8 sps:$4 sm:$0xff]   ;;  %v6624_v7 = vld [vmem:[%s11051_s3 + $0x150] ss:$8 sps:$4 sm:$0xff]  }
 0x1c3   :  { %v2261_v0 = vadd.f32 %v8909_v17, %v2208_v16  ;;  %v2267_v60 = vadd.f32 %v8949_v5, %v2214_v14  ;;  %v6617_v5 = vld [vmem:[%s11051_s3 + $0x64] ss:$8 sps:$4 sm:$0xff]   ;;  %v2216_v4 = vadd.f32 %v8900_v58, %v2163_v48  ;;  %v6620_v58 = vld [vmem:[%s11051_s3 + $0x160] ss:$8 sps:$4 sm:$0xff]   ;;  %v6622_v54 = vld [vmem:[%s11051_s3 + $0x154] ss:$8 sps:$4 sm:$0xff]  }
 0x1c4   :  { %3866 = vmatpush2.bf16.msra.mxu1 %v6604_v34  ;;  %v2167_v10 = vadd.f32 %v8858_v56, %v2114_v61  ;;  %v6619_v56 = vld [vmem:[%s11051_s3 + $0x60] ss:$8 sps:$4 sm:$0xff]  }
 0x1c5   :  { %3867 = vmatprep.subr.bf16.mxu1 %v6612_v47  ;;  %3815 = vmatpush2.bf16.msra.mxu0 %v6607_v50  ;;  %v2218_v47 = vadd.f32 %v8919_v28, %v2165_v20  ;;  %v2269_v50 = vadd.f32 %v8972_v33, %v2216_v4  ;;  %v2323_v28 = vpop.f32.mrf.mxu1 }
 0x1c6   :  { %4714 = vmatprep.subr.bf16.mxu0 %v6613_v53  ;;  %v2220_v55 = vadd.f32 %v8939_v2, %v2167_v10 }
 0x1c7   :  { %v2322_v48 = vadd.f32 %v2321_v9, %v2269_v50  ;;  %v2325_v14 = vpop.f32.mrf.mxu1 }
 0x1c8   :  { %3868 = vmatpush2.bf16.msra.mxu1 %v6610_v11  ;;  %v2362_v21 = vpop.f32.mrf.mxu0  ;;  %3817 = vmatmul.mubr.bf16.vlgmr.msra.gmra.mxu0 %v8046_v26  ;;  %v3891_v26 = vld [vmem:[%s11053_s1 + $0x8] sm:$0xff]  ;;  %v2320_v11 = vadd.f32 %v2319_v62, %v2267_v60  ;;  %v6623_v62 = vld [vmem:[%s11051_s3 + $0x50] ss:$8 sps:$4 sm:$0xff]  }
 0x1c9   :  { %4767 = vmatprep.subr.bf16.mxu1 %v6614_v15  ;;  %v2363_v17 = vadd.f32 %v2362_v21, %v2310_v52  ;;  %3826 = vmatprep.mubr.bf16.mxu0 %v8068_v42  ;;  %v6616_v42 = vld [vmem:[%s11051_s3 + $0x170] ss:$8 sps:$4 sm:$0xff]   ;;  %v2273_v15 = vadd.f32 %v9007_v18, %v2220_v55  ;;  %v6625_v18 = vld [vmem:[%s11051_s3 + $0x44] ss:$8 sps:$4 sm:$0xff]  }
 0x1ca   :  { %v2364_v34 = vpop.f32.mrf.mxu0  ;;  %v6626_v21 = vld [vmem:[%s11051_s3 + $0x144] ss:$8 sps:$4 sm:$0xff]  }
 0x1cb   :  { %3870 = vmatmul.mubr.bf16.vlgmr.msra.gmra.mxu1 %v8282_v37  ;;  %v6615_v37 = vld [vmem:[%s11051_s3 + $0x70] ss:$8 sps:$4 sm:$0xff]   ;;  %v3898_v29 = vadd.f32 %v3890_v8, %v2363_v17  ;;  %v2365_v44 = vadd.f32 %v2364_v34, %v2312_v59  ;;  %v2326_v34 = vadd.f32 %v2325_v14, %v2273_v15 }
 0x1cc   :  { %3879 = vmatprep.mubr.bf16.mxu1 %v8297_v51  ;;  %4715 = vmatpush1.bf16.msra.mxu0 %v6615_v37  ;;  %v2314_v51 = vadd.f32 %v2313_v35, %v2261_v0  ;;  %v2366_v43 = vpop.f32.mrf.mxu0  ;;  %v2316_v35 = vadd.f32 %v2315_v57, %v2263_v25 }
 0x1cd   :  { %4768 = vmatpush1.bf16.msra.mxu1 %v6616_v42  ;;  %4716 = vmatprep.subr.bf16.mxu0 %v6617_v5  ;;  %v9049_v39 = vmax.f32 %v3898_v29, 0.0  ;;  %v3899_v46 = vadd.f32 %v3891_v26, %v2365_v44  ;;  %v6627_v29 = vld [vmem:[%s11051_s3 + $0x40] ss:$8 sps:$4 sm:$0xff]  }
 0x1ce   :  { %4769 = vmatprep.subr.bf16.mxu1 %v6618_v32  ;;  %v2367_v22 = vadd.f32 %v2366_v43, %v2314_v51  ;;  %v2368_v38 = vpop.f32.mrf.mxu0  ;;  %v6628_v44 = vld [vmem:[%s11051_s3 + $0x140] ss:$8 sps:$4 sm:$0xff]  }
 0x1cf   :  { %3914 = vst [vmem:[#allocation2 + $0x30] sm:$0xff] %v9049_v39  ;;  %v3938_v45 = vrot.slane %v9049_v39, 5  ;;  %v3962_v30 = vrot.slane %v9049_v39, 6  ;;  %v3986_v33 = vrot.slane %v9049_v39, 7  ;;  %4007 = vst [vmem:[#allocation5 + $0x30] sm:$0xff] %v9049_v39  ;;  %v9066_v13 = vmax.f32 %v3899_v46, 0.0 }
 0x1d0   :  { %4717 = vmatpush1.bf16.msra.mxu0 %v6619_v56  ;;  %v3900_v16 = vadd.f32 %v3892_v23, %v2367_v22  ;;  %v2369_v49 = vadd.f32 %v2368_v38, %v2316_v35  ;;  %v2372_v57 = vpop.f32.mrf.mxu0  ;;  %v3895_v43 = vld [vmem:[%s11053_s1 + $0x28] sm:$0xff]  ;;  %v6630_v46 = vld [vmem:[%s11051_s3 + $0x134] ss:$8 sps:$4 sm:$0xff]  }
 0x1d1   :  { %4770 = vmatpush1.bf16.msra.mxu1 %v6620_v58  ;;  %4718 = vmatprep.subr.bf16.mxu0 %v6621_v36  ;;  %3948 = vst [vmem:[#allocation5] sm:$0xf8] %v3938_v45  ;;  %3972 = vst [vmem:[#allocation5 + $0x10] sm:$0xfc] %v3962_v30  ;;  %v3939_v2 = vrot.slane %v9066_v13, 5  ;;  %v3963_v40 = vrot.slane %v9066_v13, 6 }
 0x1d2   :  { %4771 = vmatprep.subr.bf16.mxu1 %v6622_v54  ;;  %3827 = vmatmul.mubr.bf16.gmra.mxu0 %v8102_v1  ;;  %3996 = vst [vmem:[#allocation5 + $0x20] sm:$0xfe] %v3986_v33  ;;  %3915 = vst [vmem:[#allocation2] sm:$0xff] %v9066_v13  ;;  %v3987_v53 = vrot.slane %v9066_v13, 7  ;;  %v2373_v1 = vadd.f32 %v2372_v57, %v2320_v11  ;;  %v9096_v24 = vmax.f32 %v3900_v16, 0.0  ;;  %v2374_v0 = vpop.f32.mrf.mxu0  ;;  %v3896_v16 = vld [vmem:[%s11053_s1 + $0x30] sm:$0xff] }
 0x1d3   :  { %3880 = vmatmul.mubr.bf16.gmra.mxu1 %v8313_v31  ;;  %4008 = vst [vmem:[#allocation5 + $0x38] sm:$0xff] %v9066_v13  ;;  %v2271_v31 = vadd.f32 %v8994_v19, %v2218_v47  ;;  %v3901_v52 = vadd.f32 %v3893_v6, %v2369_v49  ;;  %3949 = vst [vmem:[#allocation5 + $0x8] sm:$0xf8] %v3939_v2  ;;  %v2375_v51 = vadd.f32 %v2374_v0, %v2322_v48  ;;  %v6629_v47 = vld [vmem:[%s11051_s3 + $0x34] ss:$8 sps:$4 sm:$0xff]  }
 0x1d4   :  { %4719 = vmatpush1.bf16.msra.mxu0 %v6623_v62  ;;  %3973 = vst [vmem:[#allocation5 + $0x18] sm:$0xfc] %v3963_v40  ;;  %3997 = vst [vmem:[#allocation5 + $0x28] sm:$0xfe] %v3987_v53  ;;  %v3902_v19 = vadd.f32 %v3894_v12, %v2373_v1  ;;  %v4020_v8 = vrot.slane %v9096_v24, 1  ;;  %v4045_v20 = vrot.slane %v9096_v24, 2  ;;  %v2376_v61 = vpop.f32.mrf.mxu0 }
 0x1d5   :  { %4772 = vmatpush1.bf16.msra.mxu1 %v6624_v7  ;;  %4720 = vmatprep.subr.bf16.mxu0 %v6625_v18  ;;  %3916 = vst [vmem:[#allocation2 + $0x18] sm:$0xff] %v9096_v24  ;;  %4009 = vst [vmem:[#allocation5 + $0xa0] sm:$0xff] %v9096_v24  ;;  %v4069_v59 = vrot.slane %v9096_v24, 3  ;;  %v9121_v17 = vmax.f32 %v3901_v52, 0.0  ;;  %v2324_v60 = vadd.f32 %v2323_v28, %v2271_v31  ;;  %v3897_v49 = vld [vmem:[%s11053_s1 + $0x38] sm:$0xff] }
 0x1d6   :  { %4773 = vmatprep.subr.bf16.mxu1 %v6626_v21  ;;  %v9123_v25 = vmax.f32 %v3902_v19, 0.0  ;;  %v4011_v26 = vld [vmem:[#allocation2 + $0x30] sm:$0xfe]  ;;  %4031 = vst [vmem:[#allocation5 + $0xb0] sm:$0x7f] %v4020_v8  ;;  %v2378_v9 = vpop.f32.mrf.mxu0  ;;  %v3903_v24 = vadd.f32 %v3895_v43, %v2375_v51 }
 0x1d7   :  { %v4036_v37 = vld [vmem:[#allocation2 + $0x30] sm:$0xfc]  ;;  %4056 = vst [vmem:[#allocation5 + $0xc0] sm:$0x3f] %v4045_v20  ;;  %4080 = vst [vmem:[#allocation5 + $0xd0] sm:$0x1f] %v4069_v59  ;;  %v2377_v50 = vadd.f32 %v2376_v61, %v2324_v60  ;;  %v2379_v11 = vadd.f32 %v2378_v9, %v2326_v34 }
 0x1d8   :  { %v4060_v42 = vld [vmem:[#allocation2 + $0x30] sm:$0xf8]  ;;  %3917 = vst [vmem:[#allocation2 + $0x10] sm:$0xff] %v9121_v17  ;;  %4010 = vst [vmem:[#allocation5 + $0xa8] sm:$0xff] %v9121_v17  ;;  %4721 = vmatpush1.bf16.msra.mxu0 %v6627_v29  ;;  %v4019_v5 = vrot.slane %v4011_v26, 1  ;;  %v4044_v32 = vrot.slane %v4036_v37, 2 }
 0x1d9   :  { %4774 = vmatpush1.bf16.msra.mxu1 %v6628_v44  ;;  %v4068_v4 = vrot.slane %v4060_v42, 3  ;;  %v4023_v10 = vrot.slane %v9121_v17, 1  ;;  %3918 = vst [vmem:[#allocation2 + $0x8] sm:$0xff] %v9123_v25  ;;  %4161 = vst [vmem:[#allocation5 + $0x110] sm:$0xff] %v9123_v25  ;;  %4722 = vmatprep.subr.bf16.mxu0 %v6629_v47  ;;  %v4012_v22 = vld [vmem:[#allocation2] sm:$0xfe] }
 0x1da   :  { %4775 = vmatprep.subr.bf16.mxu1 %v6630_v46  ;;  %v4037_v23 = vld [vmem:[#allocation2] sm:$0xfc]  ;;  %v4022_v38 = vrot.slane %v4012_v22, 1  ;;  %v4021_v28 = vsel %vm565_vm4, %v4019_v5, %v4020_v8  ;;  %v4046_v6 = vsel %vm591_vm5, %v4044_v32, %v4045_v20  ;;  %v4048_v54 = vrot.slane %v9121_v17, 2  ;;  %v6631_v57 = vld [vmem:[%s11051_s3 + $0x30] ss:$8 sps:$4 sm:$0xff]  }
 0x1db   :  { %v4061_v35 = vld [vmem:[#allocation2] sm:$0xf8]  ;;  %v4047_v56 = vrot.slane %v4037_v23, 2  ;;  %4032 = vst [vmem:[#allocation5 + $0xb8] sm:$0x7f] %v4023_v10  ;;  %4029 = vst [vmem:[#allocation5 + $0x40] sm:$0xff] %v4021_v28  ;;  %v4070_v36 = vsel %vm616_vm6, %v4068_v4, %v4069_v59  ;;  %v3904_v20 = vadd.f32 %v3896_v16, %v2377_v50  ;;  %v3905_v59 = vadd.f32 %v3897_v49, %v2379_v11 }
 0x1dc   :  { %v4071_v58 = vrot.slane %v4061_v35, 3  ;;  %v4072_v55 = vrot.slane %v9121_v17, 3  ;;  %4723 = vmatpush1.bf16.msra.mxu0 %v6631_v57  ;;  %v6632_v12 = vld [vmem:[%s11051_s3 + $0x130] ss:$8 sps:$4 sm:$0xff]   ;;  %4054 = vst [vmem:[#allocation5 + $0x50] sm:$0xff] %v4046_v6  ;;  %4078 = vst [vmem:[#allocation5 + $0x60] sm:$0xff] %v4070_v36  ;;  %v4024_v62 = vsel %vm565_vm4, %v4022_v38, %v4023_v10 }
 0x1dd   :  { %4776 = vmatpush1.bf16.msra.mxu1 %v6632_v12  ;;  %v3932_v1 = vld [vmem:[#allocation2 + $0x18] sm:$0x1f]  ;;  %v6633_v52 = vld [vmem:[%s11051_s3 + $0x24] ss:$8 sps:$4 sm:$0xff]   ;;  %4057 = vst [vmem:[#allocation5 + $0xc8] sm:$0x3f] %v4048_v54  ;;  %v4049_v17 = vsel %vm591_vm5, %v4047_v56, %v4048_v54 }
 0x1de   :  { %v3956_v31 = vld [vmem:[#allocation2 + $0x18] sm:$0x3f]  ;;  %4724 = vmatprep.subr.bf16.mxu0 %v6633_v52  ;;  %v6634_v0 = vld [vmem:[%s11051_s3 + $0x124] ss:$8 sps:$4 sm:$0xff]   ;;  %v3940_v7 = vrot.slane %v3932_v1, 5  ;;  %v4092_v19 = vrot.slane %v9123_v25, 5  ;;  %v4073_v61 = vsel %vm616_vm6, %v4071_v58, %v4072_v55 }
 0x1df   :  { %v3980_v15 = vld [vmem:[#allocation2 + $0x18] sm:$0x7f]  ;;  %4777 = vmatprep.subr.bf16.mxu1 %v6634_v0  ;;  %v3964_v48 = vrot.slane %v3956_v31, 6  ;;  %4081 = vst [vmem:[#allocation5 + $0xd8] sm:$0x1f] %v4072_v55  ;;  %4030 = vst [vmem:[#allocation5 + $0x48] sm:$0xff] %v4024_v62 }
 0x1e0   :  { %v3988_v14 = vrot.slane %v3980_v15, 7  ;;  %v3933_v18 = vld [vmem:[#allocation2 + $0x10] sm:$0x1f]  ;;  %v3941_v60 = vsel %vm477_vm1, %v3938_v45, %v3940_v7  ;;  %v9183_v42 = vld [vmem:[#allocation2 + $0x8] sm:$0xfe]  ;;  %4055 = vst [vmem:[#allocation5 + $0x58] sm:$0xff] %v4049_v17 }
 0x1e1   :  { %v3957_v21 = vld [vmem:[#allocation2 + $0x10] sm:$0x3f]  ;;  %v3965_v34 = vsel %vm502_vm2, %v3962_v30, %v3964_v48  ;;  %v3942_v37 = vrot.slane %v3933_v18, 5  ;;  %4102 = vst [vmem:[#allocation5 + $0xe0] sm:$0xf8] %v4092_v19  ;;  %4079 = vst [vmem:[#allocation5 + $0x68] sm:$0xff] %v4073_v61 }
 0x1e2   :  { %v9170_v8 = vld [vmem:[#allocation2 + $0x10] sm:$0x7f]  ;;  %v3989_v26 = vsel %vm527_vm3, %v3986_v33, %v3988_v14  ;;  %v6635_v51 = vld [vmem:[%s11051_s3 + $0x20] ss:$8 sps:$4 sm:$0xff]   ;;  %3950 = vst [vmem:[#allocation5 + $0x70] sm:$0xff] %v3941_v60  ;;  %3974 = vst [vmem:[#allocation5 + $0x80] sm:$0xff] %v3965_v34 }
 0x1e3   :  { %4725 = vmatpush1.bf16.msra.mxu0 %v6635_v51  ;;  %v6636_v45 = vld [vmem:[%s11051_s3 + $0x120] ss:$8 sps:$4 sm:$0xff]   ;;  %3998 = vst [vmem:[#allocation5 + $0x90] sm:$0xff] %v3989_v26  ;;  %v3966_v39 = vrot.slane %v3957_v21, 6  ;;  %v4116_v30 = vrot.slane %v9123_v25, 6  ;;  %v4140_v33 = vrot.slane %v9123_v25, 7  ;;  %v3943_v46 = vsel %vm477_vm1, %v3939_v2, %v3942_v37 }
 0x1e4   :  { %4778 = vmatpush1.bf16.msra.mxu1 %v6636_v45  ;;  %v9195_v9 = vld [vmem:[#allocation2 + $0x8] sm:$0xfc]  ;;  %v6637_v29 = vld [vmem:[%s11051_s3 + $0x14] ss:$8 sps:$4 sm:$0xff]   ;;  %v3990_v5 = vrot.slane %v9170_v8, 7  ;;  %v4173_v32 = vrot.slane %v9183_v42, 1 }
 0x1e5   :  { %4726 = vmatprep.subr.bf16.mxu0 %v6637_v29  ;;  %v6638_v44 = vld [vmem:[%s11051_s3 + $0x114] ss:$8 sps:$4 sm:$0xff]   ;;  %v9205_v4 = vmax.f32 %v3903_v24, 0.0  ;;  %v4214_v10 = vld [vmem:[#allocation2 + $0x8] sm:$0xf8]  ;;  %v3912_v43 = vmax.f32 %v3904_v20, 0.0  ;;  %v3967_v22 = vsel %vm502_vm2, %v3963_v40, %v3966_v39 }
 0x1e6   :  { %4779 = vmatprep.subr.bf16.mxu1 %v6638_v44  ;;  %4126 = vst [vmem:[#allocation5 + $0xf0] sm:$0xfc] %v4116_v30  ;;  %4150 = vst [vmem:[#allocation5 + $0x100] sm:$0xfe] %v4140_v33  ;;  %v9211_v47 = vmax.f32 %v3905_v59, 0.0  ;;  %v4198_v23 = vrot.slane %v9195_v9, 2  ;;  %v3991_v49 = vsel %vm527_vm3, %v3987_v53, %v3990_v5 }
 0x1e7   :  { %3919 = vst [vmem:[#allocation2 + $0x20] sm:$0xff] %v9205_v4  ;;  %v4093_v35 = vrot.slane %v9205_v4, 5  ;;  %v4117_v50 = vrot.slane %v9205_v4, 6  ;;  %v4141_v11 = vrot.slane %v9205_v4, 7  ;;  %4162 = vst [vmem:[#allocation5 + $0x118] sm:$0xff] %v9205_v4  ;;  %v4174_v38 = vrot.slane %v3912_v43, 1 }
 0x1e8   :  { %v6639_v2 = vld [vmem:[%s11051_s3 + $0x10] ss:$8 sps:$4 sm:$0xff]   ;;  %3951 = vst [vmem:[#allocation5 + $0x78] sm:$0xff] %v3943_v46  ;;  %3975 = vst [vmem:[#allocation5 + $0x88] sm:$0xff] %v3967_v22  ;;  %v4199_v56 = vrot.slane %v3912_v43, 2  ;;  %v4223_v58 = vrot.slane %v3912_v43, 3 }
 0x1e9   :  { %4727 = vmatpush1.bf16.msra.mxu0 %v6639_v2  ;;  %v6640_v40 = vld [vmem:[%s11051_s3 + $0x110] ss:$8 sps:$4 sm:$0xff]   ;;  %3920 = vst [vmem:[#allocation2 + $0x28] sm:$0xff] %v3912_v43  ;;  %4163 = vst [vmem:[#allocation5 + $0x180] sm:$0xff] %v3912_v43  ;;  %v4177_v28 = vrot.slane %v9211_v47, 1  ;;  %v4222_v54 = vrot.slane %v4214_v10, 3  ;;  %v4175_v13 = vsel %vm565_vm4, %v4173_v32, %v4174_v38 }
 0x1ea   :  { %4780 = vmatpush1.bf16.msra.mxu1 %v6640_v40  ;;  %3921 = vst [vmem:[#allocation2 + $0x38] sm:$0xff] %v9211_v47  ;;  %4164 = vst [vmem:[#allocation5 + $0x188] sm:$0xff] %v9211_v47  ;;  %v6641_v6 = vld [vmem:[%s11051_s3 + $0x4] ss:$8 sps:$4 sm:$0xff]   ;;  %v4202_v55 = vrot.slane %v9211_v47, 2  ;;  %v4226_v16 = vrot.slane %v9211_v47, 3  ;;  %v4200_v31 = vsel %vm591_vm5, %v4198_v23, %v4199_v56 }
 0x1eb   :  { %4728 = vmatprep.subr.bf16.mxu0 %v6641_v6  ;;  %v6642_v36 = vld [vmem:[%s11051_s3 + $0x104] ss:$8 sps:$4 sm:$0xff]   ;;  %4103 = vst [vmem:[#allocation5 + $0xe8] sm:$0xf8] %v4093_v35  ;;  %4127 = vst [vmem:[#allocation5 + $0xf8] sm:$0xfc] %v4117_v50  ;;  %v4224_v15 = vsel %vm616_vm6, %v4222_v54, %v4223_v58 }
 0x1ec   :  { %4781 = vmatprep.subr.bf16.mxu1 %v6642_v36  ;;  %4151 = vst [vmem:[#allocation5 + $0x108] sm:$0xfe] %v4141_v11  ;;  %4185 = vst [vmem:[#allocation5 + $0x190] sm:$0x7f] %v4174_v38  ;;  %v6643_v57 = vld [vmem:[%s11051_s3] ss:$8 sps:$4 sm:$0xff]  }
 0x1ed   :  { %4210 = vst [vmem:[#allocation5 + $0x1a0] sm:$0x3f] %v4199_v56  ;;  %4234 = vst [vmem:[#allocation5 + $0x1b0] sm:$0x1f] %v4223_v58  ;;  %4729 = vmatpush1.bf16.msra.mxu0 %v6643_v57  ;;  %v6644_v12 = vld [vmem:[%s11051_s3 + $0x100] ss:$8 sps:$4 sm:$0xff]  }
 0x1ee   :  { %4186 = vst [vmem:[#allocation5 + $0x198] sm:$0x7f] %v4177_v28  ;;  %3999 = vst [vmem:[#allocation5 + $0x98] sm:$0xff] %v3991_v49  ;;  %4782 = vmatpush1.bf16.msra.mxu1 %v6644_v12  ;;  %v6645_v53 = vld [vmem:[%s11051_s3 + $0xf4] ss:$8 sps:$4 sm:$0xff]  }
 0x1ef   :  { %4211 = vst [vmem:[#allocation5 + $0x1a8] sm:$0x3f] %v4202_v55  ;;  %4235 = vst [vmem:[#allocation5 + $0x1b8] sm:$0x1f] %v4226_v16  ;;  %4730 = vmatprep.subr.bf16.mxu0 %v6645_v53  ;;  %v6646_v1 = vld [vmem:[%s11051_s3 + $0x1f4] ss:$8 sps:$4 sm:$0xff]  }
 0x1f0   :  { %4783 = vmatprep.subr.bf16.mxu1 %v6646_v1  ;;  %4183 = vst [vmem:[#allocation5 + $0x120] sm:$0xff] %v4175_v13  ;;  %v4166_v24 = vld [vmem:[#allocation2 + $0x20] sm:$0xfe]  ;;  %4208 = vst [vmem:[#allocation5 + $0x130] sm:$0xff] %v4200_v31  ;;  %v4086_v14 = vld [vmem:[#allocation2 + $0x28] sm:$0x1f] }
 0x1f1   :  { %v4191_v52 = vld [vmem:[#allocation2 + $0x20] sm:$0xfc]  ;;  %4232 = vst [vmem:[#allocation5 + $0x140] sm:$0xff] %v4224_v15  ;;  %v4176_v62 = vrot.slane %v4166_v24, 1  ;;  %v6647_v18 = vld [vmem:[%s11051_s3 + $0xf0] ss:$8 sps:$4 sm:$0xff]   ;;  %v3553_v15 = vpop.f32.mrf.mxu1 }
 0x1f2   :  { %v4215_v0 = vld [vmem:[#allocation2 + $0x20] sm:$0xf8]  ;;  %v4201_v7 = vrot.slane %v4191_v52, 2  ;;  %4731 = vmatpush2.bf16.msra.mxu0 %v6647_v18  ;;  %v6648_v21 = vld [vmem:[%s11051_s3 + $0x1f0] ss:$8 sps:$4 sm:$0xff]   ;;  %v4094_v8 = vrot.slane %v4086_v14, 5 }
 0x1f3   :  { %v4225_v48 = vrot.slane %v4215_v0, 3  ;;  %4784 = vmatpush2.bf16.msra.mxu1 %v6648_v21  ;;  %v4110_v20 = vld [vmem:[#allocation2 + $0x28] sm:$0x3f]  ;;  %v4087_v26 = vld [vmem:[#allocation2 + $0x38] sm:$0x1f]  ;;  %v4178_v42 = vsel %vm565_vm4, %v4176_v62, %v4177_v28  ;;  %v3555_v24 = vpop.f32.mrf.mxu1 }
 0x1f4   :  { %v4134_v59 = vld [vmem:[#allocation2 + $0x28] sm:$0x7f]  ;;  %v4118_v60 = vrot.slane %v4110_v20, 6  ;;  %v4111_v37 = vld [vmem:[#allocation2 + $0x38] sm:$0x3f]  ;;  %v4203_v51 = vsel %vm591_vm5, %v4201_v7, %v4202_v55  ;;  %v4096_v45 = vrot.slane %v4087_v26, 5  ;;  %v4095_v29 = vsel %vm477_vm1, %v4092_v19, %v4094_v8 }
 0x1f5   :  { %v6649_v17 = vld [vmem:[%s11051_s3 + $0xe4] ss:$8 sps:$4 sm:$0xff]   ;;  %v4142_v34 = vrot.slane %v4134_v59, 7  ;;  %v4120_v39 = vrot.slane %v4111_v37, 6  ;;  %v4135_v9 = vld [vmem:[#allocation2 + $0x38] sm:$0x7f]  ;;  %v4227_v44 = vsel %vm616_vm6, %v4225_v48, %v4226_v16  ;;  %v3557_v52 = vpop.f32.mrf.mxu1 }
 0x1f6   :  { %4732 = vmatprep.subr.bf16.mxu0 %v6649_v17  ;;  %v6650_v61 = vld [vmem:[%s11051_s3 + $0x1e4] ss:$8 sps:$4 sm:$0xff]   ;;  %4184 = vst [vmem:[#allocation5 + $0x128] sm:$0xff] %v4178_v42  ;;  %4209 = vst [vmem:[#allocation5 + $0x138] sm:$0xff] %v4203_v51  ;;  %v4144_v5 = vrot.slane %v4135_v9, 7  ;;  %v4119_v19 = vsel %vm502_vm2, %v4116_v30, %v4118_v60  ;;  %v4097_v22 = vsel %vm477_vm1, %v4093_v35, %v4096_v45 }
 0x1f7   :  { %4785 = vmatprep.subr.bf16.mxu1 %v6650_v61  ;;  %v6651_v32 = vld [vmem:[%s11051_s3 + $0xe0] ss:$8 sps:$4 sm:$0xff]   ;;  %4104 = vst [vmem:[#allocation5 + $0x150] sm:$0xff] %v4095_v29  ;;  %v4143_v43 = vsel %vm527_vm3, %v4140_v33, %v4142_v34  ;;  %4233 = vst [vmem:[#allocation5 + $0x148] sm:$0xff] %v4227_v44  ;;  %v6653_v47 = vld [vmem:[%s11051_s3 + $0xd4] ss:$8 sps:$4 sm:$0xff]   ;;  %v4121_v25 = vsel %vm502_vm2, %v4117_v50, %v4120_v39  ;;  %v3559_v0 = vpop.f32.mrf.mxu1 }
 0x1f8   :  { %4733 = vmatpush2.bf16.msra.mxu0 %v6651_v32  ;;  %v6652_v10 = vld [vmem:[%s11051_s3 + $0x1e0] ss:$8 sps:$4 sm:$0xff]   ;;  %v6654_v46 = vld [vmem:[%s11051_s3 + $0x1d4] ss:$8 sps:$4 sm:$0xff]   ;;  %4128 = vst [vmem:[#allocation5 + $0x160] sm:$0xff] %v4119_v19  ;;  %4152 = vst [vmem:[#allocation5 + $0x170] sm:$0xff] %v4143_v43  ;;  %v4145_v30 = vsel %vm527_vm3, %v4141_v11, %v4144_v5 }
 0x1f9   :  { %4786 = vmatpush2.bf16.msra.mxu1 %v6652_v10  ;;  %4734 = vmatprep.subr.bf16.mxu0 %v6653_v47  ;;  %4105 = vst [vmem:[#allocation5 + $0x158] sm:$0xff] %v4097_v22  ;;  %4129 = vst [vmem:[#allocation5 + $0x168] sm:$0xff] %v4121_v25  ;;  %v6655_v33 = vld [vmem:[%s11051_s3 + $0xd0] ss:$8 sps:$4 sm:$0xff]   ;;  %v6657_v35 = vld [vmem:[%s11051_s3 + $0xc4] ss:$8 sps:$4 sm:$0xff]   ;;  %v3563_v62 = vpop.f32.mrf.mxu1 }
 0x1fa   :  { %4787 = vmatprep.subr.bf16.mxu1 %v6654_v46  ;;  %4153 = vst [vmem:[#allocation5 + $0x178] sm:$0xff] %v4145_v30  ;;  %v6656_v23 = vld [vmem:[%s11051_s3 + $0x1d0] ss:$8 sps:$4 sm:$0xff]   ;;  %v6658_v4 = vld [vmem:[%s11051_s3 + $0x1c4] ss:$8 sps:$4 sm:$0xff]   ;;  %v2383_v32 = vsub.s32 1, %v8856_v63 }
 0x1fb   :  { %v6659_v50 = vld [vmem:[%s11051_s3 + $0xc0] ss:$8 sps:$4 sm:$0xff]   ;;  %v6661_v2 = vld [vmem:[%s11051_s3 + $0xb4] ss:$8 sps:$4 sm:$0xff]   ;;  %v6663_v38 = vld [vmem:[%s11051_s3 + $0xb0] ss:$8 sps:$4 sm:$0xff]   ;;  %v3565_v7 = vpop.f32.mrf.mxu1 }
 0x1fc   :  { %4735 = vmatpush2.bf16.msra.mxu0 %v6655_v33  ;;  %v6660_v11 = vld [vmem:[%s11051_s3 + $0x1c0] ss:$8 sps:$4 sm:$0xff]   ;;  %v6662_v40 = vld [vmem:[%s11051_s3 + $0x1b4] ss:$8 sps:$4 sm:$0xff]   ;;  %v6664_v56 = vld [vmem:[%s11051_s3 + $0x1b0] ss:$8 sps:$4 sm:$0xff]   ;;  %v2384_v47 = vrot.slane %v8882_v3, %v2383_v32 }
 0x1fd   :  { %4788 = vmatpush2.bf16.msra.mxu1 %v6656_v23  ;;  %4736 = vmatprep.subr.bf16.mxu0 %v6657_v35  ;;  %v6665_v58 = vld [vmem:[%s11051_s3 + $0xa4] ss:$8 sps:$4 sm:$0xff]   ;;  %v6667_v6 = vld [vmem:[%s11051_s3 + $0xa0] ss:$8 sps:$4 sm:$0xff]   ;;  %v6669_v54 = vld [vmem:[%s11051_s3 + $0x94] ss:$8 sps:$4 sm:$0xff]   ;;  %v3567_v48 = vpop.f32.mrf.mxu1 }
 0x1fe   :  { %4789 = vmatprep.subr.bf16.mxu1 %v6658_v4  ;;  %v6666_v28 = vld [vmem:[%s11051_s3 + $0x1a4] ss:$8 sps:$4 sm:$0xff]   ;;  %v6668_v36 = vld [vmem:[%s11051_s3 + $0x1a0] ss:$8 sps:$4 sm:$0xff]   ;;  %v6670_v55 = vld [vmem:[%s11051_s3 + $0x194] ss:$8 sps:$4 sm:$0xff]   ;;  %v9389_v30 = vrot.slane %v2384_v47, %v2383_v32 }
 0x1ff   :  { %v6671_v16 = vld [vmem:[%s11051_s3 + $0x90] ss:$8 sps:$4 sm:$0xff]   ;;  %v6673_v57 = vld [vmem:[%s11051_s3 + $0x84] ss:$8 sps:$4 sm:$0xff]   ;;  %v6675_v13 = vld [vmem:[%s11051_s3 + $0x80] ss:$8 sps:$4 sm:$0xff]   ;;  %v3569_v18 = vpop.f32.mrf.mxu1 }
 0x200   :  { %4737 = vmatpush2.bf16.msra.mxu0 %v6659_v50  ;;  %v6672_v49 = vld [vmem:[%s11051_s3 + $0x190] ss:$8 sps:$4 sm:$0xff]   ;;  %v6674_v12 = vld [vmem:[%s11051_s3 + $0x184] ss:$8 sps:$4 sm:$0xff]   ;;  %v6676_v53 = vld [vmem:[%s11051_s3 + $0x180] ss:$8 sps:$4 sm:$0xff]   ;;  %v3554_v50 = vadd.f32 %v3553_v15, %v9389_v30 }
 0x201   :  { %4790 = vmatpush2.bf16.msra.mxu1 %v6660_v11  ;;  %4738 = vmatprep.subr.bf16.mxu0 %v6661_v2  ;;  %v6677_v1 = vld [vmem:[%s11051_s3 + $0x274] ss:$8 sps:$4 sm:$0xff]   ;;  %v2387_v19 = vsub.s32 3, %v8856_v63  ;;  %11065 = vst [vmem:[#allocation9_spill] sm:$0xff] %v9389_v30 }
 0x202   :  { %4791 = vmatprep.subr.bf16.mxu1 %v6662_v40  ;;  %v6678_v31 = vld [vmem:[%s11051_s3 + $0x374] ss:$8 sps:$4 sm:$0xff]  }
 0x203   :  { %v2388_v22 = vrot.slane %v8882_v3, %v2387_v19 }
 0x204   :  { %4739 = vmatpush2.bf16.msra.mxu0 %v6663_v38 }
 0x205   :  { %4792 = vmatpush2.bf16.msra.mxu1 %v6664_v56  ;;  %4740 = vmatprep.subr.bf16.mxu0 %v6665_v58  ;;  %v9391_v23 = vrot.slane %v2388_v22, %v2383_v32  ;;  %v3558_v56 = vadd.f32 %v3557_v52, %v9389_v30 }
 0x206   :  { %4793 = vmatprep.subr.bf16.mxu1 %v6666_v28  ;;  %v3564_v28 = vadd.f32 %v3563_v62, %v9389_v30 }
 0x207   :  { %11066 = vst [vmem:[#allocation10_spill] sm:$0xff] %v9391_v23  ;;  %v3556_v11 = vadd.f32 %v3555_v24, %v9391_v23  ;;  %v3560_v3 = vadd.f32 %v3559_v0, %v9391_v23 }
 0x208   :  { %4741 = vmatpush2.bf16.msra.mxu0 %v6667_v6  ;;  %v3606_v14 = vpop.f32.mrf.mxu0 }
 0x209   :  { %4794 = vmatpush2.bf16.msra.mxu1 %v6668_v36  ;;  %4742 = vmatprep.subr.bf16.mxu0 %v6669_v54  ;;  %v3607_v2 = vadd.f32 %v3606_v14, %v3554_v50  ;;  %v3570_v14 = vadd.f32 %v3569_v18, %v9391_v23 }
 0x20a   :  { %4795 = vmatprep.subr.bf16.mxu1 %v6670_v55  ;;  %v3608_v8 = vpop.f32.mrf.mxu0 }
 0x20b   :  { %v3659_v21 = vpop.f32.mrf.mxu1  ;;  %v3609_v38 = vadd.f32 %v3608_v8, %v3556_v11 }
 0x20c   :  { %4743 = vmatpush2.bf16.msra.mxu0 %v6671_v16  ;;  %v3610_v59 = vpop.f32.mrf.mxu0  ;;  %v3660_v58 = vadd.f32 %v3659_v21, %v3607_v2 }
 0x20d   :  { %4796 = vmatpush2.bf16.msra.mxu1 %v6672_v49  ;;  %4744 = vmatprep.subr.bf16.mxu0 %v6673_v57  ;;  %v3661_v20 = vpop.f32.mrf.mxu1  ;;  %v3611_v6 = vadd.f32 %v3610_v59, %v3558_v56  ;;  %v3566_v57 = vadd.f32 %v3565_v7, %v9391_v23 }
 0x20e   :  { %4797 = vmatprep.subr.bf16.mxu1 %v6674_v12  ;;  %v3612_v61 = vpop.f32.mrf.mxu0  ;;  %v3662_v16 = vadd.f32 %v3661_v20, %v3609_v38  ;;  %v3568_v12 = vadd.f32 %v3567_v48, %v9389_v30 }
 0x20f   :  { %v3663_v17 = vpop.f32.mrf.mxu1  ;;  %v3613_v36 = vadd.f32 %v3612_v61, %v3560_v3 }
 0x210   :  { %4745 = vmatpush2.bf16.msra.mxu0 %v6675_v13  ;;  %v3616_v34 = vpop.f32.mrf.mxu0 }
 0x211   :  { %4798 = vmatpush2.bf16.msra.mxu1 %v6676_v53  ;;  %4820 = vmatprep.subr.bf16.mxu0 %v6677_v1  ;;  %v3665_v60 = vpop.f32.mrf.mxu1  ;;  %v3617_v13 = vadd.f32 %v3616_v34, %v3564_v28  ;;  %v3664_v1 = vadd.f32 %v3663_v17, %v3611_v6 }
 0x212   :  { %4873 = vmatprep.subr.bf16.mxu1 %v6678_v31  ;;  %v3618_v37 = vpop.f32.mrf.mxu0  ;;  %v3666_v31 = vadd.f32 %v3665_v60, %v3613_v36 }
 0x213   :  { %v3669_v26 = vpop.f32.mrf.mxu1  ;;  %v3619_v15 = vadd.f32 %v3618_v37, %v3566_v57 }
 0x214   :  { %v3620_v51 = vpop.f32.mrf.mxu0  ;;  %v3670_v21 = vadd.f32 %v3669_v26, %v3617_v13 }
 0x215   :  { %v3671_v42 = vpop.f32.mrf.mxu1  ;;  %v3621_v24 = vadd.f32 %v3620_v51, %v3568_v12 }
 0x216   :  { %v3622_v39 = vpop.f32.mrf.mxu0  ;;  %v3672_v48 = vadd.f32 %v3671_v42, %v3619_v15 }
 0x217   :  { %v3673_v45 = vpop.f32.mrf.mxu1  ;;  %v3623_v34 = vadd.f32 %v3622_v39, %v3570_v14 }
 0x219   :  { %v9383_v9 = vpop.f32.mrf.mxu1 }
 0x21a   :  { %v3676_v22 = vadd.f32 %v9383_v9, %v3623_v34 }
 0x248   :  { %v3712_v29 = vpop.f32.mrf.mxu0 }
 0x249   :  { %v3713_v49 = vadd.f32 %v3712_v29, %v3660_v58 }
 0x24a   :  { %v3714_v5 = vpop.f32.mrf.mxu0 }
 0x24b   :  { %v3765_v44 = vpop.f32.mrf.mxu1  ;;  %v3715_v53 = vadd.f32 %v3714_v5, %v3662_v16  ;;  %v3674_v5 = vadd.f32 %v3673_v45, %v3621_v24 }
 0x24c   :  { %v3716_v43 = vpop.f32.mrf.mxu0  ;;  %v3766_v62 = vadd.f32 %v3765_v44, %v3713_v49 }
 0x24d   :  { %v3767_v10 = vpop.f32.mrf.mxu1  ;;  %v3717_v8 = vadd.f32 %v3716_v43, %v3664_v1 }
 0x24e   :  { %v3718_v25 = vpop.f32.mrf.mxu0  ;;  %v3768_v7 = vadd.f32 %v3767_v10, %v3715_v53 }
 0x24f   :  { %v3769_v46 = vpop.f32.mrf.mxu1  ;;  %v3719_v20 = vadd.f32 %v3718_v25, %v3666_v31 }
 0x250   :  { %v3722_v35 = vpop.f32.mrf.mxu0  ;;  %v3770_v19 = vadd.f32 %v3769_v46, %v3717_v8 }
 0x251   :  { %v3771_v33 = vpop.f32.mrf.mxu1  ;;  %v3723_v17 = vadd.f32 %v3722_v35, %v3670_v21 }
 0x252   :  { %v3724_v63 = vpop.f32.mrf.mxu0  ;;  %v3772_v44 = vadd.f32 %v3771_v33, %v3719_v20 }
 0x253   :  { %v3775_v4 = vpop.f32.mrf.mxu1  ;;  %v3725_v47 = vadd.f32 %v3724_v63, %v3672_v48 }
 0x254   :  { %v3726_v54 = vpop.f32.mrf.mxu0  ;;  %v3776_v25 = vadd.f32 %v3775_v4, %v3723_v17 }
 0x255   :  { %v9395_v40 = vpop.f32.mrf.mxu1  ;;  %v3727_v18 = vadd.f32 %v3726_v54, %v3674_v5 }
 0x256   :  { %v3728_v52 = vpop.f32.mrf.mxu0  ;;  %v3778_v2 = vadd.f32 %v9395_v40, %v3725_v47 }
 0x257   :  { %v3779_v55 = vpop.f32.mrf.mxu1  ;;  %v3729_v3 = vadd.f32 %v3728_v52, %v3676_v22 }
 0x258   :  { %v3780_v58 = vadd.f32 %v3779_v55, %v3727_v18 }
 0x259   :  { %v9402_v0 = vpop.f32.mrf.mxu1 }
 0x25a   :  { %v3782_v48 = vadd.f32 %v9402_v0, %v3729_v3 }
 0x288   :  { %v3818_v59 = vpop.f32.mrf.mxu0 }
 0x289   :  { %v3819_v29 = vadd.f32 %v3818_v59, %v3766_v62 }
 0x28a   :  { %v3820_v60 = vpop.f32.mrf.mxu0 }
 0x28b   :  { %v3871_v61 = vpop.f32.mrf.mxu1  ;;  %v3821_v32 = vadd.f32 %v3820_v60, %v3768_v7 }
 0x28c   :  { %v9405_v51 = vadd.f32 %v3871_v61, %v3819_v29  ;;  %v3822_v26 = vpop.f32.mrf.mxu0 }
 0x28d   :  { %v3873_v37 = vpop.f32.mrf.mxu1  ;;  %v3823_v35 = vadd.f32 %v3822_v26, %v3770_v19 }
 0x28e   :  { %3922 = vst [vmem:[#allocation3] sm:$0xff] %v9405_v51  ;;  %v4246_v10 = vrot.slane %v9405_v51, 5  ;;  %v4270_v42 = vrot.slane %v9405_v51, 6  ;;  %v4294_v45 = vrot.slane %v9405_v51, 7  ;;  %v9411_v39 = vadd.f32 %v3873_v37, %v3821_v32  ;;  %v3824_v46 = vpop.f32.mrf.mxu0 }
 0x28f   :  { %v3875_v43 = vpop.f32.mrf.mxu1  ;;  %v3825_v4 = vadd.f32 %v3824_v46, %v3772_v44 }
 0x290   :  { %4256 = vst [vmem:[#allocation6] sm:$0xf8] %v4246_v10  ;;  %4280 = vst [vmem:[#allocation6 + $0x10] sm:$0xfc] %v4270_v42  ;;  %v4247_v50 = vrot.slane %v9411_v39, 5  ;;  %v4271_v11 = vrot.slane %v9411_v39, 6  ;;  %v9425_v63 = vadd.f32 %v3875_v43, %v3823_v35 }
 0x291   :  { %v3877_v33 = vpop.f32.mrf.mxu1  ;;  %4304 = vst [vmem:[#allocation6 + $0x20] sm:$0xfe] %v4294_v45  ;;  %3923 = vst [vmem:[#allocation3 + $0x18] sm:$0xff] %v9411_v39  ;;  %v4295_v9 = vrot.slane %v9411_v39, 7 }
 0x292   :  { %v3828_v38 = vpop.f32.mrf.mxu0  ;;  %4257 = vst [vmem:[#allocation6 + $0x8] sm:$0xf8] %v4247_v50  ;;  %4281 = vst [vmem:[#allocation6 + $0x18] sm:$0xfc] %v4271_v11  ;;  %v9433_v28 = vadd.f32 %v3877_v33, %v3825_v4  ;;  %v4328_v40 = vrot.slane %v9425_v63, 1  ;;  %v4353_v36 = vrot.slane %v9425_v63, 2  ;;  %v4692_v49 = vpack.c.bf16 %v9425_v63, %v9405_v51 }
 0x293   :  { %v3881_v56 = vpop.f32.mrf.mxu1  ;;  %4305 = vst [vmem:[#allocation6 + $0x28] sm:$0xfe] %v4295_v9  ;;  %v3829_v6 = vadd.f32 %v3828_v38, %v3776_v25  ;;  %3924 = vst [vmem:[#allocation3 + $0x10] sm:$0xff] %v9425_v63  ;;  %v4377_v54 = vrot.slane %v9425_v63, 3  ;;  %v6745_v51 = vld [vmem:[%s11051_s3 + $0x464] ss:$8 sps:$4 sm:$0xff]  }
 0x294   :  { %v3830_v55 = vpop.f32.mrf.mxu0  ;;  %3925 = vst [vmem:[#allocation3 + $0x20] sm:$0xff] %v9433_v28  ;;  %v4331_v57 = vrot.slane %v9433_v28, 1  ;;  %v4356_v12 = vrot.slane %v9433_v28, 2  ;;  %v4380_v13 = vrot.slane %v9433_v28, 3  ;;  %4339 = vst [vmem:[#allocation6 + $0xb0] sm:$0x7f] %v4328_v40 }
 0x295   :  { %v3883_v16 = vpop.f32.mrf.mxu1  ;;  %v3831_v53 = vadd.f32 %v3830_v55, %v3778_v2  ;;  %v4319_v1 = vld [vmem:[#allocation3] sm:$0xfe]  ;;  %4364 = vst [vmem:[#allocation6 + $0xc0] sm:$0x3f] %v4353_v36  ;;  %4388 = vst [vmem:[#allocation6 + $0xd0] sm:$0x1f] %v4377_v54  ;;  %v9445_v24 = vadd.f32 %v3881_v56, %v3829_v6 }
 0x296   :  { %v4344_v31 = vld [vmem:[#allocation3] sm:$0xfc]  ;;  %v3832_v52 = vpop.f32.mrf.mxu0  ;;  %v4327_v14 = vrot.slane %v4319_v1, 1  ;;  %4340 = vst [vmem:[#allocation6 + $0xb8] sm:$0x7f] %v4331_v57 }
 0x297   :  { %v4368_v15 = vld [vmem:[#allocation3] sm:$0xf8]  ;;  %v3885_v62 = vpop.f32.mrf.mxu1  ;;  %v4352_v21 = vrot.slane %v4344_v31, 2  ;;  %4365 = vst [vmem:[#allocation6 + $0xc8] sm:$0x3f] %v4356_v12  ;;  %v3833_v20 = vadd.f32 %v3832_v52, %v3780_v58  ;;  %3926 = vst [vmem:[#allocation3 + $0x28] sm:$0xff] %v9445_v24  ;;  %v9450_v7 = vadd.f32 %v3883_v16, %v3831_v53 }
 0x298   :  { %v4376_v8 = vrot.slane %v4368_v15, 3  ;;  %4389 = vst [vmem:[#allocation6 + $0xd8] sm:$0x1f] %v4380_v13  ;;  %v4320_v59 = vld [vmem:[#allocation3 + $0x18] sm:$0xfe]  ;;  %v3834_v29 = vpop.f32.mrf.mxu0  ;;  %v9454_v17 = vsel %vm565_vm4, %v4327_v14, %v4328_v40  ;;  %v4400_v32 = vrot.slane %v9445_v24, 5 }
 0x299   :  { %v4345_v61 = vld [vmem:[#allocation3 + $0x18] sm:$0xfc]  ;;  %v4330_v34 = vrot.slane %v4320_v59, 1  ;;  %v9457_v60 = vsel %vm591_vm5, %v4352_v21, %v4353_v36  ;;  %v4424_v19 = vrot.slane %v9445_v24, 6  ;;  %3927 = vst [vmem:[#allocation3 + $0x8] sm:$0xff] %v9450_v7  ;;  %v3887_v44 = vpop.f32.mrf.mxu1  ;;  %v3835_v26 = vadd.f32 %v3834_v29, %v3782_v48  ;;  %v4631_v31 = vld [vmem:[#allocation6 + $0x8] sm:$0xff] }
 0x29a   :  { %v4355_v5 = vrot.slane %v4345_v61, 2  ;;  %v9460_v37 = vsel %vm616_vm6, %v4376_v8, %v4377_v54  ;;  %v4240_v47 = vld [vmem:[#allocation3 + $0x10] sm:$0x1f]  ;;  %v9465_v43 = vadd.f32 %v3885_v62, %v3833_v20  ;;  %4410 = vst [vmem:[#allocation6 + $0xe0] sm:$0xf8] %v4400_v32  ;;  %v4448_v2 = vrot.slane %v9445_v24, 7 }
 0x29b   :  { %v4264_v0 = vld [vmem:[#allocation3 + $0x10] sm:$0x3f]  ;;  %v9468_v22 = vsel %vm565_vm4, %v4330_v34, %v4331_v57  ;;  %v4248_v35 = vrot.slane %v4240_v47, 5  ;;  %v4241_v4 = vld [vmem:[#allocation3 + $0x20] sm:$0x1f]  ;;  %v4401_v58 = vrot.slane %v9450_v7, 5  ;;  %v9480_v6 = vadd.f32 %v3887_v44, %v3835_v26 }
 0x29c   :  { %v4288_v18 = vld [vmem:[#allocation3 + $0x10] sm:$0x7f]  ;;  %v9471_v25 = vsel %vm591_vm5, %v4355_v5, %v4356_v12  ;;  %v4272_v46 = vrot.slane %v4264_v0, 6  ;;  %4434 = vst [vmem:[#allocation6 + $0xf0] sm:$0xfc] %v4424_v19  ;;  %v4250_v38 = vrot.slane %v4241_v4, 5  ;;  %v4706_v40 = vpack.c.bf16 %v9465_v43, %v9445_v24 }
 0x29d   :  { %v4296_v33 = vrot.slane %v4288_v18, 7  ;;  %v4265_v56 = vld [vmem:[#allocation3 + $0x20] sm:$0x3f]  ;;  %3928 = vst [vmem:[#allocation3 + $0x30] sm:$0xff] %v9465_v43  ;;  %v4249_v36 = vsel %vm477_vm1, %v4246_v10, %v4248_v35  ;;  %4458 = vst [vmem:[#allocation6 + $0x100] sm:$0xfe] %v4448_v2  ;;  %v4707_v4 = vpack.c.bf16 %v9480_v6, %v9450_v7 }
 0x29e   :  { %v4289_v3 = vld [vmem:[#allocation3 + $0x20] sm:$0x7f]  ;;  %v4273_v54 = vsel %vm502_vm2, %v4270_v42, %v4272_v46  ;;  %v4274_v16 = vrot.slane %v4265_v56, 6  ;;  %v9497_v57 = vld [vmem:[#allocation3 + $0x28] sm:$0xfe]  ;;  %v4425_v10 = vrot.slane %v9450_v7, 6  ;;  %v4251_v42 = vsel %vm477_vm1, %v4247_v50, %v4250_v38 }
 0x29f   :  { %v9493_v55 = vsel %vm527_vm3, %v4294_v45, %v4296_v33  ;;  %v9499_v12 = vld [vmem:[#allocation3 + $0x28] sm:$0xfc]  ;;  %4411 = vst [vmem:[#allocation6 + $0xe8] sm:$0xf8] %v4401_v58  ;;  %3929 = vst [vmem:[#allocation3 + $0x38] sm:$0xff] %v9480_v6  ;;  %v4298_v45 = vrot.slane %v4289_v3, 7  ;;  %v4687_v14 = vpack.c.bf16 %v4251_v42, %v4631_v31 }
 0x2a0   :  { %v4449_v53 = vrot.slane %v9450_v7, 7  ;;  %v4482_v1 = vrot.slane %v9465_v43, 1  ;;  %v4630_v15 = vld [vmem:[#allocation6] sm:$0xff]  ;;  %4435 = vst [vmem:[#allocation6 + $0xf8] sm:$0xfc] %v4425_v10  ;;  %v4507_v62 = vrot.slane %v9465_v43, 2  ;;  %v4275_v21 = vsel %vm502_vm2, %v4271_v11, %v4274_v16 }
 0x2a1   :  { %v9512_v52 = vld [vmem:[#allocation3 + $0x8] sm:$0xfe]  ;;  %v4633_v50 = vld [vmem:[#allocation6 + $0x18] sm:$0xff]  ;;  %v4686_v8 = vpack.c.bf16 %v4249_v36, %v4630_v15  ;;  %v4481_v20 = vrot.slane %v9497_v57, 1  ;;  %v4506_v59 = vrot.slane %v9499_v12, 2  ;;  %v4531_v29 = vrot.slane %v9465_v43, 3  ;;  %4746 = vmatprep.mubr.bf16.mxu0 %v4687_v14 }
 0x2a2   :  { %4459 = vst [vmem:[#allocation6 + $0x108] sm:$0xfe] %v4449_v53  ;;  %v9522_v61 = vld [vmem:[#allocation3 + $0x8] sm:$0xfc]  ;;  %4493 = vst [vmem:[#allocation6 + $0x190] sm:$0x7f] %v4482_v1  ;;  %v4689_v47 = vpack.c.bf16 %v4275_v21, %v4633_v50  ;;  %v9542_v33 = vsel %vm527_vm3, %v4295_v9, %v4298_v45 }
 0x2a3   :  { %v4485_v48 = vrot.slane %v9480_v6, 1  ;;  %v9528_v34 = vld [vmem:[#allocation3 + $0x18] sm:$0xf8]  ;;  %v4484_v11 = vrot.slane %v9512_v52, 1  ;;  %4518 = vst [vmem:[#allocation6 + $0x1a0] sm:$0x3f] %v4507_v62  ;;  %4747 = vmatmul.mubr.bf16.vlgmr.msra.gmra.mxu0 %v4686_v8 }
 0x2a4   :  { %v4510_v5 = vrot.slane %v9480_v6, 2  ;;  %v4534_v44 = vrot.slane %v9480_v6, 3  ;;  %v4632_v0 = vld [vmem:[#allocation6 + $0x10] sm:$0xff]  ;;  %4542 = vst [vmem:[#allocation6 + $0x1b0] sm:$0x1f] %v4531_v29  ;;  %v4509_v56 = vrot.slane %v9522_v61, 2  ;;  %4799 = vmatprep.mubr.bf16.mxu1 %v4689_v47 }
 0x2a5   :  { %v4394_v18 = vld [vmem:[#allocation3 + $0x30] sm:$0x1f]  ;;  %4494 = vst [vmem:[#allocation6 + $0x198] sm:$0x7f] %v4485_v48  ;;  %v4688_v46 = vpack.c.bf16 %v4273_v54, %v4632_v0  ;;  %v9546_v38 = vld [vmem:[#allocation3 + $0x28] sm:$0xf8] }
 0x2a6   :  { %v4418_v26 = vld [vmem:[#allocation3 + $0x30] sm:$0x3f]  ;;  %v4402_v3 = vrot.slane %v4394_v18, 5  ;;  %4519 = vst [vmem:[#allocation6 + $0x1a8] sm:$0x3f] %v4510_v5  ;;  %v4379_v47 = vrot.slane %v9528_v34, 3 }
 0x2a7   :  { %v4442_v35 = vld [vmem:[#allocation3 + $0x30] sm:$0x7f]  ;;  %v4426_v36 = vrot.slane %v4418_v26, 6  ;;  %4543 = vst [vmem:[#allocation6 + $0x1b8] sm:$0x1f] %v4534_v44  ;;  %4800 = vmatmul.mubr.bf16.vlgmr.msra.gmra.mxu1 %v4688_v46  ;;  %v4659_v46 = vld [vmem:[#allocation6 + $0xe8] sm:$0xff] }
 0x2a8   :  { %v4450_v16 = vrot.slane %v4442_v35, 7  ;;  %v6679_v9 = vld [vmem:[%s11051_s3 + $0x270] ss:$8 sps:$4 sm:$0xff]   ;;  %v6680_v31 = vld [vmem:[%s11051_s3 + $0x264] ss:$8 sps:$4 sm:$0xff]   ;;  %v4403_v61 = vsel %vm477_vm1, %v4400_v32, %v4402_v3  ;;  %v4530_v35 = vrot.slane %v9546_v38, 3 }
 0x2a9   :  { %4821 = vmatpush1.bf16.msra.mxu0 %v6679_v9  ;;  %v4395_v54 = vld [vmem:[#allocation3 + $0x38] sm:$0x1f]  ;;  %v4523_v15 = vld [vmem:[#allocation3 + $0x8] sm:$0xf8]  ;;  %v4427_v18 = vsel %vm502_vm2, %v4424_v19, %v4426_v36  ;;  %v4658_v36 = vld [vmem:[#allocation6 + $0xe0] sm:$0xff] }
 0x2aa   :  { %v4419_v42 = vld [vmem:[#allocation3 + $0x38] sm:$0x3f]  ;;  %4822 = vmatprep.subr.bf16.mxu0 %v6680_v31  ;;  %v4404_v14 = vrot.slane %v4395_v54, 5  ;;  %v6682_v0 = vld [vmem:[%s11051_s3 + $0x364] ss:$8 sps:$4 sm:$0xff]   ;;  %v9573_v26 = vsel %vm527_vm3, %v4448_v2, %v4450_v16  ;;  %v4533_v38 = vrot.slane %v4523_v15, 3  ;;  %v9611_v31 = vsel %vm565_vm4, %v4481_v20, %v4482_v1 }
 0x2ab   :  { %v4443_v45 = vld [vmem:[#allocation3 + $0x38] sm:$0x7f]  ;;  %v4428_v21 = vrot.slane %v4419_v42, 6  ;;  %v6683_v32 = vld [vmem:[%s11051_s3 + $0x260] ss:$8 sps:$4 sm:$0xff]   ;;  %v4660_v42 = vld [vmem:[#allocation6 + $0xf0] sm:$0xff]  ;;  %v9618_v15 = vsel %vm591_vm5, %v4506_v59, %v4507_v62  ;;  %v9627_v1 = vsel %vm616_vm6, %v4379_v47, %v4380_v13  ;;  %v4693_v62 = vpack.c.bf16 %v9433_v28, %v9411_v39 }
 0x2ac   :  { %v4452_v50 = vrot.slane %v4443_v45, 7  ;;  %v6681_v8 = vld [vmem:[%s11051_s3 + $0x370] ss:$8 sps:$4 sm:$0xff]   ;;  %v4405_v34 = vsel %vm477_vm1, %v4401_v58, %v4404_v14  ;;  %v6684_v54 = vld [vmem:[%s11051_s3 + $0x254] ss:$8 sps:$4 sm:$0xff]   ;;  %v4700_v58 = vpack.c.bf16 %v4403_v61, %v4658_v36  ;;  %v9604_v45 = vsel %vm591_vm5, %v4509_v56, %v4510_v5  ;;  %v4662_v7 = vld [vmem:[#allocation6 + $0x100] sm:$0xff] }
 0x2ad   :  { %4874 = vmatpush1.bf16.msra.mxu1 %v6681_v8  ;;  %4823 = vmatpush1.bf16.msra.mxu0 %v6683_v32  ;;  %v4429_v19 = vsel %vm502_vm2, %v4425_v10, %v4428_v21  ;;  %v4661_v3 = vld [vmem:[#allocation6 + $0xf8] sm:$0xff]  ;;  %v4701_v16 = vpack.c.bf16 %v4405_v34, %v4659_v46  ;;  %v6685_v10 = vld [vmem:[%s11051_s3 + $0x360] ss:$8 sps:$4 sm:$0xff]   ;;  %v4702_v52 = vpack.c.bf16 %v4427_v18, %v4660_v42  ;;  %v6689_v39 = vld [vmem:[%s11051_s3 + $0x244] ss:$8 sps:$4 sm:$0xff]  }
 0x2ae   :  { %4875 = vmatprep.subr.bf16.mxu1 %v6682_v0  ;;  %v9588_v2 = vsel %vm527_vm3, %v4449_v53, %v4452_v50  ;;  %v4703_v9 = vpack.c.bf16 %v4429_v19, %v4661_v3  ;;  %4824 = vmatprep.subr.bf16.mxu0 %v6684_v54  ;;  %v9601_v53 = vsel %vm565_vm4, %v4484_v11, %v4485_v48  ;;  %v4635_v48 = vld [vmem:[#allocation6 + $0x28] sm:$0xff]  ;;  %v6686_v11 = vld [vmem:[%s11051_s3 + $0x354] ss:$8 sps:$4 sm:$0xff]   ;;  %v6687_v12 = vld [vmem:[%s11051_s3 + $0x250] ss:$8 sps:$4 sm:$0xff]  }
 0x2af   :  { %4756 = vmatprep.mubr.bf16.mxu0 %v4701_v16  ;;  %v4691_v57 = vpack.c.bf16 %v9542_v33, %v4635_v48  ;;  %v9637_v20 = vsel %vm616_vm6, %v4533_v38, %v4534_v44  ;;  %v9642_v59 = vsel %vm616_vm6, %v4530_v35, %v4531_v29  ;;  %v6688_v13 = vld [vmem:[%s11051_s3 + $0x350] ss:$8 sps:$4 sm:$0xff]   ;;  %v6690_v28 = vld [vmem:[%s11051_s3 + $0x344] ss:$8 sps:$4 sm:$0xff]   ;;  %v6691_v29 = vld [vmem:[%s11051_s3 + $0x240] ss:$8 sps:$4 sm:$0xff]  }
 0x2b0   :  { %4809 = vmatprep.mubr.bf16.mxu1 %v4703_v9  ;;  %4757 = vmatmul.mubr.bf16.gmra.mxu0 %v4700_v58  ;;  %v6692_v5 = vld [vmem:[%s11051_s3 + $0x340] ss:$8 sps:$4 sm:$0xff]   ;;  %v6693_v44 = vld [vmem:[%s11051_s3 + $0x234] ss:$8 sps:$4 sm:$0xff]   ;;  %v6695_v56 = vld [vmem:[%s11051_s3 + $0x230] ss:$8 sps:$4 sm:$0xff]  }
 0x2b1   :  { %4876 = vmatpush1.bf16.msra.mxu1 %v6685_v10  ;;  %4825 = vmatpush1.bf16.msra.mxu0 %v6687_v12  ;;  %v6694_v33 = vld [vmem:[%s11051_s3 + $0x334] ss:$8 sps:$4 sm:$0xff]   ;;  %v6696_v14 = vld [vmem:[%s11051_s3 + $0x330] ss:$8 sps:$4 sm:$0xff]   ;;  %v6697_v21 = vld [vmem:[%s11051_s3 + $0x224] ss:$8 sps:$4 sm:$0xff]  }
 0x2b2   :  { %4877 = vmatprep.subr.bf16.mxu1 %v6686_v11  ;;  %4810 = vmatmul.mubr.bf16.gmra.mxu1 %v4702_v52  ;;  %v6698_v50 = vld [vmem:[%s11051_s3 + $0x324] ss:$8 sps:$4 sm:$0xff]   ;;  %v6699_v8 = vld [vmem:[%s11051_s3 + $0x220] ss:$8 sps:$4 sm:$0xff]   ;;  %v6701_v47 = vld [vmem:[%s11051_s3 + $0x214] ss:$8 sps:$4 sm:$0xff]  }
 0x2b3   :  { %4852 = vmatprep.mubr.bf16.mxu0 %v4691_v57  ;;  %4905 = vmatprep.mubr.bf16.mxu1 %v4693_v62  ;;  %v6700_v61 = vld [vmem:[%s11051_s3 + $0x320] ss:$8 sps:$4 sm:$0xff]   ;;  %v6702_v0 = vld [vmem:[%s11051_s3 + $0x314] ss:$8 sps:$4 sm:$0xff]   ;;  %v6703_v18 = vld [vmem:[%s11051_s3 + $0x210] ss:$8 sps:$4 sm:$0xff]  }
 0x2b4   :  { %4826 = vmatprep.subr.bf16.mxu0 %v6689_v39  ;;  %v6704_v35 = vld [vmem:[%s11051_s3 + $0x310] ss:$8 sps:$4 sm:$0xff]   ;;  %v6705_v32 = vld [vmem:[%s11051_s3 + $0x204] ss:$8 sps:$4 sm:$0xff]   ;;  %v6707_v46 = vld [vmem:[%s11051_s3 + $0x200] ss:$8 sps:$4 sm:$0xff]  }
 0x2b5   :  { %4878 = vmatpush1.bf16.msra.mxu1 %v6688_v13  ;;  %4827 = vmatpush1.bf16.msra.mxu0 %v6691_v29  ;;  %v6706_v34 = vld [vmem:[%s11051_s3 + $0x304] ss:$8 sps:$4 sm:$0xff]   ;;  %v6708_v19 = vld [vmem:[%s11051_s3 + $0x300] ss:$8 sps:$4 sm:$0xff]   ;;  %v6709_v3 = vld [vmem:[%s11051_s3 + $0x2f4] ss:$8 sps:$4 sm:$0xff]  }
 0x2b6   :  { %4879 = vmatprep.subr.bf16.mxu1 %v6690_v28  ;;  %4828 = vmatprep.subr.bf16.mxu0 %v6693_v44  ;;  %v6710_v36 = vld [vmem:[%s11051_s3 + $0x3f4] ss:$8 sps:$4 sm:$0xff]   ;;  %v6711_v38 = vld [vmem:[%s11051_s3 + $0x2f0] ss:$8 sps:$4 sm:$0xff]   ;;  %v6713_v9 = vld [vmem:[%s11051_s3 + $0x2e4] ss:$8 sps:$4 sm:$0xff]  }
 0x2b7   :  { %v6712_v16 = vld [vmem:[%s11051_s3 + $0x3f0] ss:$8 sps:$4 sm:$0xff]   ;;  %v6714_v54 = vld [vmem:[%s11051_s3 + $0x3e4] ss:$8 sps:$4 sm:$0xff]   ;;  %v6715_v58 = vld [vmem:[%s11051_s3 + $0x2e0] ss:$8 sps:$4 sm:$0xff]  }
 0x2b8   :  { %v6716_v10 = vld [vmem:[%s11051_s3 + $0x3e0] ss:$8 sps:$4 sm:$0xff]   ;;  %v6717_v42 = vld [vmem:[%s11051_s3 + $0x2d4] ss:$8 sps:$4 sm:$0xff]   ;;  %v6719_v48 = vld [vmem:[%s11051_s3 + $0x2d0] ss:$8 sps:$4 sm:$0xff]  }
 0x2b9   :  { %4880 = vmatpush1.bf16.msra.mxu1 %v6692_v5  ;;  %4829 = vmatpush1.bf16.msra.mxu0 %v6695_v56  ;;  %v6718_v52 = vld [vmem:[%s11051_s3 + $0x3d4] ss:$8 sps:$4 sm:$0xff]   ;;  %v6720_v11 = vld [vmem:[%s11051_s3 + $0x3d0] ss:$8 sps:$4 sm:$0xff]   ;;  %v6721_v57 = vld [vmem:[%s11051_s3 + $0x2c4] ss:$8 sps:$4 sm:$0xff]  }
 0x2ba   :  { %4881 = vmatprep.subr.bf16.mxu1 %v6694_v33  ;;  %4830 = vmatprep.subr.bf16.mxu0 %v6697_v21  ;;  %v6722_v12 = vld [vmem:[%s11051_s3 + $0x3c4] ss:$8 sps:$4 sm:$0xff]   ;;  %v6723_v62 = vld [vmem:[%s11051_s3 + $0x2c0] ss:$8 sps:$4 sm:$0xff]   ;;  %v6725_v39 = vld [vmem:[%s11051_s3 + $0x2b4] ss:$8 sps:$4 sm:$0xff]  }
 0x2bb   :  { %v6724_v13 = vld [vmem:[%s11051_s3 + $0x3c0] ss:$8 sps:$4 sm:$0xff]   ;;  %v6726_v28 = vld [vmem:[%s11051_s3 + $0x3b4] ss:$8 sps:$4 sm:$0xff]   ;;  %v6727_v29 = vld [vmem:[%s11051_s3 + $0x2b0] ss:$8 sps:$4 sm:$0xff]  }
 0x2bc   :  { %v6728_v5 = vld [vmem:[%s11051_s3 + $0x3b0] ss:$8 sps:$4 sm:$0xff]   ;;  %v6729_v44 = vld [vmem:[%s11051_s3 + $0x2a4] ss:$8 sps:$4 sm:$0xff]   ;;  %v6731_v56 = vld [vmem:[%s11051_s3 + $0x2a0] ss:$8 sps:$4 sm:$0xff]  }
 0x2bd   :  { %4882 = vmatpush1.bf16.msra.mxu1 %v6696_v14  ;;  %4831 = vmatpush1.bf16.msra.mxu0 %v6699_v8  ;;  %v6730_v33 = vld [vmem:[%s11051_s3 + $0x3a4] ss:$8 sps:$4 sm:$0xff]   ;;  %v6732_v14 = vld [vmem:[%s11051_s3 + $0x3a0] ss:$8 sps:$4 sm:$0xff]   ;;  %v6733_v21 = vld [vmem:[%s11051_s3 + $0x294] ss:$8 sps:$4 sm:$0xff]  }
 0x2be   :  { %4883 = vmatprep.subr.bf16.mxu1 %v6698_v50  ;;  %4832 = vmatprep.subr.bf16.mxu0 %v6701_v47  ;;  %v6734_v50 = vld [vmem:[%s11051_s3 + $0x394] ss:$8 sps:$4 sm:$0xff]   ;;  %v6735_v8 = vld [vmem:[%s11051_s3 + $0x290] ss:$8 sps:$4 sm:$0xff]   ;;  %v6737_v47 = vld [vmem:[%s11051_s3 + $0x284] ss:$8 sps:$4 sm:$0xff]  }
 0x2bf   :  { %v6746_v63 = vld [vmem:[%s11051_s3 + $0x564] ss:$8 sps:$4 sm:$0xff]   ;;  %v6755_v43 = vld [vmem:[%s11051_s3 + $0x440] ss:$8 sps:$4 sm:$0xff]  }
 0x2c0   :  { %v4655_v6 = vld [vmem:[#allocation6 + $0xc8] sm:$0xff] }
 0x2c1   :  { %4884 = vmatpush1.bf16.msra.mxu1 %v6700_v61  ;;  %4833 = vmatpush1.bf16.msra.mxu0 %v6703_v18  ;;  %v6736_v61 = vld [vmem:[%s11051_s3 + $0x390] ss:$8 sps:$4 sm:$0xff]   ;;  %v6739_v18 = vld [vmem:[%s11051_s3 + $0x280] ss:$8 sps:$4 sm:$0xff]   ;;  %v6754_v24 = vld [vmem:[%s11051_s3 + $0x544] ss:$8 sps:$4 sm:$0xff]  }
 0x2c2   :  { %4885 = vmatprep.subr.bf16.mxu1 %v6702_v0  ;;  %4834 = vmatprep.subr.bf16.mxu0 %v6705_v32  ;;  %v6738_v0 = vld [vmem:[%s11051_s3 + $0x384] ss:$8 sps:$4 sm:$0xff]   ;;  %v6740_v32 = vld [vmem:[%s11051_s3 + $0x380] ss:$8 sps:$4 sm:$0xff]  }
 0x2c5   :  { %4886 = vmatpush1.bf16.msra.mxu1 %v6704_v35  ;;  %4835 = vmatpush1.bf16.msra.mxu0 %v6707_v46  ;;  %v4634_v35 = vld [vmem:[#allocation6 + $0x20] sm:$0xff]  ;;  %v6741_v46 = vld [vmem:[%s11051_s3 + $0x474] ss:$8 sps:$4 sm:$0xff]  }
 0x2c6   :  { %4887 = vmatprep.subr.bf16.mxu1 %v6706_v34  ;;  %4836 = vmatprep.subr.bf16.mxu0 %v6709_v3  ;;  %v4690_v34 = vpack.c.bf16 %v9493_v55, %v4634_v35  ;;  %v6742_v3 = vld [vmem:[%s11051_s3 + $0x574] ss:$8 sps:$4 sm:$0xff]   ;;  %v6743_v55 = vld [vmem:[%s11051_s3 + $0x470] ss:$8 sps:$4 sm:$0xff]   ;;  %v6780_v35 = vld [vmem:[%s11051_s3 + $0x5e0] ss:$8 sps:$4 sm:$0xff]  }
 0x2c9   :  { %4888 = vmatpush1.bf16.msra.mxu1 %v6708_v19  ;;  %4837 = vmatpush2.bf16.msra.mxu0 %v6711_v38  ;;  %v4663_v19 = vld [vmem:[#allocation6 + $0x108] sm:$0xff]  ;;  %v6744_v38 = vld [vmem:[%s11051_s3 + $0x570] ss:$8 sps:$4 sm:$0xff]  }
 0x2ca   :  { %4889 = vmatprep.subr.bf16.mxu1 %v6710_v36  ;;  %4838 = vmatprep.subr.bf16.mxu0 %v6713_v9  ;;  %v4705_v36 = vpack.c.bf16 %v9588_v2, %v4663_v19  ;;  %v4704_v2 = vpack.c.bf16 %v9573_v26, %v4662_v7  ;;  %v6749_v9 = vld [vmem:[%s11051_s3 + $0x454] ss:$8 sps:$4 sm:$0xff]   ;;  %v4697_v26 = vpack.c.bf16 %v4655_v6, %v9471_v25  ;;  %v6753_v25 = vld [vmem:[%s11051_s3 + $0x444] ss:$8 sps:$4 sm:$0xff]   ;;  %v6784_v19 = vld [vmem:[%s11051_s3 + $0x5d0] ss:$8 sps:$4 sm:$0xff]  }
 0x2cb   :  { %v6792_v7 = vld [vmem:[%s11051_s3 + $0x5b0] ss:$8 sps:$4 sm:$0xff]   ;;  %v6793_v6 = vld [vmem:[%s11051_s3 + $0x4a4] ss:$8 sps:$4 sm:$0xff]  }
 0x2cd   :  { %4890 = vmatpush2.bf16.msra.mxu1 %v6712_v16  ;;  %4839 = vmatpush2.bf16.msra.mxu0 %v6715_v58  ;;  %v6748_v16 = vld [vmem:[%s11051_s3 + $0x560] ss:$8 sps:$4 sm:$0xff]   ;;  %v6750_v58 = vld [vmem:[%s11051_s3 + $0x554] ss:$8 sps:$4 sm:$0xff]  }
 0x2ce   :  { %4891 = vmatprep.subr.bf16.mxu1 %v6714_v54  ;;  %4840 = vmatprep.subr.bf16.mxu0 %v6717_v42  ;;  %v6757_v42 = vld [vmem:[%s11051_s3 + $0x434] ss:$8 sps:$4 sm:$0xff]  }
 0x2d1   :  { %4892 = vmatpush2.bf16.msra.mxu1 %v6716_v10  ;;  %4841 = vmatpush2.bf16.msra.mxu0 %v6719_v48  ;;  %v6751_v10 = vld [vmem:[%s11051_s3 + $0x450] ss:$8 sps:$4 sm:$0xff]  }
 0x2d2   :  { %4893 = vmatprep.subr.bf16.mxu1 %v6718_v52  ;;  %4842 = vmatprep.subr.bf16.mxu0 %v6721_v57  ;;  %v6758_v52 = vld [vmem:[%s11051_s3 + $0x534] ss:$8 sps:$4 sm:$0xff]   ;;  %v6759_v48 = vld [vmem:[%s11051_s3 + $0x430] ss:$8 sps:$4 sm:$0xff]   ;;  %v6761_v57 = vld [vmem:[%s11051_s3 + $0x424] ss:$8 sps:$4 sm:$0xff]  }
 0x2d5   :  { %4894 = vmatpush2.bf16.msra.mxu1 %v6720_v11  ;;  %4843 = vmatpush2.bf16.msra.mxu0 %v6723_v62  ;;  %v6760_v11 = vld [vmem:[%s11051_s3 + $0x530] ss:$8 sps:$4 sm:$0xff]   ;;  %v6763_v62 = vld [vmem:[%s11051_s3 + $0x420] ss:$8 sps:$4 sm:$0xff]  }
 0x2d6   :  { %4895 = vmatprep.subr.bf16.mxu1 %v6722_v12  ;;  %4844 = vmatprep.subr.bf16.mxu0 %v6725_v39  ;;  %v6762_v12 = vld [vmem:[%s11051_s3 + $0x524] ss:$8 sps:$4 sm:$0xff]   ;;  %v6765_v39 = vld [vmem:[%s11051_s3 + $0x414] ss:$8 sps:$4 sm:$0xff]  }
 0x2d9   :  { %4896 = vmatpush2.bf16.msra.mxu1 %v6724_v13  ;;  %4845 = vmatpush2.bf16.msra.mxu0 %v6727_v29  ;;  %v6764_v13 = vld [vmem:[%s11051_s3 + $0x520] ss:$8 sps:$4 sm:$0xff]   ;;  %v6767_v29 = vld [vmem:[%s11051_s3 + $0x410] ss:$8 sps:$4 sm:$0xff]  }
 0x2da   :  { %4897 = vmatprep.subr.bf16.mxu1 %v6726_v28  ;;  %4846 = vmatprep.subr.bf16.mxu0 %v6729_v44  ;;  %v6766_v28 = vld [vmem:[%s11051_s3 + $0x514] ss:$8 sps:$4 sm:$0xff]   ;;  %v6769_v44 = vld [vmem:[%s11051_s3 + $0x404] ss:$8 sps:$4 sm:$0xff]  }
 0x2dd   :  { %4898 = vmatpush2.bf16.msra.mxu1 %v6728_v5  ;;  %4847 = vmatpush2.bf16.msra.mxu0 %v6731_v56  ;;  %v6768_v5 = vld [vmem:[%s11051_s3 + $0x510] ss:$8 sps:$4 sm:$0xff]   ;;  %v6771_v56 = vld [vmem:[%s11051_s3 + $0x400] ss:$8 sps:$4 sm:$0xff]  }
 0x2de   :  { %4899 = vmatprep.subr.bf16.mxu1 %v6730_v33  ;;  %4848 = vmatprep.subr.bf16.mxu0 %v6733_v21  ;;  %v6770_v33 = vld [vmem:[%s11051_s3 + $0x504] ss:$8 sps:$4 sm:$0xff]   ;;  %v6773_v21 = vld [vmem:[%s11051_s3 + $0x4f4] ss:$8 sps:$4 sm:$0xff]  }
 0x2e1   :  { %4900 = vmatpush2.bf16.msra.mxu1 %v6732_v14  ;;  %4849 = vmatpush2.bf16.msra.mxu0 %v6735_v8  ;;  %v6772_v14 = vld [vmem:[%s11051_s3 + $0x500] ss:$8 sps:$4 sm:$0xff]   ;;  %v6775_v8 = vld [vmem:[%s11051_s3 + $0x4f0] ss:$8 sps:$4 sm:$0xff]  }
 0x2e2   :  { %4901 = vmatprep.subr.bf16.mxu1 %v6734_v50  ;;  %4850 = vmatprep.subr.bf16.mxu0 %v6737_v47  ;;  %v6774_v50 = vld [vmem:[%s11051_s3 + $0x5f4] ss:$8 sps:$4 sm:$0xff]   ;;  %v6777_v47 = vld [vmem:[%s11051_s3 + $0x4e4] ss:$8 sps:$4 sm:$0xff]  }
 0x2e5   :  { %4902 = vmatpush2.bf16.msra.mxu1 %v6736_v61  ;;  %4851 = vmatpush2.bf16.msra.mxu0 %v6739_v18  ;;  %v6776_v61 = vld [vmem:[%s11051_s3 + $0x5f0] ss:$8 sps:$4 sm:$0xff]   ;;  %v6779_v18 = vld [vmem:[%s11051_s3 + $0x4e0] ss:$8 sps:$4 sm:$0xff]  }
 0x2e6   :  { %4903 = vmatprep.subr.bf16.mxu1 %v6738_v0  ;;  %4926 = vmatprep.subr.bf16.mxu0 %v6741_v46  ;;  %v6778_v0 = vld [vmem:[%s11051_s3 + $0x5e4] ss:$8 sps:$4 sm:$0xff]   ;;  %v6783_v46 = vld [vmem:[%s11051_s3 + $0x4d0] ss:$8 sps:$4 sm:$0xff]  }
 0x2e8   :  { %4853 = vmatmul.mubr.bf16.vlgmr.msra.gmra.mxu0 %v4690_v34  ;;  %v6782_v34 = vld [vmem:[%s11051_s3 + $0x5d4] ss:$8 sps:$4 sm:$0xff]  }
 0x2e9   :  { %4904 = vmatpush2.bf16.msra.mxu1 %v6740_v32  ;;  %4862 = vmatprep.mubr.bf16.mxu0 %v4705_v36  ;;  %v6781_v32 = vld [vmem:[%s11051_s3 + $0x4d4] ss:$8 sps:$4 sm:$0xff]   ;;  %v6786_v36 = vld [vmem:[%s11051_s3 + $0x5c4] ss:$8 sps:$4 sm:$0xff]  }
 0x2ea   :  { %4979 = vmatprep.subr.bf16.mxu1 %v6742_v3  ;;  %4927 = vmatpush1.bf16.msra.mxu0 %v6743_v55  ;;  %v6785_v3 = vld [vmem:[%s11051_s3 + $0x4c4] ss:$8 sps:$4 sm:$0xff]   ;;  %v6787_v55 = vld [vmem:[%s11051_s3 + $0x4c0] ss:$8 sps:$4 sm:$0xff]  }
 0x2eb   :  { %4928 = vmatprep.subr.bf16.mxu0 %v6745_v51  ;;  %v6789_v51 = vld [vmem:[%s11051_s3 + $0x4b4] ss:$8 sps:$4 sm:$0xff]  }
 0x2ec   :  { %4906 = vmatmul.mubr.bf16.vlgmr.msra.gmra.mxu1 %v4692_v49  ;;  %v4653_v49 = vld [vmem:[#allocation6 + $0xb8] sm:$0xff] }
 0x2ed   :  { %4915 = vmatprep.mubr.bf16.mxu1 %v4707_v4  ;;  %4980 = vmatpush1.bf16.msra.mxu1 %v6744_v38  ;;  %v6747_v4 = vld [vmem:[%s11051_s3 + $0x460] ss:$8 sps:$4 sm:$0xff]   ;;  %v4695_v54 = vpack.c.bf16 %v4653_v49, %v9468_v22  ;;  %v6752_v22 = vld [vmem:[%s11051_s3 + $0x550] ss:$8 sps:$4 sm:$0xff]  }
 0x2ee   :  { %4981 = vmatprep.subr.bf16.mxu1 %v6746_v63  ;;  %4929 = vmatpush1.bf16.msra.mxu0 %v6747_v4  ;;  %v6788_v38 = vld [vmem:[%s11051_s3 + $0x5c0] ss:$8 sps:$4 sm:$0xff]   ;;  %v6790_v63 = vld [vmem:[%s11051_s3 + $0x5b4] ss:$8 sps:$4 sm:$0xff]   ;;  %v6791_v49 = vld [vmem:[%s11051_s3 + $0x4b0] ss:$8 sps:$4 sm:$0xff]  }
 0x2ef   :  { %4930 = vmatprep.subr.bf16.mxu0 %v6749_v9  ;;  %v6794_v4 = vld [vmem:[%s11051_s3 + $0x5a4] ss:$8 sps:$4 sm:$0xff]   ;;  %v6797_v9 = vld [vmem:[%s11051_s3 + $0x494] ss:$8 sps:$4 sm:$0xff]  }
 0x2f0   :  { %4863 = vmatmul.mubr.bf16.gmra.mxu0 %v4704_v2  ;;  %v6795_v2 = vld [vmem:[%s11051_s3 + $0x4a0] ss:$8 sps:$4 sm:$0xff]  }
 0x2f1   :  { %4982 = vmatpush1.bf16.msra.mxu1 %v6748_v16  ;;  %4958 = vmatprep.mubr.bf16.mxu0 %v4695_v54  ;;  %v6796_v16 = vld [vmem:[%s11051_s3 + $0x5a0] ss:$8 sps:$4 sm:$0xff]   ;;  %v6798_v54 = vld [vmem:[%s11051_s3 + $0x594] ss:$8 sps:$4 sm:$0xff]  }
 0x2f2   :  { %4983 = vmatprep.subr.bf16.mxu1 %v6750_v58  ;;  %4931 = vmatpush1.bf16.msra.mxu0 %v6751_v10  ;;  %v6799_v58 = vld [vmem:[%s11051_s3 + $0x490] ss:$8 sps:$4 sm:$0xff]   ;;  %v6801_v10 = vld [vmem:[%s11051_s3 + $0x484] ss:$8 sps:$4 sm:$0xff]  }
 0x2f3   :  { %4932 = vmatprep.subr.bf16.mxu0 %v6753_v25  ;;  %v4652_v25 = vld [vmem:[#allocation6 + $0xb0] sm:$0xff] }
 0x2f4   :  { %4916 = vmatmul.mubr.bf16.gmra.mxu1 %v4706_v40  ;;  %v6756_v40 = vld [vmem:[%s11051_s3 + $0x540] ss:$8 sps:$4 sm:$0xff]  }
 0x2f5   :  { %5011 = vmatprep.mubr.bf16.mxu1 %v4697_v26  ;;  %4984 = vmatpush1.bf16.msra.mxu1 %v6752_v22  ;;  %v6800_v26 = vld [vmem:[%s11051_s3 + $0x590] ss:$8 sps:$4 sm:$0xff]   ;;  %v6802_v22 = vld [vmem:[%s11051_s3 + $0x584] ss:$8 sps:$4 sm:$0xff]  }
 0x2f6   :  { %4985 = vmatprep.subr.bf16.mxu1 %v6754_v24  ;;  %4933 = vmatpush1.bf16.msra.mxu0 %v6755_v43  ;;  %v4654_v24 = vld [vmem:[#allocation6 + $0xc0] sm:$0xff]  ;;  %v4681_v43 = vld [vmem:[#allocation6 + $0x198] sm:$0xff] }
 0x2f7   :  { %4934 = vmatprep.subr.bf16.mxu0 %v6757_v42  ;;  %v4683_v42 = vld [vmem:[#allocation6 + $0x1a8] sm:$0xff] }
 0x2f9   :  { %4986 = vmatpush1.bf16.msra.mxu1 %v6756_v40  ;;  %v6803_v40 = vld [vmem:[%s11051_s3 + $0x480] ss:$8 sps:$4 sm:$0xff]  }
 0x2fa   :  { %4987 = vmatprep.subr.bf16.mxu1 %v6758_v52  ;;  %4935 = vmatpush1.bf16.msra.mxu0 %v6759_v48  ;;  %v6804_v52 = vld [vmem:[%s11051_s3 + $0x580] ss:$8 sps:$4 sm:$0xff]   ;;  %v4694_v48 = vpack.c.bf16 %v4652_v25, %v9454_v17  ;;  %v6807_v17 = vld [vmem:[%s11051_s3 + $0x670] ss:$8 sps:$4 sm:$0xff]  }
 0x2fb   :  { %4936 = vmatprep.subr.bf16.mxu0 %v6761_v57  ;;  %v4696_v57 = vpack.c.bf16 %v4654_v24, %v9457_v60  ;;  %v6808_v60 = vld [vmem:[%s11049_s2 + $0x70] ss:$8 sps:$4 sm:$0xff]   ;;  %v6844_v25 = vld [vmem:[%s11051_s3 + $0x6e0] ss:$8 sps:$4 sm:$0xff]  }
 0x2fc   :  { %v6845_v24 = vld [vmem:[%s11049_s2 + $0xe0] ss:$8 sps:$4 sm:$0xff]  }
 0x2fd   :  { %4988 = vmatpush1.bf16.msra.mxu1 %v6760_v11  ;;  %v6805_v11 = vld [vmem:[%s11051_s3 + $0x674] ss:$8 sps:$4 sm:$0xff]  }
 0x2fe   :  { %4989 = vmatprep.subr.bf16.mxu1 %v6762_v12  ;;  %4937 = vmatpush1.bf16.msra.mxu0 %v6763_v62  ;;  %v6806_v12 = vld [vmem:[%s11049_s2 + $0x74] ss:$8 sps:$4 sm:$0xff]   ;;  %v4709_v62 = vpack.c.bf16 %v4681_v43, %v9601_v53  ;;  %v6809_v53 = vld [vmem:[%s11051_s3 + $0x664] ss:$8 sps:$4 sm:$0xff]  }
 0x2ff   :  { %4938 = vmatprep.subr.bf16.mxu0 %v6765_v39  ;;  %v4680_v39 = vld [vmem:[#allocation6 + $0x190] sm:$0xff] }
 0x300   :  { %v6846_v43 = vld [vmem:[%s11051_s3 + $0x6d4] ss:$8 sps:$4 sm:$0xff]  }
 0x301   :  { %4990 = vmatpush1.bf16.msra.mxu1 %v6764_v13  ;;  %v4711_v13 = vpack.c.bf16 %v4683_v42, %v9604_v45  ;;  %v6810_v45 = vld [vmem:[%s11049_s2 + $0x64] ss:$8 sps:$4 sm:$0xff]   ;;  %v6848_v42 = vld [vmem:[%s11051_s3 + $0x6d0] ss:$8 sps:$4 sm:$0xff]  }
 0x302   :  { %4991 = vmatprep.subr.bf16.mxu1 %v6766_v28  ;;  %4939 = vmatpush1.bf16.msra.mxu0 %v6767_v29  ;;  %v4682_v28 = vld [vmem:[#allocation6 + $0x1a0] sm:$0xff]  ;;  %v4657_v29 = vld [vmem:[#allocation6 + $0xd8] sm:$0xff] }
 0x303   :  { %4940 = vmatprep.subr.bf16.mxu0 %v6769_v44  ;;  %v4708_v44 = vpack.c.bf16 %v4680_v39, %v9611_v31  ;;  %v6814_v31 = vld [vmem:[%s11049_s2 + $0x54] ss:$8 sps:$4 sm:$0xff]   ;;  %v6859_v39 = vld [vmem:[%s11049_s2 + $0xa4] ss:$8 sps:$4 sm:$0xff]  }
 0x305   :  { %4992 = vmatpush1.bf16.msra.mxu1 %v6768_v5  ;;  %v6811_v5 = vld [vmem:[%s11051_s3 + $0x660] ss:$8 sps:$4 sm:$0xff]  }
 0x306   :  { %4993 = vmatprep.subr.bf16.mxu1 %v6770_v33  ;;  %4941 = vmatpush1.bf16.msra.mxu0 %v6771_v56  ;;  %v6812_v33 = vld [vmem:[%s11049_s2 + $0x60] ss:$8 sps:$4 sm:$0xff]   ;;  %v4710_v56 = vpack.c.bf16 %v4682_v28, %v9618_v15  ;;  %v6816_v15 = vld [vmem:[%s11051_s3 + $0x650] ss:$8 sps:$4 sm:$0xff]  }
 0x307   :  { %4942 = vmatprep.subr.bf16.mxu0 %v6773_v21  ;;  %v4699_v21 = vpack.c.bf16 %v4657_v29, %v9627_v1  ;;  %v6817_v1 = vld [vmem:[%s11049_s2 + $0x50] ss:$8 sps:$4 sm:$0xff]   ;;  %v6861_v28 = vld [vmem:[%s11049_s2 + $0xa0] ss:$8 sps:$4 sm:$0xff]   ;;  %v6862_v29 = vld [vmem:[%s11051_s3 + $0x694] ss:$8 sps:$4 sm:$0xff]  }
 0x309   :  { %4994 = vmatpush1.bf16.msra.mxu1 %v6772_v14  ;;  %v6813_v14 = vld [vmem:[%s11051_s3 + $0x654] ss:$8 sps:$4 sm:$0xff]  }
 0x30a   :  { %4995 = vmatprep.subr.bf16.mxu1 %v6774_v50  ;;  %4943 = vmatpush2.bf16.msra.mxu0 %v6775_v8  ;;  %v4547_v50 = vld [vmem:[#allocation5 + $0x8] sm:$0xff]  ;;  %v6815_v8 = vld [vmem:[#allocation5 + $0x78] sm:$0xff] }
 0x30b   :  { %4944 = vmatprep.subr.bf16.mxu0 %v6777_v47  ;;  %v6818_v47 = vld [vmem:[%s11051_s3 + $0x644] ss:$8 sps:$4 sm:$0xff]  }
 0x30d   :  { %4996 = vmatpush2.bf16.msra.mxu1 %v6776_v61  ;;  %v4603_v61 = vpack.c.bf16 %v6815_v8, %v4547_v50  ;;  %v4560_v50 = vld [vmem:[#allocation5 + $0x70] sm:$0xff]  ;;  %v6868_v8 = vld [vmem:[%s11051_s3 + $0x680] ss:$8 sps:$4 sm:$0xff]  }
 0x30e   :  { %4997 = vmatprep.subr.bf16.mxu1 %v6778_v0  ;;  %4945 = vmatpush2.bf16.msra.mxu0 %v6779_v18  ;;  %v6819_v0 = vld [vmem:[%s11049_s2 + $0x44] ss:$8 sps:$4 sm:$0xff]   ;;  %v6820_v18 = vld [vmem:[%s11051_s3 + $0x640] ss:$8 sps:$4 sm:$0xff]  }
 0x30f   :  { %4946 = vmatprep.subr.bf16.mxu0 %v6781_v32  ;;  %v6822_v32 = vld [vmem:[%s11051_s3 + $0x634] ss:$8 sps:$4 sm:$0xff]  }
 0x311   :  { %4998 = vmatpush2.bf16.msra.mxu1 %v6780_v35  ;;  %v6821_v35 = vld [vmem:[%s11049_s2 + $0x40] ss:$8 sps:$4 sm:$0xff]  }
 0x312   :  { %4999 = vmatprep.subr.bf16.mxu1 %v6782_v34  ;;  %4947 = vmatpush2.bf16.msra.mxu0 %v6783_v46  ;;  %v6823_v34 = vld [vmem:[%s11049_s2 + $0x34] ss:$8 sps:$4 sm:$0xff]   ;;  %v6824_v46 = vld [vmem:[%s11051_s3 + $0x630] ss:$8 sps:$4 sm:$0xff]  }
 0x313   :  { %4948 = vmatprep.subr.bf16.mxu0 %v6785_v3  ;;  %v6826_v3 = vld [vmem:[%s11051_s3 + $0x624] ss:$8 sps:$4 sm:$0xff]  }
 0x315   :  { %5000 = vmatpush2.bf16.msra.mxu1 %v6784_v19  ;;  %v6825_v19 = vld [vmem:[%s11049_s2 + $0x30] ss:$8 sps:$4 sm:$0xff]  }
 0x316   :  { %5001 = vmatprep.subr.bf16.mxu1 %v6786_v36  ;;  %4949 = vmatpush2.bf16.msra.mxu0 %v6787_v55  ;;  %v6827_v36 = vld [vmem:[%s11049_s2 + $0x24] ss:$8 sps:$4 sm:$0xff]   ;;  %v6828_v55 = vld [vmem:[%s11051_s3 + $0x620] ss:$8 sps:$4 sm:$0xff]  }
 0x317   :  { %4950 = vmatprep.subr.bf16.mxu0 %v6789_v51  ;;  %v6830_v51 = vld [vmem:[%s11051_s3 + $0x614] ss:$8 sps:$4 sm:$0xff]  }
 0x319   :  { %5002 = vmatpush2.bf16.msra.mxu1 %v6788_v38  ;;  %v6829_v38 = vld [vmem:[%s11049_s2 + $0x20] ss:$8 sps:$4 sm:$0xff]  }
 0x31a   :  { %5003 = vmatprep.subr.bf16.mxu1 %v6790_v63  ;;  %4951 = vmatpush2.bf16.msra.mxu0 %v6791_v49  ;;  %v6831_v63 = vld [vmem:[%s11049_s2 + $0x14] ss:$8 sps:$4 sm:$0xff]   ;;  %v6832_v49 = vld [vmem:[%s11051_s3 + $0x610] ss:$8 sps:$4 sm:$0xff]  }
 0x31b   :  { %4952 = vmatprep.subr.bf16.mxu0 %v6793_v6  ;;  %v6834_v6 = vld [vmem:[%s11051_s3 + $0x604] ss:$8 sps:$4 sm:$0xff]  }
 0x31d   :  { %5004 = vmatpush2.bf16.msra.mxu1 %v6792_v7  ;;  %v6833_v7 = vld [vmem:[%s11049_s2 + $0x10] ss:$8 sps:$4 sm:$0xff]  }
 0x31e   :  { %5005 = vmatprep.subr.bf16.mxu1 %v6794_v4  ;;  %4953 = vmatpush2.bf16.msra.mxu0 %v6795_v2  ;;  %v6835_v4 = vld [vmem:[%s11049_s2 + $0x4] ss:$8 sps:$4 sm:$0xff]   ;;  %v6836_v2 = vld [vmem:[%s11051_s3 + $0x600] ss:$8 sps:$4 sm:$0xff]  }
 0x31f   :  { %4954 = vmatprep.subr.bf16.mxu0 %v6797_v9  ;;  %v6838_v9 = vld [vmem:[%s11051_s3 + $0x6f4] ss:$8 sps:$4 sm:$0xff]  }
 0x321   :  { %5006 = vmatpush2.bf16.msra.mxu1 %v6796_v16  ;;  %v6837_v16 = vld [vmem:[%s11049_s2] ss:$8 sps:$4 sm:$0xff]  }
 0x322   :  { %5007 = vmatprep.subr.bf16.mxu1 %v6798_v54  ;;  %4955 = vmatpush2.bf16.msra.mxu0 %v6799_v58  ;;  %v6839_v54 = vld [vmem:[%s11049_s2 + $0xf4] ss:$8 sps:$4 sm:$0xff]   ;;  %v6840_v58 = vld [vmem:[%s11051_s3 + $0x6f0] ss:$8 sps:$4 sm:$0xff]  }
 0x323   :  { %4956 = vmatprep.subr.bf16.mxu0 %v6801_v10  ;;  %v6842_v10 = vld [vmem:[%s11051_s3 + $0x6e4] ss:$8 sps:$4 sm:$0xff]  }
 0x325   :  { %5008 = vmatpush2.bf16.msra.mxu1 %v6800_v26  ;;  %v6841_v26 = vld [vmem:[%s11049_s2 + $0xf0] ss:$8 sps:$4 sm:$0xff]  }
 0x326   :  { %5009 = vmatprep.subr.bf16.mxu1 %v6802_v22  ;;  %4957 = vmatpush2.bf16.msra.mxu0 %v6803_v40  ;;  %v6843_v22 = vld [vmem:[%s11049_s2 + $0xe4] ss:$8 sps:$4 sm:$0xff]   ;;  %v6847_v40 = vld [vmem:[%s11049_s2 + $0xd4] ss:$8 sps:$4 sm:$0xff]  }
 0x327   :  { %5032 = vmatprep.subr.bf16.mxu0 %v6805_v11  ;;  %v6851_v11 = vld [vmem:[%s11049_s2 + $0xc4] ss:$8 sps:$4 sm:$0xff]  }
 0x329   :  { %5010 = vmatpush2.bf16.msra.mxu1 %v6804_v52  ;;  %4959 = vmatmul.mubr.bf16.vlgmr.msra.gmra.mxu0 %v4694_v48  ;;  %v6849_v52 = vld [vmem:[%s11049_s2 + $0xd0] ss:$8 sps:$4 sm:$0xff]   ;;  %v6850_v48 = vld [vmem:[%s11051_s3 + $0x6c4] ss:$8 sps:$4 sm:$0xff]  }
 0x32a   :  { %5085 = vmatprep.subr.bf16.mxu1 %v6806_v12  ;;  %4968 = vmatprep.mubr.bf16.mxu0 %v4709_v62  ;;  %v6853_v12 = vld [vmem:[%s11049_s2 + $0xc0] ss:$8 sps:$4 sm:$0xff]   ;;  %v6854_v62 = vld [vmem:[%s11051_s3 + $0x6b4] ss:$8 sps:$4 sm:$0xff]  }
 0x32b   :  { %5033 = vmatpush1.bf16.msra.mxu0 %v6807_v17  ;;  %v6856_v17 = vld [vmem:[%s11051_s3 + $0x6b0] ss:$8 sps:$4 sm:$0xff]  }
 0x32c   :  { %5012 = vmatmul.mubr.bf16.vlgmr.msra.gmra.mxu1 %v4696_v57  ;;  %5034 = vmatprep.subr.bf16.mxu0 %v6809_v53  ;;  %v6852_v57 = vld [vmem:[%s11051_s3 + $0x6c0] ss:$8 sps:$4 sm:$0xff]   ;;  %v6858_v53 = vld [vmem:[%s11051_s3 + $0x6a4] ss:$8 sps:$4 sm:$0xff]  }
 0x32d   :  { %5021 = vmatprep.mubr.bf16.mxu1 %v4711_v13  ;;  %5086 = vmatpush1.bf16.msra.mxu1 %v6808_v60  ;;  %v6855_v13 = vld [vmem:[%s11049_s2 + $0xb4] ss:$8 sps:$4 sm:$0xff]   ;;  %v6857_v60 = vld [vmem:[%s11049_s2 + $0xb0] ss:$8 sps:$4 sm:$0xff]  }
 0x32e   :  { %5087 = vmatprep.subr.bf16.mxu1 %v6810_v45  ;;  %v6860_v45 = vld [vmem:[%s11051_s3 + $0x6a0] ss:$8 sps:$4 sm:$0xff]  }
 0x32f   :  { %5035 = vmatpush1.bf16.msra.mxu0 %v6811_v5  ;;  %v6863_v5 = vld [vmem:[%s11049_s2 + $0x94] ss:$8 sps:$4 sm:$0xff]  }
 0x330   :  { %5036 = vmatprep.subr.bf16.mxu0 %v6813_v14  ;;  %v6867_v14 = vld [vmem:[%s11049_s2 + $0x84] ss:$8 sps:$4 sm:$0xff]  }
 0x331   :  { %5088 = vmatpush1.bf16.msra.mxu1 %v6812_v33  ;;  %4969 = vmatmul.mubr.bf16.gmra.mxu0 %v4708_v44  ;;  %v6864_v44 = vld [vmem:[%s11051_s3 + $0x690] ss:$8 sps:$4 sm:$0xff]  }
 0x332   :  { %5089 = vmatprep.subr.bf16.mxu1 %v6814_v31  ;;  %5064 = vmatprep.mubr.bf16.mxu0 %v4699_v21  ;;  %v6865_v33 = vld [vmem:[%s11049_s2 + $0x90] ss:$8 sps:$4 sm:$0xff]  }
 0x333   :  { %5037 = vmatpush1.bf16.msra.mxu0 %v6816_v15  ;;  %v4656_v21 = vld [vmem:[#allocation6 + $0xd0] sm:$0xff]  ;;  %v4685_v31 = vld [vmem:[#allocation6 + $0x1b8] sm:$0xff]  ;;  %v6869_v15 = vld [vmem:[%s11049_s2 + $0x80] ss:$8 sps:$4 sm:$0xff]  }
 0x334   :  { %5022 = vmatmul.mubr.bf16.gmra.mxu1 %v4710_v56  ;;  %5038 = vmatprep.subr.bf16.mxu0 %v6818_v47  ;;  %v6866_v56 = vld [vmem:[%s11051_s3 + $0x684] ss:$8 sps:$4 sm:$0xff]  }
 0x335   :  { %5117 = vmatprep.mubr.bf16.mxu1 %v4603_v61  ;;  %5090 = vmatpush1.bf16.msra.mxu1 %v6817_v1  ;;  %v4698_v1 = vpack.c.bf16 %v4656_v21, %v9460_v37  ;;  %v4546_v47 = vld [vmem:[#allocation5] sm:$0xff]  ;;  %v6872_v37 = vld [vmem:[#allocation5 + $0x158] sm:$0xff] }
 0x336   :  { %5091 = vmatprep.subr.bf16.mxu1 %v6819_v0  ;;  %v6870_v0 = vld [vmem:[%s11049_s2 + $0x174] ss:$8 sps:$4 sm:$0xff]   ;;  %v6888_v21 = vld [vmem:[%s11049_s2 + $0x140] ss:$8 sps:$4 sm:$0xff]  }
 0x337   :  { %5039 = vmatpush1.bf16.msra.mxu0 %v6820_v18  ;;  %v4602_v18 = vpack.c.bf16 %v4560_v50, %v4546_v47  ;;  %v6894_v47 = vld [vmem:[%s11049_s2 + $0x124] ss:$8 sps:$4 sm:$0xff]  }
 0x338   :  { %5040 = vmatprep.subr.bf16.mxu0 %v6822_v32 }
 0x339   :  { %5092 = vmatpush1.bf16.msra.mxu1 %v6821_v35  ;;  %v6871_v35 = vld [vmem:[%s11049_s2 + $0x274] ss:$8 sps:$4 sm:$0xff]  }
 0x33a   :  { %5093 = vmatprep.subr.bf16.mxu1 %v6823_v34  ;;  %v4713_v34 = vpack.c.bf16 %v4685_v31, %v9637_v20  ;;  %v6874_v20 = vld [vmem:[%s11049_s2 + $0x270] ss:$8 sps:$4 sm:$0xff]   ;;  %v6889_v31 = vld [vmem:[%s11049_s2 + $0x240] ss:$8 sps:$4 sm:$0xff]  }
 0x33b   :  { %5041 = vmatpush1.bf16.msra.mxu0 %v6824_v46  ;;  %v4575_v46 = vld [vmem:[#allocation5 + $0xe8] sm:$0xff] }
 0x33c   :  { %5042 = vmatprep.subr.bf16.mxu0 %v6826_v3 }
 0x33d   :  { %5094 = vmatpush1.bf16.msra.mxu1 %v6825_v19 }
 0x33e   :  { %5095 = vmatprep.subr.bf16.mxu1 %v6827_v36  ;;  %v4617_v36 = vpack.c.bf16 %v6872_v37, %v4575_v46  ;;  %v6900_v46 = vld [vmem:[%s11049_s2 + $0x110] ss:$8 sps:$4 sm:$0xff]   ;;  %v6902_v37 = vld [vmem:[%s11049_s2 + $0x104] ss:$8 sps:$4 sm:$0xff]  }
 0x33f   :  { %5043 = vmatpush1.bf16.msra.mxu0 %v6828_v55 }
 0x340   :  { %5044 = vmatprep.subr.bf16.mxu0 %v6830_v51  ;;  %v6873_v51 = vld [vmem:[%s11049_s2 + $0x170] ss:$8 sps:$4 sm:$0xff]  }
 0x341   :  { %5096 = vmatpush1.bf16.msra.mxu1 %v6829_v38 }
 0x342   :  { %5097 = vmatprep.subr.bf16.mxu1 %v6831_v63 }
 0x343   :  { %5045 = vmatpush1.bf16.msra.mxu0 %v6832_v49  ;;  %v6875_v49 = vld [vmem:[%s11049_s2 + $0x164] ss:$8 sps:$4 sm:$0xff]  }
 0x344   :  { %5046 = vmatprep.subr.bf16.mxu0 %v6834_v6 }
 0x345   :  { %5098 = vmatpush1.bf16.msra.mxu1 %v6833_v7 }
 0x346   :  { %5099 = vmatprep.subr.bf16.mxu1 %v6835_v4  ;;  %v4684_v4 = vld [vmem:[#allocation6 + $0x1b0] sm:$0xff] }
 0x347   :  { %5047 = vmatpush1.bf16.msra.mxu0 %v6836_v2  ;;  %v6876_v2 = vld [vmem:[%s11049_s2 + $0x264] ss:$8 sps:$4 sm:$0xff]  }
 0x348   :  { %5048 = vmatprep.subr.bf16.mxu0 %v6838_v9 }
 0x349   :  { %5100 = vmatpush1.bf16.msra.mxu1 %v6837_v16 }
 0x34a   :  { %5101 = vmatprep.subr.bf16.mxu1 %v6839_v54  ;;  %v6877_v54 = vld [vmem:[%s11049_s2 + $0x160] ss:$8 sps:$4 sm:$0xff]  }
 0x34b   :  { %5049 = vmatpush2.bf16.msra.mxu0 %v6840_v58 }
 0x34c   :  { %5050 = vmatprep.subr.bf16.mxu0 %v6842_v10  ;;  %v4574_v10 = vld [vmem:[#allocation5 + $0xe0] sm:$0xff] }
 0x34d   :  { %5102 = vmatpush2.bf16.msra.mxu1 %v6841_v26  ;;  %v4712_v26 = vpack.c.bf16 %v4684_v4, %v9642_v59  ;;  %v6882_v59 = vld [vmem:[%s11049_s2 + $0x254] ss:$8 sps:$4 sm:$0xff]   ;;  %v6911_v4 = vld [vmem:[%s11049_s2 + $0x2e4] ss:$8 sps:$4 sm:$0xff]  }
 0x34e   :  { %5103 = vmatprep.subr.bf16.mxu1 %v6843_v22 }
 0x34f   :  { %5051 = vmatpush2.bf16.msra.mxu0 %v6844_v25  ;;  %v4549_v25 = vld [vmem:[#allocation5 + $0x18] sm:$0xff] }
 0x350   :  { %5052 = vmatprep.subr.bf16.mxu0 %v6846_v43  ;;  %v6879_v43 = vld [vmem:[#allocation5 + $0x150] sm:$0xff] }
 0x351   :  { %5104 = vmatpush2.bf16.msra.mxu1 %v6845_v24  ;;  %v6878_v24 = vld [vmem:[%s11049_s2 + $0x260] ss:$8 sps:$4 sm:$0xff]  }
 0x352   :  { %5105 = vmatprep.subr.bf16.mxu1 %v6847_v40  ;;  %v4616_v40 = vpack.c.bf16 %v6879_v43, %v4574_v10  ;;  %v6916_v10 = vld [vmem:[%s11049_s2 + $0x1d0] ss:$8 sps:$4 sm:$0xff]   ;;  %v6920_v43 = vld [vmem:[%s11049_s2 + $0x1c0] ss:$8 sps:$4 sm:$0xff]  }
 0x353   :  { %5053 = vmatpush2.bf16.msra.mxu0 %v6848_v42  ;;  %v6880_v42 = vld [vmem:[%s11049_s2 + $0x154] ss:$8 sps:$4 sm:$0xff]  }
 0x354   :  { %5054 = vmatprep.subr.bf16.mxu0 %v6850_v48  ;;  %v6881_v48 = vld [vmem:[#allocation5 + $0x88] sm:$0xff] }
 0x355   :  { %5106 = vmatpush2.bf16.msra.mxu1 %v6849_v52 }
 0x356   :  { %5107 = vmatprep.subr.bf16.mxu1 %v6851_v11  ;;  %v4605_v11 = vpack.c.bf16 %v6881_v48, %v4549_v25  ;;  %v6918_v25 = vld [vmem:[%s11049_s2 + $0x1c4] ss:$8 sps:$4 sm:$0xff]   ;;  %v6924_v48 = vld [vmem:[%s11049_s2 + $0x1b0] ss:$8 sps:$4 sm:$0xff]  }
 0x357   :  { %5055 = vmatpush2.bf16.msra.mxu0 %v6852_v57  ;;  %v4551_v57 = vld [vmem:[#allocation5 + $0x28] sm:$0xff] }
 0x358   :  { %5056 = vmatprep.subr.bf16.mxu0 %v6854_v62  ;;  %v6883_v62 = vld [vmem:[#allocation5 + $0x98] sm:$0xff] }
 0x359   :  { %5108 = vmatpush2.bf16.msra.mxu1 %v6853_v12 }
 0x35a   :  { %5109 = vmatprep.subr.bf16.mxu1 %v6855_v13  ;;  %v4607_v13 = vpack.c.bf16 %v6883_v62, %v4551_v57  ;;  %v6926_v57 = vld [vmem:[%s11049_s2 + $0x1a4] ss:$8 sps:$4 sm:$0xff]   ;;  %v6928_v62 = vld [vmem:[%s11049_s2 + $0x1a0] ss:$8 sps:$4 sm:$0xff]  }
 0x35b   :  { %5057 = vmatpush2.bf16.msra.mxu0 %v6856_v17 }
 0x35c   :  { %5058 = vmatprep.subr.bf16.mxu0 %v6858_v53  ;;  %v6884_v53 = vld [vmem:[%s11049_s2 + $0x150] ss:$8 sps:$4 sm:$0xff]  }
 0x35d   :  { %5110 = vmatpush2.bf16.msra.mxu1 %v6857_v60 }
 0x35e   :  { %5111 = vmatprep.subr.bf16.mxu1 %v6859_v39 }
 0x35f   :  { %5059 = vmatpush2.bf16.msra.mxu0 %v6860_v45 }
 0x360   :  { %5060 = vmatprep.subr.bf16.mxu0 %v6862_v29  ;;  %v6886_v29 = vld [vmem:[%s11049_s2 + $0x144] ss:$8 sps:$4 sm:$0xff]  }
 0x361   :  { %5112 = vmatpush2.bf16.msra.mxu1 %v6861_v28  ;;  %v6885_v28 = vld [vmem:[%s11049_s2 + $0x250] ss:$8 sps:$4 sm:$0xff]  }
 0x362   :  { %5113 = vmatprep.subr.bf16.mxu1 %v6863_v5 }
 0x363   :  { %5061 = vmatpush2.bf16.msra.mxu0 %v6864_v44  ;;  %v4748_v61 = vpop.f32.mrf.mxu0  ;;  %v6887_v44 = vld [vmem:[%s11049_s2 + $0x244] ss:$8 sps:$4 sm:$0xff]  }
 0x364   :  { %5062 = vmatprep.subr.bf16.mxu0 %v6866_v56 }
 0x365   :  { %5114 = vmatpush2.bf16.msra.mxu1 %v6865_v33  ;;  %v4750_v19 = vpop.f32.mrf.mxu0 }
 0x366   :  { %5115 = vmatprep.subr.bf16.mxu1 %v6867_v14 }
 0x367   :  { %5063 = vmatpush2.bf16.msra.mxu0 %v6868_v8  ;;  %v4801_v32 = vpop.f32.mrf.mxu1  ;;  %v4752_v38 = vpop.f32.mrf.mxu0  ;;  %v6890_v8 = vld [vmem:[%s11049_s2 + $0x134] ss:$8 sps:$4 sm:$0xff]  }
 0x368   :  { %5138 = vmatprep.subr.bf16.mxu0 %v6870_v0  ;;  %v10216_v3 = vadd.f32 %v4801_v32, %v4748_v61  ;;  %v6891_v61 = vld [vmem:[%s11049_s2 + $0x234] ss:$8 sps:$4 sm:$0xff]   ;;  %v6895_v0 = vld [vmem:[%s11049_s2 + $0x224] ss:$8 sps:$4 sm:$0xff]  }
 0x369   :  { %5116 = vmatpush2.bf16.msra.mxu1 %v6869_v15  ;;  %v4803_v55 = vpop.f32.mrf.mxu1  ;;  %v4754_v6 = vpop.f32.mrf.mxu0  ;;  %v6892_v15 = vld [vmem:[%s11049_s2 + $0x130] ss:$8 sps:$4 sm:$0xff]   ;;  %v6898_v32 = vld [vmem:[%s11049_s2 + $0x114] ss:$8 sps:$4 sm:$0xff]  }
 0x36a   :  { %5191 = vmatprep.subr.bf16.mxu1 %v6871_v35  ;;  %5065 = vmatmul.mubr.bf16.vlgmr.msra.gmra.mxu0 %v4698_v1  ;;  %v10221_v63 = vadd.f32 %v4803_v55, %v4750_v19  ;;  %v6893_v1 = vld [vmem:[%s11049_s2 + $0x230] ss:$8 sps:$4 sm:$0xff]   ;;  %v6897_v35 = vld [vmem:[%s11049_s2 + $0x220] ss:$8 sps:$4 sm:$0xff]  }
 0x36b   :  { %5074 = vmatprep.mubr.bf16.mxu0 %v4713_v34  ;;  %5139 = vmatpush1.bf16.msra.mxu0 %v6873_v51  ;;  %v4805_v7 = vpop.f32.mrf.mxu1  ;;  %v6899_v34 = vld [vmem:[%s11049_s2 + $0x214] ss:$8 sps:$4 sm:$0xff]   ;;  %v6901_v19 = vld [vmem:[%s11049_s2 + $0x210] ss:$8 sps:$4 sm:$0xff]   ;;  %v6904_v55 = vld [vmem:[%s11049_s2 + $0x100] ss:$8 sps:$4 sm:$0xff]  }
 0x36c   :  { %5118 = vmatmul.mubr.bf16.vlgmr.msra.gmra.mxu1 %v4602_v18  ;;  %5140 = vmatprep.subr.bf16.mxu0 %v6875_v49  ;;  %v10232_v16 = vadd.f32 %v4805_v7, %v4752_v38  ;;  %v6896_v18 = vld [vmem:[%s11049_s2 + $0x120] ss:$8 sps:$4 sm:$0xff]   ;;  %v6906_v51 = vld [vmem:[%s11049_s2 + $0x1f4] ss:$8 sps:$4 sm:$0xff]   ;;  %v6908_v49 = vld [vmem:[%s11049_s2 + $0x1f0] ss:$8 sps:$4 sm:$0xff]  }
 0x36d   :  { %5127 = vmatprep.mubr.bf16.mxu1 %v4617_v36  ;;  %5192 = vmatpush1.bf16.msra.mxu1 %v6874_v20  ;;  %v4807_v9 = vpop.f32.mrf.mxu1  ;;  %v6903_v36 = vld [vmem:[%s11049_s2 + $0x204] ss:$8 sps:$4 sm:$0xff]   ;;  %v6905_v38 = vld [vmem:[%s11049_s2 + $0x200] ss:$8 sps:$4 sm:$0xff]   ;;  %v6907_v20 = vld [vmem:[%s11049_s2 + $0x2f4] ss:$8 sps:$4 sm:$0xff]  }
 0x36e   :  { %5193 = vmatprep.subr.bf16.mxu1 %v6876_v2  ;;  %v10237_v58 = vadd.f32 %v4807_v9, %v4754_v6  ;;  %v6909_v7 = vld [vmem:[%s11049_s2 + $0x2f0] ss:$8 sps:$4 sm:$0xff]   ;;  %v6910_v6 = vld [vmem:[%s11049_s2 + $0x1e4] ss:$8 sps:$4 sm:$0xff]   ;;  %v6912_v2 = vld [vmem:[%s11049_s2 + $0x1e0] ss:$8 sps:$4 sm:$0xff]  }
 0x36f   :  { %5141 = vmatpush1.bf16.msra.mxu0 %v6877_v54  ;;  %v6913_v9 = vld [vmem:[%s11049_s2 + $0x2e0] ss:$8 sps:$4 sm:$0xff]   ;;  %v6914_v54 = vld [vmem:[%s11049_s2 + $0x1d4] ss:$8 sps:$4 sm:$0xff]  }
 0x370   :  { %v4758_v22 = vpop.f32.mrf.mxu0  ;;  %5142 = vmatprep.subr.bf16.mxu0 %v6880_v42  ;;  %v6922_v42 = vld [vmem:[%s11049_s2 + $0x1b4] ss:$8 sps:$4 sm:$0xff]  }
 0x371   :  { %5194 = vmatpush1.bf16.msra.mxu1 %v6878_v24  ;;  %v6919_v24 = vld [vmem:[%s11049_s2 + $0x2c4] ss:$8 sps:$4 sm:$0xff]  }
 0x372   :  { %v4811_v52 = vpop.f32.mrf.mxu1  ;;  %5075 = vmatmul.mubr.bf16.gmra.mxu0 %v4712_v26  ;;  %5195 = vmatprep.subr.bf16.mxu1 %v6882_v59  ;;  %v4760_v17 = vpop.f32.mrf.mxu0  ;;  %v6915_v26 = vld [vmem:[%s11049_s2 + $0x2d4] ss:$8 sps:$4 sm:$0xff]   ;;  %v6927_v59 = vld [vmem:[%s11049_s2 + $0x2a4] ss:$8 sps:$4 sm:$0xff]  }
 0x373   :  { %v10249_v12 = vadd.f32 %v4811_v52, %v4758_v22  ;;  %5170 = vmatprep.mubr.bf16.mxu0 %v4605_v11  ;;  %5143 = vmatpush1.bf16.msra.mxu0 %v6884_v53  ;;  %v6917_v22 = vld [vmem:[%s11049_s2 + $0x2d0] ss:$8 sps:$4 sm:$0xff]   ;;  %v6923_v52 = vld [vmem:[%s11049_s2 + $0x2b4] ss:$8 sps:$4 sm:$0xff]  }
 0x374   :  { %5128 = vmatmul.mubr.bf16.gmra.mxu1 %v4616_v40  ;;  %v4813_v60 = vpop.f32.mrf.mxu1  ;;  %v4762_v45 = vpop.f32.mrf.mxu0  ;;  %5144 = vmatprep.subr.bf16.mxu0 %v6886_v29  ;;  %v6921_v40 = vld [vmem:[%s11049_s2 + $0x2c0] ss:$8 sps:$4 sm:$0xff]   ;;  %v6925_v11 = vld [vmem:[%s11049_s2 + $0x2b0] ss:$8 sps:$4 sm:$0xff]   ;;  %v6935_v29 = vld [vmem:[%s11049_s2 + $0x284] ss:$8 sps:$4 sm:$0xff]  }
 0x375   :  { %5223 = vmatprep.mubr.bf16.mxu1 %v4607_v13  ;;  %v10254_v39 = vadd.f32 %v4813_v60, %v4760_v17  ;;  %5196 = vmatpush1.bf16.msra.mxu1 %v6885_v28  ;;  %v6929_v13 = vld [vmem:[%s11049_s2 + $0x2a0] ss:$8 sps:$4 sm:$0xff]   ;;  %v6930_v17 = vld [vmem:[%s11049_s2 + $0x194] ss:$8 sps:$4 sm:$0xff]   ;;  %v6932_v53 = vld [vmem:[%s11049_s2 + $0x190] ss:$8 sps:$4 sm:$0xff]  }
 0x376   :  { %v4815_v5 = vpop.f32.mrf.mxu1  ;;  %5197 = vmatprep.subr.bf16.mxu1 %v6887_v44  ;;  %v4764_v56 = vpop.f32.mrf.mxu0  ;;  %v6931_v60 = vld [vmem:[%s11049_s2 + $0x294] ss:$8 sps:$4 sm:$0xff]   ;;  %v6934_v28 = vld [vmem:[%s11049_s2 + $0x184] ss:$8 sps:$4 sm:$0xff]  }
 0x377   :  { %v10265_v33 = vadd.f32 %v4815_v5, %v4762_v45  ;;  %5145 = vmatpush1.bf16.msra.mxu0 %v6888_v21  ;;  %v6933_v45 = vld [vmem:[%s11049_s2 + $0x290] ss:$8 sps:$4 sm:$0xff]   ;;  %v4562_v5 = vld [vmem:[#allocation5 + $0x80] sm:$0xff] }
 0x378   :  { %v4817_v14 = vpop.f32.mrf.mxu1  ;;  %5146 = vmatprep.subr.bf16.mxu0 %v6890_v8  ;;  %v4564_v44 = vld [vmem:[#allocation5 + $0x90] sm:$0xff]  ;;  %v6937_v21 = vld [vmem:[%s11049_s2 + $0x280] ss:$8 sps:$4 sm:$0xff]  }
 0x379   :  { %v10270_v50 = vadd.f32 %v4817_v14, %v4764_v56  ;;  %5198 = vmatpush1.bf16.msra.mxu1 %v6889_v31  ;;  %v6936_v56 = vld [vmem:[%s11049_s2 + $0x180] ss:$8 sps:$4 sm:$0xff]   ;;  %v4548_v14 = vld [vmem:[#allocation5 + $0x10] sm:$0xff] }
 0x37a   :  { %5199 = vmatprep.subr.bf16.mxu1 %v6891_v61  ;;  %v4604_v31 = vpack.c.bf16 %v4562_v5, %v4548_v14  ;;  %v4550_v8 = vld [vmem:[#allocation5 + $0x20] sm:$0xff]  ;;  %v6938_v61 = vld [vmem:[%s11049_s2 + $0x374] ss:$8 sps:$4 sm:$0xff]   ;;  %v6969_v5 = vld [vmem:[%s11049_s2 + $0x310] ss:$8 sps:$4 sm:$0xff]  }
 0x37b   :  { %5147 = vmatpush1.bf16.msra.mxu0 %v6892_v15  ;;  %v4577_v15 = vld [vmem:[#allocation5 + $0xf8] sm:$0xff]  ;;  %v6972_v14 = vld [vmem:[%s11049_s2 + $0x404] ss:$8 sps:$4 sm:$0xff]  }
 0x37c   :  { %5148 = vmatprep.subr.bf16.mxu0 %v6894_v47  ;;  %v6939_v47 = vld [vmem:[%s11049_s2 + $0x474] ss:$8 sps:$4 sm:$0xff]  }
 0x37d   :  { %5200 = vmatpush1.bf16.msra.mxu1 %v6893_v1  ;;  %v4606_v1 = vpack.c.bf16 %v4564_v44, %v4550_v8  ;;  %v6970_v44 = vld [vmem:[%s11049_s2 + $0x410] ss:$8 sps:$4 sm:$0xff]   ;;  %v6975_v8 = vld [vmem:[%s11049_s2 + $0x3f4] ss:$8 sps:$4 sm:$0xff]  }
 0x37e   :  { %5201 = vmatprep.subr.bf16.mxu1 %v6895_v0  ;;  %v6940_v0 = vld [vmem:[#allocation5 + $0x168] sm:$0xff] }
 0x37f   :  { %5149 = vmatpush1.bf16.msra.mxu0 %v6896_v18  ;;  %v4619_v18 = vpack.c.bf16 %v6940_v0, %v4577_v15  ;;  %v6977_v15 = vld [vmem:[%s11049_s2 + $0x3f0] ss:$8 sps:$4 sm:$0xff]   ;;  %v6980_v0 = vld [vmem:[%s11049_s2 + $0x4e4] ss:$8 sps:$4 sm:$0xff]  }
 0x380   :  { %5150 = vmatprep.subr.bf16.mxu0 %v6898_v32  ;;  %v6941_v32 = vld [vmem:[#allocation5 + $0x178] sm:$0xff] }
 0x381   :  { %5202 = vmatpush1.bf16.msra.mxu1 %v6897_v35  ;;  %v4579_v35 = vld [vmem:[#allocation5 + $0x108] sm:$0xff] }
 0x382   :  { %5203 = vmatprep.subr.bf16.mxu1 %v6899_v34  ;;  %v4621_v34 = vpack.c.bf16 %v6941_v32, %v4579_v35  ;;  %v6982_v35 = vld [vmem:[%s11049_s2 + $0x4e0] ss:$8 sps:$4 sm:$0xff]   ;;  %v6983_v32 = vld [vmem:[%s11049_s2 + $0x3d4] ss:$8 sps:$4 sm:$0xff]  }
 0x383   :  { %5151 = vmatpush1.bf16.msra.mxu0 %v6900_v46  ;;  %v6942_v46 = vld [vmem:[%s11049_s2 + $0x370] ss:$8 sps:$4 sm:$0xff]  }
 0x384   :  { %5152 = vmatprep.subr.bf16.mxu0 %v6902_v37  ;;  %v6944_v37 = vld [vmem:[%s11049_s2 + $0x364] ss:$8 sps:$4 sm:$0xff]  }
 0x385   :  { %5204 = vmatpush1.bf16.msra.mxu1 %v6901_v19  ;;  %v6943_v19 = vld [vmem:[%s11049_s2 + $0x470] ss:$8 sps:$4 sm:$0xff]  }
 0x386   :  { %5205 = vmatprep.subr.bf16.mxu1 %v6903_v36  ;;  %v6945_v36 = vld [vmem:[%s11049_s2 + $0x464] ss:$8 sps:$4 sm:$0xff]  }
 0x387   :  { %5153 = vmatpush1.bf16.msra.mxu0 %v6904_v55  ;;  %v4567_v55 = vld [vmem:[#allocation5 + $0xa8] sm:$0xff] }
 0x388   :  { %5154 = vmatprep.subr.bf16.mxu0 %v6906_v51  ;;  %v4569_v51 = vld [vmem:[#allocation5 + $0xb8] sm:$0xff] }
 0x389   :  { %5206 = vmatpush1.bf16.msra.mxu1 %v6905_v38  ;;  %v4576_v38 = vld [vmem:[#allocation5 + $0xf0] sm:$0xff] }
 0x38a   :  { %5207 = vmatprep.subr.bf16.mxu1 %v6907_v20  ;;  %v6946_v20 = vld [vmem:[%s11049_s2 + $0x360] ss:$8 sps:$4 sm:$0xff]  }
 0x38b   :  { %5155 = vmatpush2.bf16.msra.mxu0 %v6908_v49  ;;  %v6947_v49 = vld [vmem:[#allocation5 + $0x160] sm:$0xff] }
 0x38c   :  { %5156 = vmatprep.subr.bf16.mxu0 %v6910_v6  ;;  %v4578_v6 = vld [vmem:[#allocation5 + $0x100] sm:$0xff] }
 0x38d   :  { %5208 = vmatpush2.bf16.msra.mxu1 %v6909_v7  ;;  %v4618_v7 = vpack.c.bf16 %v6947_v49, %v4576_v38  ;;  %v6990_v38 = vld [vmem:[%s11049_s2 + $0x4c0] ss:$8 sps:$4 sm:$0xff]   ;;  %v6993_v49 = vld [vmem:[%s11049_s2 + $0x3b0] ss:$8 sps:$4 sm:$0xff]  }
 0x38e   :  { %5209 = vmatprep.subr.bf16.mxu1 %v6911_v4  ;;  %v4553_v4 = vld [vmem:[#allocation5 + $0x38] sm:$0xff] }
 0x38f   :  { %5157 = vmatpush2.bf16.msra.mxu0 %v6912_v2  ;;  %v6948_v2 = vld [vmem:[%s11049_s2 + $0x460] ss:$8 sps:$4 sm:$0xff]  }
 0x390   :  { %5158 = vmatprep.subr.bf16.mxu0 %v6914_v54 }
 0x391   :  { %5210 = vmatpush2.bf16.msra.mxu1 %v6913_v9  ;;  %v6949_v9 = vld [vmem:[#allocation5 + $0x170] sm:$0xff] }
 0x392   :  { %5211 = vmatprep.subr.bf16.mxu1 %v6915_v26  ;;  %v4620_v54 = vpack.c.bf16 %v6949_v9, %v4578_v6  ;;  %v6950_v26 = vld [vmem:[%s11049_s2 + $0x354] ss:$8 sps:$4 sm:$0xff]   ;;  %v6995_v6 = vld [vmem:[%s11049_s2 + $0x3a4] ss:$8 sps:$4 sm:$0xff]   ;;  %v6998_v9 = vld [vmem:[%s11049_s2 + $0x4a0] ss:$8 sps:$4 sm:$0xff]  }
 0x393   :  { %5159 = vmatpush2.bf16.msra.mxu0 %v6916_v10  ;;  %v4609_v10 = vpack.c.bf16 %v4567_v55, %v4553_v4  ;;  %v6989_v55 = vld [vmem:[%s11049_s2 + $0x3c0] ss:$8 sps:$4 sm:$0xff]   ;;  %v6996_v4 = vld [vmem:[%s11049_s2 + $0x4a4] ss:$8 sps:$4 sm:$0xff]  }
 0x394   :  { %5160 = vmatprep.subr.bf16.mxu0 %v6918_v25  ;;  %v6952_v25 = vld [vmem:[#allocation5 + $0x48] sm:$0xff] }
 0x395   :  { %5212 = vmatpush2.bf16.msra.mxu1 %v6917_v22  ;;  %v6951_v22 = vld [vmem:[%s11049_s2 + $0x454] ss:$8 sps:$4 sm:$0xff]  }
 0x396   :  { %5213 = vmatprep.subr.bf16.mxu1 %v6919_v24  ;;  %v4611_v24 = vpack.c.bf16 %v4569_v51, %v6952_v25  ;;  %v6991_v51 = vld [vmem:[%s11049_s2 + $0x3b4] ss:$8 sps:$4 sm:$0xff]   ;;  %v7003_v25 = vld [vmem:[%s11049_s2 + $0x384] ss:$8 sps:$4 sm:$0xff]  }
 0x397   :  { %5161 = vmatpush2.bf16.msra.mxu0 %v6920_v43  ;;  %v6953_v43 = vld [vmem:[%s11049_s2 + $0x350] ss:$8 sps:$4 sm:$0xff]  }
 0x398   :  { %5162 = vmatprep.subr.bf16.mxu0 %v6922_v42  ;;  %v6955_v42 = vld [vmem:[%s11049_s2 + $0x344] ss:$8 sps:$4 sm:$0xff]  }
 0x399   :  { %5214 = vmatpush2.bf16.msra.mxu1 %v6921_v40  ;;  %v6954_v40 = vld [vmem:[%s11049_s2 + $0x450] ss:$8 sps:$4 sm:$0xff]  }
 0x39a   :  { %5215 = vmatprep.subr.bf16.mxu1 %v6923_v52  ;;  %v6956_v52 = vld [vmem:[%s11049_s2 + $0x444] ss:$8 sps:$4 sm:$0xff]  }
 0x39b   :  { %5163 = vmatpush2.bf16.msra.mxu0 %v6924_v48  ;;  %v6957_v48 = vld [vmem:[%s11049_s2 + $0x340] ss:$8 sps:$4 sm:$0xff]  }
 0x39c   :  { %5164 = vmatprep.subr.bf16.mxu0 %v6926_v57  ;;  %v6959_v57 = vld [vmem:[%s11049_s2 + $0x334] ss:$8 sps:$4 sm:$0xff]  }
 0x39d   :  { %5216 = vmatpush2.bf16.msra.mxu1 %v6925_v11  ;;  %v6958_v11 = vld [vmem:[%s11049_s2 + $0x440] ss:$8 sps:$4 sm:$0xff]  }
 0x39e   :  { %5217 = vmatprep.subr.bf16.mxu1 %v6927_v59  ;;  %v6960_v59 = vld [vmem:[%s11049_s2 + $0x434] ss:$8 sps:$4 sm:$0xff]  }
 0x39f   :  { %5165 = vmatpush2.bf16.msra.mxu0 %v6928_v62  ;;  %v6961_v62 = vld [vmem:[%s11049_s2 + $0x330] ss:$8 sps:$4 sm:$0xff]  }
 0x3a0   :  { %5166 = vmatprep.subr.bf16.mxu0 %v6930_v17  ;;  %v6963_v17 = vld [vmem:[%s11049_s2 + $0x324] ss:$8 sps:$4 sm:$0xff]  }
 0x3a1   :  { %5218 = vmatpush2.bf16.msra.mxu1 %v6929_v13  ;;  %v6962_v13 = vld [vmem:[%s11049_s2 + $0x430] ss:$8 sps:$4 sm:$0xff]  }
 0x3a2   :  { %5219 = vmatprep.subr.bf16.mxu1 %v6931_v60  ;;  %v6964_v60 = vld [vmem:[%s11049_s2 + $0x424] ss:$8 sps:$4 sm:$0xff]  }
 0x3a3   :  { %5167 = vmatpush2.bf16.msra.mxu0 %v6932_v53  ;;  %v6965_v53 = vld [vmem:[%s11049_s2 + $0x320] ss:$8 sps:$4 sm:$0xff]  }
 0x3a4   :  { %5168 = vmatprep.subr.bf16.mxu0 %v6934_v28  ;;  %v6967_v28 = vld [vmem:[%s11049_s2 + $0x314] ss:$8 sps:$4 sm:$0xff]  }
 0x3a5   :  { %5220 = vmatpush2.bf16.msra.mxu1 %v6933_v45  ;;  %v6966_v45 = vld [vmem:[%s11049_s2 + $0x420] ss:$8 sps:$4 sm:$0xff]  }
 0x3a6   :  { %5221 = vmatprep.subr.bf16.mxu1 %v6935_v29  ;;  %v6968_v29 = vld [vmem:[%s11049_s2 + $0x414] ss:$8 sps:$4 sm:$0xff]  }
 0x3a7   :  { %5169 = vmatpush2.bf16.msra.mxu0 %v6936_v56  ;;  %v6971_v56 = vld [vmem:[%s11049_s2 + $0x304] ss:$8 sps:$4 sm:$0xff]  }
 0x3a8   :  { %5244 = vmatprep.subr.bf16.mxu0 %v6938_v61  ;;  %v6976_v61 = vld [vmem:[%s11049_s2 + $0x4f4] ss:$8 sps:$4 sm:$0xff]  }
 0x3a9   :  { %5222 = vmatpush2.bf16.msra.mxu1 %v6937_v21  ;;  %v6973_v21 = vld [vmem:[%s11049_s2 + $0x300] ss:$8 sps:$4 sm:$0xff]  }
 0x3aa   :  { %5297 = vmatprep.subr.bf16.mxu1 %v6939_v47  ;;  %5171 = vmatmul.mubr.bf16.vlgmr.msra.gmra.mxu0 %v4604_v31  ;;  %v6974_v31 = vld [vmem:[%s11049_s2 + $0x400] ss:$8 sps:$4 sm:$0xff]   ;;  %v6979_v47 = vld [vmem:[%s11049_s2 + $0x3e4] ss:$8 sps:$4 sm:$0xff]  }
 0x3ab   :  { %5180 = vmatprep.mubr.bf16.mxu0 %v4619_v18  ;;  %5245 = vmatpush1.bf16.msra.mxu0 %v6942_v46  ;;  %v6981_v18 = vld [vmem:[%s11049_s2 + $0x3e0] ss:$8 sps:$4 sm:$0xff]   ;;  %v6985_v46 = vld [vmem:[%s11049_s2 + $0x3d0] ss:$8 sps:$4 sm:$0xff]  }
 0x3ac   :  { %5224 = vmatmul.mubr.bf16.vlgmr.msra.gmra.mxu1 %v4606_v1  ;;  %5246 = vmatprep.subr.bf16.mxu0 %v6944_v37  ;;  %v6978_v1 = vld [vmem:[%s11049_s2 + $0x4f0] ss:$8 sps:$4 sm:$0xff]   ;;  %v6987_v37 = vld [vmem:[%s11049_s2 + $0x3c4] ss:$8 sps:$4 sm:$0xff]  }
 0x3ad   :  { %5233 = vmatprep.mubr.bf16.mxu1 %v4621_v34  ;;  %5298 = vmatpush1.bf16.msra.mxu1 %v6943_v19  ;;  %v6984_v34 = vld [vmem:[%s11049_s2 + $0x4d4] ss:$8 sps:$4 sm:$0xff]   ;;  %v6986_v19 = vld [vmem:[%s11049_s2 + $0x4d0] ss:$8 sps:$4 sm:$0xff]  }
 0x3ae   :  { %5299 = vmatprep.subr.bf16.mxu1 %v6945_v36  ;;  %v6988_v36 = vld [vmem:[%s11049_s2 + $0x4c4] ss:$8 sps:$4 sm:$0xff]  }
 0x3af   :  { %5247 = vmatpush1.bf16.msra.mxu0 %v6946_v20  ;;  %v6992_v20 = vld [vmem:[%s11049_s2 + $0x4b4] ss:$8 sps:$4 sm:$0xff]  }
 0x3b0   :  { %5248 = vmatprep.subr.bf16.mxu0 %v6950_v26  ;;  %v7000_v26 = vld [vmem:[%s11049_s2 + $0x494] ss:$8 sps:$4 sm:$0xff]  }
 0x3b1   :  { %5300 = vmatpush1.bf16.msra.mxu1 %v6948_v2  ;;  %v6997_v2 = vld [vmem:[%s11049_s2 + $0x3a0] ss:$8 sps:$4 sm:$0xff]  }
 0x3b2   :  { %5181 = vmatmul.mubr.bf16.gmra.mxu0 %v4618_v7  ;;  %5301 = vmatprep.subr.bf16.mxu1 %v6951_v22  ;;  %v6994_v7 = vld [vmem:[%s11049_s2 + $0x4b0] ss:$8 sps:$4 sm:$0xff]  }
 0x3b3   :  { %5276 = vmatprep.mubr.bf16.mxu0 %v4609_v10  ;;  %5249 = vmatpush1.bf16.msra.mxu0 %v6953_v43  ;;  %v7001_v10 = vld [vmem:[%s11049_s2 + $0x390] ss:$8 sps:$4 sm:$0xff]   ;;  %v4566_v43 = vld [vmem:[#allocation5 + $0xa0] sm:$0xff] }
 0x3b4   :  { %5234 = vmatmul.mubr.bf16.gmra.mxu1 %v4620_v54  ;;  %5250 = vmatprep.subr.bf16.mxu0 %v6955_v42  ;;  %v6999_v54 = vld [vmem:[%s11049_s2 + $0x394] ss:$8 sps:$4 sm:$0xff]   ;;  %v7002_v22 = vld [vmem:[%s11049_s2 + $0x490] ss:$8 sps:$4 sm:$0xff]   ;;  %v4595_v42 = vld [vmem:[#allocation5 + $0x188] sm:$0xff] }
 0x3b5   :  { %5329 = vmatprep.mubr.bf16.mxu1 %v4611_v24  ;;  %5302 = vmatpush1.bf16.msra.mxu1 %v6954_v40  ;;  %v7004_v24 = vld [vmem:[%s11049_s2 + $0x484] ss:$8 sps:$4 sm:$0xff]  }
 0x3b6   :  { %5303 = vmatprep.subr.bf16.mxu1 %v6956_v52  ;;  %v4554_v40 = vld [vmem:[#allocation5 + $0x40] sm:$0xff] }
 0x3b7   :  { %5251 = vmatpush1.bf16.msra.mxu0 %v6957_v48  ;;  %v7005_v52 = vld [vmem:[%s11049_s2 + $0x380] ss:$8 sps:$4 sm:$0xff]   ;;  %v4552_v48 = vld [vmem:[#allocation5 + $0x30] sm:$0xff] }
 0x3b8   :  { %5252 = vmatprep.subr.bf16.mxu0 %v6959_v57  ;;  %v7006_v57 = vld [vmem:[%s11049_s2 + $0x480] ss:$8 sps:$4 sm:$0xff]  }
 0x3b9   :  { %5304 = vmatpush1.bf16.msra.mxu1 %v6958_v11  ;;  %v4597_v11 = vld [vmem:[#allocation5 + $0x198] sm:$0xff] }
 0x3ba   :  { %5305 = vmatprep.subr.bf16.mxu1 %v6960_v59  ;;  %v4608_v59 = vpack.c.bf16 %v4566_v43, %v4552_v48  ;;  %v7037_v43 = vld [vmem:[%s11049_s2 + $0x510] ss:$8 sps:$4 sm:$0xff]   ;;  %v7041_v48 = vld [vmem:[%s11049_s2 + $0x500] ss:$8 sps:$4 sm:$0xff]  }
 0x3bb   :  { %5253 = vmatpush1.bf16.msra.mxu0 %v6961_v62  ;;  %v4568_v62 = vld [vmem:[#allocation5 + $0xb0] sm:$0xff] }
 0x3bc   :  { %5254 = vmatprep.subr.bf16.mxu0 %v6963_v17  ;;  %v4581_v17 = vld [vmem:[#allocation5 + $0x118] sm:$0xff] }
 0x3bd   :  { %5306 = vmatpush1.bf16.msra.mxu1 %v6962_v13  ;;  %v7007_v13 = vld [vmem:[%s11049_s2 + $0x574] ss:$8 sps:$4 sm:$0xff]  }
 0x3be   :  { %5307 = vmatprep.subr.bf16.mxu1 %v6964_v60  ;;  %v4610_v60 = vpack.c.bf16 %v4568_v62, %v4554_v40  ;;  %v7038_v40 = vld [vmem:[%s11049_s2 + $0x610] ss:$8 sps:$4 sm:$0xff]  }
 0x3bf   :  { %5255 = vmatpush1.bf16.msra.mxu0 %v6965_v53  ;;  %v7008_v53 = vld [vmem:[%s11049_s2 + $0x674] ss:$8 sps:$4 sm:$0xff]   ;;  %v7045_v62 = vld [vmem:[%s11049_s2 + $0x5f0] ss:$8 sps:$4 sm:$0xff]  }
 0x3c0   :  { %5256 = vmatprep.subr.bf16.mxu0 %v6967_v28  ;;  %v7009_v28 = vld [vmem:[#allocation5 + $0x128] sm:$0xff] }
 0x3c1   :  { %5308 = vmatpush1.bf16.msra.mxu1 %v6966_v45  ;;  %v4623_v45 = vpack.c.bf16 %v4595_v42, %v4581_v17  ;;  %v7039_v42 = vld [vmem:[%s11049_s2 + $0x504] ss:$8 sps:$4 sm:$0xff]  }
 0x3c2   :  { %5309 = vmatprep.subr.bf16.mxu1 %v6968_v29  ;;  %v4625_v29 = vpack.c.bf16 %v4597_v11, %v7009_v28  ;;  %v7042_v11 = vld [vmem:[%s11049_s2 + $0x600] ss:$8 sps:$4 sm:$0xff]   ;;  %v7047_v17 = vld [vmem:[%s11049_s2 + $0x5e4] ss:$8 sps:$4 sm:$0xff]   ;;  %v7051_v28 = vld [vmem:[%s11049_s2 + $0x5d4] ss:$8 sps:$4 sm:$0xff]  }
 0x3c3   :  { %5257 = vmatpush1.bf16.msra.mxu0 %v6969_v5  ;;  %v7010_v5 = vld [vmem:[%s11049_s2 + $0x570] ss:$8 sps:$4 sm:$0xff]  }
 0x3c4   :  { %5258 = vmatprep.subr.bf16.mxu0 %v6971_v56  ;;  %v7012_v56 = vld [vmem:[%s11049_s2 + $0x564] ss:$8 sps:$4 sm:$0xff]  }
 0x3c5   :  { %5310 = vmatpush1.bf16.msra.mxu1 %v6970_v44  ;;  %v7011_v44 = vld [vmem:[%s11049_s2 + $0x670] ss:$8 sps:$4 sm:$0xff]  }
 0x3c6   :  { %5311 = vmatprep.subr.bf16.mxu1 %v6972_v14  ;;  %v4594_v14 = vld [vmem:[#allocation5 + $0x180] sm:$0xff] }
 0x3c7   :  { %5259 = vmatpush1.bf16.msra.mxu0 %v6973_v21  ;;  %v7013_v21 = vld [vmem:[%s11049_s2 + $0x664] ss:$8 sps:$4 sm:$0xff]  }
 0x3c8   :  { %5260 = vmatprep.subr.bf16.mxu0 %v6975_v8  ;;  %v4571_v8 = vld [vmem:[#allocation5 + $0xc8] sm:$0xff] }
 0x3c9   :  { %5312 = vmatpush1.bf16.msra.mxu1 %v6974_v31  ;;  %v4596_v31 = vld [vmem:[#allocation5 + $0x190] sm:$0xff] }
 0x3ca   :  { %5313 = vmatprep.subr.bf16.mxu1 %v6976_v61  ;;  %v4580_v61 = vld [vmem:[#allocation5 + $0x110] sm:$0xff] }
 0x3cb   :  { %5261 = vmatpush2.bf16.msra.mxu0 %v6977_v15  ;;  %v4573_v15 = vld [vmem:[#allocation5 + $0xd8] sm:$0xff] }
 0x3cc   :  { %5262 = vmatprep.subr.bf16.mxu0 %v6979_v47  ;;  %v4622_v47 = vpack.c.bf16 %v4594_v14, %v4580_v61  ;;  %v7056_v14 = vld [vmem:[%s11049_s2 + $0x6c4] ss:$8 sps:$4 sm:$0xff]   ;;  %v7060_v61 = vld [vmem:[%s11049_s2 + $0x6b4] ss:$8 sps:$4 sm:$0xff]  }
 0x3cd   :  { %5314 = vmatpush2.bf16.msra.mxu1 %v6978_v1  ;;  %v7014_v1 = vld [vmem:[%s11049_s2 + $0x560] ss:$8 sps:$4 sm:$0xff]  }
 0x3ce   :  { %5315 = vmatprep.subr.bf16.mxu1 %v6980_v0  ;;  %v7015_v0 = vld [vmem:[%s11049_s2 + $0x660] ss:$8 sps:$4 sm:$0xff]  }
 0x3cf   :  { %5263 = vmatpush2.bf16.msra.mxu0 %v6981_v18  ;;  %v7016_v18 = vld [vmem:[#allocation5 + $0x120] sm:$0xff] }
 0x3d0   :  { %5264 = vmatprep.subr.bf16.mxu0 %v6983_v32  ;;  %v7017_v32 = vld [vmem:[%s11049_s2 + $0x554] ss:$8 sps:$4 sm:$0xff]  }
 0x3d1   :  { %5316 = vmatpush2.bf16.msra.mxu1 %v6982_v35  ;;  %v4624_v35 = vpack.c.bf16 %v4596_v31, %v7016_v18  ;;  %v7058_v31 = vld [vmem:[%s11049_s2 + $0x6c0] ss:$8 sps:$4 sm:$0xff]  }
 0x3d2   :  { %5317 = vmatprep.subr.bf16.mxu1 %v6984_v34  ;;  %v7018_v34 = vld [vmem:[#allocation5 + $0x58] sm:$0xff]  ;;  %v7065_v18 = vld [vmem:[%s11049_s2 + $0x5a0] ss:$8 sps:$4 sm:$0xff]  }
 0x3d3   :  { %5265 = vmatpush2.bf16.msra.mxu0 %v6985_v46  ;;  %v4613_v46 = vpack.c.bf16 %v4571_v8, %v7018_v34  ;;  %v7059_v8 = vld [vmem:[%s11049_s2 + $0x5b4] ss:$8 sps:$4 sm:$0xff]  }
 0x3d4   :  { %5266 = vmatprep.subr.bf16.mxu0 %v6987_v37  ;;  %v7020_v37 = vld [vmem:[#allocation5 + $0x68] sm:$0xff]  ;;  %v7068_v34 = vld [vmem:[%s11049_s2 + $0x694] ss:$8 sps:$4 sm:$0xff]  }
 0x3d5   :  { %5318 = vmatpush2.bf16.msra.mxu1 %v6986_v19  ;;  %v7019_v19 = vld [vmem:[%s11049_s2 + $0x654] ss:$8 sps:$4 sm:$0xff]  }
 0x3d6   :  { %5319 = vmatprep.subr.bf16.mxu1 %v6988_v36  ;;  %v4615_v36 = vpack.c.bf16 %v4573_v15, %v7020_v37  ;;  %v7061_v15 = vld [vmem:[%s11049_s2 + $0x5b0] ss:$8 sps:$4 sm:$0xff]   ;;  %v7071_v37 = vld [vmem:[%s11049_s2 + $0x584] ss:$8 sps:$4 sm:$0xff]  }
 0x3d7   :  { %5267 = vmatpush2.bf16.msra.mxu0 %v6989_v55  ;;  %v7021_v55 = vld [vmem:[%s11049_s2 + $0x550] ss:$8 sps:$4 sm:$0xff]  }
 0x3d8   :  { %5268 = vmatprep.subr.bf16.mxu0 %v6991_v51  ;;  %v7023_v51 = vld [vmem:[%s11049_s2 + $0x544] ss:$8 sps:$4 sm:$0xff]  }
 0x3d9   :  { %5320 = vmatpush2.bf16.msra.mxu1 %v6990_v38  ;;  %v7022_v38 = vld [vmem:[%s11049_s2 + $0x650] ss:$8 sps:$4 sm:$0xff]  }
 0x3da   :  { %5321 = vmatprep.subr.bf16.mxu1 %v6992_v20  ;;  %v7024_v20 = vld [vmem:[%s11049_s2 + $0x644] ss:$8 sps:$4 sm:$0xff]  }
 0x3db   :  { %5269 = vmatpush2.bf16.msra.mxu0 %v6993_v49  ;;  %v7025_v49 = vld [vmem:[%s11049_s2 + $0x540] ss:$8 sps:$4 sm:$0xff]  }
 0x3dc   :  { %5270 = vmatprep.subr.bf16.mxu0 %v6995_v6  ;;  %v7027_v6 = vld [vmem:[%s11049_s2 + $0x534] ss:$8 sps:$4 sm:$0xff]  }
 0x3dd   :  { %5322 = vmatpush2.bf16.msra.mxu1 %v6994_v7  ;;  %v7026_v7 = vld [vmem:[%s11049_s2 + $0x640] ss:$8 sps:$4 sm:$0xff]  }
 0x3de   :  { %5323 = vmatprep.subr.bf16.mxu1 %v6996_v4  ;;  %v7028_v4 = vld [vmem:[%s11049_s2 + $0x634] ss:$8 sps:$4 sm:$0xff]  }
 0x3df   :  { %5271 = vmatpush2.bf16.msra.mxu0 %v6997_v2  ;;  %v7029_v2 = vld [vmem:[%s11049_s2 + $0x530] ss:$8 sps:$4 sm:$0xff]  }
 0x3e0   :  { %5272 = vmatprep.subr.bf16.mxu0 %v6999_v54  ;;  %v7031_v54 = vld [vmem:[%s11049_s2 + $0x524] ss:$8 sps:$4 sm:$0xff]  }
 0x3e1   :  { %5324 = vmatpush2.bf16.msra.mxu1 %v6998_v9  ;;  %v7030_v9 = vld [vmem:[%s11049_s2 + $0x630] ss:$8 sps:$4 sm:$0xff]  }
 0x3e2   :  { %5325 = vmatprep.subr.bf16.mxu1 %v7000_v26  ;;  %v7032_v26 = vld [vmem:[%s11049_s2 + $0x624] ss:$8 sps:$4 sm:$0xff]  }
 0x3e3   :  { %5273 = vmatpush2.bf16.msra.mxu0 %v7001_v10  ;;  %v7033_v10 = vld [vmem:[%s11049_s2 + $0x520] ss:$8 sps:$4 sm:$0xff]  }
 0x3e4   :  { %5274 = vmatprep.subr.bf16.mxu0 %v7003_v25  ;;  %v7035_v25 = vld [vmem:[%s11049_s2 + $0x514] ss:$8 sps:$4 sm:$0xff]  }
 0x3e5   :  { %5326 = vmatpush2.bf16.msra.mxu1 %v7002_v22  ;;  %v7034_v22 = vld [vmem:[%s11049_s2 + $0x620] ss:$8 sps:$4 sm:$0xff]  }
 0x3e6   :  { %5327 = vmatprep.subr.bf16.mxu1 %v7004_v24  ;;  %v7036_v24 = vld [vmem:[%s11049_s2 + $0x614] ss:$8 sps:$4 sm:$0xff]  }
 0x3e7   :  { %5275 = vmatpush2.bf16.msra.mxu0 %v7005_v52  ;;  %v7040_v52 = vld [vmem:[%s11049_s2 + $0x604] ss:$8 sps:$4 sm:$0xff]  }
 0x3e8   :  { %5350 = vmatprep.subr.bf16.mxu0 %v7007_v13  ;;  %v7046_v13 = vld [vmem:[%s11049_s2 + $0x6f0] ss:$8 sps:$4 sm:$0xff]  }
 0x3e9   :  { %5328 = vmatpush2.bf16.msra.mxu1 %v7006_v57  ;;  %v7043_v57 = vld [vmem:[%s11049_s2 + $0x5f4] ss:$8 sps:$4 sm:$0xff]  }
 0x3ea   :  { %5403 = vmatprep.subr.bf16.mxu1 %v7008_v53  ;;  %5277 = vmatmul.mubr.bf16.vlgmr.msra.gmra.mxu0 %v4608_v59  ;;  %v7044_v59 = vld [vmem:[%s11049_s2 + $0x6f4] ss:$8 sps:$4 sm:$0xff]   ;;  %v7049_v53 = vld [vmem:[%s11049_s2 + $0x5e0] ss:$8 sps:$4 sm:$0xff]  }
 0x3eb   :  { %5286 = vmatprep.mubr.bf16.mxu0 %v4623_v45  ;;  %5351 = vmatpush1.bf16.msra.mxu0 %v7010_v5  ;;  %v7050_v45 = vld [vmem:[%s11049_s2 + $0x6e0] ss:$8 sps:$4 sm:$0xff]   ;;  %v7053_v5 = vld [vmem:[%s11049_s2 + $0x5d0] ss:$8 sps:$4 sm:$0xff]  }
 0x3ec   :  { %5330 = vmatmul.mubr.bf16.vlgmr.msra.gmra.mxu1 %v4610_v60  ;;  %5352 = vmatprep.subr.bf16.mxu0 %v7012_v56  ;;  %v7048_v60 = vld [vmem:[%s11049_s2 + $0x6e4] ss:$8 sps:$4 sm:$0xff]  }
 0x3ed   :  { %5339 = vmatprep.mubr.bf16.mxu1 %v4625_v29  ;;  %5404 = vmatpush1.bf16.msra.mxu1 %v7011_v44  ;;  %v7052_v29 = vld [vmem:[%s11049_s2 + $0x6d4] ss:$8 sps:$4 sm:$0xff]   ;;  %v7054_v44 = vld [vmem:[%s11049_s2 + $0x6d0] ss:$8 sps:$4 sm:$0xff]   ;;  %v7055_v56 = vld [vmem:[%s11049_s2 + $0x5c4] ss:$8 sps:$4 sm:$0xff]  }
 0x3ee   :  { %5405 = vmatprep.subr.bf16.mxu1 %v7013_v21  ;;  %v7057_v21 = vld [vmem:[%s11049_s2 + $0x5c0] ss:$8 sps:$4 sm:$0xff]  }
 0x3ef   :  { %5353 = vmatpush1.bf16.msra.mxu0 %v7014_v1  ;;  %v7062_v1 = vld [vmem:[%s11049_s2 + $0x6b0] ss:$8 sps:$4 sm:$0xff]  }
 0x3f0   :  { %5354 = vmatprep.subr.bf16.mxu0 %v7017_v32  ;;  %v7067_v32 = vld [vmem:[%s11049_s2 + $0x594] ss:$8 sps:$4 sm:$0xff]  }
 0x3f1   :  { %5406 = vmatpush1.bf16.msra.mxu1 %v7015_v0  ;;  %v7064_v0 = vld [vmem:[%s11049_s2 + $0x6a4] ss:$8 sps:$4 sm:$0xff]  }
 0x3f2   :  { %5287 = vmatmul.mubr.bf16.gmra.mxu0 %v4622_v47  ;;  %5407 = vmatprep.subr.bf16.mxu1 %v7019_v19  ;;  %v7063_v47 = vld [vmem:[%s11049_s2 + $0x5a4] ss:$8 sps:$4 sm:$0xff]   ;;  %v7070_v19 = vld [vmem:[%s11049_s2 + $0x690] ss:$8 sps:$4 sm:$0xff]  }
 0x3f3   :  { %5382 = vmatprep.mubr.bf16.mxu0 %v4613_v46  ;;  %5355 = vmatpush1.bf16.msra.mxu0 %v7021_v55  ;;  %v7069_v46 = vld [vmem:[%s11049_s2 + $0x590] ss:$8 sps:$4 sm:$0xff]  }
 0x3f4   :  { %5340 = vmatmul.mubr.bf16.gmra.mxu1 %v4624_v35  ;;  %5356 = vmatprep.subr.bf16.mxu0 %v7023_v51  ;;  %v7066_v35 = vld [vmem:[%s11049_s2 + $0x6a0] ss:$8 sps:$4 sm:$0xff]   ;;  %v4556_v55 = vld [vmem:[#allocation5 + $0x50] sm:$0xff] }
 0x3f5   :  { %5435 = vmatprep.mubr.bf16.mxu1 %v4615_v36  ;;  %5408 = vmatpush1.bf16.msra.mxu1 %v7022_v38  ;;  %v7072_v36 = vld [vmem:[%s11049_s2 + $0x684] ss:$8 sps:$4 sm:$0xff]  }
 0x3f6   :  { %5409 = vmatprep.subr.bf16.mxu1 %v7024_v20  ;;  %v4558_v38 = vld [vmem:[#allocation5 + $0x60] sm:$0xff]  ;;  %v4599_v51 = vld [vmem:[#allocation5 + $0x1a8] sm:$0xff] }
 0x3f7   :  { %5357 = vmatpush1.bf16.msra.mxu0 %v7025_v49  ;;  %v7073_v20 = vld [vmem:[%s11049_s2 + $0x580] ss:$8 sps:$4 sm:$0xff]  }
 0x3f8   :  { %5358 = vmatprep.subr.bf16.mxu0 %v7027_v6  ;;  %v4570_v49 = vld [vmem:[#allocation5 + $0xc0] sm:$0xff] }
 0x3f9   :  { %5410 = vmatpush1.bf16.msra.mxu1 %v7026_v7  ;;  %v4601_v7 = vld [vmem:[#allocation5 + $0x1b8] sm:$0xff]  ;;  %v7074_v6 = vld [vmem:[%s11049_s2 + $0x680] ss:$8 sps:$4 sm:$0xff]  }
 0x3fa   :  { %5411 = vmatprep.subr.bf16.mxu1 %v7028_v4  ;;  %v4612_v4 = vpack.c.bf16 %v4570_v49, %v4556_v55 }
 0x3fb   :  { %5359 = vmatpush1.bf16.msra.mxu0 %v7029_v2  ;;  %v4572_v2 = vld [vmem:[#allocation5 + $0xd0] sm:$0xff] }
 0x3fc   :  { %5360 = vmatprep.subr.bf16.mxu0 %v7031_v54  ;;  %v7075_v54 = vld [vmem:[#allocation5 + $0x138] sm:$0xff] }
 0x3fd   :  { %5412 = vmatpush1.bf16.msra.mxu1 %v7030_v9  ;;  %v4614_v9 = vpack.c.bf16 %v4572_v2, %v4558_v38 }
 0x3fe   :  { %5413 = vmatprep.subr.bf16.mxu1 %v7032_v26  ;;  %v4627_v26 = vpack.c.bf16 %v4599_v51, %v7075_v54 }
 0x3ff   :  { %5361 = vmatpush1.bf16.msra.mxu0 %v7033_v10  ;;  %v7076_v10 = vld [vmem:[#allocation5 + $0x148] sm:$0xff] }
 0x400   :  { %5362 = vmatprep.subr.bf16.mxu0 %v7035_v25  ;;  %v4598_v25 = vld [vmem:[#allocation5 + $0x1a0] sm:$0xff] }
 0x401   :  { %5414 = vmatpush1.bf16.msra.mxu1 %v7034_v22  ;;  %v4629_v22 = vpack.c.bf16 %v4601_v7, %v7076_v10 }
 0x402   :  { %5415 = vmatprep.subr.bf16.mxu1 %v7036_v24  ;;  %v4600_v24 = vld [vmem:[#allocation5 + $0x1b0] sm:$0xff] }
 0x403   :  { %5363 = vmatpush1.bf16.msra.mxu0 %v7037_v43  ;;  %v7077_v43 = vld [vmem:[#allocation5 + $0x130] sm:$0xff] }
 0x404   :  { %5364 = vmatprep.subr.bf16.mxu0 %v7039_v42  ;;  %v7078_v42 = vld [vmem:[#allocation5 + $0x140] sm:$0xff] }
 0x405   :  { %5416 = vmatpush1.bf16.msra.mxu1 %v7038_v40  ;;  %v4626_v40 = vpack.c.bf16 %v4598_v25, %v7077_v43 }
 0x406   :  { %5417 = vmatprep.subr.bf16.mxu1 %v7040_v52  ;;  %v4628_v52 = vpack.c.bf16 %v4600_v24, %v7078_v42 }
 0x407   :  { %5365 = vmatpush1.bf16.msra.mxu0 %v7041_v48  ;;  %v10803_v48 = vpop.f32.mrf.mxu0 }
 0x408   :  { %5366 = vmatprep.subr.bf16.mxu0 %v7043_v57 }
 0x409   :  { %5418 = vmatpush1.bf16.msra.mxu1 %v7042_v11  ;;  %v10805_v11 = vpop.f32.mrf.mxu1  ;;  %v10807_v57 = vpop.f32.mrf.mxu0 }
 0x40a   :  { %5419 = vmatprep.subr.bf16.mxu1 %v7044_v59 }
 0x40b   :  { %5367 = vmatpush2.bf16.msra.mxu0 %v7045_v62  ;;  %v10809_v59 = vpop.f32.mrf.mxu1  ;;  %v10811_v62 = vpop.f32.mrf.mxu0 }
 0x40c   :  { %5368 = vmatprep.subr.bf16.mxu0 %v7047_v17 }
 0x40d   :  { %5420 = vmatpush2.bf16.msra.mxu1 %v7046_v13  ;;  %v10813_v13 = vpop.f32.mrf.mxu1  ;;  %v10815_v17 = vpop.f32.mrf.mxu0 }
 0x40e   :  { %5421 = vmatprep.subr.bf16.mxu1 %v7048_v60 }
 0x40f   :  { %5369 = vmatpush2.bf16.msra.mxu0 %v7049_v53  ;;  %v10817_v60 = vpop.f32.mrf.mxu1  ;;  %v10819_v53 = vpop.f32.mrf.mxu0 }
 0x410   :  { %5370 = vmatprep.subr.bf16.mxu0 %v7051_v28 }
 0x411   :  { %5422 = vmatpush2.bf16.msra.mxu1 %v7050_v45  ;;  %v10821_v45 = vpop.f32.mrf.mxu1  ;;  %v10823_v28 = vpop.f32.mrf.mxu0 }
 0x412   :  { %5423 = vmatprep.subr.bf16.mxu1 %v7052_v29 }
 0x413   :  { %5371 = vmatpush2.bf16.msra.mxu0 %v7053_v5  ;;  %v10825_v29 = vpop.f32.mrf.mxu1  ;;  %v10827_v5 = vpop.f32.mrf.mxu0 }
 0x414   :  { %5372 = vmatprep.subr.bf16.mxu0 %v7055_v56 }
 0x415   :  { %5424 = vmatpush2.bf16.msra.mxu1 %v7054_v44  ;;  %v10829_v44 = vpop.f32.mrf.mxu1  ;;  %v10831_v56 = vpop.f32.mrf.mxu0 }
 0x416   :  { %5425 = vmatprep.subr.bf16.mxu1 %v7056_v14 }
 0x417   :  { %5373 = vmatpush2.bf16.msra.mxu0 %v7057_v21  ;;  %v10833_v14 = vpop.f32.mrf.mxu1  ;;  %v4960_v21 = vpop.f32.mrf.mxu0 }
 0x418   :  { %5374 = vmatprep.subr.bf16.mxu0 %v7059_v8 }
 0x419   :  { %5426 = vmatpush2.bf16.msra.mxu1 %v7058_v31  ;;  %v10835_v31 = vpop.f32.mrf.mxu1  ;;  %v4962_v8 = vpop.f32.mrf.mxu0 }
 0x41a   :  { %5427 = vmatprep.subr.bf16.mxu1 %v7060_v61 }
 0x41b   :  { %5375 = vmatpush2.bf16.msra.mxu0 %v7061_v15  ;;  %v10837_v61 = vpop.f32.mrf.mxu1  ;;  %v10839_v15 = vpop.f32.mrf.mxu0 }
 0x41c   :  { %5376 = vmatprep.subr.bf16.mxu0 %v7063_v47 }
 0x41d   :  { %5428 = vmatpush2.bf16.msra.mxu1 %v7062_v1  ;;  %v10841_v1 = vpop.f32.mrf.mxu1  ;;  %v10843_v47 = vpop.f32.mrf.mxu0 }
 0x41e   :  { %5429 = vmatprep.subr.bf16.mxu1 %v7064_v0 }
 0x41f   :  { %5377 = vmatpush2.bf16.msra.mxu0 %v7065_v18  ;;  %v10845_v0 = vpop.f32.mrf.mxu1  ;;  %v10847_v18 = vpop.f32.mrf.mxu0 }
 0x420   :  { %5378 = vmatprep.subr.bf16.mxu0 %v7067_v32 }
 0x421   :  { %5430 = vmatpush2.bf16.msra.mxu1 %v7066_v35  ;;  %v10849_v35 = vpop.f32.mrf.mxu1  ;;  %v10851_v32 = vpop.f32.mrf.mxu0 }
 0x422   :  { %5431 = vmatprep.subr.bf16.mxu1 %v7068_v34 }
 0x423   :  { %5379 = vmatpush2.bf16.msra.mxu0 %v7069_v46  ;;  %v10853_v34 = vpop.f32.mrf.mxu1  ;;  %v10855_v46 = vpop.f32.mrf.mxu0 }
 0x424   :  { %5380 = vmatprep.subr.bf16.mxu0 %v7071_v37 }
 0x425   :  { %5432 = vmatpush2.bf16.msra.mxu1 %v7070_v19  ;;  %v10857_v19 = vpop.f32.mrf.mxu1  ;;  %v10859_v37 = vpop.f32.mrf.mxu0 }
 0x426   :  { %5433 = vmatprep.subr.bf16.mxu1 %v7072_v36 }
 0x427   :  { %5381 = vmatpush2.bf16.msra.mxu0 %v7073_v20  ;;  %v10861_v36 = vpop.f32.mrf.mxu1 }
 0x428   :  { %11067 = vst [vmem:[#allocation11_spill] sm:$0xff] %v10861_v36 }
 0x429   :  { %5434 = vmatpush2.bf16.msra.mxu1 %v7074_v6 }
 0x42a   :  { %5383 = vmatmul.mubr.bf16.vlgmr.msra.gmra.mxu0 %v4612_v4  ;;  %v5066_v55 = vpop.f32.mrf.mxu0 }
 0x42b   :  { %5392 = vmatprep.mubr.bf16.mxu0 %v4627_v26 }
 0x42c   :  { %5436 = vmatmul.mubr.bf16.vlgmr.msra.gmra.mxu1 %v4614_v9  ;;  %v10863_v38 = vpop.f32.mrf.mxu1  ;;  %v5068_v51 = vpop.f32.mrf.mxu0 }
 0x42d   :  { %5445 = vmatprep.mubr.bf16.mxu1 %v4629_v22 }
 0x42e   :  { %v10865_v20 = vpop.f32.mrf.mxu1  ;;  %v10867_v49 = vpop.f32.mrf.mxu0 }
 0x430   :  { %v10869_v7 = vpop.f32.mrf.mxu1  ;;  %v10871_v6 = vpop.f32.mrf.mxu0 }
 0x432   :  { %5393 = vmatmul.mubr.bf16.gmra.mxu0 %v4626_v40  ;;  %v10873_v4 = vpop.f32.mrf.mxu1  ;;  %v10875_v2 = vpop.f32.mrf.mxu0 }
 0x434   :  { %5446 = vmatmul.mubr.bf16.gmra.mxu1 %v4628_v52  ;;  %v10877_v9 = vpop.f32.mrf.mxu1  ;;  %v10879_v54 = vpop.f32.mrf.mxu0 }
 0x435   :  { %11068 = vst [vmem:[#allocation12_spill] sm:$0xff] %v10877_v9 }
 0x436   :  { %v10881_v26 = vpop.f32.mrf.mxu1  ;;  %v10883_v10 = vpop.f32.mrf.mxu0 }
 0x437   :  { %11069 = vst [vmem:[#allocation13_spill] sm:$0xff] %v10881_v26  ;;  %11070 = vst [vmem:[#allocation14_spill] sm:$0xff] %v10883_v10 }
 0x438   :  { %v10885_v22 = vpop.f32.mrf.mxu1  ;;  %v10887_v25 = vpop.f32.mrf.mxu0 }
 0x439   :  { %11071 = vst [vmem:[#allocation15_spill] sm:$0xff] %v10885_v22  ;;  %11072 = vst [vmem:[#allocation16_spill] sm:$0xff] %v10887_v25 }
 0x43a   :  { %v10889_v24 = vpop.f32.mrf.mxu1 }
 0x43b   :  { %11073 = vst [vmem:[#allocation17_spill] sm:$0xff] %v10889_v24 }
 0x46a   :  { %v5172_v43 = vpop.f32.mrf.mxu0 }
 0x46c   :  { %v10891_v40 = vpop.f32.mrf.mxu1  ;;  %v10893_v42 = vpop.f32.mrf.mxu0 }
 0x46e   :  { %v10895_v52 = vpop.f32.mrf.mxu1  ;;  %v10897_v23 = vpop.f32.mrf.mxu0 }
 0x46f   :  { %11074 = vst [vmem:[#allocation18_spill] sm:$0xff] %v10895_v52 }
 0x470   :  { %v10899_v41 = vpop.f32.mrf.mxu1  ;;  %v10901_v30 = vpop.f32.mrf.mxu0 }
 0x471   :  { %11075 = vst [vmem:[#allocation19_spill] sm:$0xff] %v10899_v41  ;;  %11076 = vst [vmem:[#allocation20_spill] sm:$0xff] %v10901_v30 }
 0x472   :  { %v10903_v27 = vpop.f32.mrf.mxu1  ;;  %v10905_v22 = vpop.f32.mrf.mxu0 }
 0x473   :  { %11077 = vst [vmem:[#allocation21_spill] sm:$0xff] %v10903_v27  ;;  %v4855_v27 = vadd.f32 %v10803_v48, %v10216_v3 }
 0x474   :  { %v10907_v25 = vpop.f32.mrf.mxu1  ;;  %v10909_v24 = vpop.f32.mrf.mxu0 }
 0x475   :  { %11078 = vst [vmem:[#allocation22_spill] sm:$0xff] %v10907_v25  ;;  %11079 = vst [vmem:[#allocation23_spill] sm:$0xff] %v10909_v24  ;;  %v4857_v25 = vadd.f32 %v10807_v57, %v10221_v63 }
 0x476   :  { %v10911_v26 = vpop.f32.mrf.mxu1  ;;  %v10913_v9 = vpop.f32.mrf.mxu0 }
 0x477   :  { %11080 = vst [vmem:[#allocation24_spill] sm:$0xff] %v10911_v26  ;;  %11081 = vst [vmem:[#allocation25_spill] sm:$0xff] %v10913_v9  ;;  %v4908_v26 = vadd.f32 %v10805_v11, %v4855_v27  ;;  %v4865_v27 = vadd.f32 %v10819_v53, %v10249_v12 }
 0x478   :  { %v10915_v10 = vpop.f32.mrf.mxu1  ;;  %v10917_v52 = vpop.f32.mrf.mxu0 }
 0x479   :  { %11082 = vst [vmem:[#allocation26_spill] sm:$0xff] %v10915_v10  ;;  %11083 = vst [vmem:[#allocation27_spill] sm:$0xff] %v10917_v52  ;;  %v4859_v10 = vadd.f32 %v10811_v62, %v10232_v16  ;;  %v4861_v52 = vadd.f32 %v10815_v17, %v10237_v58  ;;  %v4961_v3 = vadd.f32 %v4960_v21, %v4908_v26  ;;  %v11086_v26 = vld [vmem:[#allocation11_spill] sm:$0xff] }
 0x47a   :  { %v10919_v36 = vpop.f32.mrf.mxu1  ;;  %v4867_v16 = vadd.f32 %v10823_v28, %v10254_v39  ;;  %v4869_v62 = vadd.f32 %v10827_v5, %v10265_v33  ;;  %v4918_v12 = vadd.f32 %v10821_v45, %v4865_v27 }
 0x47b   :  { %11084 = vst [vmem:[#allocation28_spill] sm:$0xff] %v10919_v36  ;;  %v4910_v36 = vadd.f32 %v10809_v59, %v4857_v25  ;;  %v4914_v11 = vadd.f32 %v10817_v60, %v4861_v52  ;;  %v5014_v59 = vadd.f32 %v10835_v31, %v4961_v3  ;;  %v4871_v60 = vadd.f32 %v10831_v56, %v10270_v50  ;;  %v11089_v52 = vld [vmem:[#allocation20_spill] sm:$0xff] }
 0x47c   :  { %v4920_v39 = vadd.f32 %v10825_v29, %v4867_v16  ;;  %v4922_v33 = vadd.f32 %v10829_v44, %v4869_v62  ;;  %v4971_v28 = vadd.f32 %v10847_v18, %v4918_v12 }
 0x47d   :  { %v4963_v63 = vadd.f32 %v4962_v8, %v4910_v36  ;;  %v4967_v21 = vadd.f32 %v10843_v47, %v4914_v11  ;;  %v5067_v8 = vadd.f32 %v5066_v55, %v5014_v59  ;;  %v4924_v50 = vadd.f32 %v10833_v14, %v4871_v60 }
 0x47e   :  { %v4973_v5 = vadd.f32 %v10851_v32, %v4920_v39  ;;  %v4975_v56 = vadd.f32 %v10855_v46, %v4922_v33  ;;  %v5024_v18 = vadd.f32 %v10849_v35, %v4971_v28  ;;  %v11096_v39 = vld [vmem:[#allocation21_spill] sm:$0xff] }
 0x47f   :  { %v11098_v28 = vld [vmem:[#allocation17_spill] sm:$0xff] }
 0x480   :  { %v5026_v32 = vadd.f32 %v10853_v34, %v4973_v5  ;;  %v5028_v14 = vadd.f32 %v10857_v19, %v4975_v56  ;;  %v5077_v46 = vadd.f32 %v10875_v2, %v5024_v18  ;;  %v11090_v2 = vld [vmem:[#allocation12_spill] sm:$0xff] }
 0x482   :  { %v5130_v27 = vadd.f32 %v11090_v2, %v5077_v46 }
 0x4aa   :  { %v5278_v41 = vpop.f32.mrf.mxu0 }
 0x4ac   :  { %v10923_v30 = vpop.f32.mrf.mxu1  ;;  %v10927_v24 = vpop.f32.mrf.mxu0 }
 0x4ad   :  { %11085 = vst [vmem:[#allocation29_spill] sm:$0xff] %v10923_v30  ;;  %v4912_v30 = vadd.f32 %v10813_v13, %v4859_v10  ;;  %v5016_v13 = vadd.f32 %v10837_v61, %v4963_v63  ;;  %v5020_v61 = vadd.f32 %v10845_v0, %v4967_v21  ;;  %v4977_v0 = vadd.f32 %v10859_v37, %v4924_v50  ;;  %v11087_v10 = vld [vmem:[#allocation14_spill] sm:$0xff]  ;;  %v11095_v21 = vld [vmem:[#allocation23_spill] sm:$0xff] }
 0x4ae   :  { %v10932_v9 = vpop.f32.mrf.mxu1  ;;  %v10937_v48 = vpop.f32.mrf.mxu0  ;;  %v5081_v25 = vadd.f32 %v11087_v10, %v5028_v14 }
 0x4af   :  { %v4965_v58 = vadd.f32 %v10839_v15, %v4912_v30  ;;  %v5069_v53 = vadd.f32 %v5068_v51, %v5016_v13  ;;  %v5120_v15 = vadd.f32 %v10863_v38, %v5067_v8  ;;  %v5073_v44 = vadd.f32 %v10871_v6, %v5020_v61  ;;  %v11099_v61 = vld [vmem:[#allocation25_spill] sm:$0xff] }
 0x4b0   :  { %v10940_v57 = vpop.f32.mrf.mxu1  ;;  %v5284_v17 = vpop.f32.mrf.mxu0  ;;  %v5030_v37 = vadd.f32 %v11086_v26, %v4977_v0  ;;  %v5183_v13 = vadd.f32 %v10905_v22, %v5130_v27  ;;  %v11104_v26 = vld [vmem:[#allocation7_spill] sm:$0xff]  ;;  %v11107_v27 = vld [vmem:[#allocation8_spill] sm:$0xff] }
 0x4b1   :  { %v5018_v30 = vadd.f32 %v10841_v1, %v4965_v58  ;;  %v5122_v1 = vadd.f32 %v10865_v20, %v5069_v53  ;;  %v5173_v47 = vadd.f32 %v5172_v43, %v5120_v15  ;;  %v5079_v20 = vadd.f32 %v10879_v54, %v5026_v32  ;;  %v11088_v43 = vld [vmem:[#allocation18_spill] sm:$0xff]  ;;  %v11091_v54 = vld [vmem:[#allocation13_spill] sm:$0xff]  ;;  %v11094_v58 = vld [vmem:[#allocation15_spill] sm:$0xff] }
 0x4b2   :  { %v10953_v36 = vpop.f32.mrf.mxu1  ;;  %v5288_v31 = vpop.f32.mrf.mxu0  ;;  %v5126_v6 = vadd.f32 %v10873_v4, %v5073_v44  ;;  %v11092_v4 = vld [vmem:[#allocation16_spill] sm:$0xff]  ;;  %v5134_v62 = vadd.f32 %v11094_v58, %v5081_v25  ;;  %v11102_v32 = vld [vmem:[#allocation27_spill] sm:$0xff] }
 0x4b3   :  { %v5071_v45 = vadd.f32 %v10867_v49, %v5018_v30  ;;  %v5175_v51 = vadd.f32 %v10893_v42, %v5122_v1  ;;  %v5226_v35 = vadd.f32 %v10891_v40, %v5173_v47  ;;  %v5132_v16 = vadd.f32 %v11091_v54, %v5079_v20  ;;  %v11093_v40 = vld [vmem:[#allocation19_spill] sm:$0xff]  ;;  %v11100_v1 = vld [vmem:[#allocation22_spill] sm:$0xff]  ;;  %v11101_v47 = vld [vmem:[#allocation24_spill] sm:$0xff] }
 0x4b4   :  { %v10966_v29 = vpop.f32.mrf.mxu1  ;;  %v5290_v55 = vpop.f32.mrf.mxu0  ;;  %v5179_v3 = vadd.f32 %v11089_v52, %v5126_v6  ;;  %v5083_v11 = vadd.f32 %v11092_v4, %v5030_v37  ;;  %v11097_v60 = vld [vmem:[#allocation29_spill] sm:$0xff]  ;;  %v5187_v15 = vadd.f32 %v11099_v61, %v5134_v62  ;;  %v5236_v44 = vadd.f32 %v11100_v1, %v5183_v13  ;;  %v11103_v20 = vld [vmem:[#allocation26_spill] sm:$0xff] }
 0x4b5   :  { %v5124_v38 = vadd.f32 %v10869_v7, %v5071_v45  ;;  %v5228_v42 = vadd.f32 %v11088_v43, %v5175_v51  ;;  %v5279_v19 = vadd.f32 %v5278_v41, %v5226_v35  ;;  %v5185_v8 = vadd.f32 %v11095_v21, %v5132_v16 }
 0x4b6   :  { %v5343_v49 = vpop.f32.mrf.mxu1  ;;  %v5292_v7 = vpop.f32.mrf.mxu0  ;;  %v5232_v41 = vadd.f32 %v11096_v39, %v5179_v3  ;;  %v5136_v5 = vadd.f32 %v11098_v28, %v5083_v11  ;;  %v5240_v6 = vadd.f32 %v11103_v20, %v5187_v15  ;;  %v5289_v35 = vadd.f32 %v5288_v31, %v5236_v44 }
 0x4b7   :  { %v5177_v34 = vadd.f32 %v10897_v23, %v5124_v38  ;;  %v5281_v23 = vadd.f32 %v10927_v24, %v5228_v42  ;;  %v5332_v30 = vadd.f32 %v11097_v60, %v5279_v19  ;;  %v5238_v18 = vadd.f32 %v11101_v47, %v5185_v8  ;;  %v11105_v42 = vld [vmem:[#allocation28_spill] sm:$0xff] }
 0x4b8   :  { %v5345_v63 = vpop.f32.mrf.mxu1  ;;  %v5294_v12 = vpop.f32.mrf.mxu0  ;;  %v5285_v50 = vadd.f32 %v5284_v17, %v5232_v41  ;;  %v5189_v0 = vadd.f32 %v11102_v32, %v5136_v5  ;;  %v5293_v3 = vadd.f32 %v5292_v7, %v5240_v6 }
 0x4b9   :  { %v5230_v59 = vadd.f32 %v11093_v40, %v5177_v34  ;;  %v5334_v24 = vadd.f32 %v10932_v9, %v5281_v23  ;;  %v5291_v34 = vadd.f32 %v5290_v55, %v5238_v18  ;;  %v5342_v55 = vadd.f32 %v10966_v29, %v5289_v35  ;;  %v11108_v23 = vld [vmem:[#allocation10_spill] sm:$0xff] }
 0x4ba   :  { %v5347_v33 = vpop.f32.mrf.mxu1  ;;  %v5338_v17 = vadd.f32 %v10953_v36, %v5285_v50  ;;  %v5242_v52 = vadd.f32 %v11105_v42, %v5189_v0  ;;  %v5346_v21 = vadd.f32 %v5345_v63, %v5293_v3 }
 0x4bb   :  { %v5283_v53 = vadd.f32 %v10937_v48, %v5230_v59  ;;  %v5344_v11 = vadd.f32 %v5343_v49, %v5291_v34 }
 0x4bc   :  { %v5295_v36 = vadd.f32 %v5294_v12, %v5242_v52 }
 0x4bd   :  { %v5336_v48 = vadd.f32 %v10940_v57, %v5283_v53  ;;  %v11106_v57 = vld [vmem:[#allocation9_spill] sm:$0xff] }
 0x4ea   :  { %v5384_v45 = vpop.f32.mrf.mxu0 }
 0x4eb   :  { %v5385_v56 = vadd.f32 %v5384_v45, %v5332_v30  ;;  %v5348_v30 = vadd.f32 %v5347_v33, %v5295_v36 }
 0x4ec   :  { %v5437_v22 = vpop.f32.mrf.mxu1  ;;  %v5386_v38 = vpop.f32.mrf.mxu0 }
 0x4ed   :  { %v5438_v51 = vadd.f32 %v5437_v22, %v5385_v56  ;;  %v5387_v14 = vadd.f32 %v5386_v38, %v5334_v24 }
 0x4ee   :  { %v5439_v46 = vpop.f32.mrf.mxu1  ;;  %v5388_v9 = vpop.f32.mrf.mxu0 }
 0x4ef   :  { %v5456_v37 = vadd.f32 %v5438_v51, %v11104_v26  ;;  %v5440_v10 = vadd.f32 %v5439_v46, %v5387_v14  ;;  %v5389_v25 = vadd.f32 %v5388_v9, %v5336_v48 }
 0x4f0   :  { %v5441_v43 = vpop.f32.mrf.mxu1  ;;  %v5390_v19 = vpop.f32.mrf.mxu0 }
 0x4f1   :  { %v5464_v2 = vadd.f32 %v5456_v37, %v11106_v57  ;;  %v5457_v54 = vadd.f32 %v5440_v10, %v11107_v27  ;;  %v5442_v16 = vadd.f32 %v5441_v43, %v5389_v25  ;;  %v5391_v4 = vadd.f32 %v5390_v19, %v5338_v17 }
 0x4f2   :  { %v5443_v31 = vpop.f32.mrf.mxu1  ;;  %v5394_v40 = vpop.f32.mrf.mxu0 }
 0x4f3   :  { %v5472_v59 = vmax.f32 %v5464_v2, 0.0  ;;  %v5465_v58 = vadd.f32 %v5457_v54, %v11108_v23  ;;  %v5458_v62 = vadd.f32 %v5442_v16, %v11104_v26  ;;  %v5444_v13 = vadd.f32 %v5443_v31, %v5391_v4 }
 0x4f4   :  { %v5447_v7 = vpop.f32.mrf.mxu1  ;;  %v5395_v8 = vadd.f32 %v5394_v40, %v5342_v55  ;;  %v5396_v39 = vpop.f32.mrf.mxu0 }
 0x4f5   :  { %5480 = vst [vmem:[%s11054_s5] sm:$0xff] %v5472_v59  ;;  %v5473_v41 = vmax.f32 %v5465_v58, 0.0  ;;  %v5466_v29 = vadd.f32 %v5458_v62, %v11106_v57  ;;  %v5459_v49 = vadd.f32 %v5444_v13, %v11107_v27  ;;  %v5397_v12 = vadd.f32 %v5396_v39, %v5344_v11 }
 0x4f6   :  { %v5449_v60 = vpop.f32.mrf.mxu1  ;;  %v5448_v53 = vadd.f32 %v5447_v7, %v5395_v8  ;;  %v5398_v28 = vpop.f32.mrf.mxu0 }
 0x4f7   :  { %5481 = vst [vmem:[%s11054_s5 + $0x8] sm:$0xff] %v5473_v41  ;;  %v5474_v63 = vmax.f32 %v5466_v29, 0.0  ;;  %v5467_v5 = vadd.f32 %v5459_v49, %v11108_v23  ;;  %v5450_v61 = vadd.f32 %v5449_v60, %v5397_v12  ;;  %v5399_v15 = vadd.f32 %v5398_v28, %v5346_v21 }
 0x4f8   :  { %v5451_v45 = vpop.f32.mrf.mxu1  ;;  %v5460_v24 = vadd.f32 %v5448_v53, %v11104_v26  ;;  %v5400_v50 = vpop.f32.mrf.mxu0 }
 0x4f9   :  { %5482 = vst [vmem:[%s11054_s5 + $0x10] sm:$0xff] %v5474_v63  ;;  %v5475_v33 = vmax.f32 %v5467_v5, 0.0  ;;  %v5461_v56 = vadd.f32 %v5450_v61, %v11107_v27  ;;  %v5452_v22 = vadd.f32 %v5451_v45, %v5399_v15  ;;  %v5401_v1 = vadd.f32 %v5400_v50, %v5348_v30 }
 0x4fa   :  { %v5468_v44 = vadd.f32 %v5460_v24, %v11106_v57  ;;  %v5453_v47 = vpop.f32.mrf.mxu1 }
 0x4fb   :  { %5483 = vst [vmem:[%s11054_s5 + $0x18] sm:$0xff] %v5475_v33  ;;  %v5469_v18 = vadd.f32 %v5461_v56, %v11108_v23  ;;  %v5462_v32 = vadd.f32 %v5452_v22, %v11104_v26  ;;  %v5454_v0 = vadd.f32 %v5453_v47, %v5401_v1 }
 0x4fc   :  { %v5476_v38 = vmax.f32 %v5468_v44, 0.0 }
 0x4fd   :  { %v5477_v48 = vmax.f32 %v5469_v18, 0.0  ;;  %v5470_v51 = vadd.f32 %v5462_v32, %v11106_v57  ;;  %v5463_v14 = vadd.f32 %v5454_v0, %v11107_v27 }
 0x4fe   :  { %5484 = vst [vmem:[%s11054_s5 + $0x20] sm:$0xff] %v5476_v38 }
 0x4ff   :  { %5485 = vst [vmem:[%s11054_s5 + $0x28] sm:$0xff] %v5477_v48  ;;  %v5478_v46 = vmax.f32 %v5470_v51, 0.0  ;;  %v5471_v20 = vadd.f32 %v5463_v14, %v11108_v23 }
 0x501   :  { %5486 = vst [vmem:[%s11054_s5 + $0x30] sm:$0xff] %v5478_v46  ;;  %v5479_v6 = vmax.f32 %v5471_v20, 0.0 }
 0x503   :  { %5487 = vst [vmem:[%s11054_s5 + $0x38] sm:$0xff] %v5479_v6 }

</bundles_post_ra>
